<compile_context>
chip_gen: v6e
topology: v6e:2x2x1
jax: 0.10.0
libtpu: 0.0.40
codegen_flags: <defaults>
</compile_context>

<pallas_src>
import functools

import jax
import jax.numpy as jnp
from jax import lax
from jax.experimental import pallas as pl
from jax.experimental.pallas import tpu as pltpu

BN_EPS = 1e-3                      # nn.BatchNorm2d(..., eps=0.001)


# ----------------------------------------------------------------------------
# Hardware-aware VMEM limit (review: derive from get_tpu_info, not a constant)
# ----------------------------------------------------------------------------
def _vmem_limit_bytes():
    try:
        cap = int(pltpu.get_tpu_info().vmem_capacity_bytes)
        return int(min(max(cap - 16 * 1024 * 1024, 32 * 1024 * 1024),
                       112 * 1024 * 1024))
    except Exception:                       # unknown chip -> conservative, always valid
        return 32 * 1024 * 1024


# ----------------------------------------------------------------------------
# BatchNorm folding / weight preparation (plain JAX, runs once under jit)
# ----------------------------------------------------------------------------
def _fold_bn(p):
    scale = p["gamma"] / jnp.sqrt(p["var"] + BN_EPS)
    bias = p["beta"] - p["mean"] * scale
    w = p["w"] * scale[:, None, None, None]          # (Cout, Cin, KH, KW), f32
    return w, bias


def _taps_1d(params, name):
    """BN-folded (7, Cin, Cout) taps for a 1x7 (along W) or 7x1 (along H) conv."""
    w, b = _fold_bn(params[name])
    kh = w.shape[2]
    if kh == 1:                                       # 1x7
        wt = jnp.transpose(w[:, :, 0, :], (2, 1, 0))
    else:                                             # 7x1
        wt = jnp.transpose(w[:, :, :, 0], (2, 1, 0))
    return wt, b


# ----------------------------------------------------------------------------
# The fused InceptionC kernel (one grid step == one padded image)
# ----------------------------------------------------------------------------
def _make_inception_c_kernel(H, W, Wp, c1x1, c7, couts, out_dtype):
    band_lo = 3 * Wp                 # first padded-slab row with a valid h
    band_len = H * Wp                # all rows whose h is valid (w halo masked)
    off_b1 = 0
    off_b7 = off_b1 + couts[0]
    off_bd = off_b7 + couts[1]
    off_bp = off_bd + couts[2]

    def kernel(x_ref, mask_ref, wh_ref, bh_ref, wcc_ref, bcc_ref,
               wco_ref, bco_ref, wpool_ref, bpool_ref,
               o_ref, buf0, buf1, buf2):
        cdtype = buf0.dtype
        mask = mask_ref[...]                                   # (band_len, 1) f32

        def conv7(src_ref, w_ref, wi, b_ref, bi, shift):
            """7-tap BN-folded conv + ReLU over the valid-H band (f32 accumulation)."""
            base = band_lo - 3 * shift
            acc = jnp.dot(src_ref[pl.ds(base, band_len), :], w_ref[wi, 0],
                          preferred_element_type=jnp.float32)
            for t in range(1, 7):                              # static unroll
                acc = acc + jnp.dot(
                    src_ref[pl.ds(base + t * shift, band_len), :], w_ref[wi, t],
                    preferred_element_type=jnp.float32)
            return jnp.maximum(acc + b_ref[bi], 0.0)           # (band_len, cout) f32

        def store_chain(dst_ref, y):
            # Chain intermediates live on the padded grid; masking keeps the zero halo
            # (== the next conv's implicit "same" zero padding) intact.
            dst_ref[pl.ds(band_lo, band_len), :] = (y * mask).astype(cdtype)

        def write_branch(val_f32, c0, cout):
            # Scatter the valid HxW positions of the band straight into this branch's
            # channel slice of the (H*W, Cout_total) output block (no HBM concat).
            for h in range(H):
                o_ref[pl.ds(h * W, W), pl.ds(c0, cout)] = (
                    val_f32[h * Wp + 3: h * Wp + 3 + W, :].astype(out_dtype))

        # Halo rows of the scratch buffers must be zero before first use; every later
        # write is masked, so the zero-halo invariant holds across layers / grid steps.
        buf0[...] = jnp.zeros_like(buf0)
        buf1[...] = jnp.zeros_like(buf1)
        buf2[...] = jnp.zeros_like(buf2)

        # -- fused 1x1 heads: branch1x1 | branch7x7_1 | branch7x7dbl_1 (one matmul) --
        heads = jnp.dot(x_ref[pl.ds(band_lo, band_len), :], wh_ref[...],
                        preferred_element_type=jnp.float32)
        heads = jnp.maximum(heads + bh_ref[...], 0.0)
        write_branch(heads[:, 0:c1x1], off_b1, couts[0])
        store_chain(buf0, heads[:, c1x1:c1x1 + c7])            # branch7x7 head
        store_chain(buf1, heads[:, c1x1 + c7:c1x1 + 2 * c7])   # branch7x7dbl head

        # -- branch7x7: 1x7 (shift 1) -> 7x1 (shift Wp), intermediates stay in VMEM --
        store_chain(buf2, conv7(buf0, wcc_ref, 0, bcc_ref, 0, 1))
        write_branch(conv7(buf2, wco_ref, 0, bco_ref, 0, Wp), off_b7, couts[1])

        # -- branch7x7dbl: 7x1 -> 1x7 -> 7x1 -> 1x7 --
        store_chain(buf0, conv7(buf1, wcc_ref, 1, bcc_ref, 1, Wp))
        store_chain(buf1, conv7(buf0, wcc_ref, 2, bcc_ref, 2, 1))
        store_chain(buf0, conv7(buf1, wcc_ref, 3, bcc_ref, 3, Wp))
        write_branch(conv7(buf0, wco_ref, 1, bco_ref, 1, 1), off_bd, couts[2])

        # -- branch_pool: 3x3/s1/p1 avg pool (1/9 folded into W) + 1x1 conv + BN + ReLU
        s9 = None
        for dh in range(3):
            for dw in range(3):
                sl = x_ref[pl.ds(band_lo + (dh - 1) * Wp + (dw - 1), band_len), :]
                sl = sl.astype(jnp.float32)
                s9 = sl if s9 is None else s9 + sl
        bpv = jnp.dot(s9.astype(cdtype), wpool_ref[...],
                      preferred_element_type=jnp.float32)
        bpv = jnp.maximum(bpv + bpool_ref[...], 0.0)
        write_branch(bpv, off_bp, couts[3])

    return kernel


# ----------------------------------------------------------------------------
# Public forward (NCHW in / NCHW out)
# ----------------------------------------------------------------------------
def inception_c_forward(x_nchw, params, *, compute_dtype=jnp.bfloat16):
    n, cin, h, w = x_nchw.shape
    c7 = params["branch7x7_1"]["w"].shape[0]
    c1x1 = params["branch1x1"]["w"].shape[0]
    cb7 = params["branch7x7_3"]["w"].shape[0]
    cbd = params["branch7x7dbl_5"]["w"].shape[0]
    cpool = params["branch_pool"]["w"].shape[0]
    couts = (c1x1, cb7, cbd, cpool)
    c_out = sum(couts)

    hp, wp = h + 6, w + 6
    m = hp * wp
    band_len = h * wp

    # NCHW -> NHWC, pad the spatial halo (3 each side) ONCE, flatten the spatial grid.
    x = jnp.transpose(x_nchw, (0, 2, 3, 1))
    x = jnp.pad(x, ((0, 0), (3, 3), (3, 3), (0, 0))).astype(compute_dtype)
    x = x.reshape(n, m, cin)

    # Valid-column mask for band rows (all band rows already have a valid h).
    col = jnp.arange(band_len, dtype=jnp.int32) % wp
    mask = ((col >= 3) & (col < 3 + w)).astype(jnp.float32)[:, None]

    # ---- BN-folded, branch-fused weights ------------------------------------
    w1, b1 = _fold_bn(params["branch1x1"])
    w71, b71 = _fold_bn(params["branch7x7_1"])
    wd1, bd1 = _fold_bn(params["branch7x7dbl_1"])
    w_heads = jnp.concatenate(
        [w1[:, :, 0, 0].T, w71[:, :, 0, 0].T, wd1[:, :, 0, 0].T], axis=1)
    b_heads = jnp.concatenate([b1, b71, bd1])[None, :]

    w_b72, b_b72 = _taps_1d(params, "branch7x7_2")     # 1x7  c7 -> c7
    w_bd2, b_bd2 = _taps_1d(params, "branch7x7dbl_2")  # 7x1  c7 -> c7
    w_bd3, b_bd3 = _taps_1d(params, "branch7x7dbl_3")  # 1x7  c7 -> c7
    w_bd4, b_bd4 = _taps_1d(params, "branch7x7dbl_4")  # 7x1  c7 -> c7
    w7cc = jnp.stack([w_b72, w_bd2, w_bd3, w_bd4], axis=0)              # (4,7,c7,c7)
    b7cc = jnp.stack([b_b72, b_bd2, b_bd3, b_bd4], axis=0)[:, None, :]  # (4,1,c7)

    w_b73, b_b73 = _taps_1d(params, "branch7x7_3")     # 7x1  c7 -> 192
    w_bd5, b_bd5 = _taps_1d(params, "branch7x7dbl_5")  # 1x7  c7 -> 192
    w7co = jnp.stack([w_b73, w_bd5], axis=0)                            # (2,7,c7,192)
    b7co = jnp.stack([b_b73, b_bd5], axis=0)[:, None, :]                # (2,1,192)

    wpk, bpk = _fold_bn(params["branch_pool"])
    w_pool = wpk[:, :, 0, 0].T * (1.0 / 9.0)                            # avgpool folded
    b_pool = bpk[None, :]

    cdt = compute_dtype
    w_heads = w_heads.astype(cdt)
    w7cc = w7cc.astype(cdt)
    w7co = w7co.astype(cdt)
    w_pool = w_pool.astype(cdt)
    b_heads = b_heads.astype(jnp.float32)
    b7cc = b7cc.astype(jnp.float32)
    b7co = b7co.astype(jnp.float32)
    b_pool = b_pool.astype(jnp.float32)

    kernel = _make_inception_c_kernel(h, w, wp, c1x1, c7, couts, cdt)

    out = pl.pallas_call(
        kernel,
        out_shape=jax.ShapeDtypeStruct((n, h * w, c_out), cdt),
        grid=(n,),                                       # >= 2 (batch) grid steps
        in_specs=[
            pl.BlockSpec((None, m, cin), lambda i: (i, 0, 0)),   # streamed per image
            pl.BlockSpec(mask.shape, lambda i: (0, 0)),          # resident
            pl.BlockSpec(w_heads.shape, lambda i: (0, 0)),       # resident weights
            pl.BlockSpec(b_heads.shape, lambda i: (0, 0)),
            pl.BlockSpec(w7cc.shape, lambda i: (0, 0, 0, 0)),
            pl.BlockSpec(b7cc.shape, lambda i: (0, 0, 0)),
            pl.BlockSpec(w7co.shape, lambda i: (0, 0, 0, 0)),
            pl.BlockSpec(b7co.shape, lambda i: (0, 0, 0)),
            pl.BlockSpec(w_pool.shape, lambda i: (0, 0)),
            pl.BlockSpec(b_pool.shape, lambda i: (0, 0)),
        ],
        out_specs=pl.BlockSpec((None, h * w, c_out), lambda i: (i, 0, 0)),
        scratch_shapes=[pltpu.VMEM((m, c7), cdt) for _ in range(3)],
        compiler_params=pltpu.CompilerParams(
            dimension_semantics=("parallel",),           # megacore split on v7x
            vmem_limit_bytes=_vmem_limit_bytes(),
        ),
    )(x, mask, w_heads, b_heads, w7cc, b7cc, w7co, b7co, w_pool, b_pool)

    out = out.reshape(n, h, w, c_out)
    return jnp.transpose(out, (0, 3, 1, 2))              # NHWC -> NCHW


# ----------------------------------------------------------------------------
# Parameters
# ----------------------------------------------------------------------------
def _make_basic_conv_params(key, cin, cout, kh, kw):
    k1, k2, k3, k4, k5 = jax.random.split(key, 5)
    return dict(
        w=jax.random.normal(k1, (cout, cin, kh, kw), jnp.float32) * 0.1,
        gamma=jax.random.uniform(k2, (cout,), jnp.float32, 0.5, 1.5),
        beta=jax.random.normal(k3, (cout,), jnp.float32) * 0.1,
        mean=jax.random.normal(k4, (cout,), jnp.float32) * 0.1,
        var=jax.random.uniform(k5, (cout,), jnp.float32, 0.5, 1.5),
    )


def init_inception_c_params(key, in_channels, channels_7x7):
    c7 = channels_7x7
    layers = [
        ("branch1x1",      in_channels, 192, 1, 1),
        ("branch7x7_1",    in_channels, c7,  1, 1),
        ("branch7x7_2",    c7,          c7,  1, 7),
        ("branch7x7_3",    c7,          192, 7, 1),
        ("branch7x7dbl_1", in_channels, c7,  1, 1),
        ("branch7x7dbl_2", c7,          c7,  7, 1),
        ("branch7x7dbl_3", c7,          c7,  1, 7),
        ("branch7x7dbl_4", c7,          c7,  7, 1),
        ("branch7x7dbl_5", c7,          192, 1, 7),
        ("branch_pool",    in_channels, 192, 1, 1),
    ]
    keys = jax.random.split(key, len(layers))
    return {name: _make_basic_conv_params(k, cin, cout, kh, kw)
            for k, (name, cin, cout, kh, kw) in zip(keys, layers)}


# ----------------------------------------------------------------------------
# Pure-JAX reference (correctness checking only)
# ----------------------------------------------------------------------------
def _basic_conv_ref(x_nchw, p, precision):
    kh, kw = p["w"].shape[2], p["w"].shape[3]
    ph, pw = (kh - 1) // 2, (kw - 1) // 2
    y = lax.conv_general_dilated(
        x_nchw, p["w"], window_strides=(1, 1), padding=((ph, ph), (pw, pw)),
        dimension_numbers=("NCHW", "OIHW", "NCHW"), precision=precision)
    scale = p["gamma"] / jnp.sqrt(p["var"] + BN_EPS)
    bias = p["beta"] - p["mean"] * scale
    y = y * scale[None, :, None, None] + bias[None, :, None, None]
    return jnp.maximum(y, 0.0)


def _inception_c_ref(x, params, precision=lax.Precision.HIGHEST):
    b1 = _basic_conv_ref(x, params["branch1x1"], precision)
    b7 = _basic_conv_ref(x, params["branch7x7_1"], precision)
    b7 = _basic_conv_ref(b7, params["branch7x7_2"], precision)
    b7 = _basic_conv_ref(b7, params["branch7x7_3"], precision)
    bd = _basic_conv_ref(x, params["branch7x7dbl_1"], precision)
    bd = _basic_conv_ref(bd, params["branch7x7dbl_2"], precision)
    bd = _basic_conv_ref(bd, params["branch7x7dbl_3"], precision)
    bd = _basic_conv_ref(bd, params["branch7x7dbl_4"], precision)
    bd = _basic_conv_ref(bd, params["branch7x7dbl_5"], precision)
    N, C, H, W = x.shape
    xp = jnp.pad(x, ((0, 0), (0, 0), (1, 1), (1, 1)))
    bp = sum(xp[:, :, dh:dh + H, dw:dw + W] for dh in range(3) for dw in range(3)) / 9.0
    bp = _basic_conv_ref(bp, params["branch_pool"], precision)
    return jnp.concatenate([b1, b7, bd, bp], axis=1)


# ----------------------------------------------------------------------------
if __name__ == "__main__":
    N, Cin, H, W = 2, 16, 8, 8       # small NCHW input (real block: 768ch, 17x17)
    channels_7x7 = 8

    key = jax.random.PRNGKey(0)
    kx, kp = jax.random.split(key)
    x = jax.random.normal(kx, (N, Cin, H, W), jnp.float32)
    params = init_inception_c_params(kp, Cin, channels_7x7)

    ref_hi = _inception_c_ref(x, params, lax.Precision.HIGHEST)
    ref_lo = _inception_c_ref(x, params, lax.Precision.DEFAULT)
    # Baseline: error introduced by the platform's default matmul precision itself.
    baseline = float(jnp.max(jnp.abs(ref_lo - ref_hi)))

    # f32 path: tight, precision-aware tolerance.
    fwd_f32 = jax.jit(functools.partial(inception_c_forward,
                                        compute_dtype=jnp.float32))
    out_f32 = jax.block_until_ready(fwd_f32(x, params))
    assert out_f32.shape == (N, 192 * 4, H, W), out_f32.shape
    err_f32 = float(jnp.max(jnp.abs(out_f32 - ref_hi)))
    tol_f32 = max(5e-3, 4.0 * baseline)
    if not err_f32 < tol_f32:
        raise AssertionError(f"f32 mismatch vs reference: {err_f32} >= {tol_f32}")

    # bf16 path (the MXU-rate configuration used at real sizes).
    fwd_bf16 = jax.jit(functools.partial(inception_c_forward,
                                         compute_dtype=jnp.bfloat16))
    out_bf16 = jax.block_until_ready(fwd_bf16(x, params))
    assert out_bf16.shape == (N, 192 * 4, H, W), out_bf16.shape
    rel_bf16 = float(jnp.max(jnp.abs(out_bf16.astype(jnp.float32) - ref_hi)
                             / (jnp.abs(ref_hi) + 1.0)))
    if not rel_bf16 < 6e-2:
        raise AssertionError(f"bf16 mismatch vs reference: max rel err {rel_bf16}")

    print("KERNEL_OK")
</pallas_src>

<mosaic_0001>
module attributes {stable_mosaic.version = 11 : i64} {
  func.func @kernel(%arg0: i32, %arg1: memref<1x196x16xf32, #tpu.memory_space<vmem>>, %arg2: memref<112x1xf32, #tpu.memory_space<vmem>>, %arg3: memref<16x208xf32, #tpu.memory_space<vmem>>, %arg4: memref<1x208xf32, #tpu.memory_space<vmem>>, %arg5: memref<4x7x8x8xf32, #tpu.memory_space<vmem>>, %arg6: memref<4x1x8xf32, #tpu.memory_space<vmem>>, %arg7: memref<2x7x8x192xf32, #tpu.memory_space<vmem>>, %arg8: memref<2x1x192xf32, #tpu.memory_space<vmem>>, %arg9: memref<16x192xf32, #tpu.memory_space<vmem>>, %arg10: memref<1x192xf32, #tpu.memory_space<vmem>>, %arg11: memref<1x64x768xf32, #tpu.memory_space<vmem>>, %arg12: memref<196x8xf32, #tpu.memory_space<vmem>>, %arg13: memref<196x8xf32, #tpu.memory_space<vmem>>, %arg14: memref<196x8xf32, #tpu.memory_space<vmem>>) attributes {dimension_semantics = [#tpu.dimension_semantics<parallel>], iteration_bounds = array<i64: 2>, scalar_prefetch = 0 : i64, scratch_operands = 3 : i64, tpu.core_type = #tpu.core_type<tc>, window_params = [{transform_indices = @transform_0, window_bounds = array<i64: 1, 196, 16>}, {pipeline_mode = #tpu.pipeline_mode<synchronous>, transform_indices = @transform_1, window_bounds = array<i64: 112, 1>}, {pipeline_mode = #tpu.pipeline_mode<synchronous>, transform_indices = @transform_2, window_bounds = array<i64: 16, 208>}, {pipeline_mode = #tpu.pipeline_mode<synchronous>, transform_indices = @transform_3, window_bounds = array<i64: 1, 208>}, {pipeline_mode = #tpu.pipeline_mode<synchronous>, transform_indices = @transform_4, window_bounds = array<i64: 4, 7, 8, 8>}, {pipeline_mode = #tpu.pipeline_mode<synchronous>, transform_indices = @transform_5, window_bounds = array<i64: 4, 1, 8>}, {pipeline_mode = #tpu.pipeline_mode<synchronous>, transform_indices = @transform_6, window_bounds = array<i64: 2, 7, 8, 192>}, {pipeline_mode = #tpu.pipeline_mode<synchronous>, transform_indices = @transform_7, window_bounds = array<i64: 2, 1, 192>}, {pipeline_mode = #tpu.pipeline_mode<synchronous>, transform_indices = @transform_8, window_bounds = array<i64: 16, 192>}, {pipeline_mode = #tpu.pipeline_mode<synchronous>, transform_indices = @transform_9, window_bounds = array<i64: 1, 192>}, {transform_indices = @transform_10, window_bounds = array<i64: 1, 64, 768>}]} {
    %c0 = arith.constant 0 : index
    %c0_0 = arith.constant 0 : index
    %0 = vector.load %arg2[%c0, %c0_0] : memref<112x1xf32, #tpu.memory_space<vmem>>, vector<112x1xf32>
    %cst = arith.constant 0.000000e+00 : f32
    %1 = vector.broadcast %cst : f32 to vector<196x8xf32>
    %c0_1 = arith.constant 0 : index
    %c0_2 = arith.constant 0 : index
    %2 = vector.load %arg12[%c0_1, %c0_2] : memref<196x8xf32, #tpu.memory_space<vmem>>, vector<196x8xf32>
    tpu.vector_store %arg12[%c0_1, %c0_2], %1 {strides = array<i32>} : memref<196x8xf32, #tpu.memory_space<vmem>>, vector<196x8xf32>,
    %cst_3 = arith.constant 0.000000e+00 : f32
    %3 = vector.broadcast %cst_3 : f32 to vector<196x8xf32>
    %c0_4 = arith.constant 0 : index
    %c0_5 = arith.constant 0 : index
    %4 = vector.load %arg13[%c0_4, %c0_5] : memref<196x8xf32, #tpu.memory_space<vmem>>, vector<196x8xf32>
    tpu.vector_store %arg13[%c0_4, %c0_5], %3 {strides = array<i32>} : memref<196x8xf32, #tpu.memory_space<vmem>>, vector<196x8xf32>,
    %cst_6 = arith.constant 0.000000e+00 : f32
    %5 = vector.broadcast %cst_6 : f32 to vector<196x8xf32>
    %c0_7 = arith.constant 0 : index
    %c0_8 = arith.constant 0 : index
    %6 = vector.load %arg14[%c0_7, %c0_8] : memref<196x8xf32, #tpu.memory_space<vmem>>, vector<196x8xf32>
    tpu.vector_store %arg14[%c0_7, %c0_8], %5 {strides = array<i32>} : memref<196x8xf32, #tpu.memory_space<vmem>>, vector<196x8xf32>,
    %c0_9 = arith.constant 0 : index
    %c42 = arith.constant 42 : index
    %c0_10 = arith.constant 0 : index
    %7 = vector.load %arg1[%c0_9, %c42, %c0_10] : memref<1x196x16xf32, #tpu.memory_space<vmem>>, vector<1x112x16xf32>
    %8 = vector.shape_cast %7 : vector<1x112x16xf32> to vector<112x16xf32>
    %c0_11 = arith.constant 0 : index
    %c0_12 = arith.constant 0 : index
    %9 = vector.load %arg3[%c0_11, %c0_12] : memref<16x208xf32, #tpu.memory_space<vmem>>, vector<16x208xf32>
    %cst_13 = arith.constant dense<0.000000e+00> : vector<112x208xf32>
    %10 = tpu.matmul %8, %9, %cst_13 {dimension_numbers = #tpu.dot_dimension_numbers<[1], [0], [0], [1], [0, 0, 1, 1], [], []>} : vector<112x16xf32>, vector<16x208xf32>, vector<112x208xf32> -> vector<112x208xf32>
    %c0_14 = arith.constant 0 : index
    %c0_15 = arith.constant 0 : index
    %11 = vector.load %arg4[%c0_14, %c0_15] : memref<1x208xf32, #tpu.memory_space<vmem>>, vector<1x208xf32>
    %12 = vector.broadcast %11 : vector<1x208xf32> to vector<112x208xf32>
    %13 = arith.addf %10, %12 : vector<112x208xf32>
    %cst_16 = arith.constant 0.000000e+00 : f32
    %14 = vector.broadcast %cst_16 : f32 to vector<112x208xf32>
    %15 = arith.maximumf %13, %14 : vector<112x208xf32>
    %16 = vector.extract_strided_slice %15 {offsets = [0, 0], sizes = [112, 192], strides = [1, 1]} : vector<112x208xf32> to vector<112x192xf32>
    %17 = vector.extract_strided_slice %16 {offsets = [3, 0], sizes = [8, 192], strides = [1, 1]} : vector<112x192xf32> to vector<8x192xf32>
    %c0_17 = arith.constant 0 : index
    %c0_18 = arith.constant 0 : index
    %c0_19 = arith.constant 0 : index
    %18 = vector.load %arg11[%c0_17, %c0_18, %c0_19] : memref<1x64x768xf32, #tpu.memory_space<vmem>>, vector<1x8x192xf32>
    %19 = vector.shape_cast %18 : vector<1x8x192xf32> to vector<8x192xf32>
    %20 = vector.shape_cast %17 : vector<8x192xf32> to vector<1x8x192xf32>
    tpu.vector_store %arg11[%c0_17, %c0_18, %c0_19], %20 {strides = array<i32>} : memref<1x64x768xf32, #tpu.memory_space<vmem>>, vector<1x8x192xf32>,
    %21 = vector.extract_strided_slice %16 {offsets = [17, 0], sizes = [8, 192], strides = [1, 1]} : vector<112x192xf32> to vector<8x192xf32>
    %c0_20 = arith.constant 0 : index
    %c8 = arith.constant 8 : index
    %c0_21 = arith.constant 0 : index
    %22 = vector.load %arg11[%c0_20, %c8, %c0_21] : memref<1x64x768xf32, #tpu.memory_space<vmem>>, vector<1x8x192xf32>
    %23 = vector.shape_cast %22 : vector<1x8x192xf32> to vector<8x192xf32>
    %24 = vector.shape_cast %21 : vector<8x192xf32> to vector<1x8x192xf32>
    tpu.vector_store %arg11[%c0_20, %c8, %c0_21], %24 {strides = array<i32>} : memref<1x64x768xf32, #tpu.memory_space<vmem>>, vector<1x8x192xf32>,
    %25 = vector.extract_strided_slice %16 {offsets = [31, 0], sizes = [8, 192], strides = [1, 1]} : vector<112x192xf32> to vector<8x192xf32>
    %c0_22 = arith.constant 0 : index
    %c16 = arith.constant 16 : index
    %c0_23 = arith.constant 0 : index
    %26 = vector.load %arg11[%c0_22, %c16, %c0_23] : memref<1x64x768xf32, #tpu.memory_space<vmem>>, vector<1x8x192xf32>
    %27 = vector.shape_cast %26 : vector<1x8x192xf32> to vector<8x192xf32>
    %28 = vector.shape_cast %25 : vector<8x192xf32> to vector<1x8x192xf32>
    tpu.vector_store %arg11[%c0_22, %c16, %c0_23], %28 {strides = array<i32>} : memref<1x64x768xf32, #tpu.memory_space<vmem>>, vector<1x8x192xf32>,
    %29 = vector.extract_strided_slice %16 {offsets = [45, 0], sizes = [8, 192], strides = [1, 1]} : vector<112x192xf32> to vector<8x192xf32>
    %c0_24 = arith.constant 0 : index
    %c24 = arith.constant 24 : index
    %c0_25 = arith.constant 0 : index
    %30 = vector.load %arg11[%c0_24, %c24, %c0_25] : memref<1x64x768xf32, #tpu.memory_space<vmem>>, vector<1x8x192xf32>
    %31 = vector.shape_cast %30 : vector<1x8x192xf32> to vector<8x192xf32>
    %32 = vector.shape_cast %29 : vector<8x192xf32> to vector<1x8x192xf32>
    tpu.vector_store %arg11[%c0_24, %c24, %c0_25], %32 {strides = array<i32>} : memref<1x64x768xf32, #tpu.memory_space<vmem>>, vector<1x8x192xf32>,
    %33 = vector.extract_strided_slice %16 {offsets = [59, 0], sizes = [8, 192], strides = [1, 1]} : vector<112x192xf32> to vector<8x192xf32>
    %c0_26 = arith.constant 0 : index
    %c32 = arith.constant 32 : index
    %c0_27 = arith.constant 0 : index
    %34 = vector.load %arg11[%c0_26, %c32, %c0_27] : memref<1x64x768xf32, #tpu.memory_space<vmem>>, vector<1x8x192xf32>
    %35 = vector.shape_cast %34 : vector<1x8x192xf32> to vector<8x192xf32>
    %36 = vector.shape_cast %33 : vector<8x192xf32> to vector<1x8x192xf32>
    tpu.vector_store %arg11[%c0_26, %c32, %c0_27], %36 {strides = array<i32>} : memref<1x64x768xf32, #tpu.memory_space<vmem>>, vector<1x8x192xf32>,
    %37 = vector.extract_strided_slice %16 {offsets = [73, 0], sizes = [8, 192], strides = [1, 1]} : vector<112x192xf32> to vector<8x192xf32>
    %c0_28 = arith.constant 0 : index
    %c40 = arith.constant 40 : index
    %c0_29 = arith.constant 0 : index
    %38 = vector.load %arg11[%c0_28, %c40, %c0_29] : memref<1x64x768xf32, #tpu.memory_space<vmem>>, vector<1x8x192xf32>
    %39 = vector.shape_cast %38 : vector<1x8x192xf32> to vector<8x192xf32>
    %40 = vector.shape_cast %37 : vector<8x192xf32> to vector<1x8x192xf32>
    tpu.vector_store %arg11[%c0_28, %c40, %c0_29], %40 {strides = array<i32>} : memref<1x64x768xf32, #tpu.memory_space<vmem>>, vector<1x8x192xf32>,
    %41 = vector.extract_strided_slice %16 {offsets = [87, 0], sizes = [8, 192], strides = [1, 1]} : vector<112x192xf32> to vector<8x192xf32>
    %c0_30 = arith.constant 0 : index
    %c48 = arith.constant 48 : index
    %c0_31 = arith.constant 0 : index
    %42 = vector.load %arg11[%c0_30, %c48, %c0_31] : memref<1x64x768xf32, #tpu.memory_space<vmem>>, vector<1x8x192xf32>
    %43 = vector.shape_cast %42 : vector<1x8x192xf32> to vector<8x192xf32>
    %44 = vector.shape_cast %41 : vector<8x192xf32> to vector<1x8x192xf32>
    tpu.vector_store %arg11[%c0_30, %c48, %c0_31], %44 {strides = array<i32>} : memref<1x64x768xf32, #tpu.memory_space<vmem>>, vector<1x8x192xf32>,
    %45 = vector.extract_strided_slice %16 {offsets = [101, 0], sizes = [8, 192], strides = [1, 1]} : vector<112x192xf32> to vector<8x192xf32>
    %c0_32 = arith.constant 0 : index
    %c56 = arith.constant 56 : index
    %c0_33 = arith.constant 0 : index
    %46 = vector.load %arg11[%c0_32, %c56, %c0_33] : memref<1x64x768xf32, #tpu.memory_space<vmem>>, vector<1x8x192xf32>
    %47 = vector.shape_cast %46 : vector<1x8x192xf32> to vector<8x192xf32>
    %48 = vector.shape_cast %45 : vector<8x192xf32> to vector<1x8x192xf32>
    tpu.vector_store %arg11[%c0_32, %c56, %c0_33], %48 {strides = array<i32>} : memref<1x64x768xf32, #tpu.memory_space<vmem>>, vector<1x8x192xf32>,
    %49 = vector.extract_strided_slice %15 {offsets = [0, 192], sizes = [112, 8], strides = [1, 1]} : vector<112x208xf32> to vector<112x8xf32>
    %50 = vector.broadcast %0 : vector<112x1xf32> to vector<112x8xf32>
    %51 = arith.mulf %49, %50 : vector<112x8xf32>
    %c42_34 = arith.constant 42 : index
    %c0_35 = arith.constant 0 : index
    %52 = vector.load %arg12[%c42_34, %c0_35] : memref<196x8xf32, #tpu.memory_space<vmem>>, vector<112x8xf32>
    tpu.vector_store %arg12[%c42_34, %c0_35], %51 {strides = array<i32>} : memref<196x8xf32, #tpu.memory_space<vmem>>, vector<112x8xf32>,
    %53 = vector.extract_strided_slice %15 {offsets = [0, 200], sizes = [112, 8], strides = [1, 1]} : vector<112x208xf32> to vector<112x8xf32>
    %54 = vector.broadcast %0 : vector<112x1xf32> to vector<112x8xf32>
    %55 = arith.mulf %53, %54 : vector<112x8xf32>
    %c42_36 = arith.constant 42 : index
    %c0_37 = arith.constant 0 : index
    %56 = vector.load %arg13[%c42_36, %c0_37] : memref<196x8xf32, #tpu.memory_space<vmem>>, vector<112x8xf32>
    tpu.vector_store %arg13[%c42_36, %c0_37], %55 {strides = array<i32>} : memref<196x8xf32, #tpu.memory_space<vmem>>, vector<112x8xf32>,
    %c39 = arith.constant 39 : index
    %c0_38 = arith.constant 0 : index
    %57 = vector.load %arg12[%c39, %c0_38] : memref<196x8xf32, #tpu.memory_space<vmem>>, vector<112x8xf32>
    %c0_39 = arith.constant 0 : index
    %c0_40 = arith.constant 0 : index
    %c0_41 = arith.constant 0 : index
    %c0_42 = arith.constant 0 : index
    %58 = vector.load %arg5[%c0_39, %c0_40, %c0_41, %c0_42] : memref<4x7x8x8xf32, #tpu.memory_space<vmem>>, vector<1x1x8x8xf32>
    %59 = vector.shape_cast %58 : vector<1x1x8x8xf32> to vector<8x8xf32>
    %cst_43 = arith.constant dense<0.000000e+00> : vector<112x8xf32>
    %60 = tpu.matmul %57, %59, %cst_43 {dimension_numbers = #tpu.dot_dimension_numbers<[1], [0], [0], [1], [0, 0, 1, 1], [], []>} : vector<112x8xf32>, vector<8x8xf32>, vector<112x8xf32> -> vector<112x8xf32>
    %c40_44 = arith.constant 40 : index
    %c0_45 = arith.constant 0 : index
    %61 = vector.load %arg12[%c40_44, %c0_45] : memref<196x8xf32, #tpu.memory_space<vmem>>, vector<112x8xf32>
    %c0_46 = arith.constant 0 : index
    %c1 = arith.constant 1 : index
    %c0_47 = arith.constant 0 : index
    %c0_48 = arith.constant 0 : index
    %62 = vector.load %arg5[%c0_46, %c1, %c0_47, %c0_48] : memref<4x7x8x8xf32, #tpu.memory_space<vmem>>, vector<1x1x8x8xf32>
    %63 = vector.shape_cast %62 : vector<1x1x8x8xf32> to vector<8x8xf32>
    %cst_49 = arith.constant dense<0.000000e+00> : vector<112x8xf32>
    %64 = tpu.matmul %61, %63, %cst_49 {dimension_numbers = #tpu.dot_dimension_numbers<[1], [0], [0], [1], [0, 0, 1, 1], [], []>} : vector<112x8xf32>, vector<8x8xf32>, vector<112x8xf32> -> vector<112x8xf32>
    %65 = arith.addf %60, %64 : vector<112x8xf32>
    %c41 = arith.constant 41 : index
    %c0_50 = arith.constant 0 : index
    %66 = vector.load %arg12[%c41, %c0_50] : memref<196x8xf32, #tpu.memory_space<vmem>>, vector<112x8xf32>
    %c0_51 = arith.constant 0 : index
    %c2 = arith.constant 2 : index
    %c0_52 = arith.constant 0 : index
    %c0_53 = arith.constant 0 : index
    %67 = vector.load %arg5[%c0_51, %c2, %c0_52, %c0_53] : memref<4x7x8x8xf32, #tpu.memory_space<vmem>>, vector<1x1x8x8xf32>
    %68 = vector.shape_cast %67 : vector<1x1x8x8xf32> to vector<8x8xf32>
    %cst_54 = arith.constant dense<0.000000e+00> : vector<112x8xf32>
    %69 = tpu.matmul %66, %68, %cst_54 {dimension_numbers = #tpu.dot_dimension_numbers<[1], [0], [0], [1], [0, 0, 1, 1], [], []>} : vector<112x8xf32>, vector<8x8xf32>, vector<112x8xf32> -> vector<112x8xf32>
    %70 = arith.addf %65, %69 : vector<112x8xf32>
    %c42_55 = arith.constant 42 : index
    %c0_56 = arith.constant 0 : index
    %71 = vector.load %arg12[%c42_55, %c0_56] : memref<196x8xf32, #tpu.memory_space<vmem>>, vector<112x8xf32>
    %c0_57 = arith.constant 0 : index
    %c3 = arith.constant 3 : index
    %c0_58 = arith.constant 0 : index
    %c0_59 = arith.constant 0 : index
    %72 = vector.load %arg5[%c0_57, %c3, %c0_58, %c0_59] : memref<4x7x8x8xf32, #tpu.memory_space<vmem>>, vector<1x1x8x8xf32>
    %73 = vector.shape_cast %72 : vector<1x1x8x8xf32> to vector<8x8xf32>
    %cst_60 = arith.constant dense<0.000000e+00> : vector<112x8xf32>
    %74 = tpu.matmul %71, %73, %cst_60 {dimension_numbers = #tpu.dot_dimension_numbers<[1], [0], [0], [1], [0, 0, 1, 1], [], []>} : vector<112x8xf32>, vector<8x8xf32>, vector<112x8xf32> -> vector<112x8xf32>
    %75 = arith.addf %70, %74 : vector<112x8xf32>
    %c43 = arith.constant 43 : index
    %c0_61 = arith.constant 0 : index
    %76 = vector.load %arg12[%c43, %c0_61] : memref<196x8xf32, #tpu.memory_space<vmem>>, vector<112x8xf32>
    %c0_62 = arith.constant 0 : index
    %c4 = arith.constant 4 : index
    %c0_63 = arith.constant 0 : index
    %c0_64 = arith.constant 0 : index
    %77 = vector.load %arg5[%c0_62, %c4, %c0_63, %c0_64] : memref<4x7x8x8xf32, #tpu.memory_space<vmem>>, vector<1x1x8x8xf32>
    %78 = vector.shape_cast %77 : vector<1x1x8x8xf32> to vector<8x8xf32>
    %cst_65 = arith.constant dense<0.000000e+00> : vector<112x8xf32>
    %79 = tpu.matmul %76, %78, %cst_65 {dimension_numbers = #tpu.dot_dimension_numbers<[1], [0], [0], [1], [0, 0, 1, 1], [], []>} : vector<112x8xf32>, vector<8x8xf32>, vector<112x8xf32> -> vector<112x8xf32>
    %80 = arith.addf %75, %79 : vector<112x8xf32>
    %c44 = arith.constant 44 : index
    %c0_66 = arith.constant 0 : index
    %81 = vector.load %arg12[%c44, %c0_66] : memref<196x8xf32, #tpu.memory_space<vmem>>, vector<112x8xf32>
    %c0_67 = arith.constant 0 : index
    %c5 = arith.constant 5 : index
    %c0_68 = arith.constant 0 : index
    %c0_69 = arith.constant 0 : index
    %82 = vector.load %arg5[%c0_67, %c5, %c0_68, %c0_69] : memref<4x7x8x8xf32, #tpu.memory_space<vmem>>, vector<1x1x8x8xf32>
    %83 = vector.shape_cast %82 : vector<1x1x8x8xf32> to vector<8x8xf32>
    %cst_70 = arith.constant dense<0.000000e+00> : vector<112x8xf32>
    %84 = tpu.matmul %81, %83, %cst_70 {dimension_numbers = #tpu.dot_dimension_numbers<[1], [0], [0], [1], [0, 0, 1, 1], [], []>} : vector<112x8xf32>, vector<8x8xf32>, vector<112x8xf32> -> vector<112x8xf32>
    %85 = arith.addf %80, %84 : vector<112x8xf32>
    %c45 = arith.constant 45 : index
    %c0_71 = arith.constant 0 : index
    %86 = vector.load %arg12[%c45, %c0_71] : memref<196x8xf32, #tpu.memory_space<vmem>>, vector<112x8xf32>
    %c0_72 = arith.constant 0 : index
    %c6 = arith.constant 6 : index
    %c0_73 = arith.constant 0 : index
    %c0_74 = arith.constant 0 : index
    %87 = vector.load %arg5[%c0_72, %c6, %c0_73, %c0_74] : memref<4x7x8x8xf32, #tpu.memory_space<vmem>>, vector<1x1x8x8xf32>
    %88 = vector.shape_cast %87 : vector<1x1x8x8xf32> to vector<8x8xf32>
    %cst_75 = arith.constant dense<0.000000e+00> : vector<112x8xf32>
    %89 = tpu.matmul %86, %88, %cst_75 {dimension_numbers = #tpu.dot_dimension_numbers<[1], [0], [0], [1], [0, 0, 1, 1], [], []>} : vector<112x8xf32>, vector<8x8xf32>, vector<112x8xf32> -> vector<112x8xf32>
    %90 = arith.addf %85, %89 : vector<112x8xf32>
    %c0_76 = arith.constant 0 : index
    %c0_77 = arith.constant 0 : index
    %c0_78 = arith.constant 0 : index
    %91 = vector.load %arg6[%c0_76, %c0_77, %c0_78] : memref<4x1x8xf32, #tpu.memory_space<vmem>>, vector<1x1x8xf32>
    %92 = vector.shape_cast %91 : vector<1x1x8xf32> to vector<1x8xf32>
    %93 = vector.broadcast %92 : vector<1x8xf32> to vector<112x8xf32>
    %94 = arith.addf %90, %93 : vector<112x8xf32>
    %cst_79 = arith.constant 0.000000e+00 : f32
    %95 = vector.broadcast %cst_79 : f32 to vector<112x8xf32>
    %96 = arith.maximumf %94, %95 : vector<112x8xf32>
    %97 = vector.broadcast %0 : vector<112x1xf32> to vector<112x8xf32>
    %98 = arith.mulf %96, %97 : vector<112x8xf32>
    %c42_80 = arith.constant 42 : index
    %c0_81 = arith.constant 0 : index
    %99 = vector.load %arg14[%c42_80, %c0_81] : memref<196x8xf32, #tpu.memory_space<vmem>>, vector<112x8xf32>
    tpu.vector_store %arg14[%c42_80, %c0_81], %98 {strides = array<i32>} : memref<196x8xf32, #tpu.memory_space<vmem>>, vector<112x8xf32>,
    %c0_82 = arith.constant 0 : index
    %c0_83 = arith.constant 0 : index
    %100 = vector.load %arg14[%c0_82, %c0_83] : memref<196x8xf32, #tpu.memory_space<vmem>>, vector<112x8xf32>
    %c0_84 = arith.constant 0 : index
    %c0_85 = arith.constant 0 : index
    %c0_86 = arith.constant 0 : index
    %c0_87 = arith.constant 0 : index
    %101 = vector.load %arg7[%c0_84, %c0_85, %c0_86, %c0_87] : memref<2x7x8x192xf32, #tpu.memory_space<vmem>>, vector<1x1x8x192xf32>
    %102 = vector.shape_cast %101 : vector<1x1x8x192xf32> to vector<8x192xf32>
    %cst_88 = arith.constant dense<0.000000e+00> : vector<112x192xf32>
    %103 = tpu.matmul %100, %102, %cst_88 {dimension_numbers = #tpu.dot_dimension_numbers<[1], [0], [0], [1], [0, 0, 1, 1], [], []>} : vector<112x8xf32>, vector<8x192xf32>, vector<112x192xf32> -> vector<112x192xf32>
    %c14 = arith.constant 14 : index
    %c0_89 = arith.constant 0 : index
    %104 = vector.load %arg14[%c14, %c0_89] : memref<196x8xf32, #tpu.memory_space<vmem>>, vector<112x8xf32>
    %c0_90 = arith.constant 0 : index
    %c1_91 = arith.constant 1 : index
    %c0_92 = arith.constant 0 : index
    %c0_93 = arith.constant 0 : index
    %105 = vector.load %arg7[%c0_90, %c1_91, %c0_92, %c0_93] : memref<2x7x8x192xf32, #tpu.memory_space<vmem>>, vector<1x1x8x192xf32>
    %106 = vector.shape_cast %105 : vector<1x1x8x192xf32> to vector<8x192xf32>
    %cst_94 = arith.constant dense<0.000000e+00> : vector<112x192xf32>
    %107 = tpu.matmul %104, %106, %cst_94 {dimension_numbers = #tpu.dot_dimension_numbers<[1], [0], [0], [1], [0, 0, 1, 1], [], []>} : vector<112x8xf32>, vector<8x192xf32>, vector<112x192xf32> -> vector<112x192xf32>
    %108 = arith.addf %103, %107 : vector<112x192xf32>
    %c28 = arith.constant 28 : index
    %c0_95 = arith.constant 0 : index
    %109 = vector.load %arg14[%c28, %c0_95] : memref<196x8xf32, #tpu.memory_space<vmem>>, vector<112x8xf32>
    %c0_96 = arith.constant 0 : index
    %c2_97 = arith.constant 2 : index
    %c0_98 = arith.constant 0 : index
    %c0_99 = arith.constant 0 : index
    %110 = vector.load %arg7[%c0_96, %c2_97, %c0_98, %c0_99] : memref<2x7x8x192xf32, #tpu.memory_space<vmem>>, vector<1x1x8x192xf32>
    %111 = vector.shape_cast %110 : vector<1x1x8x192xf32> to vector<8x192xf32>
    %cst_100 = arith.constant dense<0.000000e+00> : vector<112x192xf32>
    %112 = tpu.matmul %109, %111, %cst_100 {dimension_numbers = #tpu.dot_dimension_numbers<[1], [0], [0], [1], [0, 0, 1, 1], [], []>} : vector<112x8xf32>, vector<8x192xf32>, vector<112x192xf32> -> vector<112x192xf32>
    %113 = arith.addf %108, %112 : vector<112x192xf32>
    %c42_101 = arith.constant 42 : index
    %c0_102 = arith.constant 0 : index
    %114 = vector.load %arg14[%c42_101, %c0_102] : memref<196x8xf32, #tpu.memory_space<vmem>>, vector<112x8xf32>
    %c0_103 = arith.constant 0 : index
    %c3_104 = arith.constant 3 : index
    %c0_105 = arith.constant 0 : index
    %c0_106 = arith.constant 0 : index
    %115 = vector.load %arg7[%c0_103, %c3_104, %c0_105, %c0_106] : memref<2x7x8x192xf32, #tpu.memory_space<vmem>>, vector<1x1x8x192xf32>
    %116 = vector.shape_cast %115 : vector<1x1x8x192xf32> to vector<8x192xf32>
    %cst_107 = arith.constant dense<0.000000e+00> : vector<112x192xf32>
    %117 = tpu.matmul %114, %116, %cst_107 {dimension_numbers = #tpu.dot_dimension_numbers<[1], [0], [0], [1], [0, 0, 1, 1], [], []>} : vector<112x8xf32>, vector<8x192xf32>, vector<112x192xf32> -> vector<112x192xf32>
    %118 = arith.addf %113, %117 : vector<112x192xf32>
    %c56_108 = arith.constant 56 : index
    %c0_109 = arith.constant 0 : index
    %119 = vector.load %arg14[%c56_108, %c0_109] : memref<196x8xf32, #tpu.memory_space<vmem>>, vector<112x8xf32>
    %c0_110 = arith.constant 0 : index
    %c4_111 = arith.constant 4 : index
    %c0_112 = arith.constant 0 : index
    %c0_113 = arith.constant 0 : index
    %120 = vector.load %arg7[%c0_110, %c4_111, %c0_112, %c0_113] : memref<2x7x8x192xf32, #tpu.memory_space<vmem>>, vector<1x1x8x192xf32>
    %121 = vector.shape_cast %120 : vector<1x1x8x192xf32> to vector<8x192xf32>
    %cst_114 = arith.constant dense<0.000000e+00> : vector<112x192xf32>
    %122 = tpu.matmul %119, %121, %cst_114 {dimension_numbers = #tpu.dot_dimension_numbers<[1], [0], [0], [1], [0, 0, 1, 1], [], []>} : vector<112x8xf32>, vector<8x192xf32>, vector<112x192xf32> -> vector<112x192xf32>
    %123 = arith.addf %118, %122 : vector<112x192xf32>
    %c70 = arith.constant 70 : index
    %c0_115 = arith.constant 0 : index
    %124 = vector.load %arg14[%c70, %c0_115] : memref<196x8xf32, #tpu.memory_space<vmem>>, vector<112x8xf32>
    %c0_116 = arith.constant 0 : index
    %c5_117 = arith.constant 5 : index
    %c0_118 = arith.constant 0 : index
    %c0_119 = arith.constant 0 : index
    %125 = vector.load %arg7[%c0_116, %c5_117, %c0_118, %c0_119] : memref<2x7x8x192xf32, #tpu.memory_space<vmem>>, vector<1x1x8x192xf32>
    %126 = vector.shape_cast %125 : vector<1x1x8x192xf32> to vector<8x192xf32>
    %cst_120 = arith.constant dense<0.000000e+00> : vector<112x192xf32>
    %127 = tpu.matmul %124, %126, %cst_120 {dimension_numbers = #tpu.dot_dimension_numbers<[1], [0], [0], [1], [0, 0, 1, 1], [], []>} : vector<112x8xf32>, vector<8x192xf32>, vector<112x192xf32> -> vector<112x192xf32>
    %128 = arith.addf %123, %127 : vector<112x192xf32>
    %c84 = arith.constant 84 : index
    %c0_121 = arith.constant 0 : index
    %129 = vector.load %arg14[%c84, %c0_121] : memref<196x8xf32, #tpu.memory_space<vmem>>, vector<112x8xf32>
    %c0_122 = arith.constant 0 : index
    %c6_123 = arith.constant 6 : index
    %c0_124 = arith.constant 0 : index
    %c0_125 = arith.constant 0 : index
    %130 = vector.load %arg7[%c0_122, %c6_123, %c0_124, %c0_125] : memref<2x7x8x192xf32, #tpu.memory_space<vmem>>, vector<1x1x8x192xf32>
    %131 = vector.shape_cast %130 : vector<1x1x8x192xf32> to vector<8x192xf32>
    %cst_126 = arith.constant dense<0.000000e+00> : vector<112x192xf32>
    %132 = tpu.matmul %129, %131, %cst_126 {dimension_numbers = #tpu.dot_dimension_numbers<[1], [0], [0], [1], [0, 0, 1, 1], [], []>} : vector<112x8xf32>, vector<8x192xf32>, vector<112x192xf32> -> vector<112x192xf32>
    %133 = arith.addf %128, %132 : vector<112x192xf32>
    %c0_127 = arith.constant 0 : index
    %c0_128 = arith.constant 0 : index
    %c0_129 = arith.constant 0 : index
    %134 = vector.load %arg8[%c0_127, %c0_128, %c0_129] : memref<2x1x192xf32, #tpu.memory_space<vmem>>, vector<1x1x192xf32>
    %135 = vector.shape_cast %134 : vector<1x1x192xf32> to vector<1x192xf32>
    %136 = vector.broadcast %135 : vector<1x192xf32> to vector<112x192xf32>
    %137 = arith.addf %133, %136 : vector<112x192xf32>
    %cst_130 = arith.constant 0.000000e+00 : f32
    %138 = vector.broadcast %cst_130 : f32 to vector<112x192xf32>
    %139 = arith.maximumf %137, %138 : vector<112x192xf32>
    %140 = vector.extract_strided_slice %139 {offsets = [3, 0], sizes = [8, 192], strides = [1, 1]} : vector<112x192xf32> to vector<8x192xf32>
    %c0_131 = arith.constant 0 : index
    %c0_132 = arith.constant 0 : index
    %c192 = arith.constant 192 : index
    %141 = vector.load %arg11[%c0_131, %c0_132, %c192] : memref<1x64x768xf32, #tpu.memory_space<vmem>>, vector<1x8x192xf32>
    %142 = vector.shape_cast %141 : vector<1x8x192xf32> to vector<8x192xf32>
    %143 = vector.shape_cast %140 : vector<8x192xf32> to vector<1x8x192xf32>
    tpu.vector_store %arg11[%c0_131, %c0_132, %c192], %143 {strides = array<i32>} : memref<1x64x768xf32, #tpu.memory_space<vmem>>, vector<1x8x192xf32>,
    %144 = vector.extract_strided_slice %139 {offsets = [17, 0], sizes = [8, 192], strides = [1, 1]} : vector<112x192xf32> to vector<8x192xf32>
    %c0_133 = arith.constant 0 : index
    %c8_134 = arith.constant 8 : index
    %c192_135 = arith.constant 192 : index
    %145 = vector.load %arg11[%c0_133, %c8_134, %c192_135] : memref<1x64x768xf32, #tpu.memory_space<vmem>>, vector<1x8x192xf32>
    %146 = vector.shape_cast %145 : vector<1x8x192xf32> to vector<8x192xf32>
    %147 = vector.shape_cast %144 : vector<8x192xf32> to vector<1x8x192xf32>
    tpu.vector_store %arg11[%c0_133, %c8_134, %c192_135], %147 {strides = array<i32>} : memref<1x64x768xf32, #tpu.memory_space<vmem>>, vector<1x8x192xf32>,
    %148 = vector.extract_strided_slice %139 {offsets = [31, 0], sizes = [8, 192], strides = [1, 1]} : vector<112x192xf32> to vector<8x192xf32>
    %c0_136 = arith.constant 0 : index
    %c16_137 = arith.constant 16 : index
    %c192_138 = arith.constant 192 : index
    %149 = vector.load %arg11[%c0_136, %c16_137, %c192_138] : memref<1x64x768xf32, #tpu.memory_space<vmem>>, vector<1x8x192xf32>
    %150 = vector.shape_cast %149 : vector<1x8x192xf32> to vector<8x192xf32>
    %151 = vector.shape_cast %148 : vector<8x192xf32> to vector<1x8x192xf32>
    tpu.vector_store %arg11[%c0_136, %c16_137, %c192_138], %151 {strides = array<i32>} : memref<1x64x768xf32, #tpu.memory_space<vmem>>, vector<1x8x192xf32>,
    %152 = vector.extract_strided_slice %139 {offsets = [45, 0], sizes = [8, 192], strides = [1, 1]} : vector<112x192xf32> to vector<8x192xf32>
    %c0_139 = arith.constant 0 : index
    %c24_140 = arith.constant 24 : index
    %c192_141 = arith.constant 192 : index
    %153 = vector.load %arg11[%c0_139, %c24_140, %c192_141] : memref<1x64x768xf32, #tpu.memory_space<vmem>>, vector<1x8x192xf32>
    %154 = vector.shape_cast %153 : vector<1x8x192xf32> to vector<8x192xf32>
    %155 = vector.shape_cast %152 : vector<8x192xf32> to vector<1x8x192xf32>
    tpu.vector_store %arg11[%c0_139, %c24_140, %c192_141], %155 {strides = array<i32>} : memref<1x64x768xf32, #tpu.memory_space<vmem>>, vector<1x8x192xf32>,
    %156 = vector.extract_strided_slice %139 {offsets = [59, 0], sizes = [8, 192], strides = [1, 1]} : vector<112x192xf32> to vector<8x192xf32>
    %c0_142 = arith.constant 0 : index
    %c32_143 = arith.constant 32 : index
    %c192_144 = arith.constant 192 : index
    %157 = vector.load %arg11[%c0_142, %c32_143, %c192_144] : memref<1x64x768xf32, #tpu.memory_space<vmem>>, vector<1x8x192xf32>
    %158 = vector.shape_cast %157 : vector<1x8x192xf32> to vector<8x192xf32>
    %159 = vector.shape_cast %156 : vector<8x192xf32> to vector<1x8x192xf32>
    tpu.vector_store %arg11[%c0_142, %c32_143, %c192_144], %159 {strides = array<i32>} : memref<1x64x768xf32, #tpu.memory_space<vmem>>, vector<1x8x192xf32>,
    %160 = vector.extract_strided_slice %139 {offsets = [73, 0], sizes = [8, 192], strides = [1, 1]} : vector<112x192xf32> to vector<8x192xf32>
    %c0_145 = arith.constant 0 : index
    %c40_146 = arith.constant 40 : index
    %c192_147 = arith.constant 192 : index
    %161 = vector.load %arg11[%c0_145, %c40_146, %c192_147] : memref<1x64x768xf32, #tpu.memory_space<vmem>>, vector<1x8x192xf32>
    %162 = vector.shape_cast %161 : vector<1x8x192xf32> to vector<8x192xf32>
    %163 = vector.shape_cast %160 : vector<8x192xf32> to vector<1x8x192xf32>
    tpu.vector_store %arg11[%c0_145, %c40_146, %c192_147], %163 {strides = array<i32>} : memref<1x64x768xf32, #tpu.memory_space<vmem>>, vector<1x8x192xf32>,
    %164 = vector.extract_strided_slice %139 {offsets = [87, 0], sizes = [8, 192], strides = [1, 1]} : vector<112x192xf32> to vector<8x192xf32>
    %c0_148 = arith.constant 0 : index
    %c48_149 = arith.constant 48 : index
    %c192_150 = arith.constant 192 : index
    %165 = vector.load %arg11[%c0_148, %c48_149, %c192_150] : memref<1x64x768xf32, #tpu.memory_space<vmem>>, vector<1x8x192xf32>
    %166 = vector.shape_cast %165 : vector<1x8x192xf32> to vector<8x192xf32>
    %167 = vector.shape_cast %164 : vector<8x192xf32> to vector<1x8x192xf32>
    tpu.vector_store %arg11[%c0_148, %c48_149, %c192_150], %167 {strides = array<i32>} : memref<1x64x768xf32, #tpu.memory_space<vmem>>, vector<1x8x192xf32>,
    %168 = vector.extract_strided_slice %139 {offsets = [101, 0], sizes = [8, 192], strides = [1, 1]} : vector<112x192xf32> to vector<8x192xf32>
    %c0_151 = arith.constant 0 : index
    %c56_152 = arith.constant 56 : index
    %c192_153 = arith.constant 192 : index
    %169 = vector.load %arg11[%c0_151, %c56_152, %c192_153] : memref<1x64x768xf32, #tpu.memory_space<vmem>>, vector<1x8x192xf32>
    %170 = vector.shape_cast %169 : vector<1x8x192xf32> to vector<8x192xf32>
    %171 = vector.shape_cast %168 : vector<8x192xf32> to vector<1x8x192xf32>
    tpu.vector_store %arg11[%c0_151, %c56_152, %c192_153], %171 {strides = array<i32>} : memref<1x64x768xf32, #tpu.memory_space<vmem>>, vector<1x8x192xf32>,
    %c0_154 = arith.constant 0 : index
    %c0_155 = arith.constant 0 : index
    %172 = vector.load %arg13[%c0_154, %c0_155] : memref<196x8xf32, #tpu.memory_space<vmem>>, vector<112x8xf32>
    %c1_156 = arith.constant 1 : index
    %c0_157 = arith.constant 0 : index
    %c0_158 = arith.constant 0 : index
    %c0_159 = arith.constant 0 : index
    %173 = vector.load %arg5[%c1_156, %c0_157, %c0_158, %c0_159] : memref<4x7x8x8xf32, #tpu.memory_space<vmem>>, vector<1x1x8x8xf32>
    %174 = vector.shape_cast %173 : vector<1x1x8x8xf32> to vector<8x8xf32>
    %cst_160 = arith.constant dense<0.000000e+00> : vector<112x8xf32>
    %175 = tpu.matmul %172, %174, %cst_160 {dimension_numbers = #tpu.dot_dimension_numbers<[1], [0], [0], [1], [0, 0, 1, 1], [], []>} : vector<112x8xf32>, vector<8x8xf32>, vector<112x8xf32> -> vector<112x8xf32>
    %c14_161 = arith.constant 14 : index
    %c0_162 = arith.constant 0 : index
    %176 = vector.load %arg13[%c14_161, %c0_162] : memref<196x8xf32, #tpu.memory_space<vmem>>, vector<112x8xf32>
    %c1_163 = arith.constant 1 : index
    %c1_164 = arith.constant 1 : index
    %c0_165 = arith.constant 0 : index
    %c0_166 = arith.constant 0 : index
    %177 = vector.load %arg5[%c1_163, %c1_164, %c0_165, %c0_166] : memref<4x7x8x8xf32, #tpu.memory_space<vmem>>, vector<1x1x8x8xf32>
    %178 = vector.shape_cast %177 : vector<1x1x8x8xf32> to vector<8x8xf32>
    %cst_167 = arith.constant dense<0.000000e+00> : vector<112x8xf32>
    %179 = tpu.matmul %176, %178, %cst_167 {dimension_numbers = #tpu.dot_dimension_numbers<[1], [0], [0], [1], [0, 0, 1, 1], [], []>} : vector<112x8xf32>, vector<8x8xf32>, vector<112x8xf32> -> vector<112x8xf32>
    %180 = arith.addf %175, %179 : vector<112x8xf32>
    %c28_168 = arith.constant 28 : index
    %c0_169 = arith.constant 0 : index
    %181 = vector.load %arg13[%c28_168, %c0_169] : memref<196x8xf32, #tpu.memory_space<vmem>>, vector<112x8xf32>
    %c1_170 = arith.constant 1 : index
    %c2_171 = arith.constant 2 : index
    %c0_172 = arith.constant 0 : index
    %c0_173 = arith.constant 0 : index
    %182 = vector.load %arg5[%c1_170, %c2_171, %c0_172, %c0_173] : memref<4x7x8x8xf32, #tpu.memory_space<vmem>>, vector<1x1x8x8xf32>
    %183 = vector.shape_cast %182 : vector<1x1x8x8xf32> to vector<8x8xf32>
    %cst_174 = arith.constant dense<0.000000e+00> : vector<112x8xf32>
    %184 = tpu.matmul %181, %183, %cst_174 {dimension_numbers = #tpu.dot_dimension_numbers<[1], [0], [0], [1], [0, 0, 1, 1], [], []>} : vector<112x8xf32>, vector<8x8xf32>, vector<112x8xf32> -> vector<112x8xf32>
    %185 = arith.addf %180, %184 : vector<112x8xf32>
    %c42_175 = arith.constant 42 : index
    %c0_176 = arith.constant 0 : index
    %186 = vector.load %arg13[%c42_175, %c0_176] : memref<196x8xf32, #tpu.memory_space<vmem>>, vector<112x8xf32>
    %c1_177 = arith.constant 1 : index
    %c3_178 = arith.constant 3 : index
    %c0_179 = arith.constant 0 : index
    %c0_180 = arith.constant 0 : index
    %187 = vector.load %arg5[%c1_177, %c3_178, %c0_179, %c0_180] : memref<4x7x8x8xf32, #tpu.memory_space<vmem>>, vector<1x1x8x8xf32>
    %188 = vector.shape_cast %187 : vector<1x1x8x8xf32> to vector<8x8xf32>
    %cst_181 = arith.constant dense<0.000000e+00> : vector<112x8xf32>
    %189 = tpu.matmul %186, %188, %cst_181 {dimension_numbers = #tpu.dot_dimension_numbers<[1], [0], [0], [1], [0, 0, 1, 1], [], []>} : vector<112x8xf32>, vector<8x8xf32>, vector<112x8xf32> -> vector<112x8xf32>
    %190 = arith.addf %185, %189 : vector<112x8xf32>
    %c56_182 = arith.constant 56 : index
    %c0_183 = arith.constant 0 : index
    %191 = vector.load %arg13[%c56_182, %c0_183] : memref<196x8xf32, #tpu.memory_space<vmem>>, vector<112x8xf32>
    %c1_184 = arith.constant 1 : index
    %c4_185 = arith.constant 4 : index
    %c0_186 = arith.constant 0 : index
    %c0_187 = arith.constant 0 : index
    %192 = vector.load %arg5[%c1_184, %c4_185, %c0_186, %c0_187] : memref<4x7x8x8xf32, #tpu.memory_space<vmem>>, vector<1x1x8x8xf32>
    %193 = vector.shape_cast %192 : vector<1x1x8x8xf32> to vector<8x8xf32>
    %cst_188 = arith.constant dense<0.000000e+00> : vector<112x8xf32>
    %194 = tpu.matmul %191, %193, %cst_188 {dimension_numbers = #tpu.dot_dimension_numbers<[1], [0], [0], [1], [0, 0, 1, 1], [], []>} : vector<112x8xf32>, vector<8x8xf32>, vector<112x8xf32> -> vector<112x8xf32>
    %195 = arith.addf %190, %194 : vector<112x8xf32>
    %c70_189 = arith.constant 70 : index
    %c0_190 = arith.constant 0 : index
    %196 = vector.load %arg13[%c70_189, %c0_190] : memref<196x8xf32, #tpu.memory_space<vmem>>, vector<112x8xf32>
    %c1_191 = arith.constant 1 : index
    %c5_192 = arith.constant 5 : index
    %c0_193 = arith.constant 0 : index
    %c0_194 = arith.constant 0 : index
    %197 = vector.load %arg5[%c1_191, %c5_192, %c0_193, %c0_194] : memref<4x7x8x8xf32, #tpu.memory_space<vmem>>, vector<1x1x8x8xf32>
    %198 = vector.shape_cast %197 : vector<1x1x8x8xf32> to vector<8x8xf32>
    %cst_195 = arith.constant dense<0.000000e+00> : vector<112x8xf32>
    %199 = tpu.matmul %196, %198, %cst_195 {dimension_numbers = #tpu.dot_dimension_numbers<[1], [0], [0], [1], [0, 0, 1, 1], [], []>} : vector<112x8xf32>, vector<8x8xf32>, vector<112x8xf32> -> vector<112x8xf32>
    %200 = arith.addf %195, %199 : vector<112x8xf32>
    %c84_196 = arith.constant 84 : index
    %c0_197 = arith.constant 0 : index
    %201 = vector.load %arg13[%c84_196, %c0_197] : memref<196x8xf32, #tpu.memory_space<vmem>>, vector<112x8xf32>
    %c1_198 = arith.constant 1 : index
    %c6_199 = arith.constant 6 : index
    %c0_200 = arith.constant 0 : index
    %c0_201 = arith.constant 0 : index
    %202 = vector.load %arg5[%c1_198, %c6_199, %c0_200, %c0_201] : memref<4x7x8x8xf32, #tpu.memory_space<vmem>>, vector<1x1x8x8xf32>
    %203 = vector.shape_cast %202 : vector<1x1x8x8xf32> to vector<8x8xf32>
    %cst_202 = arith.constant dense<0.000000e+00> : vector<112x8xf32>
    %204 = tpu.matmul %201, %203, %cst_202 {dimension_numbers = #tpu.dot_dimension_numbers<[1], [0], [0], [1], [0, 0, 1, 1], [], []>} : vector<112x8xf32>, vector<8x8xf32>, vector<112x8xf32> -> vector<112x8xf32>
    %205 = arith.addf %200, %204 : vector<112x8xf32>
    %c1_203 = arith.constant 1 : index
    %c0_204 = arith.constant 0 : index
    %c0_205 = arith.constant 0 : index
    %206 = vector.load %arg6[%c1_203, %c0_204, %c0_205] : memref<4x1x8xf32, #tpu.memory_space<vmem>>, vector<1x1x8xf32>
    %207 = vector.shape_cast %206 : vector<1x1x8xf32> to vector<1x8xf32>
    %208 = vector.broadcast %207 : vector<1x8xf32> to vector<112x8xf32>
    %209 = arith.addf %205, %208 : vector<112x8xf32>
    %cst_206 = arith.constant 0.000000e+00 : f32
    %210 = vector.broadcast %cst_206 : f32 to vector<112x8xf32>
    %211 = arith.maximumf %209, %210 : vector<112x8xf32>
    %212 = vector.broadcast %0 : vector<112x1xf32> to vector<112x8xf32>
    %213 = arith.mulf %211, %212 : vector<112x8xf32>
    %c42_207 = arith.constant 42 : index
    %c0_208 = arith.constant 0 : index
    %214 = vector.load %arg12[%c42_207, %c0_208] : memref<196x8xf32, #tpu.memory_space<vmem>>, vector<112x8xf32>
    tpu.vector_store %arg12[%c42_207, %c0_208], %213 {strides = array<i32>} : memref<196x8xf32, #tpu.memory_space<vmem>>, vector<112x8xf32>,
    %c39_209 = arith.constant 39 : index
    %c0_210 = arith.constant 0 : index
    %215 = vector.load %arg12[%c39_209, %c0_210] : memref<196x8xf32, #tpu.memory_space<vmem>>, vector<112x8xf32>
    %c2_211 = arith.constant 2 : index
    %c0_212 = arith.constant 0 : index
    %c0_213 = arith.constant 0 : index
    %c0_214 = arith.constant 0 : index
    %216 = vector.load %arg5[%c2_211, %c0_212, %c0_213, %c0_214] : memref<4x7x8x8xf32, #tpu.memory_space<vmem>>, vector<1x1x8x8xf32>
    %217 = vector.shape_cast %216 : vector<1x1x8x8xf32> to vector<8x8xf32>
    %cst_215 = arith.constant dense<0.000000e+00> : vector<112x8xf32>
    %218 = tpu.matmul %215, %217, %cst_215 {dimension_numbers = #tpu.dot_dimension_numbers<[1], [0], [0], [1], [0, 0, 1, 1], [], []>} : vector<112x8xf32>, vector<8x8xf32>, vector<112x8xf32> -> vector<112x8xf32>
    %c40_216 = arith.constant 40 : index
    %c0_217 = arith.constant 0 : index
    %219 = vector.load %arg12[%c40_216, %c0_217] : memref<196x8xf32, #tpu.memory_space<vmem>>, vector<112x8xf32>
    %c2_218 = arith.constant 2 : index
    %c1_219 = arith.constant 1 : index
    %c0_220 = arith.constant 0 : index
    %c0_221 = arith.constant 0 : index
    %220 = vector.load %arg5[%c2_218, %c1_219, %c0_220, %c0_221] : memref<4x7x8x8xf32, #tpu.memory_space<vmem>>, vector<1x1x8x8xf32>
    %221 = vector.shape_cast %220 : vector<1x1x8x8xf32> to vector<8x8xf32>
    %cst_222 = arith.constant dense<0.000000e+00> : vector<112x8xf32>
    %222 = tpu.matmul %219, %221, %cst_222 {dimension_numbers = #tpu.dot_dimension_numbers<[1], [0], [0], [1], [0, 0, 1, 1], [], []>} : vector<112x8xf32>, vector<8x8xf32>, vector<112x8xf32> -> vector<112x8xf32>
    %223 = arith.addf %218, %222 : vector<112x8xf32>
    %c41_223 = arith.constant 41 : index
    %c0_224 = arith.constant 0 : index
    %224 = vector.load %arg12[%c41_223, %c0_224] : memref<196x8xf32, #tpu.memory_space<vmem>>, vector<112x8xf32>
    %c2_225 = arith.constant 2 : index
    %c2_226 = arith.constant 2 : index
    %c0_227 = arith.constant 0 : index
    %c0_228 = arith.constant 0 : index
    %225 = vector.load %arg5[%c2_225, %c2_226, %c0_227, %c0_228] : memref<4x7x8x8xf32, #tpu.memory_space<vmem>>, vector<1x1x8x8xf32>
    %226 = vector.shape_cast %225 : vector<1x1x8x8xf32> to vector<8x8xf32>
    %cst_229 = arith.constant dense<0.000000e+00> : vector<112x8xf32>
    %227 = tpu.matmul %224, %226, %cst_229 {dimension_numbers = #tpu.dot_dimension_numbers<[1], [0], [0], [1], [0, 0, 1, 1], [], []>} : vector<112x8xf32>, vector<8x8xf32>, vector<112x8xf32> -> vector<112x8xf32>
    %228 = arith.addf %223, %227 : vector<112x8xf32>
    %c42_230 = arith.constant 42 : index
    %c0_231 = arith.constant 0 : index
    %229 = vector.load %arg12[%c42_230, %c0_231] : memref<196x8xf32, #tpu.memory_space<vmem>>, vector<112x8xf32>
    %c2_232 = arith.constant 2 : index
    %c3_233 = arith.constant 3 : index
    %c0_234 = arith.constant 0 : index
    %c0_235 = arith.constant 0 : index
    %230 = vector.load %arg5[%c2_232, %c3_233, %c0_234, %c0_235] : memref<4x7x8x8xf32, #tpu.memory_space<vmem>>, vector<1x1x8x8xf32>
    %231 = vector.shape_cast %230 : vector<1x1x8x8xf32> to vector<8x8xf32>
    %cst_236 = arith.constant dense<0.000000e+00> : vector<112x8xf32>
    %232 = tpu.matmul %229, %231, %cst_236 {dimension_numbers = #tpu.dot_dimension_numbers<[1], [0], [0], [1], [0, 0, 1, 1], [], []>} : vector<112x8xf32>, vector<8x8xf32>, vector<112x8xf32> -> vector<112x8xf32>
    %233 = arith.addf %228, %232 : vector<112x8xf32>
    %c43_237 = arith.constant 43 : index
    %c0_238 = arith.constant 0 : index
    %234 = vector.load %arg12[%c43_237, %c0_238] : memref<196x8xf32, #tpu.memory_space<vmem>>, vector<112x8xf32>
    %c2_239 = arith.constant 2 : index
    %c4_240 = arith.constant 4 : index
    %c0_241 = arith.constant 0 : index
    %c0_242 = arith.constant 0 : index
    %235 = vector.load %arg5[%c2_239, %c4_240, %c0_241, %c0_242] : memref<4x7x8x8xf32, #tpu.memory_space<vmem>>, vector<1x1x8x8xf32>
    %236 = vector.shape_cast %235 : vector<1x1x8x8xf32> to vector<8x8xf32>
    %cst_243 = arith.constant dense<0.000000e+00> : vector<112x8xf32>
    %237 = tpu.matmul %234, %236, %cst_243 {dimension_numbers = #tpu.dot_dimension_numbers<[1], [0], [0], [1], [0, 0, 1, 1], [], []>} : vector<112x8xf32>, vector<8x8xf32>, vector<112x8xf32> -> vector<112x8xf32>
    %238 = arith.addf %233, %237 : vector<112x8xf32>
    %c44_244 = arith.constant 44 : index
    %c0_245 = arith.constant 0 : index
    %239 = vector.load %arg12[%c44_244, %c0_245] : memref<196x8xf32, #tpu.memory_space<vmem>>, vector<112x8xf32>
    %c2_246 = arith.constant 2 : index
    %c5_247 = arith.constant 5 : index
    %c0_248 = arith.constant 0 : index
    %c0_249 = arith.constant 0 : index
    %240 = vector.load %arg5[%c2_246, %c5_247, %c0_248, %c0_249] : memref<4x7x8x8xf32, #tpu.memory_space<vmem>>, vector<1x1x8x8xf32>
    %241 = vector.shape_cast %240 : vector<1x1x8x8xf32> to vector<8x8xf32>
    %cst_250 = arith.constant dense<0.000000e+00> : vector<112x8xf32>
    %242 = tpu.matmul %239, %241, %cst_250 {dimension_numbers = #tpu.dot_dimension_numbers<[1], [0], [0], [1], [0, 0, 1, 1], [], []>} : vector<112x8xf32>, vector<8x8xf32>, vector<112x8xf32> -> vector<112x8xf32>
    %243 = arith.addf %238, %242 : vector<112x8xf32>
    %c45_251 = arith.constant 45 : index
    %c0_252 = arith.constant 0 : index
    %244 = vector.load %arg12[%c45_251, %c0_252] : memref<196x8xf32, #tpu.memory_space<vmem>>, vector<112x8xf32>
    %c2_253 = arith.constant 2 : index
    %c6_254 = arith.constant 6 : index
    %c0_255 = arith.constant 0 : index
    %c0_256 = arith.constant 0 : index
    %245 = vector.load %arg5[%c2_253, %c6_254, %c0_255, %c0_256] : memref<4x7x8x8xf32, #tpu.memory_space<vmem>>, vector<1x1x8x8xf32>
    %246 = vector.shape_cast %245 : vector<1x1x8x8xf32> to vector<8x8xf32>
    %cst_257 = arith.constant dense<0.000000e+00> : vector<112x8xf32>
    %247 = tpu.matmul %244, %246, %cst_257 {dimension_numbers = #tpu.dot_dimension_numbers<[1], [0], [0], [1], [0, 0, 1, 1], [], []>} : vector<112x8xf32>, vector<8x8xf32>, vector<112x8xf32> -> vector<112x8xf32>
    %248 = arith.addf %243, %247 : vector<112x8xf32>
    %c2_258 = arith.constant 2 : index
    %c0_259 = arith.constant 0 : index
    %c0_260 = arith.constant 0 : index
    %249 = vector.load %arg6[%c2_258, %c0_259, %c0_260] : memref<4x1x8xf32, #tpu.memory_space<vmem>>, vector<1x1x8xf32>
    %250 = vector.shape_cast %249 : vector<1x1x8xf32> to vector<1x8xf32>
    %251 = vector.broadcast %250 : vector<1x8xf32> to vector<112x8xf32>
    %252 = arith.addf %248, %251 : vector<112x8xf32>
    %cst_261 = arith.constant 0.000000e+00 : f32
    %253 = vector.broadcast %cst_261 : f32 to vector<112x8xf32>
    %254 = arith.maximumf %252, %253 : vector<112x8xf32>
    %255 = vector.broadcast %0 : vector<112x1xf32> to vector<112x8xf32>
    %256 = arith.mulf %254, %255 : vector<112x8xf32>
    %c42_262 = arith.constant 42 : index
    %c0_263 = arith.constant 0 : index
    %257 = vector.load %arg13[%c42_262, %c0_263] : memref<196x8xf32, #tpu.memory_space<vmem>>, vector<112x8xf32>
    tpu.vector_store %arg13[%c42_262, %c0_263], %256 {strides = array<i32>} : memref<196x8xf32, #tpu.memory_space<vmem>>, vector<112x8xf32>,
    %c0_264 = arith.constant 0 : index
    %c0_265 = arith.constant 0 : index
    %258 = vector.load %arg13[%c0_264, %c0_265] : memref<196x8xf32, #tpu.memory_space<vmem>>, vector<112x8xf32>
    %c3_266 = arith.constant 3 : index
    %c0_267 = arith.constant 0 : index
    %c0_268 = arith.constant 0 : index
    %c0_269 = arith.constant 0 : index
    %259 = vector.load %arg5[%c3_266, %c0_267, %c0_268, %c0_269] : memref<4x7x8x8xf32, #tpu.memory_space<vmem>>, vector<1x1x8x8xf32>
    %260 = vector.shape_cast %259 : vector<1x1x8x8xf32> to vector<8x8xf32>
    %cst_270 = arith.constant dense<0.000000e+00> : vector<112x8xf32>
    %261 = tpu.matmul %258, %260, %cst_270 {dimension_numbers = #tpu.dot_dimension_numbers<[1], [0], [0], [1], [0, 0, 1, 1], [], []>} : vector<112x8xf32>, vector<8x8xf32>, vector<112x8xf32> -> vector<112x8xf32>
    %c14_271 = arith.constant 14 : index
    %c0_272 = arith.constant 0 : index
    %262 = vector.load %arg13[%c14_271, %c0_272] : memref<196x8xf32, #tpu.memory_space<vmem>>, vector<112x8xf32>
    %c3_273 = arith.constant 3 : index
    %c1_274 = arith.constant 1 : index
    %c0_275 = arith.constant 0 : index
    %c0_276 = arith.constant 0 : index
    %263 = vector.load %arg5[%c3_273, %c1_274, %c0_275, %c0_276] : memref<4x7x8x8xf32, #tpu.memory_space<vmem>>, vector<1x1x8x8xf32>
    %264 = vector.shape_cast %263 : vector<1x1x8x8xf32> to vector<8x8xf32>
    %cst_277 = arith.constant dense<0.000000e+00> : vector<112x8xf32>
    %265 = tpu.matmul %262, %264, %cst_277 {dimension_numbers = #tpu.dot_dimension_numbers<[1], [0], [0], [1], [0, 0, 1, 1], [], []>} : vector<112x8xf32>, vector<8x8xf32>, vector<112x8xf32> -> vector<112x8xf32>
    %266 = arith.addf %261, %265 : vector<112x8xf32>
    %c28_278 = arith.constant 28 : index
    %c0_279 = arith.constant 0 : index
    %267 = vector.load %arg13[%c28_278, %c0_279] : memref<196x8xf32, #tpu.memory_space<vmem>>, vector<112x8xf32>
    %c3_280 = arith.constant 3 : index
    %c2_281 = arith.constant 2 : index
    %c0_282 = arith.constant 0 : index
    %c0_283 = arith.constant 0 : index
    %268 = vector.load %arg5[%c3_280, %c2_281, %c0_282, %c0_283] : memref<4x7x8x8xf32, #tpu.memory_space<vmem>>, vector<1x1x8x8xf32>
    %269 = vector.shape_cast %268 : vector<1x1x8x8xf32> to vector<8x8xf32>
    %cst_284 = arith.constant dense<0.000000e+00> : vector<112x8xf32>
    %270 = tpu.matmul %267, %269, %cst_284 {dimension_numbers = #tpu.dot_dimension_numbers<[1], [0], [0], [1], [0, 0, 1, 1], [], []>} : vector<112x8xf32>, vector<8x8xf32>, vector<112x8xf32> -> vector<112x8xf32>
    %271 = arith.addf %266, %270 : vector<112x8xf32>
    %c42_285 = arith.constant 42 : index
    %c0_286 = arith.constant 0 : index
    %272 = vector.load %arg13[%c42_285, %c0_286] : memref<196x8xf32, #tpu.memory_space<vmem>>, vector<112x8xf32>
    %c3_287 = arith.constant 3 : index
    %c3_288 = arith.constant 3 : index
    %c0_289 = arith.constant 0 : index
    %c0_290 = arith.constant 0 : index
    %273 = vector.load %arg5[%c3_287, %c3_288, %c0_289, %c0_290] : memref<4x7x8x8xf32, #tpu.memory_space<vmem>>, vector<1x1x8x8xf32>
    %274 = vector.shape_cast %273 : vector<1x1x8x8xf32> to vector<8x8xf32>
    %cst_291 = arith.constant dense<0.000000e+00> : vector<112x8xf32>
    %275 = tpu.matmul %272, %274, %cst_291 {dimension_numbers = #tpu.dot_dimension_numbers<[1], [0], [0], [1], [0, 0, 1, 1], [], []>} : vector<112x8xf32>, vector<8x8xf32>, vector<112x8xf32> -> vector<112x8xf32>
    %276 = arith.addf %271, %275 : vector<112x8xf32>
    %c56_292 = arith.constant 56 : index
    %c0_293 = arith.constant 0 : index
    %277 = vector.load %arg13[%c56_292, %c0_293] : memref<196x8xf32, #tpu.memory_space<vmem>>, vector<112x8xf32>
    %c3_294 = arith.constant 3 : index
    %c4_295 = arith.constant 4 : index
    %c0_296 = arith.constant 0 : index
    %c0_297 = arith.constant 0 : index
    %278 = vector.load %arg5[%c3_294, %c4_295, %c0_296, %c0_297] : memref<4x7x8x8xf32, #tpu.memory_space<vmem>>, vector<1x1x8x8xf32>
    %279 = vector.shape_cast %278 : vector<1x1x8x8xf32> to vector<8x8xf32>
    %cst_298 = arith.constant dense<0.000000e+00> : vector<112x8xf32>
    %280 = tpu.matmul %277, %279, %cst_298 {dimension_numbers = #tpu.dot_dimension_numbers<[1], [0], [0], [1], [0, 0, 1, 1], [], []>} : vector<112x8xf32>, vector<8x8xf32>, vector<112x8xf32> -> vector<112x8xf32>
    %281 = arith.addf %276, %280 : vector<112x8xf32>
    %c70_299 = arith.constant 70 : index
    %c0_300 = arith.constant 0 : index
    %282 = vector.load %arg13[%c70_299, %c0_300] : memref<196x8xf32, #tpu.memory_space<vmem>>, vector<112x8xf32>
    %c3_301 = arith.constant 3 : index
    %c5_302 = arith.constant 5 : index
    %c0_303 = arith.constant 0 : index
    %c0_304 = arith.constant 0 : index
    %283 = vector.load %arg5[%c3_301, %c5_302, %c0_303, %c0_304] : memref<4x7x8x8xf32, #tpu.memory_space<vmem>>, vector<1x1x8x8xf32>
    %284 = vector.shape_cast %283 : vector<1x1x8x8xf32> to vector<8x8xf32>
    %cst_305 = arith.constant dense<0.000000e+00> : vector<112x8xf32>
    %285 = tpu.matmul %282, %284, %cst_305 {dimension_numbers = #tpu.dot_dimension_numbers<[1], [0], [0], [1], [0, 0, 1, 1], [], []>} : vector<112x8xf32>, vector<8x8xf32>, vector<112x8xf32> -> vector<112x8xf32>
    %286 = arith.addf %281, %285 : vector<112x8xf32>
    %c84_306 = arith.constant 84 : index
    %c0_307 = arith.constant 0 : index
    %287 = vector.load %arg13[%c84_306, %c0_307] : memref<196x8xf32, #tpu.memory_space<vmem>>, vector<112x8xf32>
    %c3_308 = arith.constant 3 : index
    %c6_309 = arith.constant 6 : index
    %c0_310 = arith.constant 0 : index
    %c0_311 = arith.constant 0 : index
    %288 = vector.load %arg5[%c3_308, %c6_309, %c0_310, %c0_311] : memref<4x7x8x8xf32, #tpu.memory_space<vmem>>, vector<1x1x8x8xf32>
    %289 = vector.shape_cast %288 : vector<1x1x8x8xf32> to vector<8x8xf32>
    %cst_312 = arith.constant dense<0.000000e+00> : vector<112x8xf32>
    %290 = tpu.matmul %287, %289, %cst_312 {dimension_numbers = #tpu.dot_dimension_numbers<[1], [0], [0], [1], [0, 0, 1, 1], [], []>} : vector<112x8xf32>, vector<8x8xf32>, vector<112x8xf32> -> vector<112x8xf32>
    %291 = arith.addf %286, %290 : vector<112x8xf32>
    %c3_313 = arith.constant 3 : index
    %c0_314 = arith.constant 0 : index
    %c0_315 = arith.constant 0 : index
    %292 = vector.load %arg6[%c3_313, %c0_314, %c0_315] : memref<4x1x8xf32, #tpu.memory_space<vmem>>, vector<1x1x8xf32>
    %293 = vector.shape_cast %292 : vector<1x1x8xf32> to vector<1x8xf32>
    %294 = vector.broadcast %293 : vector<1x8xf32> to vector<112x8xf32>
    %295 = arith.addf %291, %294 : vector<112x8xf32>
    %cst_316 = arith.constant 0.000000e+00 : f32
    %296 = vector.broadcast %cst_316 : f32 to vector<112x8xf32>
    %297 = arith.maximumf %295, %296 : vector<112x8xf32>
    %298 = vector.broadcast %0 : vector<112x1xf32> to vector<112x8xf32>
    %299 = arith.mulf %297, %298 : vector<112x8xf32>
    %c42_317 = arith.constant 42 : index
    %c0_318 = arith.constant 0 : index
    %300 = vector.load %arg12[%c42_317, %c0_318] : memref<196x8xf32, #tpu.memory_space<vmem>>, vector<112x8xf32>
    tpu.vector_store %arg12[%c42_317, %c0_318], %299 {strides = array<i32>} : memref<196x8xf32, #tpu.memory_space<vmem>>, vector<112x8xf32>,
    %c39_319 = arith.constant 39 : index
    %c0_320 = arith.constant 0 : index
    %301 = vector.load %arg12[%c39_319, %c0_320] : memref<196x8xf32, #tpu.memory_space<vmem>>, vector<112x8xf32>
    %c1_321 = arith.constant 1 : index
    %c0_322 = arith.constant 0 : index
    %c0_323 = arith.constant 0 : index
    %c0_324 = arith.constant 0 : index
    %302 = vector.load %arg7[%c1_321, %c0_322, %c0_323, %c0_324] : memref<2x7x8x192xf32, #tpu.memory_space<vmem>>, vector<1x1x8x192xf32>
    %303 = vector.shape_cast %302 : vector<1x1x8x192xf32> to vector<8x192xf32>
    %cst_325 = arith.constant dense<0.000000e+00> : vector<112x192xf32>
    %304 = tpu.matmul %301, %303, %cst_325 {dimension_numbers = #tpu.dot_dimension_numbers<[1], [0], [0], [1], [0, 0, 1, 1], [], []>} : vector<112x8xf32>, vector<8x192xf32>, vector<112x192xf32> -> vector<112x192xf32>
    %c40_326 = arith.constant 40 : index
    %c0_327 = arith.constant 0 : index
    %305 = vector.load %arg12[%c40_326, %c0_327] : memref<196x8xf32, #tpu.memory_space<vmem>>, vector<112x8xf32>
    %c1_328 = arith.constant 1 : index
    %c1_329 = arith.constant 1 : index
    %c0_330 = arith.constant 0 : index
    %c0_331 = arith.constant 0 : index
    %306 = vector.load %arg7[%c1_328, %c1_329, %c0_330, %c0_331] : memref<2x7x8x192xf32, #tpu.memory_space<vmem>>, vector<1x1x8x192xf32>
    %307 = vector.shape_cast %306 : vector<1x1x8x192xf32> to vector<8x192xf32>
    %cst_332 = arith.constant dense<0.000000e+00> : vector<112x192xf32>
    %308 = tpu.matmul %305, %307, %cst_332 {dimension_numbers = #tpu.dot_dimension_numbers<[1], [0], [0], [1], [0, 0, 1, 1], [], []>} : vector<112x8xf32>, vector<8x192xf32>, vector<112x192xf32> -> vector<112x192xf32>
    %309 = arith.addf %304, %308 : vector<112x192xf32>
    %c41_333 = arith.constant 41 : index
    %c0_334 = arith.constant 0 : index
    %310 = vector.load %arg12[%c41_333, %c0_334] : memref<196x8xf32, #tpu.memory_space<vmem>>, vector<112x8xf32>
    %c1_335 = arith.constant 1 : index
    %c2_336 = arith.constant 2 : index
    %c0_337 = arith.constant 0 : index
    %c0_338 = arith.constant 0 : index
    %311 = vector.load %arg7[%c1_335, %c2_336, %c0_337, %c0_338] : memref<2x7x8x192xf32, #tpu.memory_space<vmem>>, vector<1x1x8x192xf32>
    %312 = vector.shape_cast %311 : vector<1x1x8x192xf32> to vector<8x192xf32>
    %cst_339 = arith.constant dense<0.000000e+00> : vector<112x192xf32>
    %313 = tpu.matmul %310, %312, %cst_339 {dimension_numbers = #tpu.dot_dimension_numbers<[1], [0], [0], [1], [0, 0, 1, 1], [], []>} : vector<112x8xf32>, vector<8x192xf32>, vector<112x192xf32> -> vector<112x192xf32>
    %314 = arith.addf %309, %313 : vector<112x192xf32>
    %c42_340 = arith.constant 42 : index
    %c0_341 = arith.constant 0 : index
    %315 = vector.load %arg12[%c42_340, %c0_341] : memref<196x8xf32, #tpu.memory_space<vmem>>, vector<112x8xf32>
    %c1_342 = arith.constant 1 : index
    %c3_343 = arith.constant 3 : index
    %c0_344 = arith.constant 0 : index
    %c0_345 = arith.constant 0 : index
    %316 = vector.load %arg7[%c1_342, %c3_343, %c0_344, %c0_345] : memref<2x7x8x192xf32, #tpu.memory_space<vmem>>, vector<1x1x8x192xf32>
    %317 = vector.shape_cast %316 : vector<1x1x8x192xf32> to vector<8x192xf32>
    %cst_346 = arith.constant dense<0.000000e+00> : vector<112x192xf32>
    %318 = tpu.matmul %315, %317, %cst_346 {dimension_numbers = #tpu.dot_dimension_numbers<[1], [0], [0], [1], [0, 0, 1, 1], [], []>} : vector<112x8xf32>, vector<8x192xf32>, vector<112x192xf32> -> vector<112x192xf32>
    %319 = arith.addf %314, %318 : vector<112x192xf32>
    %c43_347 = arith.constant 43 : index
    %c0_348 = arith.constant 0 : index
    %320 = vector.load %arg12[%c43_347, %c0_348] : memref<196x8xf32, #tpu.memory_space<vmem>>, vector<112x8xf32>
    %c1_349 = arith.constant 1 : index
    %c4_350 = arith.constant 4 : index
    %c0_351 = arith.constant 0 : index
    %c0_352 = arith.constant 0 : index
    %321 = vector.load %arg7[%c1_349, %c4_350, %c0_351, %c0_352] : memref<2x7x8x192xf32, #tpu.memory_space<vmem>>, vector<1x1x8x192xf32>
    %322 = vector.shape_cast %321 : vector<1x1x8x192xf32> to vector<8x192xf32>
    %cst_353 = arith.constant dense<0.000000e+00> : vector<112x192xf32>
    %323 = tpu.matmul %320, %322, %cst_353 {dimension_numbers = #tpu.dot_dimension_numbers<[1], [0], [0], [1], [0, 0, 1, 1], [], []>} : vector<112x8xf32>, vector<8x192xf32>, vector<112x192xf32> -> vector<112x192xf32>
    %324 = arith.addf %319, %323 : vector<112x192xf32>
    %c44_354 = arith.constant 44 : index
    %c0_355 = arith.constant 0 : index
    %325 = vector.load %arg12[%c44_354, %c0_355] : memref<196x8xf32, #tpu.memory_space<vmem>>, vector<112x8xf32>
    %c1_356 = arith.constant 1 : index
    %c5_357 = arith.constant 5 : index
    %c0_358 = arith.constant 0 : index
    %c0_359 = arith.constant 0 : index
    %326 = vector.load %arg7[%c1_356, %c5_357, %c0_358, %c0_359] : memref<2x7x8x192xf32, #tpu.memory_space<vmem>>, vector<1x1x8x192xf32>
    %327 = vector.shape_cast %326 : vector<1x1x8x192xf32> to vector<8x192xf32>
    %cst_360 = arith.constant dense<0.000000e+00> : vector<112x192xf32>
    %328 = tpu.matmul %325, %327, %cst_360 {dimension_numbers = #tpu.dot_dimension_numbers<[1], [0], [0], [1], [0, 0, 1, 1], [], []>} : vector<112x8xf32>, vector<8x192xf32>, vector<112x192xf32> -> vector<112x192xf32>
    %329 = arith.addf %324, %328 : vector<112x192xf32>
    %c45_361 = arith.constant 45 : index
    %c0_362 = arith.constant 0 : index
    %330 = vector.load %arg12[%c45_361, %c0_362] : memref<196x8xf32, #tpu.memory_space<vmem>>, vector<112x8xf32>
    %c1_363 = arith.constant 1 : index
    %c6_364 = arith.constant 6 : index
    %c0_365 = arith.constant 0 : index
    %c0_366 = arith.constant 0 : index
    %331 = vector.load %arg7[%c1_363, %c6_364, %c0_365, %c0_366] : memref<2x7x8x192xf32, #tpu.memory_space<vmem>>, vector<1x1x8x192xf32>
    %332 = vector.shape_cast %331 : vector<1x1x8x192xf32> to vector<8x192xf32>
    %cst_367 = arith.constant dense<0.000000e+00> : vector<112x192xf32>
    %333 = tpu.matmul %330, %332, %cst_367 {dimension_numbers = #tpu.dot_dimension_numbers<[1], [0], [0], [1], [0, 0, 1, 1], [], []>} : vector<112x8xf32>, vector<8x192xf32>, vector<112x192xf32> -> vector<112x192xf32>
    %334 = arith.addf %329, %333 : vector<112x192xf32>
    %c1_368 = arith.constant 1 : index
    %c0_369 = arith.constant 0 : index
    %c0_370 = arith.constant 0 : index
    %335 = vector.load %arg8[%c1_368, %c0_369, %c0_370] : memref<2x1x192xf32, #tpu.memory_space<vmem>>, vector<1x1x192xf32>
    %336 = vector.shape_cast %335 : vector<1x1x192xf32> to vector<1x192xf32>
    %337 = vector.broadcast %336 : vector<1x192xf32> to vector<112x192xf32>
    %338 = arith.addf %334, %337 : vector<112x192xf32>
    %cst_371 = arith.constant 0.000000e+00 : f32
    %339 = vector.broadcast %cst_371 : f32 to vector<112x192xf32>
    %340 = arith.maximumf %338, %339 : vector<112x192xf32>
    %341 = vector.extract_strided_slice %340 {offsets = [3, 0], sizes = [8, 192], strides = [1, 1]} : vector<112x192xf32> to vector<8x192xf32>
    %c0_372 = arith.constant 0 : index
    %c0_373 = arith.constant 0 : index
    %c384 = arith.constant 384 : index
    %342 = vector.load %arg11[%c0_372, %c0_373, %c384] : memref<1x64x768xf32, #tpu.memory_space<vmem>>, vector<1x8x192xf32>
    %343 = vector.shape_cast %342 : vector<1x8x192xf32> to vector<8x192xf32>
    %344 = vector.shape_cast %341 : vector<8x192xf32> to vector<1x8x192xf32>
    tpu.vector_store %arg11[%c0_372, %c0_373, %c384], %344 {strides = array<i32>} : memref<1x64x768xf32, #tpu.memory_space<vmem>>, vector<1x8x192xf32>,
    %345 = vector.extract_strided_slice %340 {offsets = [17, 0], sizes = [8, 192], strides = [1, 1]} : vector<112x192xf32> to vector<8x192xf32>
    %c0_374 = arith.constant 0 : index
    %c8_375 = arith.constant 8 : index
    %c384_376 = arith.constant 384 : index
    %346 = vector.load %arg11[%c0_374, %c8_375, %c384_376] : memref<1x64x768xf32, #tpu.memory_space<vmem>>, vector<1x8x192xf32>
    %347 = vector.shape_cast %346 : vector<1x8x192xf32> to vector<8x192xf32>
    %348 = vector.shape_cast %345 : vector<8x192xf32> to vector<1x8x192xf32>
    tpu.vector_store %arg11[%c0_374, %c8_375, %c384_376], %348 {strides = array<i32>} : memref<1x64x768xf32, #tpu.memory_space<vmem>>, vector<1x8x192xf32>,
    %349 = vector.extract_strided_slice %340 {offsets = [31, 0], sizes = [8, 192], strides = [1, 1]} : vector<112x192xf32> to vector<8x192xf32>
    %c0_377 = arith.constant 0 : index
    %c16_378 = arith.constant 16 : index
    %c384_379 = arith.constant 384 : index
    %350 = vector.load %arg11[%c0_377, %c16_378, %c384_379] : memref<1x64x768xf32, #tpu.memory_space<vmem>>, vector<1x8x192xf32>
    %351 = vector.shape_cast %350 : vector<1x8x192xf32> to vector<8x192xf32>
    %352 = vector.shape_cast %349 : vector<8x192xf32> to vector<1x8x192xf32>
    tpu.vector_store %arg11[%c0_377, %c16_378, %c384_379], %352 {strides = array<i32>} : memref<1x64x768xf32, #tpu.memory_space<vmem>>, vector<1x8x192xf32>,
    %353 = vector.extract_strided_slice %340 {offsets = [45, 0], sizes = [8, 192], strides = [1, 1]} : vector<112x192xf32> to vector<8x192xf32>
    %c0_380 = arith.constant 0 : index
    %c24_381 = arith.constant 24 : index
    %c384_382 = arith.constant 384 : index
    %354 = vector.load %arg11[%c0_380, %c24_381, %c384_382] : memref<1x64x768xf32, #tpu.memory_space<vmem>>, vector<1x8x192xf32>
    %355 = vector.shape_cast %354 : vector<1x8x192xf32> to vector<8x192xf32>
    %356 = vector.shape_cast %353 : vector<8x192xf32> to vector<1x8x192xf32>
    tpu.vector_store %arg11[%c0_380, %c24_381, %c384_382], %356 {strides = array<i32>} : memref<1x64x768xf32, #tpu.memory_space<vmem>>, vector<1x8x192xf32>,
    %357 = vector.extract_strided_slice %340 {offsets = [59, 0], sizes = [8, 192], strides = [1, 1]} : vector<112x192xf32> to vector<8x192xf32>
    %c0_383 = arith.constant 0 : index
    %c32_384 = arith.constant 32 : index
    %c384_385 = arith.constant 384 : index
    %358 = vector.load %arg11[%c0_383, %c32_384, %c384_385] : memref<1x64x768xf32, #tpu.memory_space<vmem>>, vector<1x8x192xf32>
    %359 = vector.shape_cast %358 : vector<1x8x192xf32> to vector<8x192xf32>
    %360 = vector.shape_cast %357 : vector<8x192xf32> to vector<1x8x192xf32>
    tpu.vector_store %arg11[%c0_383, %c32_384, %c384_385], %360 {strides = array<i32>} : memref<1x64x768xf32, #tpu.memory_space<vmem>>, vector<1x8x192xf32>,
    %361 = vector.extract_strided_slice %340 {offsets = [73, 0], sizes = [8, 192], strides = [1, 1]} : vector<112x192xf32> to vector<8x192xf32>
    %c0_386 = arith.constant 0 : index
    %c40_387 = arith.constant 40 : index
    %c384_388 = arith.constant 384 : index
    %362 = vector.load %arg11[%c0_386, %c40_387, %c384_388] : memref<1x64x768xf32, #tpu.memory_space<vmem>>, vector<1x8x192xf32>
    %363 = vector.shape_cast %362 : vector<1x8x192xf32> to vector<8x192xf32>
    %364 = vector.shape_cast %361 : vector<8x192xf32> to vector<1x8x192xf32>
    tpu.vector_store %arg11[%c0_386, %c40_387, %c384_388], %364 {strides = array<i32>} : memref<1x64x768xf32, #tpu.memory_space<vmem>>, vector<1x8x192xf32>,
    %365 = vector.extract_strided_slice %340 {offsets = [87, 0], sizes = [8, 192], strides = [1, 1]} : vector<112x192xf32> to vector<8x192xf32>
    %c0_389 = arith.constant 0 : index
    %c48_390 = arith.constant 48 : index
    %c384_391 = arith.constant 384 : index
    %366 = vector.load %arg11[%c0_389, %c48_390, %c384_391] : memref<1x64x768xf32, #tpu.memory_space<vmem>>, vector<1x8x192xf32>
    %367 = vector.shape_cast %366 : vector<1x8x192xf32> to vector<8x192xf32>
    %368 = vector.shape_cast %365 : vector<8x192xf32> to vector<1x8x192xf32>
    tpu.vector_store %arg11[%c0_389, %c48_390, %c384_391], %368 {strides = array<i32>} : memref<1x64x768xf32, #tpu.memory_space<vmem>>, vector<1x8x192xf32>,
    %369 = vector.extract_strided_slice %340 {offsets = [101, 0], sizes = [8, 192], strides = [1, 1]} : vector<112x192xf32> to vector<8x192xf32>
    %c0_392 = arith.constant 0 : index
    %c56_393 = arith.constant 56 : index
    %c384_394 = arith.constant 384 : index
    %370 = vector.load %arg11[%c0_392, %c56_393, %c384_394] : memref<1x64x768xf32, #tpu.memory_space<vmem>>, vector<1x8x192xf32>
    %371 = vector.shape_cast %370 : vector<1x8x192xf32> to vector<8x192xf32>
    %372 = vector.shape_cast %369 : vector<8x192xf32> to vector<1x8x192xf32>
    tpu.vector_store %arg11[%c0_392, %c56_393, %c384_394], %372 {strides = array<i32>} : memref<1x64x768xf32, #tpu.memory_space<vmem>>, vector<1x8x192xf32>,
    %c0_395 = arith.constant 0 : index
    %c27 = arith.constant 27 : index
    %c0_396 = arith.constant 0 : index
    %373 = vector.load %arg1[%c0_395, %c27, %c0_396] : memref<1x196x16xf32, #tpu.memory_space<vmem>>, vector<1x112x16xf32>
    %374 = vector.shape_cast %373 : vector<1x112x16xf32> to vector<112x16xf32>
    %c0_397 = arith.constant 0 : index
    %c28_398 = arith.constant 28 : index
    %c0_399 = arith.constant 0 : index
    %375 = vector.load %arg1[%c0_397, %c28_398, %c0_399] : memref<1x196x16xf32, #tpu.memory_space<vmem>>, vector<1x112x16xf32>
    %376 = vector.shape_cast %375 : vector<1x112x16xf32> to vector<112x16xf32>
    %377 = arith.addf %374, %376 : vector<112x16xf32>
    %c0_400 = arith.constant 0 : index
    %c29 = arith.constant 29 : index
    %c0_401 = arith.constant 0 : index
    %378 = vector.load %arg1[%c0_400, %c29, %c0_401] : memref<1x196x16xf32, #tpu.memory_space<vmem>>, vector<1x112x16xf32>
    %379 = vector.shape_cast %378 : vector<1x112x16xf32> to vector<112x16xf32>
    %380 = arith.addf %377, %379 : vector<112x16xf32>
    %c0_402 = arith.constant 0 : index
    %c41_403 = arith.constant 41 : index
    %c0_404 = arith.constant 0 : index
    %381 = vector.load %arg1[%c0_402, %c41_403, %c0_404] : memref<1x196x16xf32, #tpu.memory_space<vmem>>, vector<1x112x16xf32>
    %382 = vector.shape_cast %381 : vector<1x112x16xf32> to vector<112x16xf32>
    %383 = arith.addf %380, %382 : vector<112x16xf32>
    %c0_405 = arith.constant 0 : index
    %c42_406 = arith.constant 42 : index
    %c0_407 = arith.constant 0 : index
    %384 = vector.load %arg1[%c0_405, %c42_406, %c0_407] : memref<1x196x16xf32, #tpu.memory_space<vmem>>, vector<1x112x16xf32>
    %385 = vector.shape_cast %384 : vector<1x112x16xf32> to vector<112x16xf32>
    %386 = arith.addf %383, %385 : vector<112x16xf32>
    %c0_408 = arith.constant 0 : index
    %c43_409 = arith.constant 43 : index
    %c0_410 = arith.constant 0 : index
    %387 = vector.load %arg1[%c0_408, %c43_409, %c0_410] : memref<1x196x16xf32, #tpu.memory_space<vmem>>, vector<1x112x16xf32>
    %388 = vector.shape_cast %387 : vector<1x112x16xf32> to vector<112x16xf32>
    %389 = arith.addf %386, %388 : vector<112x16xf32>
    %c0_411 = arith.constant 0 : index
    %c55 = arith.constant 55 : index
    %c0_412 = arith.constant 0 : index
    %390 = vector.load %arg1[%c0_411, %c55, %c0_412] : memref<1x196x16xf32, #tpu.memory_space<vmem>>, vector<1x112x16xf32>
    %391 = vector.shape_cast %390 : vector<1x112x16xf32> to vector<112x16xf32>
    %392 = arith.addf %389, %391 : vector<112x16xf32>
    %c0_413 = arith.constant 0 : index
    %c56_414 = arith.constant 56 : index
    %c0_415 = arith.constant 0 : index
    %393 = vector.load %arg1[%c0_413, %c56_414, %c0_415] : memref<1x196x16xf32, #tpu.memory_space<vmem>>, vector<1x112x16xf32>
    %394 = vector.shape_cast %393 : vector<1x112x16xf32> to vector<112x16xf32>
    %395 = arith.addf %392, %394 : vector<112x16xf32>
    %c0_416 = arith.constant 0 : index
    %c57 = arith.constant 57 : index
    %c0_417 = arith.constant 0 : index
    %396 = vector.load %arg1[%c0_416, %c57, %c0_417] : memref<1x196x16xf32, #tpu.memory_space<vmem>>, vector<1x112x16xf32>
    %397 = vector.shape_cast %396 : vector<1x112x16xf32> to vector<112x16xf32>
    %398 = arith.addf %395, %397 : vector<112x16xf32>
    %c0_418 = arith.constant 0 : index
    %c0_419 = arith.constant 0 : index
    %399 = vector.load %arg9[%c0_418, %c0_419] : memref<16x192xf32, #tpu.memory_space<vmem>>, vector<16x192xf32>
    %cst_420 = arith.constant dense<0.000000e+00> : vector<112x192xf32>
    %400 = tpu.matmul %398, %399, %cst_420 {dimension_numbers = #tpu.dot_dimension_numbers<[1], [0], [0], [1], [0, 0, 1, 1], [], []>} : vector<112x16xf32>, vector<16x192xf32>, vector<112x192xf32> -> vector<112x192xf32>
    %c0_421 = arith.constant 0 : index
    %c0_422 = arith.constant 0 : index
    %401 = vector.load %arg10[%c0_421, %c0_422] : memref<1x192xf32, #tpu.memory_space<vmem>>, vector<1x192xf32>
    %402 = vector.broadcast %401 : vector<1x192xf32> to vector<112x192xf32>
    %403 = arith.addf %400, %402 : vector<112x192xf32>
    %cst_423 = arith.constant 0.000000e+00 : f32
    %404 = vector.broadcast %cst_423 : f32 to vector<112x192xf32>
    %405 = arith.maximumf %403, %404 : vector<112x192xf32>
    %406 = vector.extract_strided_slice %405 {offsets = [3, 0], sizes = [8, 192], strides = [1, 1]} : vector<112x192xf32> to vector<8x192xf32>
    %c0_424 = arith.constant 0 : index
    %c0_425 = arith.constant 0 : index
    %c576 = arith.constant 576 : index
    %407 = vector.load %arg11[%c0_424, %c0_425, %c576] : memref<1x64x768xf32, #tpu.memory_space<vmem>>, vector<1x8x192xf32>
    %408 = vector.shape_cast %407 : vector<1x8x192xf32> to vector<8x192xf32>
    %409 = vector.shape_cast %406 : vector<8x192xf32> to vector<1x8x192xf32>
    tpu.vector_store %arg11[%c0_424, %c0_425, %c576], %409 {strides = array<i32>} : memref<1x64x768xf32, #tpu.memory_space<vmem>>, vector<1x8x192xf32>,
    %410 = vector.extract_strided_slice %405 {offsets = [17, 0], sizes = [8, 192], strides = [1, 1]} : vector<112x192xf32> to vector<8x192xf32>
    %c0_426 = arith.constant 0 : index
    %c8_427 = arith.constant 8 : index
    %c576_428 = arith.constant 576 : index
    %411 = vector.load %arg11[%c0_426, %c8_427, %c576_428] : memref<1x64x768xf32, #tpu.memory_space<vmem>>, vector<1x8x192xf32>
    %412 = vector.shape_cast %411 : vector<1x8x192xf32> to vector<8x192xf32>
    %413 = vector.shape_cast %410 : vector<8x192xf32> to vector<1x8x192xf32>
    tpu.vector_store %arg11[%c0_426, %c8_427, %c576_428], %413 {strides = array<i32>} : memref<1x64x768xf32, #tpu.memory_space<vmem>>, vector<1x8x192xf32>,
    %414 = vector.extract_strided_slice %405 {offsets = [31, 0], sizes = [8, 192], strides = [1, 1]} : vector<112x192xf32> to vector<8x192xf32>
    %c0_429 = arith.constant 0 : index
    %c16_430 = arith.constant 16 : index
    %c576_431 = arith.constant 576 : index
    %415 = vector.load %arg11[%c0_429, %c16_430, %c576_431] : memref<1x64x768xf32, #tpu.memory_space<vmem>>, vector<1x8x192xf32>
    %416 = vector.shape_cast %415 : vector<1x8x192xf32> to vector<8x192xf32>
    %417 = vector.shape_cast %414 : vector<8x192xf32> to vector<1x8x192xf32>
    tpu.vector_store %arg11[%c0_429, %c16_430, %c576_431], %417 {strides = array<i32>} : memref<1x64x768xf32, #tpu.memory_space<vmem>>, vector<1x8x192xf32>,
    %418 = vector.extract_strided_slice %405 {offsets = [45, 0], sizes = [8, 192], strides = [1, 1]} : vector<112x192xf32> to vector<8x192xf32>
    %c0_432 = arith.constant 0 : index
    %c24_433 = arith.constant 24 : index
    %c576_434 = arith.constant 576 : index
    %419 = vector.load %arg11[%c0_432, %c24_433, %c576_434] : memref<1x64x768xf32, #tpu.memory_space<vmem>>, vector<1x8x192xf32>
    %420 = vector.shape_cast %419 : vector<1x8x192xf32> to vector<8x192xf32>
    %421 = vector.shape_cast %418 : vector<8x192xf32> to vector<1x8x192xf32>
    tpu.vector_store %arg11[%c0_432, %c24_433, %c576_434], %421 {strides = array<i32>} : memref<1x64x768xf32, #tpu.memory_space<vmem>>, vector<1x8x192xf32>,
    %422 = vector.extract_strided_slice %405 {offsets = [59, 0], sizes = [8, 192], strides = [1, 1]} : vector<112x192xf32> to vector<8x192xf32>
    %c0_435 = arith.constant 0 : index
    %c32_436 = arith.constant 32 : index
    %c576_437 = arith.constant 576 : index
    %423 = vector.load %arg11[%c0_435, %c32_436, %c576_437] : memref<1x64x768xf32, #tpu.memory_space<vmem>>, vector<1x8x192xf32>
    %424 = vector.shape_cast %423 : vector<1x8x192xf32> to vector<8x192xf32>
    %425 = vector.shape_cast %422 : vector<8x192xf32> to vector<1x8x192xf32>
    tpu.vector_store %arg11[%c0_435, %c32_436, %c576_437], %425 {strides = array<i32>} : memref<1x64x768xf32, #tpu.memory_space<vmem>>, vector<1x8x192xf32>,
    %426 = vector.extract_strided_slice %405 {offsets = [73, 0], sizes = [8, 192], strides = [1, 1]} : vector<112x192xf32> to vector<8x192xf32>
    %c0_438 = arith.constant 0 : index
    %c40_439 = arith.constant 40 : index
    %c576_440 = arith.constant 576 : index
    %427 = vector.load %arg11[%c0_438, %c40_439, %c576_440] : memref<1x64x768xf32, #tpu.memory_space<vmem>>, vector<1x8x192xf32>
    %428 = vector.shape_cast %427 : vector<1x8x192xf32> to vector<8x192xf32>
    %429 = vector.shape_cast %426 : vector<8x192xf32> to vector<1x8x192xf32>
    tpu.vector_store %arg11[%c0_438, %c40_439, %c576_440], %429 {strides = array<i32>} : memref<1x64x768xf32, #tpu.memory_space<vmem>>, vector<1x8x192xf32>,
    %430 = vector.extract_strided_slice %405 {offsets = [87, 0], sizes = [8, 192], strides = [1, 1]} : vector<112x192xf32> to vector<8x192xf32>
    %c0_441 = arith.constant 0 : index
    %c48_442 = arith.constant 48 : index
    %c576_443 = arith.constant 576 : index
    %431 = vector.load %arg11[%c0_441, %c48_442, %c576_443] : memref<1x64x768xf32, #tpu.memory_space<vmem>>, vector<1x8x192xf32>
    %432 = vector.shape_cast %431 : vector<1x8x192xf32> to vector<8x192xf32>
    %433 = vector.shape_cast %430 : vector<8x192xf32> to vector<1x8x192xf32>
    tpu.vector_store %arg11[%c0_441, %c48_442, %c576_443], %433 {strides = array<i32>} : memref<1x64x768xf32, #tpu.memory_space<vmem>>, vector<1x8x192xf32>,
    %434 = vector.extract_strided_slice %405 {offsets = [101, 0], sizes = [8, 192], strides = [1, 1]} : vector<112x192xf32> to vector<8x192xf32>
    %c0_444 = arith.constant 0 : index
    %c56_445 = arith.constant 56 : index
    %c576_446 = arith.constant 576 : index
    %435 = vector.load %arg11[%c0_444, %c56_445, %c576_446] : memref<1x64x768xf32, #tpu.memory_space<vmem>>, vector<1x8x192xf32>
    %436 = vector.shape_cast %435 : vector<1x8x192xf32> to vector<8x192xf32>
    %437 = vector.shape_cast %434 : vector<8x192xf32> to vector<1x8x192xf32>
    tpu.vector_store %arg11[%c0_444, %c56_445, %c576_446], %437 {strides = array<i32>} : memref<1x64x768xf32, #tpu.memory_space<vmem>>, vector<1x8x192xf32>,
    return
  }
  func.func @transform_0(%arg0: i32) -> (i32, i32, i32) {
    %c0_i32 = arith.constant 0 : i32
    %c0_i32_0 = arith.constant 0 : i32
    %c0_i32_1 = arith.constant 0 : i32
    return %arg0, %c0_i32, %c0_i32_0 : i32, i32, i32
  }
  func.func @transform_1(%arg0: i32) -> (i32, i32) {
    %c0_i32 = arith.constant 0 : i32
    %c0_i32_0 = arith.constant 0 : i32
    %c0_i32_1 = arith.constant 0 : i32
    return %c0_i32, %c0_i32_0 : i32, i32
  }
  func.func @transform_2(%arg0: i32) -> (i32, i32) {
    %c0_i32 = arith.constant 0 : i32
    %c0_i32_0 = arith.constant 0 : i32
    %c0_i32_1 = arith.constant 0 : i32
    return %c0_i32, %c0_i32_0 : i32, i32
  }
  func.func @transform_3(%arg0: i32) -> (i32, i32) {
    %c0_i32 = arith.constant 0 : i32
    %c0_i32_0 = arith.constant 0 : i32
    %c0_i32_1 = arith.constant 0 : i32
    return %c0_i32, %c0_i32_0 : i32, i32
  }
  func.func @transform_4(%arg0: i32) -> (i32, i32, i32, i32) {
    %c0_i32 = arith.constant 0 : i32
    %c0_i32_0 = arith.constant 0 : i32
    %c0_i32_1 = arith.constant 0 : i32
    %c0_i32_2 = arith.constant 0 : i32
    %c0_i32_3 = arith.constant 0 : i32
    return %c0_i32, %c0_i32_0, %c0_i32_1, %c0_i32_2 : i32, i32, i32, i32
  }
  func.func @transform_5(%arg0: i32) -> (i32, i32, i32) {
    %c0_i32 = arith.constant 0 : i32
    %c0_i32_0 = arith.constant 0 : i32
    %c0_i32_1 = arith.constant 0 : i32
    %c0_i32_2 = arith.constant 0 : i32
    return %c0_i32, %c0_i32_0, %c0_i32_1 : i32, i32, i32
  }
  func.func @transform_6(%arg0: i32) -> (i32, i32, i32, i32) {
    %c0_i32 = arith.constant 0 : i32
    %c0_i32_0 = arith.constant 0 : i32
    %c0_i32_1 = arith.constant 0 : i32
    %c0_i32_2 = arith.constant 0 : i32
    %c0_i32_3 = arith.constant 0 : i32
    return %c0_i32, %c0_i32_0, %c0_i32_1, %c0_i32_2 : i32, i32, i32, i32
  }
  func.func @transform_7(%arg0: i32) -> (i32, i32, i32) {
    %c0_i32 = arith.constant 0 : i32
    %c0_i32_0 = arith.constant 0 : i32
    %c0_i32_1 = arith.constant 0 : i32
    %c0_i32_2 = arith.constant 0 : i32
    return %c0_i32, %c0_i32_0, %c0_i32_1 : i32, i32, i32
  }
  func.func @transform_8(%arg0: i32) -> (i32, i32) {
    %c0_i32 = arith.constant 0 : i32
    %c0_i32_0 = arith.constant 0 : i32
    %c0_i32_1 = arith.constant 0 : i32
    return %c0_i32, %c0_i32_0 : i32, i32
  }
  func.func @transform_9(%arg0: i32) -> (i32, i32) {
    %c0_i32 = arith.constant 0 : i32
    %c0_i32_0 = arith.constant 0 : i32
    %c0_i32_1 = arith.constant 0 : i32
    return %c0_i32, %c0_i32_0 : i32, i32
  }
  func.func @transform_10(%arg0: i32) -> (i32, i32, i32) {
    %c0_i32 = arith.constant 0 : i32
    %c0_i32_0 = arith.constant 0 : i32
    %c0_i32_1 = arith.constant 0 : i32
    return %arg0, %c0_i32, %c0_i32_0 : i32, i32, i32
  }
}

</mosaic_0001>

<bundles_post_ra>
// kernel: inception_c_forward.1
= control target key start
LH: loop header
LB: loop body
LE: loop exit
PB: predicated region body
PF: predicated region fallthrough
CT: control target
= control target key end

     0   :  { %s16985_s0 = inlined_call_operand.vmem [shape: f32[2,196,16], index: 0, kind: input, shape index: {}]   ;;  %s16986_s1 = inlined_call_operand.vmem [shape: f32[112,1], index: 1, kind: input, shape index: {}]   ;;  %s16987_s2 = inlined_call_operand.vmem [shape: f32[16,208], index: 2, kind: input, shape index: {}]   ;;  %s16988_s3 = inlined_call_operand.vmem [shape: f32[1,208], index: 3, kind: input, shape index: {}]   ;;  %s16989_s4 = inlined_call_operand.vmem [shape: f32[4,7,8,8], index: 4, kind: input, shape index: {}]   ;;  %s16990_s5 = inlined_call_operand.vmem [shape: f32[4,1,8], index: 5, kind: input, shape index: {}]   ;;  %s16991_s6 = inlined_call_operand.vmem [shape: f32[2,7,8,192], index: 6, kind: input, shape index: {}]   ;;  %s16992_s7 = inlined_call_operand.vmem [shape: f32[2,1,192], index: 7, kind: input, shape index: {}]   ;;  %s16993_s8 = inlined_call_operand.vmem [shape: f32[16,192], index: 8, kind: input, shape index: {}]   ;;  %s16994_s9 = inlined_call_operand.vmem [shape: f32[1,192], index: 9, kind: input, shape index: {}]   ;;  %s16995_s10 = inlined_call_operand.hbm [shape: f32[2,64,768], index: 10, kind: output, shape index: {}]  }
   0x1   :  { %17039 = sst [smem:[#allocation81_spill]] %s16985_s0 }
   0x2   :  { %15 = vsyncpa [#allocation6], 0 }
   0x3   :  { %17 = vsyncpa [#allocation6 + $0x1], 0  ;;  %s13141_s13 = smov 0   ;;  %s13143_s14 = smov 0  }
   0x4   :  { %s13145_s15 = smov 0   ;;  %s13147_s16 = smov 0  }
   0x5 LB: > { %s13162_s17 = sadd.s32 4294967295, %s13077_s16   ;;  %s11218_s18 = sadd.s32 4294967294, %s13077_s16   ;;  %s13077_s16 = sphi %s13147_s16, %s17416_s16   ;;  %s13073_s15 = sphi %s13145_s15, %s17415_s15   ;;  %s13069_s14 = sphi %s13143_s14, %s17414_s14   ;;  %s13065_s13 = sphi %s13141_s13, %s17413_s13  }
   0x6   : > { %s13166_s19 = sadd.s32 1, %s13077_s16   ;;  %s245_s20 = sadd.s32 1, %s13073_s15 }
   0x7   : > { %s242_s21 = ssub.s32 %s13077_s16, %s13166_s19  ;;  %p255_p0 = scmp.ne.s32.totalorder %s13073_s15, %s13069_s14 }
   0x8   : > { %p243_p1 = scmp.eq.s32.totalorder %s242_s21, 0  ;;  %p256_p2 = scmp.eq.s32.totalorder %s13162_s17, 1 }
   0x9   : > { %p261_p3 = scmp.ne.s32.totalorder %s13069_s14, %s13065_s13  ;;  %p262_p4 = scmp.eq.s32.totalorder %s11218_s18, 1 }
   0xa   : > { %s13177_s22 = scalar_select %p243_p1, %s13073_s15, %s245_s20  }
   0xb   : > { %p13179_p5 = por %p256_p2, %p255_p0  ;;  %p13183_p6 = por %p262_p4, %p261_p3 }
   0xc   : > { %p11221_p7 = scmp.ge.s32.totalorder %s13077_s16, 1  ;;  %p315_p8 = scmp.lt.s32.totalorder %s13077_s16, 3 }
   0xe   : > { %p316_p9 = pnand %p11221_p7, %p315_p8 }
  0x10   : > { %319 = sbr.rel (%p316_p9) target bundleno = 2328 (0x918), region = 60 }
  0x15   : > { %v466_v0 = vld [vmem:[%s16987_s2 + $0x18] sm:$0xff]  ;;  %v465_v1 = vld [vmem:[%s16987_s2 + $0x10] sm:$0xff]  ;;  %v464_v2 = vld [vmem:[%s16987_s2 + $0x8] sm:$0xff]  ;;  %p353_p10 = scmp.lt.s32.totalorder %s13162_s17, 1  ;;  %v16997_v4 = vmov 0.0   ;;  %v13080_v6 = vmov 0   ;;  %v469_v34 = vlaneseq }
  0x16   : > { %550 = vmatprep.subr.mxu0 %v466_v0  ;;  %v463_v3 = vld [vmem:[%s16987_s2] sm:$0xff]  ;;  %586 = vmatprep.mubr.f32.mxu0 %v16997_v4  ;;  %v360_v7 = vld [vmem:[%s16986_s1 + $0x10] sm:$0xff]  ;;  %v359_v8 = vld [vmem:[%s16986_s1 + $0x8] sm:$0xff]  ;;  %vm479_vm0 = vcmask 130048   ;;  %s17042_s0 = sld [smem:[#allocation81_spill]]  ;;  %vm372_vm1 = vcmask 64512  }
  0x17   : > { %v358_v5 = vld [vmem:[%s16986_s1] sm:$0xff]  ;;  %551 = vmatpush1.msra.mxu0 %v465_v1  ;;  %s354_s21 = scalar_select %p353_p10, %s13162_s17, 1  ;;  %13015 = vset.pattern.permute.xlu0 %v13080_v6  ;;  %v361_v9 = vld [vmem:[%s16986_s1 + $0x18] sm:$0xff]  ;;  %v363_v13 = vld [vmem:[%s16986_s1 + $0x28] sm:$0xff]  ;;  %378 = vst.msk [vmem:[#allocation2 + $0x28] sm:$0xff] %vm372_vm1, %v16997_v4  ;;  %v470_v35 = vshrl.u32 %v469_v34, 7 }
  0x18   : > { %552 = vmatprep.subr.mxu0 %v464_v2  ;;  %814 = vperm.xlu0 %13015, %v358_v5   ;;  %v362_v11 = vld [vmem:[%s16986_s1 + $0x20] sm:$0xff]  ;;  %v364_v14 = vld [vmem:[%s16986_s1 + $0x30] sm:$0xff]  ;;  %v365_v16 = vld [vmem:[%s16986_s1 + $0x38] sm:$0xff]  ;;  %379 = vst.msk [vmem:[#allocation2 + $0x30] sm:$0xff] %vm372_vm1, %v16997_v4  ;;  %s16996_s26 = sand.u32 1, %s13069_s14   ;;  %vm703_vm2 = vcmask 1044480  }
  0x19   : > { %553 = vmatpush1.msra.mxu0 %v463_v3  ;;  %s12968_s27 = smul.u32 200, %s354_s21  ;;  %13016 = vset.pattern.permute.xlu1 %v13080_v6  ;;  %v366_v17 = vld [vmem:[%s16986_s1 + $0x40] sm:$0xff]  ;;  %v367_v19 = vld [vmem:[%s16986_s1 + $0x48] sm:$0xff]  ;;  %v368_v20 = vld [vmem:[%s16986_s1 + $0x50] sm:$0xff]  ;;  %377 = vst.msk [vmem:[#allocation2 + $0x20] sm:$0xff] %vm372_vm1, %v16997_v4  ;;  %v13420_v36 = vsub.s32 0, %v470_v35 }
  0x1a   : > { %824 = vperm.xlu1 %13016, %v360_v7   ;;  %v369_v22 = vld [vmem:[%s16986_s1 + $0x58] sm:$0xff]  ;;  %v370_v23 = vld [vmem:[%s16986_s1 + $0x60] sm:$0xff]  ;;  %v371_v25 = vld [vmem:[%s16986_s1 + $0x68] sm:$0xff]  ;;  %380 = vst.msk [vmem:[#allocation2 + $0x38] sm:$0xff] %vm372_vm1, %v16997_v4  ;;  %v13425_v38 = vsub.s32 1, %v470_v35  ;;  %s12967_s11 = smul.u32 384, %s16996_s26 }
  0x1b   : > { %381 = vst.msk [vmem:[#allocation2 + $0x40] sm:$0xff] %vm372_vm1, %v16997_v4  ;;  %382 = vst.msk [vmem:[#allocation2 + $0x48] sm:$0xff] %vm372_vm1, %v16997_v4  ;;  %v467_v37 = vld [vmem:[%s16988_s3] sm:$0x3]  ;;  %v11237_v47 = vld [vmem:[%s16989_s4 + $0x8] sm:$0xff]  ;;  %s17036_s18 = smov 64  }
  0x1c   : > { %s13216_s12 = scalar_lea.vmem %s17042_s0, %s12968_s27  ;;  %819 = vperm.xlu0 %13015, %v359_v8   ;;  %383 = vst.msk [vmem:[#allocation2 + $0x50] sm:$0xff] %vm372_vm1, %v16997_v4  ;;  %384 = vst.msk [vmem:[#allocation2 + $0x58] sm:$0xff] %vm372_vm1, %v16997_v4  ;;  %v13428_v39 = vrot.slane %v467_v37, %v13420_v36  ;;  %v13431_v40 = vrot.slane %v467_v37, %v13425_v38  ;;  %v11281_v48 = vld [vmem:[%s16989_s4 + $0x18] sm:$0xff]  ;;  %12323 = vmatprep.subr.mxu1 %v11237_v47  ;;  %vm713_vm3 = vcmask 523264   ;;  %s13458_s20 = scalar_lea.vmem [#allocation5], %s12967_s11  ;;  %vm719_vm4 = vcmask 1046528  }
  0x1d   : > { %v449_v10 = vld [vmem:[%s13216_s12 + $0x2a] sm:$0xff]  ;;  %v450_v12 = vld [vmem:[%s13216_s12 + $0x32] sm:$0xff]  ;;  %v451_v15 = vld [vmem:[%s13216_s12 + $0x3a] sm:$0xff]  ;;  %385 = vst.msk [vmem:[#allocation2 + $0x60] sm:$0xff] %vm372_vm1, %v16997_v4  ;;  %12392 = vmatprep.subr.mxu0 %v11281_v48  ;;  %12324 = vmatpush3.msra.mxu1 %v11237_v47  ;;  %vm732_vm5 = vcmask 1040384   ;;  %vm747_vm6 = vcmask 1042432  }
  0x1e   : > { %11223 = vmatmul.mubr.msk.f32.vlgmr.msra.gmra.mxu0 %vm479_vm0, %v449_v10  ;;  %829 = vperm.xlu1 %13016, %v361_v9   ;;  %v452_v18 = vld [vmem:[%s13216_s12 + $0x42] sm:$0xff]  ;;  %v453_v21 = vld [vmem:[%s13216_s12 + $0x4a] sm:$0xff]  ;;  %v454_v24 = vld [vmem:[%s13216_s12 + $0x52] sm:$0xff]  ;;  %386 = vst.msk [vmem:[#allocation2 + $0x68] sm:$0xff] %vm372_vm1, %v16997_v4  ;;  %s13082_s29 = smov 56   ;;  %vm397_vm7 = vcmask 60416  }
  0x1f   : > { %592 = vmatprep.mubr.f32.mxu0 %v16997_v4  ;;  %v455_v26 = vld [vmem:[%s13216_s12 + $0x5a] sm:$0xff]  ;;  %v456_v27 = vld [vmem:[%s13216_s12 + $0x62] sm:$0xff]  ;;  %v457_v28 = vld [vmem:[%s13216_s12 + $0x6a] sm:$0xff]  ;;  %387 = vst.msk [vmem:[#allocation2 + $0x70] sm:$0xff] %vm372_vm1, %v16997_v4  ;;  %12393 = vmatpush3.msra.mxu0 %v11281_v48  ;;  %vm4185_vm8 = vcmask 1048064   ;;  %s12969_s27 = smul.u32 6144, %s13162_s17 }
  0x20   : > { %834 = vperm.xlu0 %13015, %v362_v11   ;;  %v458_v29 = vld [vmem:[%s13216_s12 + $0x72] sm:$0xff]  ;;  %v459_v30 = vld [vmem:[%s13216_s12 + $0x7a] sm:$0xff]  ;;  %v460_v31 = vld [vmem:[%s13216_s12 + $0x82] sm:$0xff]  ;;  %388 = vst.msk [vmem:[#allocation2 + $0x78] sm:$0xff] %vm372_vm1, %v16997_v4  ;;  %s11156_s28 = sshll.u32 %s13458_s20, 4  ;;  %s17412_s17 = sand.u32 1, %s13069_s14   ;;  %s16939_s28 = int_to_ptr.vmem [resolvable:$true] %s11156_s28 }
  0x21   : > { %v461_v32 = vld [vmem:[%s13216_s12 + $0x8a] sm:$0xff]  ;;  %v462_v33 = vld [vmem:[%s13216_s12 + $0x92] sm:$0xff]  ;;  %389 = vst.msk [vmem:[#allocation2 + $0x80] sm:$0xff] %vm372_vm1, %v16997_v4  ;;  %390 = vst.msk [vmem:[#allocation2 + $0x88] sm:$0xff] %vm372_vm1, %v16997_v4  ;;  %s16937_s30 = scalar_lea.hbm %s16995_s10, %s12969_s27  ;;  %s16945_s11 = scalar_lea.sflag [#allocation6], %s17412_s17 }
  0x22   : > { %11224 = vmatmul.mubr.msk.f32.gmra.mxu0 %vm479_vm0, %v450_v12  ;;  %839 = vperm.xlu1 %13016, %v363_v13   ;;  %391 = vst.msk [vmem:[#allocation2 + $0x90] sm:$0xff] %vm372_vm1, %v16997_v4  ;;  %392 = vst.msk [vmem:[#allocation2 + $0x98] sm:$0xff] %vm372_vm1, %v16997_v4  ;;  %s13083_s21 = smov [#allocation5]  }
  0x23   : > { %598 = vmatprep.mubr.f32.mxu0 %v16997_v4  ;;  %399 = vst.msk [vmem:[#allocation3] sm:$0xff] %vm372_vm1, %v16997_v4  ;;  %400 = vst.msk [vmem:[#allocation3 + $0x8] sm:$0xff] %vm372_vm1, %v16997_v4  ;;  %s13021_s25 = sshll.u32 %s13083_s21, 4  ;;  %s13022_s25 = int_to_ptr.vmem [resolvable:$false] %s13021_s25 }
  0x24   : > { %844 = vperm.xlu0 %13015, %v364_v14   ;;  %401 = vst.msk [vmem:[#allocation3 + $0x10] sm:$0xff] %vm372_vm1, %v16997_v4  ;;  %402 = vst.msk [vmem:[#allocation3 + $0x18] sm:$0xff] %vm372_vm1, %v16997_v4  ;;  %s13023_s0 = scalar_lea.vmem %s13022_s25, 12288  ;;  %p13024_p0 = scmp.lt.s32.totalorder %s16939_s28, %s13022_s25 }
  0x25   : > { %403 = vst.msk [vmem:[#allocation3 + $0x20] sm:$0xff] %vm372_vm1, %v16997_v4  ;;  %404 = vst.msk [vmem:[#allocation3 + $0x28] sm:$0xff] %vm372_vm1, %v16997_v4 }
  0x26   : > { %11225 = vmatmul.mubr.msk.f32.gmra.mxu0 %vm479_vm0, %v451_v15  ;;  %849 = vperm.xlu1 %13016, %v365_v16   ;;  %405 = vst.msk [vmem:[#allocation3 + $0x30] sm:$0xff] %vm372_vm1, %v16997_v4  ;;  %406 = vst.msk [vmem:[#allocation3 + $0x38] sm:$0xff] %vm372_vm1, %v16997_v4 }
  0x27   : > { %604 = vmatprep.mubr.f32.mxu0 %v16997_v4  ;;  %407 = vst.msk [vmem:[#allocation3 + $0x40] sm:$0xff] %vm372_vm1, %v16997_v4  ;;  %408 = vst.msk [vmem:[#allocation3 + $0x48] sm:$0xff] %vm372_vm1, %v16997_v4 }
  0x28   : > { %854 = vperm.xlu0 %13015, %v366_v17   ;;  %409 = vst.msk [vmem:[#allocation3 + $0x50] sm:$0xff] %vm372_vm1, %v16997_v4  ;;  %410 = vst.msk [vmem:[#allocation3 + $0x58] sm:$0xff] %vm372_vm1, %v16997_v4 }
  0x29   : > { %411 = vst.msk [vmem:[#allocation3 + $0x60] sm:$0xff] %vm372_vm1, %v16997_v4  ;;  %412 = vst.msk [vmem:[#allocation3 + $0x68] sm:$0xff] %vm372_vm1, %v16997_v4 }
  0x2a   : > { %11226 = vmatmul.mubr.msk.f32.gmra.mxu0 %vm479_vm0, %v452_v18  ;;  %859 = vperm.xlu1 %13016, %v367_v19   ;;  %413 = vst.msk [vmem:[#allocation3 + $0x70] sm:$0xff] %vm372_vm1, %v16997_v4  ;;  %414 = vst.msk [vmem:[#allocation3 + $0x78] sm:$0xff] %vm372_vm1, %v16997_v4 }
  0x2b   : > { %610 = vmatprep.mubr.f32.mxu0 %v16997_v4  ;;  %415 = vst.msk [vmem:[#allocation3 + $0x80] sm:$0xff] %vm372_vm1, %v16997_v4  ;;  %416 = vst.msk [vmem:[#allocation3 + $0x88] sm:$0xff] %vm372_vm1, %v16997_v4 }
  0x2c   : > { %864 = vperm.xlu0 %13015, %v368_v20   ;;  %417 = vst.msk [vmem:[#allocation3 + $0x90] sm:$0xff] %vm372_vm1, %v16997_v4  ;;  %418 = vst.msk [vmem:[#allocation3 + $0x98] sm:$0xff] %vm372_vm1, %v16997_v4 }
  0x2d   : > { %419 = vst.msk [vmem:[#allocation3 + $0xa0] sm:$0xff] %vm372_vm1, %v16997_v4  ;;  %420 = vst.msk [vmem:[#allocation3 + $0xa8] sm:$0xff] %vm372_vm1, %v16997_v4 }
  0x2e   : > { %11227 = vmatmul.mubr.msk.f32.gmra.mxu0 %vm479_vm0, %v453_v21  ;;  %869 = vperm.xlu1 %13016, %v369_v22   ;;  %421 = vst.msk [vmem:[#allocation3 + $0xb0] sm:$0xff] %vm372_vm1, %v16997_v4  ;;  %422 = vst.msk [vmem:[#allocation3 + $0xb8] sm:$0xff] %vm372_vm1, %v16997_v4 }
  0x2f   : > { %616 = vmatprep.mubr.f32.mxu0 %v16997_v4  ;;  %424 = vst.msk [vmem:[#allocation4] sm:$0xff] %vm372_vm1, %v16997_v4  ;;  %425 = vst.msk [vmem:[#allocation4 + $0x8] sm:$0xff] %vm372_vm1, %v16997_v4 }
  0x30   : > { %874 = vperm.xlu0 %13015, %v370_v23   ;;  %426 = vst.msk [vmem:[#allocation4 + $0x10] sm:$0xff] %vm372_vm1, %v16997_v4  ;;  %427 = vst.msk [vmem:[#allocation4 + $0x18] sm:$0xff] %vm372_vm1, %v16997_v4 }
  0x31   : > { %428 = vst.msk [vmem:[#allocation4 + $0x20] sm:$0xff] %vm372_vm1, %v16997_v4  ;;  %429 = vst.msk [vmem:[#allocation4 + $0x28] sm:$0xff] %vm372_vm1, %v16997_v4 }
  0x32   : > { %11228 = vmatmul.mubr.msk.f32.gmra.mxu0 %vm479_vm0, %v454_v24  ;;  %879 = vperm.xlu1 %13016, %v371_v25   ;;  %430 = vst.msk [vmem:[#allocation4 + $0x30] sm:$0xff] %vm372_vm1, %v16997_v4  ;;  %431 = vst.msk [vmem:[#allocation4 + $0x38] sm:$0xff] %vm372_vm1, %v16997_v4 }
  0x33   : > { %622 = vmatprep.mubr.f32.mxu0 %v16997_v4  ;;  %432 = vst.msk [vmem:[#allocation4 + $0x40] sm:$0xff] %vm372_vm1, %v16997_v4  ;;  %433 = vst.msk [vmem:[#allocation4 + $0x48] sm:$0xff] %vm372_vm1, %v16997_v4 }
  0x34   : > { %434 = vst.msk [vmem:[#allocation4 + $0x50] sm:$0xff] %vm372_vm1, %v16997_v4  ;;  %435 = vst.msk [vmem:[#allocation4 + $0x58] sm:$0xff] %vm372_vm1, %v16997_v4 }
  0x35   : > { %436 = vst.msk [vmem:[#allocation4 + $0x60] sm:$0xff] %vm372_vm1, %v16997_v4  ;;  %437 = vst.msk [vmem:[#allocation4 + $0x68] sm:$0xff] %vm372_vm1, %v16997_v4 }
  0x36   : > { %11229 = vmatmul.mubr.msk.f32.gmra.mxu0 %vm479_vm0, %v455_v26  ;;  %438 = vst.msk [vmem:[#allocation4 + $0x70] sm:$0xff] %vm372_vm1, %v16997_v4  ;;  %439 = vst.msk [vmem:[#allocation4 + $0x78] sm:$0xff] %vm372_vm1, %v16997_v4 }
  0x37   : > { %628 = vmatprep.mubr.f32.mxu0 %v16997_v4  ;;  %440 = vst.msk [vmem:[#allocation4 + $0x80] sm:$0xff] %vm372_vm1, %v16997_v4  ;;  %441 = vst.msk [vmem:[#allocation4 + $0x88] sm:$0xff] %vm372_vm1, %v16997_v4 }
  0x38   : > { %442 = vst.msk [vmem:[#allocation4 + $0x90] sm:$0xff] %vm372_vm1, %v16997_v4  ;;  %443 = vst.msk [vmem:[#allocation4 + $0x98] sm:$0xff] %vm372_vm1, %v16997_v4 }
  0x39   : > { %444 = vst.msk [vmem:[#allocation4 + $0xa0] sm:$0xff] %vm372_vm1, %v16997_v4  ;;  %445 = vst.msk [vmem:[#allocation4 + $0xa8] sm:$0xff] %vm372_vm1, %v16997_v4 }
  0x3a   : > { %11230 = vmatmul.mubr.msk.f32.gmra.mxu0 %vm479_vm0, %v456_v27  ;;  %446 = vst.msk [vmem:[#allocation4 + $0xb0] sm:$0xff] %vm372_vm1, %v16997_v4  ;;  %447 = vst.msk [vmem:[#allocation4 + $0xb8] sm:$0xff] %vm372_vm1, %v16997_v4 }
  0x3b   : > { %634 = vmatprep.mubr.f32.mxu0 %v16997_v4  ;;  %17043 = vst [vmem:[#allocation8_spill] sm:$0xff] %v13420_v36  ;;  %17044 = vst [vmem:[#allocation9_spill] sm:$0xff] %v13425_v38 }
  0x3e   : > { %11231 = vmatmul.mubr.msk.f32.gmra.mxu0 %vm479_vm0, %v457_v28 }
  0x3f   : > { %640 = vmatprep.mubr.f32.mxu0 %v16997_v4 }
  0x42   : > { %11232 = vmatmul.mubr.msk.f32.gmra.mxu0 %vm479_vm0, %v458_v29 }
  0x43   : > { %646 = vmatprep.mubr.f32.mxu0 %v16997_v4 }
  0x46   : > { %11233 = vmatmul.mubr.msk.f32.gmra.mxu0 %vm479_vm0, %v459_v30 }
  0x47   : > { %652 = vmatprep.mubr.f32.mxu0 %v16997_v4 }
  0x4a   : > { %11234 = vmatmul.mubr.msk.f32.gmra.mxu0 %vm479_vm0, %v460_v31 }
  0x4b   : > { %658 = vmatprep.mubr.f32.mxu0 %v16997_v4 }
  0x4e   : > { %11235 = vmatmul.mubr.msk.f32.gmra.mxu0 %vm479_vm0, %v461_v32 }
  0x4f   : > { %664 = vmatprep.mubr.f32.mxu0 %v16997_v4 }
  0x52   : > { %11236 = vmatmul.mubr.msk.f32.gmra.mxu0 %vm479_vm0, %v462_v33 }
  0x93   : > { %v13436_v45 = vpop.permute.xlu0 %814 }
  0x94   : > { %17045 = vst [vmem:[#allocation10_spill] sm:$0xff] %v13436_v45 }
  0x95   : > { %v13465_v8 = vpop.permute.xlu1 %824 }
  0x96   : > { %17047 = vst [vmem:[#allocation12_spill] sm:$0xff] %v13465_v8 }
  0x97   : > { %v13454_v61 = vpop.permute.xlu0 %819 }
  0x98   : > { %17046 = vst [vmem:[#allocation11_spill] sm:$0xff] %v13454_v61 }
  0x99   : > { %v13480_v23 = vpop.permute.xlu1 %829 }
  0x9a   : > { %17048 = vst [vmem:[#allocation13_spill] sm:$0xff] %v13480_v23 }
  0x9b   : > { %v13493_v35 = vpop.permute.xlu0 %834 }
  0x9c   : > { %17049 = vst [vmem:[#allocation14_spill] sm:$0xff] %v13493_v35 }
  0xde   : > { %v588_v41 = vpop.f32.mrf.mxu0 }
  0xdf   : > { %v589_v42 = vadd.f32 %v588_v41, %v13428_v39 }
  0xe0   : > { %v590_v43 = vpop.f32.mrf.mxu0 }
  0xe1   : > { %v591_v44 = vadd.f32 %v590_v43, %v13431_v40  ;;  %v671_v49 = vmax.f32 %v589_v42, 0.0 }
  0xe2   : > { %v594_v46 = vpop.f32.mrf.mxu0 }
  0xe3   : > { %v672_v50 = vmax.f32 %v591_v44, 0.0  ;;  %v595_v51 = vadd.f32 %v594_v46, %v13428_v39  ;;  %v704_v57 = vrot.slane %v671_v49, 3 }
  0xe4   : > { %v596_v52 = vpop.f32.mrf.mxu0 }
  0xe5   : > { %v673_v53 = vmax.f32 %v595_v51, 0.0  ;;  %v597_v54 = vadd.f32 %v596_v52, %v13431_v40  ;;  %v13449_v55 = vmul.f32 %v13436_v45, %v672_v50  ;;  %v707_v63 = vrot.slane %v672_v50, 3  ;;  %v13502_v50 = vpop.permute.xlu1 %839 }
  0xe6   : > { %v600_v56 = vpop.f32.mrf.mxu0  ;;  %17050 = vst [vmem:[#allocation15_spill] sm:$0xff] %v13502_v50 }
  0xe7   : > { %v705_v58 = vrot.slane %v673_v53, 3  ;;  %v674_v59 = vmax.f32 %v597_v54, 0.0  ;;  %v601_v60 = vadd.f32 %v600_v56, %v13428_v39  ;;  %910 = vrot.lane.b32.xlu0 %v13449_v55, %s17036_s18 }
  0xe8   : > { %v602_v62 = vpop.f32.mrf.mxu0 }
  0xe9   : > { %v706_v0 = vsel %vm703_vm2, %v704_v57, %v705_v58  ;;  %v708_v1 = vrot.slane %v674_v59, 3  ;;  %v603_v2 = vadd.f32 %v602_v62, %v13431_v40  ;;  %v13462_v5 = vmul.f32 %v13454_v61, %v674_v59 }
  0xea   : > { %712 = vst [vmem:[%s13458_s20] sm:$0xff] %v706_v0  ;;  %v606_v3 = vpop.f32.mrf.mxu0  ;;  %v675_v7 = vmax.f32 %v601_v60, 0.0 }
  0xeb   : > { %v709_v6 = vsel %vm703_vm2, %v707_v63, %v708_v1  ;;  %v676_v9 = vmax.f32 %v603_v2, 0.0  ;;  %v607_v10 = vadd.f32 %v606_v3, %v13428_v39  ;;  %912 = vrot.lane.b32.xlu1 %v13462_v5, %s17036_s18  ;;  %v13519_v63 = vld [vmem:[%s16989_s4] sm:$0xff]  ;;  %v13522_v1 = vpop.permute.xlu0 %844 }
  0xec   : > { %v608_v11 = vpop.f32.mrf.mxu0  ;;  %714 = vst.msk [vmem:[%s13458_s20 + $0x8] sm:$0xff] %vm713_vm3, %v709_v6  ;;  %v720_v16 = vrot.slane %v675_v7, 1  ;;  %12346 = vmatprep.subr.mxu1 %v13519_v63  ;;  %17051 = vst [vmem:[#allocation16_spill] sm:$0xff] %v13522_v1 }
  0xed   : > { %v677_v12 = vmax.f32 %v607_v10, 0.0  ;;  %v609_v13 = vadd.f32 %v608_v11, %v13431_v40  ;;  %v13474_v14 = vmul.f32 %v13465_v8, %v676_v9  ;;  %v723_v21 = vrot.slane %v676_v9, 1 }
  0xee   : > { %v612_v15 = vpop.f32.mrf.mxu0 }
  0xef   : > { %v721_v17 = vrot.slane %v677_v12, 1  ;;  %v678_v18 = vmax.f32 %v609_v13, 0.0  ;;  %v613_v19 = vadd.f32 %v612_v15, %v13428_v39  ;;  %914 = vrot.lane.b32.xlu0 %v13474_v14, %s17036_s18  ;;  %v733_v29 = vrot.slane %v677_v12, 7 }
  0xf0   : > { %v614_v20 = vpop.f32.mrf.mxu0 }
  0xf1   : > { %v722_v22 = vsel %vm719_vm4, %v720_v16, %v721_v17  ;;  %v724_v24 = vrot.slane %v678_v18, 1  ;;  %v679_v25 = vmax.f32 %v613_v19, 0.0  ;;  %v615_v26 = vadd.f32 %v614_v20, %v13431_v40  ;;  %v13532_v16 = vpop.permute.xlu1 %849 }
  0xf2   : > { %728 = vst [vmem:[%s13458_s20 + $0x30] sm:$0xff] %v722_v22  ;;  %v618_v27 = vpop.f32.mrf.mxu0  ;;  %v13485_v28 = vmul.f32 %v13480_v23, %v678_v18  ;;  %v736_v42 = vrot.slane %v678_v18, 7  ;;  %17052 = vst [vmem:[#allocation17_spill] sm:$0xff] %v13532_v16 }
  0xf3   : > { %v734_v30 = vrot.slane %v679_v25, 7  ;;  %v619_v31 = vadd.f32 %v618_v27, %v13428_v39  ;;  %v725_v32 = vsel %vm719_vm4, %v723_v21, %v724_v24  ;;  %v680_v33 = vmax.f32 %v615_v26, 0.0 }
  0xf4   : > { %916 = vrot.lane.b32.xlu1 %v13485_v28, %s17036_s18  ;;  %v620_v34 = vpop.f32.mrf.mxu0  ;;  %729 = vst.msk [vmem:[%s13458_s20 + $0x38] sm:$0xff] %vm713_vm3, %v725_v32 }
  0xf5   : > { %v735_v37 = vsel %vm732_vm5, %v733_v29, %v734_v30  ;;  %v621_v41 = vadd.f32 %v620_v34, %v13431_v40  ;;  %v737_v43 = vrot.slane %v680_v33, 7  ;;  %v13499_v46 = vmul.f32 %v13493_v35, %v680_v33  ;;  %v13545_v29 = vpop.permute.xlu0 %854 }
  0xf6   : > { %741 = vst [vmem:[%s13458_s20 + $0x60] sm:$0xff] %v735_v37  ;;  %v624_v44 = vpop.f32.mrf.mxu0  ;;  %v681_v47 = vmax.f32 %v619_v31, 0.0  ;;  %17053 = vst [vmem:[#allocation18_spill] sm:$0xff] %v13545_v29 }
  0xf7   : > { %v682_v48 = vmax.f32 %v621_v41, 0.0  ;;  %v625_v49 = vadd.f32 %v624_v44, %v13428_v39  ;;  %v738_v51 = vsel %vm732_vm5, %v736_v42, %v737_v43  ;;  %918 = vrot.lane.b32.xlu0 %v13499_v46, %s17036_s18 }
  0xf8   : > { %v626_v52 = vpop.f32.mrf.mxu0  ;;  %742 = vst.msk [vmem:[%s13458_s20 + $0x68] sm:$0xff] %vm713_vm3, %v738_v51  ;;  %v748_v58 = vrot.slane %v681_v47, 5  ;;  %v13555_v47 = vpop.permute.xlu1 %859 }
  0xf9   : > { %v683_v53 = vmax.f32 %v625_v49, 0.0  ;;  %v627_v54 = vadd.f32 %v626_v52, %v13431_v40  ;;  %v13509_v56 = vmul.f32 %v13502_v50, %v682_v48  ;;  %v751_v2 = vrot.slane %v682_v48, 5  ;;  %17054 = vst [vmem:[#allocation19_spill] sm:$0xff] %v13555_v47 }
  0xfa   : > { %v630_v57 = vpop.f32.mrf.mxu0 }
  0xfb   : > { %v749_v59 = vrot.slane %v683_v53, 5  ;;  %v684_v60 = vmax.f32 %v627_v54, 0.0  ;;  %v631_v62 = vadd.f32 %v630_v57, %v13428_v39  ;;  %920 = vrot.lane.b32.xlu1 %v13509_v56, %s17036_s18 }
  0xfc   : > { %v632_v0 = vpop.f32.mrf.mxu0 }
  0xfd   : > { %v750_v3 = vsel %vm747_vm6, %v748_v58, %v749_v59  ;;  %v752_v6 = vrot.slane %v684_v60, 5  ;;  %v633_v7 = vadd.f32 %v632_v0, %v13431_v40  ;;  %v13528_v10 = vmul.f32 %v13522_v1, %v684_v60 }
  0xfe   : > { %756 = vst [vmem:[%s13458_s20 + $0x90] sm:$0xff] %v750_v3  ;;  %v636_v9 = vpop.f32.mrf.mxu0  ;;  %v685_v12 = vmax.f32 %v631_v62, 0.0  ;;  %v13568_v62 = vpop.permute.xlu0 %864 }
  0xff   : > { %v753_v11 = vsel %vm747_vm6, %v751_v2, %v752_v6  ;;  %v686_v13 = vmax.f32 %v633_v7, 0.0  ;;  %v637_v15 = vadd.f32 %v636_v9, %v13428_v39  ;;  %922 = vrot.lane.b32.xlu0 %v13528_v10, %s17036_s18  ;;  %17055 = vst [vmem:[#allocation20_spill] sm:$0xff] %v13568_v62 }
 0x100   : > { %v638_v17 = vpop.f32.mrf.mxu0  ;;  %757 = vst.msk [vmem:[%s13458_s20 + $0x98] sm:$0xff] %vm713_vm3, %v753_v11  ;;  %v762_v22 = vrot.slane %v685_v12, 3 }
 0x101   : > { %v687_v18 = vmax.f32 %v637_v15, 0.0  ;;  %v639_v19 = vadd.f32 %v638_v17, %v13431_v40  ;;  %v13540_v20 = vmul.f32 %v13532_v16, %v686_v13  ;;  %v765_v30 = vrot.slane %v686_v13, 3 }
 0x102   : > { %v642_v21 = vpop.f32.mrf.mxu0 }
 0x103   : > { %v763_v24 = vrot.slane %v687_v18, 3  ;;  %v688_v25 = vmax.f32 %v639_v19, 0.0  ;;  %v643_v26 = vadd.f32 %v642_v21, %v13428_v39  ;;  %924 = vrot.lane.b32.xlu1 %v13540_v20, %s17036_s18  ;;  %v13579_v21 = vpop.permute.xlu1 %869 }
 0x104   : > { %v644_v27 = vpop.f32.mrf.mxu0  ;;  %17056 = vst [vmem:[#allocation21_spill] sm:$0xff] %v13579_v21 }
 0x105   : > { %v764_v31 = vsel %vm703_vm2, %v762_v22, %v763_v24  ;;  %v766_v32 = vrot.slane %v688_v25, 3  ;;  %v645_v33 = vadd.f32 %v644_v27, %v13431_v40  ;;  %v13551_v37 = vmul.f32 %v13545_v29, %v688_v25 }
 0x106   : > { %770 = vst [vmem:[%s13458_s20 + $0xc0] sm:$0xff] %v764_v31  ;;  %v648_v34 = vpop.f32.mrf.mxu0  ;;  %v689_v42 = vmax.f32 %v643_v26, 0.0 }
 0x107   : > { %v767_v41 = vsel %vm703_vm2, %v765_v30, %v766_v32  ;;  %v690_v43 = vmax.f32 %v645_v33, 0.0  ;;  %v649_v44 = vadd.f32 %v648_v34, %v13428_v39  ;;  %926 = vrot.lane.b32.xlu0 %v13551_v37, %s17036_s18  ;;  %v13586_v34 = vpop.permute.xlu0 %874 }
 0x108   : > { %v650_v48 = vpop.f32.mrf.mxu0  ;;  %771 = vst.msk [vmem:[%s13458_s20 + $0xc8] sm:$0xff] %vm713_vm3, %v767_v41  ;;  %v776_v54 = vrot.slane %v689_v42, 1  ;;  %17057 = vst [vmem:[#allocation22_spill] sm:$0xff] %v13586_v34 }
 0x109   : > { %v691_v49 = vmax.f32 %v649_v44, 0.0  ;;  %v651_v51 = vadd.f32 %v650_v48, %v13431_v40  ;;  %v13563_v52 = vmul.f32 %v13555_v47, %v690_v43  ;;  %v779_v0 = vrot.slane %v690_v43, 1 }
 0x10a   : > { %v654_v53 = vpop.f32.mrf.mxu0 }
 0x10b   : > { %v777_v57 = vrot.slane %v691_v49, 1  ;;  %v692_v58 = vmax.f32 %v651_v51, 0.0  ;;  %v655_v59 = vadd.f32 %v654_v53, %v13428_v39  ;;  %928 = vrot.lane.b32.xlu1 %v13563_v52, %s17036_s18  ;;  %v788_v12 = vrot.slane %v691_v49, 7 }
 0x10c   : > { %v656_v60 = vpop.f32.mrf.mxu0 }
 0x10d   : > { %v778_v2 = vsel %vm719_vm4, %v776_v54, %v777_v57  ;;  %v780_v3 = vrot.slane %v692_v58, 1  ;;  %v693_v6 = vmax.f32 %v655_v59, 0.0  ;;  %v657_v7 = vadd.f32 %v656_v60, %v13431_v40  ;;  %v13598_v54 = vpop.permute.xlu1 %879 }
 0x10e   : > { %784 = vst [vmem:[%s13458_s20 + $0xf0] sm:$0xff] %v778_v2  ;;  %v660_v9 = vpop.f32.mrf.mxu0  ;;  %v892_v11 = vmul.f32 %v13568_v62, %v692_v58  ;;  %v791_v25 = vrot.slane %v692_v58, 7  ;;  %17058 = vst [vmem:[#allocation23_spill] sm:$0xff] %v13598_v54 }
 0x10f   : > { %v789_v13 = vrot.slane %v693_v6, 7  ;;  %v661_v15 = vadd.f32 %v660_v9, %v13428_v39  ;;  %v781_v17 = vsel %vm719_vm4, %v779_v0, %v780_v3  ;;  %v694_v18 = vmax.f32 %v657_v7, 0.0 }
 0x110   : > { %930 = vrot.lane.b32.xlu0 %v892_v11, %s17036_s18  ;;  %v662_v19 = vpop.f32.mrf.mxu0  ;;  %785 = vst.msk [vmem:[%s13458_s20 + $0xf8] sm:$0xff] %vm713_vm3, %v781_v17 }
 0x111   : > { %v790_v22 = vsel %vm732_vm5, %v788_v12, %v789_v13  ;;  %v663_v24 = vadd.f32 %v662_v19, %v13431_v40  ;;  %v792_v26 = vrot.slane %v694_v18, 7  ;;  %v893_v30 = vmul.f32 %v13579_v21, %v694_v18 }
 0x112   : > { %796 = vst [vmem:[%s13458_s20 + $0x120] sm:$0xff] %v790_v22  ;;  %v666_v27 = vpop.f32.mrf.mxu0  ;;  %v695_v31 = vmax.f32 %v661_v15, 0.0 }
 0x113   : > { %v696_v32 = vmax.f32 %v663_v24, 0.0  ;;  %v667_v33 = vadd.f32 %v666_v27, %v13428_v39  ;;  %v793_v41 = vsel %vm732_vm5, %v791_v25, %v792_v26  ;;  %932 = vrot.lane.b32.xlu1 %v893_v30, %s17036_s18  ;;  %v11311_v39 = vld [vmem:[%s16989_s4 + $0x28] sm:$0xff] }
 0x114   : > { %v668_v42 = vpop.f32.mrf.mxu0  ;;  %797 = vst.msk [vmem:[%s13458_s20 + $0x128] sm:$0xff] %vm713_vm3, %v793_v41  ;;  %v802_v49 = vrot.slane %v695_v31, 5  ;;  %12438 = vmatprep.subr.mxu0 %v11311_v39 }
 0x115   : > { %v697_v43 = vmax.f32 %v667_v33, 0.0  ;;  %v669_v44 = vadd.f32 %v668_v42, %v13431_v40  ;;  %v894_v48 = vmul.f32 %v13586_v34, %v696_v32  ;;  %v805_v57 = vrot.slane %v696_v32, 5 }
 0x117   : > { %v803_v51 = vrot.slane %v697_v43, 5  ;;  %v698_v53 = vmax.f32 %v669_v44, 0.0  ;;  %934 = vrot.lane.b32.xlu0 %v894_v48, %s17036_s18 }
 0x119   : > { %v804_v40 = vsel %vm747_vm6, %v802_v49, %v803_v51  ;;  %v806_v58 = vrot.slane %v698_v53, 5  ;;  %v895_v59 = vmul.f32 %v13598_v54, %v698_v53 }
 0x11a   : > { %810 = vst [vmem:[%s13458_s20 + $0x150] sm:$0xff] %v804_v40 }
 0x11b   : > { %v807_v60 = vsel %vm747_vm6, %v805_v57, %v806_v58  ;;  %936 = vrot.lane.b32.xlu1 %v895_v59, %s17036_s18  ;;  %966 = vrot.lane.b32.xlu0 %v13449_v55, %s13082_s29 }
 0x11c   : > { %811 = vst.msk [vmem:[%s13458_s20 + $0x158] sm:$0xff] %vm713_vm3, %v807_v60 }
 0x11f   : > { %968 = vrot.lane.b32.xlu1 %v13462_v5, %s13082_s29  ;;  %970 = vrot.lane.b32.xlu0 %v13474_v14, %s13082_s29 }
 0x123   : > { %972 = vrot.lane.b32.xlu1 %v13485_v28, %s13082_s29  ;;  %974 = vrot.lane.b32.xlu0 %v13499_v46, %s13082_s29 }
 0x127   : > { %976 = vrot.lane.b32.xlu1 %v13509_v56, %s13082_s29  ;;  %978 = vrot.lane.b32.xlu0 %v13528_v10, %s13082_s29 }
 0x12b   : > { %980 = vrot.lane.b32.xlu1 %v13540_v20, %s13082_s29  ;;  %982 = vrot.lane.b32.xlu0 %v13551_v37, %s13082_s29  ;;  %v13625_v37 = vld [vmem:[%s16989_s4 + $0x10] sm:$0xff] }
 0x12f   : > { %984 = vrot.lane.b32.xlu1 %v13563_v52, %s13082_s29  ;;  %986 = vrot.lane.b32.xlu0 %v892_v11, %s13082_s29 }
 0x133   : > { %988 = vrot.lane.b32.xlu1 %v893_v30, %s13082_s29  ;;  %990 = vrot.lane.b32.xlu0 %v894_v48, %s13082_s29 }
 0x137   : > { %992 = vrot.lane.b32.xlu1 %v895_v59, %s13082_s29 }
 0x159   : > { %v911_v55 = vpop.permute.xlu0 %910 }
 0x15a   : > { %952 = vst.msk [vmem:[#allocation2 + $0x2a] sm:$0xff] %vm372_vm1, %v911_v55 }
 0x15d   : > { %v913_v5 = vpop.permute.xlu1 %912 }
 0x15e   : > { %953 = vst.msk [vmem:[#allocation2 + $0x32] sm:$0xff] %vm372_vm1, %v913_v5 }
 0x161   : > { %v915_v14 = vpop.permute.xlu0 %914  ;;  %v1037_v28 = vld [vmem:[#allocation2 + $0x28] sm:$0xff] }
 0x162   : > { %v1614_v46 = vld [vmem:[#allocation2 + $0x2a] sm:$0xff]  ;;  %954 = vst.msk [vmem:[#allocation2 + $0x3a] sm:$0xff] %vm372_vm1, %v915_v14  ;;  %12325 = vmatprep.mubr.msk.f32.mxu1 %vm372_vm1, %v1037_v28 }
 0x163   : > { %12394 = vmatprep.mubr.msk.f32.mxu0 %vm372_vm1, %v1614_v46  ;;  %v1022_v5 = vld [vmem:[#allocation2 + $0x27] sm:$0xff] }
 0x165   : > { %v1038_v10 = vld [vmem:[#allocation2 + $0x30] sm:$0xff] }
 0x166   : > { %v917_v56 = vpop.permute.xlu1 %916  ;;  %v1615_v20 = vld [vmem:[#allocation2 + $0x32] sm:$0xff]  ;;  %12326 = vmatmul.mubr.msk.f32.vlgmr.msra.gmra.mxu1 %vm372_vm1, %v1038_v10 }
 0x167   : > { %955 = vst.msk [vmem:[#allocation2 + $0x42] sm:$0xff] %vm372_vm1, %v917_v56  ;;  %12395 = vmatmul.mubr.msk.f32.vlgmr.msra.gmra.mxu0 %vm372_vm1, %v1615_v20  ;;  %12347 = vmatpush3.msra.mxu1 %v13519_v63  ;;  %v2028_v14 = vld [vmem:[#allocation2 + $0x2c] sm:$0xff]  ;;  %v13676_v20 = vld [vmem:[%s16989_s4 + $0x20] sm:$0xff] }
 0x168   : > { %12439 = vmatpush3.msra.mxu0 %v11311_v39  ;;  %12369 = vmatprep.subr.mxu1 %v13625_v37  ;;  %v1023_v56 = vld [vmem:[#allocation2 + $0x2f] sm:$0xff] }
 0x169   : > { %v1039_v52 = vld [vmem:[#allocation2 + $0x38] sm:$0xff]  ;;  %v919_v2 = vpop.permute.xlu0 %918 }
 0x16a   : > { %v1616_v0 = vld [vmem:[#allocation2 + $0x3a] sm:$0xff]  ;;  %12328 = vmatprep.mubr.msk.f32.mxu1 %vm372_vm1, %v1039_v52  ;;  %956 = vst.msk [vmem:[#allocation2 + $0x4a] sm:$0xff] %vm372_vm1, %v919_v2 }
 0x16b   : > { %12397 = vmatprep.mubr.msk.f32.mxu0 %vm372_vm1, %v1616_v0  ;;  %v2029_v10 = vld [vmem:[#allocation2 + $0x34] sm:$0xff] }
 0x16c   : > { %v1024_v52 = vld [vmem:[#allocation2 + $0x37] sm:$0xff] }
 0x16d   : > { %v921_v3 = vpop.permute.xlu1 %920 }
 0x16e   : > { %957 = vst.msk [vmem:[#allocation2 + $0x52] sm:$0xff] %vm372_vm1, %v921_v3  ;;  %v1040_v6 = vld [vmem:[#allocation2 + $0x40] sm:$0xff] }
 0x16f   : > { %v1617_v7 = vld [vmem:[#allocation2 + $0x42] sm:$0xff]  ;;  %12329 = vmatmul.mubr.msk.f32.gmra.mxu1 %vm372_vm1, %v1040_v6 }
 0x170   : > { %12398 = vmatmul.mubr.msk.f32.gmra.mxu0 %vm372_vm1, %v1617_v7  ;;  %v2030_v0 = vld [vmem:[#allocation2 + $0x3c] sm:$0xff] }
 0x171   : > { %v923_v63 = vpop.permute.xlu0 %922  ;;  %v1041_v9 = vld [vmem:[#allocation2 + $0x48] sm:$0xff]  ;;  %v1025_v6 = vld [vmem:[#allocation2 + $0x3f] sm:$0xff] }
 0x172   : > { %v1618_v11 = vld [vmem:[#allocation2 + $0x4a] sm:$0xff]  ;;  %958 = vst.msk [vmem:[#allocation2 + $0x5a] sm:$0xff] %vm372_vm1, %v923_v63  ;;  %12331 = vmatprep.mubr.msk.f32.mxu1 %vm372_vm1, %v1041_v9 }
 0x173   : > { %12400 = vmatprep.mubr.msk.f32.mxu0 %vm372_vm1, %v1618_v11  ;;  %v2031_v7 = vld [vmem:[#allocation2 + $0x44] sm:$0xff] }
 0x175   : > { %v925_v12 = vpop.permute.xlu1 %924  ;;  %v1042_v13 = vld [vmem:[#allocation2 + $0x50] sm:$0xff] }
 0x176   : > { %v1619_v15 = vld [vmem:[#allocation2 + $0x52] sm:$0xff]  ;;  %959 = vst.msk [vmem:[#allocation2 + $0x62] sm:$0xff] %vm372_vm1, %v925_v12  ;;  %12332 = vmatmul.mubr.msk.f32.gmra.mxu1 %vm372_vm1, %v1042_v13 }
 0x177   : > { %12401 = vmatmul.mubr.msk.f32.gmra.mxu0 %vm372_vm1, %v1619_v15  ;;  %v2032_v63 = vld [vmem:[#allocation2 + $0x4c] sm:$0xff] }
 0x178   : > { %v1027_v12 = vld [vmem:[#allocation2 + $0x4f] sm:$0xff] }
 0x179   : > { %v927_v17 = vpop.permute.xlu0 %926  ;;  %v1043_v18 = vld [vmem:[#allocation2 + $0x58] sm:$0xff] }
 0x17a   : > { %v1620_v19 = vld [vmem:[#allocation2 + $0x5a] sm:$0xff]  ;;  %960 = vst.msk [vmem:[#allocation2 + $0x6a] sm:$0xff] %vm372_vm1, %v927_v17  ;;  %12334 = vmatprep.mubr.msk.f32.mxu1 %vm372_vm1, %v1043_v18 }
 0x17b   : > { %12403 = vmatprep.mubr.msk.f32.mxu0 %vm372_vm1, %v1620_v19  ;;  %v2033_v13 = vld [vmem:[#allocation2 + $0x54] sm:$0xff] }
 0x17c   : > { %v1028_v15 = vld [vmem:[#allocation2 + $0x57] sm:$0xff] }
 0x17d   : > { %v929_v22 = vpop.permute.xlu1 %928  ;;  %v1044_v24 = vld [vmem:[#allocation2 + $0x60] sm:$0xff] }
 0x17e   : > { %v1621_v25 = vld [vmem:[#allocation2 + $0x62] sm:$0xff]  ;;  %961 = vst.msk [vmem:[#allocation2 + $0x72] sm:$0xff] %vm372_vm1, %v929_v22  ;;  %12335 = vmatmul.mubr.msk.f32.gmra.mxu1 %vm372_vm1, %v1044_v24 }
 0x17f   : > { %12404 = vmatmul.mubr.msk.f32.gmra.mxu0 %vm372_vm1, %v1621_v25  ;;  %v2034_v17 = vld [vmem:[#allocation2 + $0x5c] sm:$0xff] }
 0x180   : > { %v1029_v22 = vld [vmem:[#allocation2 + $0x5f] sm:$0xff] }
 0x181   : > { %v1045_v27 = vld [vmem:[#allocation2 + $0x68] sm:$0xff] }
 0x182   : > { %v931_v26 = vpop.permute.xlu0 %930  ;;  %v1622_v30 = vld [vmem:[#allocation2 + $0x6a] sm:$0xff]  ;;  %12337 = vmatprep.mubr.msk.f32.mxu1 %vm372_vm1, %v1045_v27 }
 0x183   : > { %962 = vst.msk [vmem:[#allocation2 + $0x7a] sm:$0xff] %vm372_vm1, %v931_v26  ;;  %12406 = vmatprep.mubr.msk.f32.mxu0 %vm372_vm1, %v1622_v30  ;;  %v2035_v24 = vld [vmem:[#allocation2 + $0x64] sm:$0xff] }
 0x184   : > { %v1030_v25 = vld [vmem:[#allocation2 + $0x67] sm:$0xff] }
 0x185   : > { %v1046_v31 = vld [vmem:[#allocation2 + $0x70] sm:$0xff]  ;;  %v933_v33 = vpop.permute.xlu1 %932 }
 0x186   : > { %v1623_v32 = vld [vmem:[#allocation2 + $0x72] sm:$0xff]  ;;  %12338 = vmatmul.mubr.msk.f32.gmra.mxu1 %vm372_vm1, %v1046_v31  ;;  %963 = vst.msk [vmem:[#allocation2 + $0x82] sm:$0xff] %vm372_vm1, %v933_v33 }
 0x187   : > { %12407 = vmatmul.mubr.msk.f32.gmra.mxu0 %vm372_vm1, %v1623_v32  ;;  %v2036_v26 = vld [vmem:[#allocation2 + $0x6c] sm:$0xff] }
 0x188   : > { %v1031_v30 = vld [vmem:[#allocation2 + $0x6f] sm:$0xff] }
 0x189   : > { %v935_v41 = vpop.permute.xlu0 %934 }
 0x18a   : > { %964 = vst.msk [vmem:[#allocation2 + $0x8a] sm:$0xff] %vm372_vm1, %v935_v41  ;;  %v1047_v42 = vld [vmem:[#allocation2 + $0x78] sm:$0xff] }
 0x18b   : > { %v1624_v43 = vld [vmem:[#allocation2 + $0x7a] sm:$0xff]  ;;  %12340 = vmatprep.mubr.msk.f32.mxu1 %vm372_vm1, %v1047_v42 }
 0x18c   : > { %12409 = vmatprep.mubr.msk.f32.mxu0 %vm372_vm1, %v1624_v43  ;;  %v2037_v31 = vld [vmem:[#allocation2 + $0x74] sm:$0xff] }
 0x18d   : > { %v937_v44 = vpop.permute.xlu1 %936  ;;  %v967_v48 = vpop.permute.xlu0 %966  ;;  %v1048_v49 = vld [vmem:[#allocation2 + $0x80] sm:$0xff]  ;;  %v1032_v32 = vld [vmem:[#allocation2 + $0x77] sm:$0xff] }
 0x18e   : > { %965 = vst.msk [vmem:[#allocation2 + $0x92] sm:$0xff] %vm372_vm1, %v937_v44  ;;  %1008 = vst.msk [vmem:[#allocation3 + $0x2a] sm:$0xff] %vm372_vm1, %v967_v48  ;;  %v1625_v51 = vld [vmem:[#allocation2 + $0x82] sm:$0xff]  ;;  %12341 = vmatmul.mubr.msk.f32.gmra.mxu1 %vm372_vm1, %v1048_v49 }
 0x18f   : > { %12410 = vmatmul.mubr.msk.f32.gmra.mxu0 %vm372_vm1, %v1625_v51  ;;  %v2038_v33 = vld [vmem:[#allocation2 + $0x7c] sm:$0xff]  ;;  %v1407_v51 = vld [vmem:[#allocation2 + $0x29] sm:$0xff] }
 0x190   : > { %v1033_v41 = vld [vmem:[#allocation2 + $0x7f] sm:$0xff] }
 0x191   : > { %v969_v53 = vpop.permute.xlu1 %968  ;;  %v971_v39 = vpop.permute.xlu0 %970  ;;  %v1049_v57 = vld [vmem:[#allocation2 + $0x88] sm:$0xff] }
 0x192   : > { %v1626_v40 = vld [vmem:[#allocation2 + $0x8a] sm:$0xff]  ;;  %1009 = vst.msk [vmem:[#allocation3 + $0x32] sm:$0xff] %vm372_vm1, %v969_v53  ;;  %1010 = vst.msk [vmem:[#allocation3 + $0x3a] sm:$0xff] %vm372_vm1, %v971_v39  ;;  %12343 = vmatprep.mubr.msk.f32.mxu1 %vm372_vm1, %v1049_v57  ;;  %v1409_v57 = vld [vmem:[#allocation2 + $0x39] sm:$0xff] }
 0x193   : > { %12412 = vmatprep.mubr.msk.f32.mxu0 %vm372_vm1, %v1626_v40  ;;  %v2039_v42 = vld [vmem:[#allocation2 + $0x84] sm:$0xff]  ;;  %v1408_v53 = vld [vmem:[#allocation2 + $0x31] sm:$0xff] }
 0x194   : > { %v1034_v43 = vld [vmem:[#allocation2 + $0x87] sm:$0xff]  ;;  %v11326_v39 = vld [vmem:[%s16989_s4 + $0x30] sm:$0xff] }
 0x195   : > { %v973_v58 = vpop.permute.xlu1 %972  ;;  %v975_v59 = vpop.permute.xlu0 %974  ;;  %v1050_v60 = vld [vmem:[#allocation2 + $0x90] sm:$0xff]  ;;  %v1410_v40 = vld [vmem:[#allocation2 + $0x41] sm:$0xff] }
 0x196   : > { %v1627_v55 = vld [vmem:[#allocation2 + $0x92] sm:$0xff]  ;;  %1011 = vst.msk [vmem:[#allocation3 + $0x42] sm:$0xff] %vm372_vm1, %v973_v58  ;;  %1012 = vst.msk [vmem:[#allocation3 + $0x4a] sm:$0xff] %vm372_vm1, %v975_v59  ;;  %12344 = vmatmul.mubr.msk.f32.gmra.mxu1 %vm372_vm1, %v1050_v60  ;;  %v1411_v58 = vld [vmem:[#allocation2 + $0x49] sm:$0xff] }
 0x197   : > { %12413 = vmatmul.mubr.msk.f32.gmra.mxu0 %vm372_vm1, %v1627_v55  ;;  %12348 = vmatprep.mubr.msk.f32.mxu1 %vm372_vm1, %v1022_v5  ;;  %v2040_v44 = vld [vmem:[#allocation2 + $0x8c] sm:$0xff]  ;;  %v2041_v49 = vld [vmem:[#allocation2 + $0x94] sm:$0xff]  ;;  %v1414_v55 = vld [vmem:[#allocation2 + $0x61] sm:$0xff] }
 0x198   : > { %12440 = vmatprep.mubr.msk.f32.mxu0 %vm372_vm1, %v2028_v14  ;;  %v1035_v48 = vld [vmem:[#allocation2 + $0x8f] sm:$0xff]  ;;  %v1413_v60 = vld [vmem:[#allocation2 + $0x59] sm:$0xff] }
 0x199   : > { %v977_v28 = vpop.permute.xlu1 %976  ;;  %v979_v46 = vpop.permute.xlu0 %978  ;;  %v1412_v59 = vld [vmem:[#allocation2 + $0x51] sm:$0xff]  ;;  %v1415_v5 = vld [vmem:[#allocation2 + $0x69] sm:$0xff] }
 0x19a   : > { %1013 = vst.msk [vmem:[#allocation3 + $0x52] sm:$0xff] %vm372_vm1, %v977_v28  ;;  %1014 = vst.msk [vmem:[#allocation3 + $0x5a] sm:$0xff] %vm372_vm1, %v979_v46  ;;  %12349 = vmatmul.mubr.msk.f32.vlgmr.msra.gmra.mxu1 %vm372_vm1, %v1023_v56  ;;  %v1416_v14 = vld [vmem:[#allocation2 + $0x71] sm:$0xff]  ;;  %v1417_v28 = vld [vmem:[#allocation2 + $0x79] sm:$0xff] }
 0x19b   : > { %12441 = vmatmul.mubr.msk.f32.vlgmr.msra.gmra.mxu0 %vm372_vm1, %v2029_v10  ;;  %12370 = vmatpush3.msra.mxu1 %v13625_v37  ;;  %v1026_v37 = vld [vmem:[#allocation2 + $0x47] sm:$0xff]  ;;  %v1420_v10 = vld [vmem:[#allocation2 + $0x91] sm:$0xff] }
 0x19c   : > { %12351 = vmatprep.mubr.msk.f32.mxu1 %vm372_vm1, %v1024_v52  ;;  %12443 = vmatprep.mubr.msk.f32.mxu0 %vm372_vm1, %v2030_v0  ;;  %v1418_v46 = vld [vmem:[#allocation2 + $0x81] sm:$0xff]  ;;  %v1419_v56 = vld [vmem:[#allocation2 + $0x89] sm:$0xff]  ;;  %v1822_v52 = vld [vmem:[#allocation2 + $0x33] sm:$0xff] }
 0x19d   : > { %12415 = vmatprep.subr.mxu1 %v13676_v20  ;;  %v981_v2 = vpop.permute.xlu1 %980  ;;  %v983_v3 = vpop.permute.xlu0 %982  ;;  %v1823_v0 = vld [vmem:[#allocation2 + $0x3b] sm:$0xff] }
 0x19e   : > { %1015 = vst.msk [vmem:[#allocation3 + $0x62] sm:$0xff] %vm372_vm1, %v981_v2  ;;  %1016 = vst.msk [vmem:[#allocation3 + $0x6a] sm:$0xff] %vm372_vm1, %v983_v3  ;;  %12352 = vmatmul.mubr.msk.f32.gmra.mxu1 %vm372_vm1, %v1025_v6  ;;  %v1824_v2 = vld [vmem:[#allocation2 + $0x43] sm:$0xff]  ;;  %v1825_v3 = vld [vmem:[#allocation2 + $0x4b] sm:$0xff] }
 0x19f   : > { %12444 = vmatmul.mubr.msk.f32.gmra.mxu0 %vm372_vm1, %v2031_v7  ;;  %12354 = vmatprep.mubr.msk.f32.mxu1 %vm372_vm1, %v1026_v37  ;;  %v1826_v6 = vld [vmem:[#allocation2 + $0x53] sm:$0xff]  ;;  %v1827_v7 = vld [vmem:[#allocation2 + $0x5b] sm:$0xff]  ;;  %v1828_v37 = vld [vmem:[#allocation2 + $0x63] sm:$0xff] }
 0x1a0   : > { %12446 = vmatprep.mubr.msk.f32.mxu0 %vm372_vm1, %v2032_v63  ;;  %v1829_v63 = vld [vmem:[#allocation2 + $0x6b] sm:$0xff] }
 0x1a1   : > { %v985_v9 = vpop.permute.xlu1 %984  ;;  %v987_v11 = vpop.permute.xlu0 %986 }
 0x1a2   : > { %1017 = vst.msk [vmem:[#allocation3 + $0x72] sm:$0xff] %vm372_vm1, %v985_v9  ;;  %1018 = vst.msk [vmem:[#allocation3 + $0x7a] sm:$0xff] %vm372_vm1, %v987_v11  ;;  %12355 = vmatmul.mubr.msk.f32.gmra.mxu1 %vm372_vm1, %v1027_v12  ;;  %v1830_v9 = vld [vmem:[#allocation2 + $0x73] sm:$0xff]  ;;  %v1831_v11 = vld [vmem:[#allocation2 + $0x7b] sm:$0xff] }
 0x1a3   : > { %12447 = vmatmul.mubr.msk.f32.gmra.mxu0 %vm372_vm1, %v2033_v13  ;;  %12357 = vmatprep.mubr.msk.f32.mxu1 %vm372_vm1, %v1028_v15  ;;  %v1832_v12 = vld [vmem:[#allocation2 + $0x83] sm:$0xff]  ;;  %v1833_v13 = vld [vmem:[#allocation2 + $0x8b] sm:$0xff]  ;;  %v1834_v15 = vld [vmem:[#allocation2 + $0x93] sm:$0xff] }
 0x1a4   : > { %12449 = vmatprep.mubr.msk.f32.mxu0 %vm372_vm1, %v2034_v17  ;;  %v2235_v17 = vld [vmem:[#allocation2 + $0x2d] sm:$0xff] }
 0x1a5   : > { %v989_v18 = vpop.permute.xlu1 %988  ;;  %v991_v19 = vpop.permute.xlu0 %990 }
 0x1a6   : > { %1019 = vst.msk [vmem:[#allocation3 + $0x82] sm:$0xff] %vm372_vm1, %v989_v18  ;;  %1020 = vst.msk [vmem:[#allocation3 + $0x8a] sm:$0xff] %vm372_vm1, %v991_v19  ;;  %12358 = vmatmul.mubr.msk.f32.gmra.mxu1 %vm372_vm1, %v1029_v22  ;;  %v2236_v18 = vld [vmem:[#allocation2 + $0x35] sm:$0xff]  ;;  %v2237_v19 = vld [vmem:[#allocation2 + $0x3d] sm:$0xff] }
 0x1a7   : > { %12450 = vmatmul.mubr.msk.f32.gmra.mxu0 %vm372_vm1, %v2035_v24  ;;  %12360 = vmatprep.mubr.msk.f32.mxu1 %vm372_vm1, %v1030_v25  ;;  %v2238_v22 = vld [vmem:[#allocation2 + $0x45] sm:$0xff]  ;;  %v2239_v24 = vld [vmem:[#allocation2 + $0x4d] sm:$0xff]  ;;  %v2240_v25 = vld [vmem:[#allocation2 + $0x55] sm:$0xff] }
 0x1a8   : > { %12452 = vmatprep.mubr.msk.f32.mxu0 %vm372_vm1, %v2036_v26  ;;  %v2241_v26 = vld [vmem:[#allocation2 + $0x5d] sm:$0xff] }
 0x1a9   : > { %v993_v27 = vpop.permute.xlu1 %992 }
 0x1aa   : > { %1021 = vst.msk [vmem:[#allocation3 + $0x92] sm:$0xff] %vm372_vm1, %v993_v27  ;;  %12361 = vmatmul.mubr.msk.f32.gmra.mxu1 %vm372_vm1, %v1031_v30  ;;  %v2242_v27 = vld [vmem:[#allocation2 + $0x65] sm:$0xff]  ;;  %v2243_v30 = vld [vmem:[#allocation2 + $0x6d] sm:$0xff] }
 0x1ab   : > { %12453 = vmatmul.mubr.msk.f32.gmra.mxu0 %vm372_vm1, %v2037_v31  ;;  %12363 = vmatprep.mubr.msk.f32.mxu1 %vm372_vm1, %v1032_v32  ;;  %v2244_v31 = vld [vmem:[#allocation2 + $0x75] sm:$0xff]  ;;  %v2245_v32 = vld [vmem:[#allocation2 + $0x7d] sm:$0xff] }
 0x1ac   : > { %12455 = vmatprep.mubr.msk.f32.mxu0 %vm372_vm1, %v2038_v33  ;;  %v2246_v33 = vld [vmem:[#allocation2 + $0x85] sm:$0xff] }
 0x1ae   : > { %12364 = vmatmul.mubr.msk.f32.gmra.mxu1 %vm372_vm1, %v1033_v41  ;;  %v2247_v41 = vld [vmem:[#allocation2 + $0x8d] sm:$0xff] }
 0x1af   : > { %12456 = vmatmul.mubr.msk.f32.gmra.mxu0 %vm372_vm1, %v2039_v42  ;;  %12366 = vmatprep.mubr.msk.f32.mxu1 %vm372_vm1, %v1034_v43  ;;  %v2248_v42 = vld [vmem:[#allocation2 + $0x95] sm:$0xff] }
 0x1b0   : > { %12458 = vmatprep.mubr.msk.f32.mxu0 %vm372_vm1, %v2040_v44  ;;  %v11343_v43 = vld [vmem:[%s16991_s6 + $0x18] sm:$0xff]  ;;  %v11342_v44 = vld [vmem:[%s16991_s6 + $0x10] sm:$0xff] }
 0x1b1   : > { %2610 = vmatprep.subr.mxu0 %v11343_v43 }
 0x1b2   : > { %12367 = vmatmul.mubr.msk.f32.gmra.mxu1 %vm372_vm1, %v1035_v48  ;;  %2611 = vmatpush1.msra.mxu0 %v11342_v44  ;;  %v2520_v48 = vld [vmem:[%s16991_s6 + $0x8] sm:$0xff] }
 0x1b3   : > { %12459 = vmatmul.mubr.msk.f32.gmra.mxu0 %vm372_vm1, %v2041_v49  ;;  %12371 = vmatprep.mubr.msk.f32.mxu1 %vm372_vm1, %v1407_v51  ;;  %v2519_v49 = vld [vmem:[%s16991_s6] sm:$0xff]  ;;  %v2505_v51 = vld [vmem:[#allocation4] sm:$0xff] }
 0x1b4   : > { %2644 = vmatprep.mubr.f32.mxu0 %v16997_v4 }
 0x1b6   : > { %12372 = vmatmul.mubr.msk.f32.vlgmr.msra.gmra.mxu1 %vm372_vm1, %v1408_v53 }
 0x1b7   : > { %12416 = vmatpush3.msra.mxu1 %v13676_v20  ;;  %12374 = vmatprep.mubr.msk.f32.mxu1 %vm372_vm1, %v1409_v57  ;;  %v1821_v20 = vld [vmem:[#allocation2 + $0x2b] sm:$0xff]  ;;  %v2521_v57 = vld [vmem:[#allocation4 + $0xe] sm:$0xff] }
 0x1b8   : > { %12461 = vmatprep.subr.mxu1 %v11326_v39  ;;  %11344 = vmatmul.mubr.msk.f32.vlgmr.msra.gmra.mxu0 %vm372_vm1, %v2521_v57 }
 0x1b9   : > { %2650 = vmatprep.mubr.f32.mxu0 %v16997_v4 }
 0x1ba   : > { %12375 = vmatmul.mubr.msk.f32.gmra.mxu1 %vm372_vm1, %v1410_v40 }
 0x1bb   : > { %12377 = vmatprep.mubr.msk.f32.mxu1 %vm372_vm1, %v1411_v58  ;;  %v2507_v58 = vld [vmem:[#allocation4 + $0x10] sm:$0xff] }
 0x1be   : > { %12378 = vmatmul.mubr.msk.f32.gmra.mxu1 %vm372_vm1, %v1412_v59 }
 0x1bf   : > { %12380 = vmatprep.mubr.msk.f32.mxu1 %vm372_vm1, %v1413_v60  ;;  %v2522_v60 = vld [vmem:[#allocation4 + $0x16] sm:$0xff] }
 0x1c0   : > { %11345 = vmatmul.mubr.msk.f32.gmra.mxu0 %vm372_vm1, %v2522_v60 }
 0x1c1   : > { %2656 = vmatprep.mubr.f32.mxu0 %v16997_v4 }
 0x1c2   : > { %12381 = vmatmul.mubr.msk.f32.gmra.mxu1 %vm372_vm1, %v1414_v55  ;;  %v2508_v55 = vld [vmem:[#allocation4 + $0x18] sm:$0xff] }
 0x1c3   : > { %12383 = vmatprep.mubr.msk.f32.mxu1 %vm372_vm1, %v1415_v5 }
 0x1c6   : > { %12384 = vmatmul.mubr.msk.f32.gmra.mxu1 %vm372_vm1, %v1416_v14  ;;  %v11373_v14 = vld [vmem:[%s16991_s6 + $0x28] sm:$0xff] }
 0x1c7   : > { %12386 = vmatprep.mubr.msk.f32.mxu1 %vm372_vm1, %v1417_v28  ;;  %v11372_v28 = vld [vmem:[%s16991_s6 + $0x20] sm:$0xff]  ;;  %3009 = vmatprep.subr.mxu0 %v11373_v14 }
 0x1c8   : > { %3010 = vmatpush1.msra.mxu0 %v11372_v28 }
 0x1ca   : > { %12387 = vmatmul.mubr.msk.f32.gmra.mxu1 %vm372_vm1, %v1418_v46  ;;  %v2523_v46 = vld [vmem:[#allocation4 + $0x1e] sm:$0xff] }
 0x1cb   : > { %12389 = vmatprep.mubr.msk.f32.mxu1 %vm372_vm1, %v1419_v56  ;;  %11346 = vmatmul.mubr.msk.f32.gmra.mxu0 %vm372_vm1, %v2523_v46 }
 0x1cc   : > { %2662 = vmatprep.mubr.f32.mxu0 %v16997_v4 }
 0x1ce   : > { %12390 = vmatmul.mubr.msk.f32.gmra.mxu1 %vm372_vm1, %v1420_v10  ;;  %v2509_v10 = vld [vmem:[#allocation4 + $0x20] sm:$0xff] }
 0x1cf   : > { %12417 = vmatprep.mubr.msk.f32.mxu1 %vm372_vm1, %v1821_v20 }
 0x1d2   : > { %12418 = vmatmul.mubr.msk.f32.vlgmr.msra.gmra.mxu1 %vm372_vm1, %v1822_v52 }
 0x1d3   : > { %12462 = vmatpush3.msra.mxu1 %v11326_v39  ;;  %12420 = vmatprep.mubr.msk.f32.mxu1 %vm372_vm1, %v1823_v0  ;;  %v2506_v39 = vld [vmem:[#allocation4 + $0x8] sm:$0xff] }
 0x1d4   : > { %2801 = vmatprep.subr.mxu1 %v2520_v48 }
 0x1d6   : > { %12421 = vmatmul.mubr.msk.f32.gmra.mxu1 %vm372_vm1, %v1824_v2 }
 0x1d7   : > { %12423 = vmatprep.mubr.msk.f32.mxu1 %vm372_vm1, %v1825_v3 }
 0x1da   : > { %12424 = vmatmul.mubr.msk.f32.gmra.mxu1 %vm372_vm1, %v1826_v6 }
 0x1db   : > { %12426 = vmatprep.mubr.msk.f32.mxu1 %vm372_vm1, %v1827_v7  ;;  %v11389_v7 = vld [vmem:[%s16991_s6 + $0x38] sm:$0xff] }
 0x1de   : > { %12427 = vmatmul.mubr.msk.f32.gmra.mxu1 %vm372_vm1, %v1828_v37  ;;  %v11388_v37 = vld [vmem:[%s16991_s6 + $0x30] sm:$0xff] }
 0x1df   : > { %12429 = vmatprep.mubr.msk.f32.mxu1 %vm372_vm1, %v1829_v63 }
 0x1e2   : > { %12430 = vmatmul.mubr.msk.f32.gmra.mxu1 %vm372_vm1, %v1830_v9 }
 0x1e3   : > { %12432 = vmatprep.mubr.msk.f32.mxu1 %vm372_vm1, %v1831_v11 }
 0x1e6   : > { %12433 = vmatmul.mubr.msk.f32.gmra.mxu1 %vm372_vm1, %v1832_v12 }
 0x1e7   : > { %12435 = vmatprep.mubr.msk.f32.mxu1 %vm372_vm1, %v1833_v13 }
 0x1ea   : > { %12436 = vmatmul.mubr.msk.f32.gmra.mxu1 %vm372_vm1, %v1834_v15 }
 0x1eb   : > { %12463 = vmatprep.mubr.msk.f32.mxu1 %vm372_vm1, %v2235_v17 }
 0x1ee   : > { %12464 = vmatmul.mubr.msk.f32.vlgmr.msra.gmra.mxu1 %vm372_vm1, %v2236_v18 }
 0x1ef   : > { %12466 = vmatprep.mubr.msk.f32.mxu1 %vm372_vm1, %v2237_v19  ;;  %2802 = vmatpush1.msra.mxu1 %v2519_v49 }
 0x1f0   : > { %3245 = vmatprep.subr.mxu1 %v11389_v7 }
 0x1f2   : > { %12467 = vmatmul.mubr.msk.f32.gmra.mxu1 %vm372_vm1, %v2238_v22 }
 0x1f3   : > { %12469 = vmatprep.mubr.msk.f32.mxu1 %vm372_vm1, %v2239_v24 }
 0x1f6   : > { %12470 = vmatmul.mubr.msk.f32.gmra.mxu1 %vm372_vm1, %v2240_v25 }
 0x1f7   : > { %12472 = vmatprep.mubr.msk.f32.mxu1 %vm372_vm1, %v2241_v26 }
 0x1fa   : > { %12473 = vmatmul.mubr.msk.f32.gmra.mxu1 %vm372_vm1, %v2242_v27 }
 0x1fb   : > { %12475 = vmatprep.mubr.msk.f32.mxu1 %vm372_vm1, %v2243_v30 }
 0x1fe   : > { %12476 = vmatmul.mubr.msk.f32.gmra.mxu1 %vm372_vm1, %v2244_v31 }
 0x1ff   : > { %12478 = vmatprep.mubr.msk.f32.mxu1 %vm372_vm1, %v2245_v32 }
 0x202   : > { %12479 = vmatmul.mubr.msk.f32.gmra.mxu1 %vm372_vm1, %v2246_v33 }
 0x203   : > { %12481 = vmatprep.mubr.msk.f32.mxu1 %vm372_vm1, %v2247_v41  ;;  %v11405_v41 = vld [vmem:[%s16991_s6 + $0x48] sm:$0xff] }
 0x204   : > { %3481 = vmatprep.subr.mxu0 %v11405_v41 }
 0x206   : > { %12482 = vmatmul.mubr.msk.f32.gmra.mxu1 %vm372_vm1, %v2248_v42 }
 0x207   : > { %2835 = vmatprep.mubr.f32.mxu1 %v16997_v4 }
 0x20a   : > { %11358 = vmatmul.mubr.msk.f32.vlgmr.msra.gmra.mxu1 %vm372_vm1, %v2505_v51 }
 0x20b   : > { %2841 = vmatprep.mubr.f32.mxu1 %v16997_v4  ;;  %3246 = vmatpush1.msra.mxu1 %v11388_v37 }
 0x20e   : > { %11359 = vmatmul.mubr.msk.f32.gmra.mxu1 %vm372_vm1, %v2506_v39 }
 0x20f   : > { %2847 = vmatprep.mubr.f32.mxu1 %v16997_v4 }
 0x212   : > { %11360 = vmatmul.mubr.msk.f32.gmra.mxu1 %vm372_vm1, %v2507_v58 }
 0x213   : > { %2853 = vmatprep.mubr.f32.mxu1 %v16997_v4 }
 0x216   : > { %11361 = vmatmul.mubr.msk.f32.gmra.mxu1 %vm372_vm1, %v2508_v55 }
 0x217   : > { %2859 = vmatprep.mubr.f32.mxu1 %v16997_v4 }
 0x21a   : > { %11362 = vmatmul.mubr.msk.f32.gmra.mxu1 %vm372_vm1, %v2509_v10 }
 0x21b   : > { %2865 = vmatprep.mubr.f32.mxu1 %v16997_v4 }
 0x226   : > { %v12327_v53 = vpop.f32.mrf.mxu1 }
 0x227   : > { %v13829_v26 = vpop.f32.mrf.mxu0 }
 0x228   : > { %v13779_v40 = vpop.f32.mrf.mxu1 }
 0x229   : > { %v13835_v32 = vpop.f32.mrf.mxu0 }
 0x22f   : > { %v12330_v59 = vpop.f32.mrf.mxu1 }
 0x230   : > { %v13840_v42 = vpop.f32.mrf.mxu0 }
 0x231   : > { %v13787_v5 = vpop.f32.mrf.mxu1 }
 0x232   : > { %v13846_v49 = vpop.f32.mrf.mxu0 }
 0x236   : > { %v12333_v56 = vpop.f32.mrf.mxu1 }
 0x237   : > { %v13852_v39 = vpop.f32.mrf.mxu0 }
 0x238   : > { %v13801_v20 = vpop.f32.mrf.mxu1 }
 0x239   : > { %v13858_v60 = vpop.f32.mrf.mxu0 }
 0x23e   : > { %v12336_v52 = vpop.f32.mrf.mxu1 }
 0x23f   : > { %v13860_v14 = vpop.f32.mrf.mxu0 }
 0x240   : > { %v13803_v0 = vpop.f32.mrf.mxu1 }
 0x246   : > { %v12339_v2 = vpop.f32.mrf.mxu1 }
 0x248   : > { %v13805_v3 = vpop.f32.mrf.mxu1 }
 0x24e   : > { %v12342_v6 = vpop.f32.mrf.mxu1 }
 0x250   : > { %v13813_v63 = vpop.f32.mrf.mxu1 }
 0x256   : > { %v12345_v9 = vpop.f32.mrf.mxu1 }
 0x258   : > { %v13815_v11 = vpop.f32.mrf.mxu1 }
 0x25a   : > { %v12350_v12 = vpop.f32.mrf.mxu1 }
 0x25b   : > { %v13817_v13 = vadd.f32 %v12350_v12, %v12327_v53 }
 0x25c   : > { %v13819_v15 = vpop.f32.mrf.mxu1 }
 0x25e   : > { %v12353_v17 = vpop.f32.mrf.mxu1 }
 0x25f   : > { %v13821_v18 = vadd.f32 %v12353_v17, %v12330_v59  ;;  %v11421_v17 = vld [vmem:[%s16991_s6 + $0x58] sm:$0xff] }
 0x260   : > { %v13823_v19 = vpop.f32.mrf.mxu1  ;;  %3717 = vmatprep.subr.mxu1 %v11421_v17 }
 0x262   : > { %v12356_v22 = vpop.f32.mrf.mxu1 }
 0x263   : > { %v13825_v24 = vadd.f32 %v12356_v22, %v12333_v56  ;;  %v13862_v56 = vpop.f32.mrf.mxu0 }
 0x264   : > { %v13827_v25 = vpop.f32.mrf.mxu1 }
 0x266   : > { %v12359_v27 = vpop.f32.mrf.mxu1 }
 0x267   : > { %v13831_v30 = vadd.f32 %v12359_v27, %v12336_v52  ;;  %v13864_v52 = vpop.f32.mrf.mxu0 }
 0x268   : > { %v13833_v31 = vpop.f32.mrf.mxu1  ;;  %17060 = vst [vmem:[#allocation25_spill] sm:$0xff] %v13864_v52 }
 0x269   : > { %v13866_v7 = vpop.f32.mrf.mxu0 }
 0x26a   : > { %v12362_v33 = vpop.f32.mrf.mxu1  ;;  %17061 = vst [vmem:[#allocation26_spill] sm:$0xff] %v13866_v7  ;;  %v1349_v7 = vadd.f32 %v13823_v19, %v13787_v5 }
 0x26b   : > { %v13842_v43 = vadd.f32 %v12362_v33, %v12339_v2 }
 0x26c   : > { %v13844_v44 = vpop.f32.mrf.mxu1 }
 0x26e   : > { %v12365_v48 = vpop.f32.mrf.mxu1 }
 0x26f   : > { %v13848_v51 = vadd.f32 %v12365_v48, %v12342_v6 }
 0x270   : > { %v13850_v53 = vpop.f32.mrf.mxu1 }
 0x272   : > { %v12368_v57 = vpop.f32.mrf.mxu1 }
 0x273   : > { %v13854_v58 = vadd.f32 %v12368_v57, %v12345_v9  ;;  %v13868_v9 = vpop.f32.mrf.mxu0 }
 0x274   : > { %v13856_v59 = vpop.f32.mrf.mxu1  ;;  %17062 = vst [vmem:[#allocation27_spill] sm:$0xff] %v13868_v9 }
 0x275   : > { %17059 = vst [vmem:[#allocation24_spill] sm:$0xff] %v13854_v58  ;;  %v13875_v27 = vpop.f32.mrf.mxu0 }
 0x276   : > { %v12373_v55 = vpop.f32.mrf.mxu1  ;;  %17063 = vst [vmem:[#allocation28_spill] sm:$0xff] %v13875_v27 }
 0x277   : > { %v13879_v41 = vpop.f32.mrf.mxu0 }
 0x278   : > { %v1531_v28 = vpop.f32.mrf.mxu1  ;;  %17064 = vst [vmem:[#allocation29_spill] sm:$0xff] %v13879_v41 }
 0x279   : > { %v13885_v4 = vpop.f32.mrf.mxu0 }
 0x27a   : > { %v12376_v46 = vpop.f32.mrf.mxu1  ;;  %17066 = vst [vmem:[#allocation31_spill] sm:$0xff] %v13885_v4  ;;  %v1339_v4 = vadd.f32 %v13819_v15, %v13779_v40 }
 0x27b   : > { %v12442_v34 = vpop.f32.mrf.mxu0 }
 0x27c   : > { %v1541_v10 = vpop.f32.mrf.mxu1  ;;  %v1600_v58 = vadd.f32 %v1531_v28, %v1339_v4  ;;  %v1359_v4 = vadd.f32 %v13827_v25, %v13801_v20 }
 0x27d   : > { %v2152_v17 = vpop.f32.mrf.mxu0  ;;  %v1602_v40 = vadd.f32 %v1541_v10, %v1349_v7 }
 0x27e   : > { %v12379_v2 = vpop.f32.mrf.mxu1  ;;  %v1807_v15 = vadd.f32 %v13835_v32, %v1600_v58  ;;  %v1369_v32 = vadd.f32 %v13833_v31, %v13803_v0 }
 0x27f   : > { %v12445_v47 = vpop.f32.mrf.mxu0 }
 0x280   : > { %v1551_v6 = vpop.f32.mrf.mxu1 }
 0x281   : > { %v2162_v35 = vpop.f32.mrf.mxu0  ;;  %v1604_v19 = vadd.f32 %v1551_v6, %v1359_v4 }
 0x282   : > { %v12382_v37 = vpop.f32.mrf.mxu1 }
 0x283   : > { %v12448_v27 = vpop.f32.mrf.mxu0  ;;  %v1607_v20 = vadd.f32 %v12382_v37, %v13831_v30  ;;  %v1811_v0 = vadd.f32 %v13858_v60, %v1604_v19 }
 0x284   : > { %v1561_v12 = vpop.f32.mrf.mxu1 }
 0x286   : > { %v13873_v22 = vpop.f32.mrf.mxu1 }
 0x287   : > { %v1609_v37 = vadd.f32 %v13873_v22, %v13842_v43 }
 0x288   : > { %v13877_v33 = vpop.f32.mrf.mxu1 }
 0x28a   : > { %v13881_v48 = vpop.f32.mrf.mxu1 }
 0x28b   : > { %v1611_v22 = vadd.f32 %v13881_v48, %v13848_v51  ;;  %v17074_v51 = vld [vmem:[#allocation26_spill] sm:$0xff] }
 0x28c   : > { %v13883_v57 = vpop.f32.mrf.mxu1 }
 0x28d   : > { %17065 = vst [vmem:[#allocation30_spill] sm:$0xff] %v13883_v57  ;;  %v1603_v57 = vadd.f32 %v12376_v46, %v13821_v18 }
 0x28e   : > { %v13887_v38 = vpop.f32.mrf.mxu1 }
 0x28f   : > { %17067 = vst [vmem:[#allocation32_spill] sm:$0xff] %v13887_v38  ;;  %v13900_v38 = vpop.f32.mrf.mxu0  ;;  %v1810_v18 = vadd.f32 %v13840_v42, %v1603_v57 }
 0x290   : > { %v13889_v36 = vpop.f32.mrf.mxu1 }
 0x291   : > { %17068 = vst [vmem:[#allocation33_spill] sm:$0xff] %v13889_v36  ;;  %v1601_v36 = vadd.f32 %v12373_v55, %v13817_v13  ;;  %v13910_v52 = vpop.f32.mrf.mxu0  ;;  %v1605_v55 = vadd.f32 %v12379_v2, %v13825_v24 }
 0x292   : > { %v12419_v54 = vpop.f32.mrf.mxu1 }
 0x293   : > { %v1808_v45 = vadd.f32 %v13829_v26, %v1601_v36  ;;  %v13921_v26 = vpop.f32.mrf.mxu0  ;;  %v1812_v24 = vadd.f32 %v13852_v39, %v1605_v55  ;;  %v1389_v39 = vadd.f32 %v13850_v53, %v13813_v63 }
 0x294   : > { %v1945_v62 = vpop.f32.mrf.mxu1  ;;  %v17072_v19 = vld [vmem:[#allocation30_spill] sm:$0xff] }
 0x295   : > { %v2015_v13 = vadd.f32 %v12419_v54, %v1808_v45  ;;  %v2014_v5 = vadd.f32 %v1945_v62, %v1807_v15  ;;  %v1809_v45 = vadd.f32 %v13846_v49, %v1602_v40  ;;  %v13931_v62 = vld [vmem:[%s16990_s5] ss:$0 sm:$0xff]  ;;  %v12454_v30 = vpop.f32.mrf.mxu0 }
 0x296   : > { %v12422_v21 = vpop.f32.mrf.mxu1 }
 0x297   : > { %v2017_v46 = vadd.f32 %v12422_v21, %v1810_v18  ;;  %v2222_v54 = vadd.f32 %v12442_v34, %v2015_v13  ;;  %v2221_v10 = vadd.f32 %v2152_v17, %v2014_v5  ;;  %v1379_v21 = vadd.f32 %v13844_v44, %v13805_v3 }
 0x298   : > { %v1955_v29 = vpop.f32.mrf.mxu1  ;;  %v1606_v34 = vadd.f32 %v1561_v12, %v1369_v32 }
 0x299   : > { %v2016_v42 = vadd.f32 %v1955_v29, %v1809_v45  ;;  %v2224_v7 = vadd.f32 %v12445_v47, %v2017_v46  ;;  %v1399_v29 = vadd.f32 %v13856_v59, %v13815_v11  ;;  %v1608_v63 = vadd.f32 %v13877_v33, %v1379_v21  ;;  %v2192_v11 = vpop.f32.mrf.mxu0  ;;  %v17077_v21 = vld [vmem:[#allocation32_spill] sm:$0xff] }
 0x29a   : > { %v12425_v1 = vpop.f32.mrf.mxu1  ;;  %v1813_v47 = vadd.f32 %v13862_v56, %v1606_v34  ;;  %v17071_v56 = vld [vmem:[#allocation10_spill] sm:$0xff]  ;;  %v1610_v46 = vadd.f32 %v17072_v19, %v1389_v39 }
 0x29b   : > { %v2019_v49 = vadd.f32 %v12425_v1, %v1812_v24  ;;  %v1814_v1 = vadd.f32 %v13860_v14, %v1607_v20  ;;  %v2223_v17 = vadd.f32 %v2162_v35, %v2016_v42  ;;  %v17070_v35 = vld [vmem:[#allocation25_spill] sm:$0xff]  ;;  %v1815_v48 = vadd.f32 %v17074_v51, %v1608_v63  ;;  %v12457_v20 = vpop.f32.mrf.mxu0 }
 0x29c   : > { %v1965_v16 = vpop.f32.mrf.mxu1  ;;  %v1816_v4 = vadd.f32 %v17070_v35, %v1609_v37 }
 0x29d   : > { %v2018_v3 = vadd.f32 %v1965_v16, %v1811_v0  ;;  %v2226_v13 = vadd.f32 %v12448_v27, %v2019_v49  ;;  %v17078_v0 = vld [vmem:[#allocation27_spill] sm:$0xff]  ;;  %v2202_v63 = vpop.f32.mrf.mxu0 }
 0x29e   : > { %v12428_v41 = vpop.f32.mrf.mxu1 }
 0x29f   : > { %v2021_v53 = vadd.f32 %v12428_v41, %v1814_v1  ;;  %v2225_v41 = vadd.f32 %v13900_v38, %v2018_v3  ;;  %v17075_v38 = vld [vmem:[#allocation13_spill] sm:$0xff] }
 0x2a0   : > { %v13891_v50 = vpop.f32.mrf.mxu1  ;;  %v17080_v1 = vld [vmem:[#allocation33_spill] sm:$0xff] }
 0x2a1   : > { %v2020_v15 = vadd.f32 %v13891_v50, %v1813_v47  ;;  %v2228_v32 = vadd.f32 %v13910_v52, %v2021_v53  ;;  %v17079_v52 = vld [vmem:[#allocation12_spill] sm:$0xff] }
 0x2a2   : > { %v13893_v8 = vpop.f32.mrf.mxu1 }
 0x2a3   : > { %17069 = vst [vmem:[#allocation34_spill] sm:$0xff] %v13893_v8 }
 0x2a4   : > { %v13898_v9 = vpop.f32.mrf.mxu1 }
 0x2a5   : > { %v2022_v49 = vadd.f32 %v13898_v9, %v1815_v48 }
 0x2a6   : > { %v13902_v23 = vpop.f32.mrf.mxu1 }
 0x2a8   : > { %v13908_v8 = vpop.f32.mrf.mxu1 }
 0x2aa   : > { %v13916_v28 = vpop.f32.mrf.mxu1  ;;  %v17073_v45 = vld [vmem:[#allocation34_spill] sm:$0xff] }
 0x2ac   : > { %v13919_v36 = vpop.f32.mrf.mxu1 }
 0x2ae   : > { %v12465_v25 = vpop.f32.mrf.mxu1 }
 0x2af   : > { %v2429_v58 = vadd.f32 %v12465_v25, %v2222_v54  ;;  %v2023_v54 = vadd.f32 %v17073_v45, %v1816_v4 }
 0x2b0   : > { %v2359_v31 = vpop.f32.mrf.mxu1 }
 0x2b1   : > { %v2450_v2 = vadd.f32 %v13931_v62, %v2429_v58  ;;  %v2428_v6 = vadd.f32 %v2359_v31, %v2221_v10  ;;  %v17076_v10 = vld [vmem:[#allocation24_spill] sm:$0xff]  ;;  %v1818_v31 = vadd.f32 %v17078_v0, %v1611_v22 }
 0x2b2   : > { %v12468_v44 = vpop.f32.mrf.mxu1  ;;  %v1613_v34 = vadd.f32 %v17077_v21, %v17076_v10 }
 0x2b3   : > { %v2464_v60 = vmax.f32 %v2450_v2, 0.0  ;;  %v2449_v12 = vadd.f32 %v13931_v62, %v2428_v6  ;;  %v2431_v57 = vadd.f32 %v12468_v44, %v2224_v7  ;;  %v2227_v2 = vadd.f32 %v13921_v26, %v2020_v15  ;;  %v17082_v26 = vld [vmem:[#allocation15_spill] sm:$0xff] }
 0x2b4   : > { %v2369_v40 = vpop.f32.mrf.mxu1  ;;  %v1612_v44 = vadd.f32 %v17080_v1, %v1399_v29 }
 0x2b5   : > { %v2478_v59 = vmul.f32 %v2464_v60, %v13454_v61  ;;  %v2463_v43 = vmax.f32 %v2449_v12, 0.0  ;;  %v2452_v16 = vadd.f32 %v13931_v62, %v2431_v57  ;;  %v2430_v14 = vadd.f32 %v2369_v40, %v2223_v17  ;;  %v17081_v12 = vld [vmem:[#allocation28_spill] sm:$0xff] }
 0x2b6   : > { %v12471_v33 = vpop.f32.mrf.mxu1  ;;  %v2025_v60 = vadd.f32 %v13902_v23, %v1818_v31  ;;  %v1817_v57 = vadd.f32 %v17081_v12, %v1610_v46  ;;  %v2230_v17 = vadd.f32 %v12454_v30, %v2023_v54  ;;  %v17084_v23 = vld [vmem:[#allocation14_spill] sm:$0xff] }
 0x2b7   : > { %2492 = vst.msk [vmem:[#allocation4 + $0x32] sm:$0xff] %vm372_vm1, %v2478_v59  ;;  %v2477_v27 = vmul.f32 %v2463_v43, %v17071_v56  ;;  %v2466_v55 = vmax.f32 %v2452_v16, 0.0  ;;  %v2451_v5 = vadd.f32 %v13931_v62, %v2430_v14  ;;  %v2433_v18 = vadd.f32 %v12471_v33, %v2226_v13  ;;  %v17083_v43 = vld [vmem:[#allocation29_spill] sm:$0xff]  ;;  %v17085_v33 = vld [vmem:[#allocation31_spill] sm:$0xff] }
 0x2b8   : > { %v2379_v50 = vpop.f32.mrf.mxu1  ;;  %v2024_v59 = vadd.f32 %v13908_v8, %v1817_v57  ;;  %v1820_v16 = vadd.f32 %v17083_v43, %v1613_v34  ;;  %v2229_v14 = vadd.f32 %v2192_v11, %v2022_v49  ;;  %v2232_v8 = vadd.f32 %v12457_v20, %v2025_v60  ;;  %v17086_v11 = vld [vmem:[#allocation17_spill] sm:$0xff] }
 0x2b9   : > { %2491 = vst.msk [vmem:[#allocation4 + $0x2a] sm:$0xff] %vm372_vm1, %v2477_v27  ;;  %v2480_v24 = vmul.f32 %v2466_v55, %v17075_v38  ;;  %v2465_v25 = vmax.f32 %v2451_v5, 0.0  ;;  %v2454_v42 = vadd.f32 %v13931_v62, %v2433_v18  ;;  %v2432_v58 = vadd.f32 %v2379_v50, %v2225_v41  ;;  %v12460_v18 = vpop.f32.mrf.mxu0 }
 0x2ba   : > { %v12474_v39 = vpop.f32.mrf.mxu1  ;;  %v2027_v4 = vadd.f32 %v13916_v28, %v1820_v16  ;;  %v1819_v41 = vadd.f32 %v17085_v33, %v1612_v44  ;;  %v2231_v48 = vadd.f32 %v2202_v63, %v2024_v59  ;;  %v17087_v50 = vmov 0.0  }
 0x2bb   : > { %2494 = vst.msk [vmem:[#allocation4 + $0x42] sm:$0xff] %vm372_vm1, %v2480_v24  ;;  %v2479_v6 = vmul.f32 %v2465_v25, %v17079_v52  ;;  %v2468_v7 = vmax.f32 %v2454_v42, 0.0  ;;  %v2453_v37 = vadd.f32 %v13931_v62, %v2432_v58  ;;  %v2435_v3 = vadd.f32 %v12474_v39, %v2228_v32  ;;  %v17088_v32 = vld [vmem:[#allocation16_spill] sm:$0xff]  ;;  %v2212_v49 = vpop.f32.mrf.mxu0 }
 0x2bc   : > { %v2389_v9 = vpop.f32.mrf.mxu1  ;;  %v2026_v28 = vadd.f32 %v13919_v36, %v1819_v41  ;;  %v2234_v34 = vadd.f32 %v12460_v18, %v2027_v4  ;;  %v17089_v36 = vld [vmem:[#allocation19_spill] sm:$0xff]  ;;  %448 = vst.msk [vmem:[#allocation4 + $0xc0] sm:$0xf] %vm397_vm7, %v17087_v50  ;;  %423 = vst.msk [vmem:[#allocation3 + $0xc0] sm:$0xf] %vm397_vm7, %v17087_v50 }
 0x2bd   : > { %2493 = vst.msk [vmem:[#allocation4 + $0x3a] sm:$0xff] %vm372_vm1, %v2479_v6  ;;  %v2482_v53 = vmul.f32 %v2468_v7, %v17082_v26  ;;  %v2467_v47 = vmax.f32 %v2453_v37, 0.0  ;;  %v2456_v40 = vadd.f32 %v13931_v62, %v2435_v3  ;;  %v2434_v13 = vadd.f32 %v2389_v9, %v2227_v2  ;;  %v17090_v37 = vld [vmem:[#allocation18_spill] sm:$0xff] }
 0x2be   : > { %v12477_v29 = vpop.f32.mrf.mxu1  ;;  %v2233_v7 = vadd.f32 %v2212_v49, %v2026_v28  ;;  %v11420_v28 = vld [vmem:[%s16991_s6 + $0x50] sm:$0xff] }
 0x2bf   : > { %2496 = vst.msk [vmem:[#allocation4 + $0x52] sm:$0xff] %vm372_vm1, %v2482_v53  ;;  %v2481_v22 = vmul.f32 %v2467_v47, %v17084_v23  ;;  %v2470_v30 = vmax.f32 %v2456_v40, 0.0  ;;  %v2455_v15 = vadd.f32 %v13931_v62, %v2434_v13  ;;  %v2437_v35 = vadd.f32 %v12477_v29, %v2230_v17  ;;  %v17091_v17 = vld [vmem:[#allocation21_spill] sm:$0xff]  ;;  %v17092_v13 = vld [vmem:[#allocation20_spill] sm:$0xff] }
 0x2c0   : > { %v2399_v27 = vpop.f32.mrf.mxu1  ;;  %v2524_v55 = vld [vmem:[#allocation4 + $0x26] sm:$0xff]  ;;  %v2525_v10 = vld [vmem:[#allocation4 + $0x2e] sm:$0xff] }
 0x2c1   : > { %v2510_v5 = vld [vmem:[#allocation4 + $0x28] sm:$0xff]  ;;  %2495 = vst.msk [vmem:[#allocation4 + $0x4a] sm:$0xff] %vm372_vm1, %v2481_v22  ;;  %v2484_v19 = vmul.f32 %v2470_v30, %v17086_v11  ;;  %v2469_v46 = vmax.f32 %v2455_v15, 0.0  ;;  %v2458_v45 = vadd.f32 %v13931_v62, %v2437_v35  ;;  %v2436_v54 = vadd.f32 %v2399_v27, %v2229_v14  ;;  %11347 = vmatmul.mubr.msk.f32.gmra.mxu0 %vm372_vm1, %v2524_v55  ;;  %v2511_v21 = vld [vmem:[#allocation4 + $0x30] sm:$0xff]  ;;  %v17093_v22 = vld [vmem:[#allocation23_spill] sm:$0xff] }
 0x2c2   : > { %11363 = vmatmul.mubr.msk.f32.gmra.mxu1 %vm372_vm1, %v2510_v5  ;;  %v12480_v51 = vpop.f32.mrf.mxu1  ;;  %2668 = vmatprep.mubr.f32.mxu0 %v17087_v50 }
 0x2c3   : > { %2871 = vmatprep.mubr.f32.mxu1 %v17087_v50  ;;  %2498 = vst.msk [vmem:[#allocation4 + $0x62] sm:$0xff] %vm372_vm1, %v2484_v19  ;;  %v2483_v20 = vmul.f32 %v2469_v46, %v17088_v32  ;;  %v2472_v24 = vmax.f32 %v2458_v45, 0.0  ;;  %v2457_v25 = vadd.f32 %v13931_v62, %v2436_v54  ;;  %v2439_v42 = vadd.f32 %v12480_v51, %v2232_v8  ;;  %v3156_v54 = vld [vmem:[#allocation4 + $0x2a] sm:$0xff] }
 0x2c4   : > { %v2409_v58 = vpop.f32.mrf.mxu1  ;;  %v2526_v57 = vld [vmem:[#allocation4 + $0x36] sm:$0xff]  ;;  %v2527_v29 = vld [vmem:[#allocation4 + $0x3e] sm:$0xff] }
 0x2c5   : > { %2497 = vst.msk [vmem:[#allocation4 + $0x5a] sm:$0xff] %vm372_vm1, %v2483_v20  ;;  %v2486_v0 = vmul.f32 %v2472_v24, %v17089_v36  ;;  %v2471_v31 = vmax.f32 %v2457_v25, 0.0  ;;  %v2460_v39 = vadd.f32 %v13931_v62, %v2439_v42  ;;  %v2438_v2 = vadd.f32 %v2409_v58, %v2231_v48  ;;  %11348 = vmatmul.mubr.msk.f32.gmra.mxu0 %vm372_vm1, %v2525_v10  ;;  %v14006_v9 = vld [vmem:[#allocation4 + $0x38] sm:$0xff]  ;;  %v14019_v14 = vld [vmem:[#allocation4 + $0x40] sm:$0xff]  ;;  %v14092_v51 = vld [vmem:[%s16989_s4 + $0x40] sm:$0xff] }
 0x2c6   : > { %11364 = vmatmul.mubr.msk.f32.gmra.mxu1 %vm372_vm1, %v2511_v21  ;;  %v12483_v6 = vpop.f32.mrf.mxu1  ;;  %2674 = vmatprep.mubr.f32.mxu0 %v17087_v50  ;;  %v3157_v20 = vld [vmem:[#allocation4 + $0x32] sm:$0xff]  ;;  %v2920_v24 = vld [vmem:[#allocation4 + $0x1c] sm:$0xff]  ;;  %v2921_v21 = vld [vmem:[#allocation4 + $0x24] sm:$0xff] }
 0x2c7   : > { %2877 = vmatprep.mubr.f32.mxu1 %v17087_v50  ;;  %2500 = vst.msk [vmem:[#allocation4 + $0x72] sm:$0xff] %vm372_vm1, %v2486_v0  ;;  %v2485_v3 = vmul.f32 %v2471_v31, %v17090_v37  ;;  %v2474_v1 = vmax.f32 %v2460_v39, 0.0  ;;  %v2459_v44 = vadd.f32 %v13931_v62, %v2438_v2  ;;  %v2441_v60 = vadd.f32 %v12483_v6, %v2234_v34  ;;  %v11404_v25 = vld [vmem:[%s16991_s6 + $0x40] sm:$0xff]  ;;  %v3158_v42 = vld [vmem:[#allocation4 + $0x3a] sm:$0xff]  ;;  %v3159_v34 = vld [vmem:[#allocation4 + $0x42] sm:$0xff]  ;;  %v2646_v2 = vpop.f32.mrf.mxu0 }
 0x2c8   : > { %v2419_v12 = vpop.f32.mrf.mxu1  ;;  %v14030_v4 = vld [vmem:[#allocation4 + $0x46] sm:$0xff]  ;;  %v14041_v41 = vld [vmem:[#allocation4 + $0x4e] sm:$0xff]  ;;  %v11437_v58 = vld [vmem:[%s16991_s6 + $0x68] sm:$0xff] }
 0x2c9   : > { %2499 = vst.msk [vmem:[#allocation4 + $0x6a] sm:$0xff] %vm372_vm1, %v2485_v3  ;;  %v2488_v63 = vmul.f32 %v2474_v1, %v17091_v17  ;;  %v2473_v53 = vmax.f32 %v2459_v44, 0.0  ;;  %v2462_v47 = vadd.f32 %v13931_v62, %v2441_v60  ;;  %v2440_v40 = vadd.f32 %v2419_v12, %v2233_v7  ;;  %11349 = vmatmul.mubr.msk.f32.gmra.mxu0 %vm372_vm1, %v2526_v57  ;;  %v14032_v33 = vld [vmem:[#allocation4 + $0x48] sm:$0xff]  ;;  %v14043_v27 = vld [vmem:[#allocation4 + $0x50] sm:$0xff]  ;;  %v14126_v1 = vpop.f32.mrf.mxu0  ;;  %v2924_v57 = vld [vmem:[#allocation4 + $0x3c] sm:$0xff] }
 0x2ca   : > { %11365 = vmatmul.mubr.msk.f32.gmra.mxu1 %vm372_vm1, %v14006_v9  ;;  %2680 = vmatprep.mubr.f32.mxu0 %v17087_v50  ;;  %v2837_v10 = vpop.f32.mrf.mxu1  ;;  %v2922_v0 = vld [vmem:[#allocation4 + $0x2c] sm:$0xff]  ;;  %v2923_v7 = vld [vmem:[#allocation4 + $0x34] sm:$0xff] }
 0x2cb   : > { %2883 = vmatprep.mubr.f32.mxu1 %v17087_v50  ;;  %2502 = vst.msk [vmem:[#allocation4 + $0x82] sm:$0xff] %vm372_vm1, %v2488_v63  ;;  %v2487_v59 = vmul.f32 %v2473_v53, %v17092_v13  ;;  %v2476_v43 = vmax.f32 %v2462_v47, 0.0  ;;  %v2461_v16 = vadd.f32 %v13931_v62, %v2440_v40  ;;  %v17094_v62 = vld [vmem:[#allocation22_spill] sm:$0xff]  ;;  %v3160_v31 = vld [vmem:[#allocation4 + $0x4a] sm:$0xff]  ;;  %v14124_v6 = vadd.f32 %v2837_v10, %v2646_v2  ;;  %v2652_v60 = vpop.f32.mrf.mxu0 }
 0x2cc   : > { %v14051_v55 = vld [vmem:[#allocation4 + $0x56] sm:$0xff]  ;;  %v14061_v8 = vld [vmem:[#allocation4 + $0x5e] sm:$0xff]  ;;  %v14118_v49 = vpop.f32.mrf.mxu1  ;;  %v4706_v13 = vld [vmem:[#allocation3 + $0x34] sm:$0xff] }
 0x2cd   : > { %2501 = vst.msk [vmem:[#allocation4 + $0x7a] sm:$0xff] %vm372_vm1, %v2487_v59  ;;  %v2490_v30 = vmul.f32 %v2476_v43, %v17093_v22  ;;  %v2475_v15 = vmax.f32 %v2461_v16, 0.0  ;;  %11350 = vmatmul.mubr.msk.f32.gmra.mxu0 %vm372_vm1, %v2527_v29  ;;  %v14053_v5 = vld [vmem:[#allocation4 + $0x58] sm:$0xff]  ;;  %v14063_v18 = vld [vmem:[#allocation4 + $0x60] sm:$0xff]  ;;  %v14136_v53 = vpop.f32.mrf.mxu0  ;;  %v2926_v29 = vld [vmem:[#allocation4 + $0x4c] sm:$0xff] }
 0x2ce   : > { %11366 = vmatmul.mubr.msk.f32.gmra.mxu1 %vm372_vm1, %v14019_v14  ;;  %2686 = vmatprep.mubr.f32.mxu0 %v17087_v50  ;;  %v2843_v39 = vpop.f32.mrf.mxu1  ;;  %v3161_v3 = vld [vmem:[#allocation4 + $0x52] sm:$0xff]  ;;  %v3162_v63 = vld [vmem:[#allocation4 + $0x5a] sm:$0xff]  ;;  %v2925_v43 = vld [vmem:[#allocation4 + $0x44] sm:$0xff] }
 0x2cf   : > { %2889 = vmatprep.mubr.f32.mxu1 %v17087_v50  ;;  %2504 = vst.msk [vmem:[#allocation4 + $0x92] sm:$0xff] %vm372_vm1, %v2490_v30  ;;  %v2489_v35 = vmul.f32 %v2475_v15, %v17094_v62  ;;  %v14134_v12 = vadd.f32 %v2843_v39, %v2652_v60  ;;  %v2658_v40 = vpop.f32.mrf.mxu0  ;;  %v3163_v16 = vld [vmem:[#allocation4 + $0x62] sm:$0xff]  ;;  %v14152_v15 = vld [vmem:[#allocation4 + $0x54] sm:$0xff]  ;;  %v4919_v37 = vld [vmem:[#allocation3 + $0x72] sm:$0xff] }
 0x2d0   : > { %v14071_v19 = vld [vmem:[#allocation4 + $0x66] sm:$0xff]  ;;  %v14081_v45 = vld [vmem:[#allocation4 + $0x6e] sm:$0xff]  ;;  %v14132_v44 = vpop.f32.mrf.mxu1  ;;  %v4335_v39 = vld [vmem:[#allocation3 + $0x1e] sm:$0xff] }
 0x2d1   : > { %2503 = vst.msk [vmem:[#allocation4 + $0x8a] sm:$0xff] %vm372_vm1, %v2489_v35  ;;  %11351 = vmatmul.mubr.msk.f32.gmra.mxu0 %vm372_vm1, %v14030_v4  ;;  %v14073_v46 = vld [vmem:[#allocation4 + $0x68] sm:$0xff]  ;;  %v3165_v35 = vld [vmem:[#allocation4 + $0x72] sm:$0xff]  ;;  %v4336_v60 = vld [vmem:[#allocation3 + $0x26] sm:$0xff] }
 0x2d2   : > { %11367 = vmatmul.mubr.msk.f32.gmra.mxu1 %vm372_vm1, %v14032_v33  ;;  %2692 = vmatprep.mubr.f32.mxu0 %v17087_v50  ;;  %v2849_v47 = vpop.f32.mrf.mxu1  ;;  %v3164_v30 = vld [vmem:[#allocation4 + $0x6a] sm:$0xff]  ;;  %v4703_v62 = vld [vmem:[#allocation3 + $0x1c] sm:$0xff] }
 0x2d3   : > { %2895 = vmatprep.mubr.f32.mxu1 %v17087_v50  ;;  %v14142_v59 = vadd.f32 %v2849_v47, %v2658_v40  ;;  %v14296_v47 = vld [vmem:[%s16989_s4 + $0x58] sm:$0xff]  ;;  %v4339_v40 = vld [vmem:[#allocation3 + $0x3e] sm:$0xff] }
 0x2d4   : > { %v14096_v48 = vld [vmem:[#allocation4 + $0x76] sm:$0xff] }
 0x2d5   : > { %11352 = vmatmul.mubr.msk.f32.gmra.mxu0 %vm372_vm1, %v14041_v41 }
 0x2d6   : > { %11368 = vmatmul.mubr.msk.f32.gmra.mxu1 %vm372_vm1, %v14043_v27  ;;  %2698 = vmatprep.mubr.f32.mxu0 %v17087_v50  ;;  %v3169_v10 = vld [vmem:[#allocation4 + $0x92] sm:$0xff] }
 0x2d7   : > { %2901 = vmatprep.mubr.f32.mxu1 %v17087_v50  ;;  %v3404_v2 = vld [vmem:[#allocation4 + $0x98] sm:$0xff] }
 0x2d9   : > { %11353 = vmatmul.mubr.msk.f32.gmra.mxu0 %vm372_vm1, %v14051_v55 }
 0x2da   : > { %11369 = vmatmul.mubr.msk.f32.gmra.mxu1 %vm372_vm1, %v14053_v5  ;;  %2704 = vmatprep.mubr.f32.mxu0 %v17087_v50 }
 0x2db   : > { %2907 = vmatprep.mubr.f32.mxu1 %v17087_v50 }
 0x2dd   : > { %11354 = vmatmul.mubr.msk.f32.gmra.mxu0 %vm372_vm1, %v14061_v8 }
 0x2de   : > { %11370 = vmatmul.mubr.msk.f32.gmra.mxu1 %vm372_vm1, %v14063_v18  ;;  %2710 = vmatprep.mubr.f32.mxu0 %v17087_v50 }
 0x2df   : > { %2913 = vmatprep.mubr.f32.mxu1 %v17087_v50 }
 0x2e1   : > { %11355 = vmatmul.mubr.msk.f32.gmra.mxu0 %vm372_vm1, %v14071_v19 }
 0x2e2   : > { %11371 = vmatmul.mubr.msk.f32.gmra.mxu1 %vm372_vm1, %v14073_v46  ;;  %2716 = vmatprep.mubr.f32.mxu0 %v17087_v50 }
 0x2e3   : > { %3279 = vmatprep.mubr.f32.mxu1 %v17087_v50 }
 0x2e5   : > { %11356 = vmatmul.mubr.msk.f32.gmra.mxu0 %vm372_vm1, %v14081_v45 }
 0x2e6   : > { %11390 = vmatmul.mubr.msk.f32.vlgmr.msra.gmra.mxu1 %vm372_vm1, %v3156_v54  ;;  %2722 = vmatprep.mubr.f32.mxu0 %v17087_v50  ;;  %v14159_v54 = vld [vmem:[#allocation4 + $0x5c] sm:$0xff] }
 0x2e7   : > { %3285 = vmatprep.mubr.f32.mxu1 %v17087_v50  ;;  %3718 = vmatpush1.msra.mxu1 %v11420_v28  ;;  %v3166_v28 = vld [vmem:[#allocation4 + $0x7a] sm:$0xff] }
 0x2e8   : > { %12484 = vmatprep.subr.mxu1 %v14092_v51 }
 0x2e9   : > { %11357 = vmatmul.mubr.msk.f32.gmra.mxu0 %vm372_vm1, %v14096_v48 }
 0x2ea   : > { %11391 = vmatmul.mubr.msk.f32.gmra.mxu1 %vm372_vm1, %v3157_v20  ;;  %3043 = vmatprep.mubr.f32.mxu0 %v17087_v50  ;;  %v14168_v20 = vld [vmem:[#allocation4 + $0x64] sm:$0xff] }
 0x2eb   : > { %3291 = vmatprep.mubr.f32.mxu1 %v17087_v50 }
 0x2ed   : > { %11374 = vmatmul.mubr.msk.f32.vlgmr.msra.gmra.mxu0 %vm372_vm1, %v2920_v24  ;;  %v3167_v24 = vld [vmem:[#allocation4 + $0x82] sm:$0xff] }
 0x2ee   : > { %11392 = vmatmul.mubr.msk.f32.gmra.mxu1 %vm372_vm1, %v3158_v42  ;;  %3482 = vmatpush1.msra.mxu0 %v11404_v25  ;;  %v14175_v25 = vld [vmem:[#allocation4 + $0x6c] sm:$0xff] }
 0x2ef   : > { %3049 = vmatprep.mubr.f32.mxu0 %v17087_v50  ;;  %3297 = vmatprep.mubr.f32.mxu1 %v17087_v50  ;;  %v3168_v42 = vld [vmem:[#allocation4 + $0x8a] sm:$0xff] }
 0x2f0   : > { %3953 = vmatprep.subr.mxu0 %v11437_v58  ;;  %v14182_v58 = vld [vmem:[#allocation4 + $0x74] sm:$0xff] }
 0x2f1   : > { %11375 = vmatmul.mubr.msk.f32.gmra.mxu0 %vm372_vm1, %v2921_v21  ;;  %v14189_v21 = vld [vmem:[#allocation4 + $0x7c] sm:$0xff] }
 0x2f2   : > { %11393 = vmatmul.mubr.msk.f32.gmra.mxu1 %vm372_vm1, %v3159_v34  ;;  %3055 = vmatprep.mubr.f32.mxu0 %v17087_v50  ;;  %v14198_v34 = vld [vmem:[%s16989_s4 + $0x38] sm:$0xff] }
 0x2f3   : > { %3303 = vmatprep.mubr.f32.mxu1 %v17087_v50 }
 0x2f5   : > { %11376 = vmatmul.mubr.msk.f32.gmra.mxu0 %vm372_vm1, %v2922_v0  ;;  %v14203_v0 = vld [vmem:[#allocation4 + $0x84] sm:$0xff] }
 0x2f6   : > { %11394 = vmatmul.mubr.msk.f32.gmra.mxu1 %vm372_vm1, %v3160_v31  ;;  %3061 = vmatprep.mubr.f32.mxu0 %v17087_v50  ;;  %v4334_v31 = vld [vmem:[#allocation3 + $0x16] sm:$0xff] }
 0x2f7   : > { %3309 = vmatprep.mubr.f32.mxu1 %v17087_v50 }
 0x2f9   : > { %11377 = vmatmul.mubr.msk.f32.gmra.mxu0 %vm372_vm1, %v2923_v7  ;;  %v11497_v7 = vld [vmem:[%s16989_s4 + $0x50] sm:$0xff] }
 0x2fa   : > { %11395 = vmatmul.mubr.msk.f32.gmra.mxu1 %vm372_vm1, %v3161_v3  ;;  %3067 = vmatprep.mubr.f32.mxu0 %v17087_v50  ;;  %v3405_v3 = vld [vmem:[#allocation4 + $0xa0] sm:$0xff] }
 0x2fb   : > { %3315 = vmatprep.mubr.f32.mxu1 %v17087_v50 }
 0x2fd   : > { %11378 = vmatmul.mubr.msk.f32.gmra.mxu0 %vm372_vm1, %v2924_v57  ;;  %v4337_v57 = vld [vmem:[#allocation3 + $0x2e] sm:$0xff] }
 0x2fe   : > { %11396 = vmatmul.mubr.msk.f32.gmra.mxu1 %vm372_vm1, %v3162_v63  ;;  %3073 = vmatprep.mubr.f32.mxu0 %v17087_v50  ;;  %v4338_v63 = vld [vmem:[#allocation3 + $0x36] sm:$0xff] }
 0x2ff   : > { %3321 = vmatprep.mubr.f32.mxu1 %v17087_v50 }
 0x301   : > { %11379 = vmatmul.mubr.msk.f32.gmra.mxu0 %vm372_vm1, %v2925_v43  ;;  %v14305_v43 = vld [vmem:[#allocation3 + $0x46] sm:$0xff] }
 0x302   : > { %11397 = vmatmul.mubr.msk.f32.gmra.mxu1 %vm372_vm1, %v3163_v16  ;;  %3079 = vmatprep.mubr.f32.mxu0 %v17087_v50  ;;  %v14311_v16 = vld [vmem:[#allocation3 + $0x4e] sm:$0xff] }
 0x303   : > { %3327 = vmatprep.mubr.f32.mxu1 %v17087_v50 }
 0x305   : > { %11380 = vmatmul.mubr.msk.f32.gmra.mxu0 %vm372_vm1, %v2926_v29  ;;  %v14316_v29 = vld [vmem:[#allocation3 + $0x56] sm:$0xff] }
 0x306   : > { %11398 = vmatmul.mubr.msk.f32.gmra.mxu1 %vm372_vm1, %v3164_v30  ;;  %3085 = vmatprep.mubr.f32.mxu0 %v17087_v50  ;;  %v14322_v30 = vld [vmem:[#allocation3 + $0x5e] sm:$0xff] }
 0x307   : > { %3333 = vmatprep.mubr.f32.mxu1 %v17087_v50 }
 0x309   : > { %11381 = vmatmul.mubr.msk.f32.gmra.mxu0 %vm372_vm1, %v14152_v15 }
 0x30a   : > { %11399 = vmatmul.mubr.msk.f32.gmra.mxu1 %vm372_vm1, %v3165_v35  ;;  %3091 = vmatprep.mubr.f32.mxu0 %v17087_v50  ;;  %v14333_v35 = vld [vmem:[#allocation3 + $0x6e] sm:$0xff] }
 0x30b   : > { %3339 = vmatprep.mubr.f32.mxu1 %v17087_v50 }
 0x30d   : > { %11382 = vmatmul.mubr.msk.f32.gmra.mxu0 %vm372_vm1, %v14159_v54 }
 0x30e   : > { %11400 = vmatmul.mubr.msk.f32.gmra.mxu1 %vm372_vm1, %v3166_v28  ;;  %3097 = vmatprep.mubr.f32.mxu0 %v17087_v50  ;;  %v14338_v28 = vld [vmem:[#allocation3 + $0x76] sm:$0xff] }
 0x30f   : > { %3345 = vmatprep.mubr.f32.mxu1 %v17087_v50 }
 0x311   : > { %11383 = vmatmul.mubr.msk.f32.gmra.mxu0 %vm372_vm1, %v14168_v20 }
 0x312   : > { %11401 = vmatmul.mubr.msk.f32.gmra.mxu1 %vm372_vm1, %v3167_v24  ;;  %3103 = vmatprep.mubr.f32.mxu0 %v17087_v50  ;;  %v4318_v24 = vld [vmem:[#allocation3 + $0x8] sm:$0xff] }
 0x313   : > { %3351 = vmatprep.mubr.f32.mxu1 %v17087_v50 }
 0x315   : > { %11384 = vmatmul.mubr.msk.f32.gmra.mxu0 %vm372_vm1, %v14175_v25 }
 0x316   : > { %11402 = vmatmul.mubr.msk.f32.gmra.mxu1 %vm372_vm1, %v3168_v42  ;;  %3109 = vmatprep.mubr.f32.mxu0 %v17087_v50 }
 0x317   : > { %3357 = vmatprep.mubr.f32.mxu1 %v17087_v50 }
 0x319   : > { %11385 = vmatmul.mubr.msk.f32.gmra.mxu0 %vm372_vm1, %v14182_v58 }
 0x31a   : > { %11403 = vmatmul.mubr.msk.f32.gmra.mxu1 %vm372_vm1, %v3169_v10  ;;  %3115 = vmatprep.mubr.f32.mxu0 %v17087_v50  ;;  %v4320_v10 = vld [vmem:[#allocation3 + $0x18] sm:$0xff] }
 0x31b   : > { %3751 = vmatprep.mubr.f32.mxu1 %v17087_v50 }
 0x31d   : > { %11386 = vmatmul.mubr.msk.f32.gmra.mxu0 %vm372_vm1, %v14189_v21 }
 0x31e   : > { %11422 = vmatmul.mubr.msk.f32.vlgmr.msra.gmra.mxu1 %vm372_vm1, %v14030_v4  ;;  %3121 = vmatprep.mubr.f32.mxu0 %v17087_v50  ;;  %v11436_v4 = vld [vmem:[%s16991_s6 + $0x60] sm:$0xff] }
 0x31f   : > { %3757 = vmatprep.mubr.f32.mxu1 %v17087_v50  ;;  %12485 = vmatpush3.msra.mxu1 %v14092_v51  ;;  %v14218_v51 = vld [vmem:[%s16989_s4 + $0x48] sm:$0xff] }
 0x320   : > { %12507 = vmatprep.subr.mxu1 %v14198_v34 }
 0x321   : > { %11387 = vmatmul.mubr.msk.f32.gmra.mxu0 %vm372_vm1, %v14203_v0 }
 0x322   : > { %11423 = vmatmul.mubr.msk.f32.gmra.mxu1 %vm372_vm1, %v14041_v41  ;;  %3515 = vmatprep.mubr.f32.mxu0 %v17087_v50  ;;  %v3637_v41 = vld [vmem:[#allocation4 + $0x8e] sm:$0xff] }
 0x323   : > { %3763 = vmatprep.mubr.f32.mxu1 %v17087_v50 }
 0x325   : > { %11406 = vmatmul.mubr.msk.f32.vlgmr.msra.gmra.mxu0 %vm372_vm1, %v14006_v9  ;;  %v3635_v9 = vld [vmem:[#allocation4 + $0x7e] sm:$0xff] }
 0x326   : > { %11424 = vmatmul.mubr.msk.f32.gmra.mxu1 %vm372_vm1, %v14051_v55  ;;  %3954 = vmatpush1.msra.mxu0 %v11436_v4  ;;  %v3638_v55 = vld [vmem:[#allocation4 + $0x96] sm:$0xff]  ;;  %v3871_v4 = vld [vmem:[#allocation4 + $0x8c] sm:$0xff] }
 0x327   : > { %3521 = vmatprep.mubr.f32.mxu0 %v17087_v50  ;;  %3769 = vmatprep.mubr.f32.mxu1 %v17087_v50 }
 0x328   : > { %12530 = vmatprep.subr.mxu0 %v14218_v51 }
 0x329   : > { %11407 = vmatmul.mubr.msk.f32.gmra.mxu0 %vm372_vm1, %v14019_v14  ;;  %v3636_v14 = vld [vmem:[#allocation4 + $0x86] sm:$0xff] }
 0x32a   : > { %11425 = vmatmul.mubr.msk.f32.gmra.mxu1 %vm372_vm1, %v14061_v8  ;;  %3527 = vmatprep.mubr.f32.mxu0 %v17087_v50  ;;  %v3401_v8 = vld [vmem:[#allocation4 + $0x80] sm:$0xff] }
 0x32b   : > { %3775 = vmatprep.mubr.f32.mxu1 %v17087_v50 }
 0x32d   : > { %11408 = vmatmul.mubr.msk.f32.gmra.mxu0 %vm372_vm1, %v14032_v33  ;;  %v3399_v33 = vld [vmem:[#allocation4 + $0x70] sm:$0xff] }
 0x32e   : > { %11426 = vmatmul.mubr.msk.f32.gmra.mxu1 %vm372_vm1, %v14071_v19  ;;  %3533 = vmatprep.mubr.f32.mxu0 %v17087_v50  ;;  %v3402_v19 = vld [vmem:[#allocation4 + $0x88] sm:$0xff] }
 0x32f   : > { %3781 = vmatprep.mubr.f32.mxu1 %v17087_v50 }
 0x331   : > { %11409 = vmatmul.mubr.msk.f32.gmra.mxu0 %vm372_vm1, %v14043_v27  ;;  %v3400_v27 = vld [vmem:[#allocation4 + $0x78] sm:$0xff] }
 0x332   : > { %11427 = vmatmul.mubr.msk.f32.gmra.mxu1 %vm372_vm1, %v14081_v45  ;;  %3539 = vmatprep.mubr.f32.mxu0 %v17087_v50  ;;  %v4333_v45 = vld [vmem:[#allocation3 + $0xe] sm:$0xff] }
 0x333   : > { %3787 = vmatprep.mubr.f32.mxu1 %v17087_v50 }
 0x335   : > { %11410 = vmatmul.mubr.msk.f32.gmra.mxu0 %vm372_vm1, %v14053_v5  ;;  %v3639_v5 = vld [vmem:[#allocation4 + $0x9e] sm:$0xff] }
 0x336   : > { %11428 = vmatmul.mubr.msk.f32.gmra.mxu1 %vm372_vm1, %v14096_v48  ;;  %3545 = vmatprep.mubr.f32.mxu0 %v17087_v50  ;;  %v3403_v48 = vld [vmem:[#allocation4 + $0x90] sm:$0xff] }
 0x337   : > { %3793 = vmatprep.mubr.f32.mxu1 %v17087_v50 }
 0x339   : > { %11411 = vmatmul.mubr.msk.f32.gmra.mxu0 %vm372_vm1, %v14063_v18  ;;  %v3640_v18 = vld [vmem:[#allocation4 + $0xa6] sm:$0xff] }
 0x33a   : > { %11429 = vmatmul.mubr.msk.f32.gmra.mxu1 %vm372_vm1, %v3635_v9  ;;  %3551 = vmatprep.mubr.f32.mxu0 %v17087_v50  ;;  %v4323_v9 = vld [vmem:[#allocation3 + $0x30] sm:$0xff] }
 0x33b   : > { %3799 = vmatprep.mubr.f32.mxu1 %v17087_v50 }
 0x33d   : > { %11412 = vmatmul.mubr.msk.f32.gmra.mxu0 %vm372_vm1, %v14073_v46  ;;  %v3641_v46 = vld [vmem:[#allocation4 + $0xae] sm:$0xff] }
 0x33e   : > { %11430 = vmatmul.mubr.msk.f32.gmra.mxu1 %vm372_vm1, %v3636_v14  ;;  %3557 = vmatprep.mubr.f32.mxu0 %v17087_v50 }
 0x33f   : > { %3805 = vmatprep.mubr.f32.mxu1 %v17087_v50 }
 0x341   : > { %11413 = vmatmul.mubr.msk.f32.gmra.mxu0 %vm372_vm1, %v3399_v33  ;;  %v14374_v33 = vld [vmem:[#allocation3 + $0x38] sm:$0xff] }
 0x342   : > { %11431 = vmatmul.mubr.msk.f32.gmra.mxu1 %vm372_vm1, %v3637_v41  ;;  %3563 = vmatprep.mubr.f32.mxu0 %v17087_v50  ;;  %v14379_v41 = vld [vmem:[#allocation3 + $0x40] sm:$0xff] }
 0x343   : > { %3811 = vmatprep.mubr.f32.mxu1 %v17087_v50 }
 0x345   : > { %11414 = vmatmul.mubr.msk.f32.gmra.mxu0 %vm372_vm1, %v3400_v27 }
 0x346   : > { %11432 = vmatmul.mubr.msk.f32.gmra.mxu1 %vm372_vm1, %v3638_v55  ;;  %3569 = vmatprep.mubr.f32.mxu0 %v17087_v50  ;;  %v3873_v55 = vld [vmem:[#allocation4 + $0x9c] sm:$0xff] }
 0x347   : > { %3817 = vmatprep.mubr.f32.mxu1 %v17087_v50 }
 0x349   : > { %11415 = vmatmul.mubr.msk.f32.gmra.mxu0 %vm372_vm1, %v3401_v8  ;;  %v14386_v8 = vld [vmem:[#allocation3 + $0x48] sm:$0xff] }
 0x34a   : > { %11433 = vmatmul.mubr.msk.f32.gmra.mxu1 %vm372_vm1, %v3639_v5  ;;  %3575 = vmatprep.mubr.f32.mxu0 %v17087_v50  ;;  %v14384_v5 = vpop.f32.mrf.mxu0 }
 0x34b   : > { %3823 = vmatprep.mubr.f32.mxu1 %v17087_v50 }
 0x34d   : > { %11416 = vmatmul.mubr.msk.f32.gmra.mxu0 %vm372_vm1, %v3402_v19 }
 0x34e   : > { %11434 = vmatmul.mubr.msk.f32.gmra.mxu1 %vm372_vm1, %v3640_v18  ;;  %3581 = vmatprep.mubr.f32.mxu0 %v17087_v50 }
 0x34f   : > { %3829 = vmatprep.mubr.f32.mxu1 %v17087_v50 }
 0x351   : > { %11417 = vmatmul.mubr.msk.f32.gmra.mxu0 %vm372_vm1, %v3403_v48 }
 0x352   : > { %11435 = vmatmul.mubr.msk.f32.gmra.mxu1 %vm372_vm1, %v3641_v46  ;;  %3587 = vmatprep.mubr.f32.mxu0 %v17087_v50  ;;  %v14393_v46 = vld [vmem:[#allocation3 + $0x50] sm:$0xff] }
 0x353   : > { %12486 = vmatprep.mubr.msk.f32.mxu1 %vm372_vm1, %v4333_v45  ;;  %v3874_v45 = vld [vmem:[#allocation4 + $0xa4] sm:$0xff] }
 0x355   : > { %11418 = vmatmul.mubr.msk.f32.gmra.mxu0 %vm372_vm1, %v3404_v2 }
 0x356   : > { %12487 = vmatmul.mubr.msk.f32.vlgmr.msra.gmra.mxu1 %vm372_vm1, %v4334_v31  ;;  %3593 = vmatprep.mubr.f32.mxu0 %v17087_v50 }
 0x357   : > { %12489 = vmatprep.mubr.msk.f32.mxu1 %vm372_vm1, %v4335_v39  ;;  %12508 = vmatpush3.msra.mxu1 %v14198_v34  ;;  %v4321_v34 = vld [vmem:[#allocation3 + $0x20] sm:$0xff]  ;;  %v14400_v39 = vld [vmem:[#allocation3 + $0x58] sm:$0xff] }
 0x358   : > { %12553 = vmatprep.subr.mxu1 %v11497_v7 }
 0x359   : > { %11419 = vmatmul.mubr.msk.f32.gmra.mxu0 %vm372_vm1, %v3405_v3  ;;  %v14407_v3 = vld [vmem:[#allocation3 + $0x60] sm:$0xff] }
 0x35a   : > { %12490 = vmatmul.mubr.msk.f32.gmra.mxu1 %vm372_vm1, %v4336_v60  ;;  %3987 = vmatprep.mubr.f32.mxu0 %v17087_v50  ;;  %v3875_v60 = vld [vmem:[#allocation4 + $0xac] sm:$0xff] }
 0x35b   : > { %12492 = vmatprep.mubr.msk.f32.mxu1 %vm372_vm1, %v4337_v57 }
 0x35d   : > { %11438 = vmatmul.mubr.msk.f32.vlgmr.msra.gmra.mxu0 %vm372_vm1, %v14152_v15  ;;  %v14327_v15 = vld [vmem:[#allocation3 + $0x66] sm:$0xff] }
 0x35e   : > { %12493 = vmatmul.mubr.msk.f32.gmra.mxu1 %vm372_vm1, %v4338_v63  ;;  %12531 = vmatpush3.msra.mxu0 %v14218_v51  ;;  %v4322_v51 = vld [vmem:[#allocation3 + $0x28] sm:$0xff] }
 0x35f   : > { %12495 = vmatprep.mubr.msk.f32.mxu1 %vm372_vm1, %v4339_v40  ;;  %3993 = vmatprep.mubr.f32.mxu0 %v17087_v50 }
 0x360   : > { %12576 = vmatprep.subr.mxu0 %v14296_v47 }
 0x361   : > { %11439 = vmatmul.mubr.msk.f32.gmra.mxu0 %vm372_vm1, %v14159_v54  ;;  %v4317_v54 = vld [vmem:[#allocation3] sm:$0xff] }
 0x362   : > { %12496 = vmatmul.mubr.msk.f32.gmra.mxu1 %vm372_vm1, %v14305_v43  ;;  %3999 = vmatprep.mubr.f32.mxu0 %v17087_v50 }
 0x363   : > { %12498 = vmatprep.mubr.msk.f32.mxu1 %vm372_vm1, %v14311_v16 }
 0x365   : > { %11440 = vmatmul.mubr.msk.f32.gmra.mxu0 %vm372_vm1, %v14168_v20  ;;  %v14344_v20 = vpop.f32.mrf.mxu1 }
 0x366   : > { %12499 = vmatmul.mubr.msk.f32.gmra.mxu1 %vm372_vm1, %v14316_v29  ;;  %4005 = vmatprep.mubr.f32.mxu0 %v17087_v50 }
 0x367   : > { %12501 = vmatprep.mubr.msk.f32.mxu1 %vm372_vm1, %v14322_v30  ;;  %v14351_v42 = vpop.f32.mrf.mxu1 }
 0x369   : > { %11441 = vmatmul.mubr.msk.f32.gmra.mxu0 %vm372_vm1, %v14175_v25  ;;  %v4319_v25 = vld [vmem:[#allocation3 + $0x10] sm:$0xff] }
 0x36a   : > { %12502 = vmatmul.mubr.msk.f32.gmra.mxu1 %vm372_vm1, %v14327_v15  ;;  %4011 = vmatprep.mubr.f32.mxu0 %v17087_v50 }
 0x36b   : > { %12504 = vmatprep.mubr.msk.f32.mxu1 %vm372_vm1, %v14333_v35 }
 0x36d   : > { %11442 = vmatmul.mubr.msk.f32.gmra.mxu0 %vm372_vm1, %v14182_v58  ;;  %v14356_v58 = vld [vmem:[%s16989_s4 + $0x60] sm:$0xff] }
 0x36e   : > { %12505 = vmatmul.mubr.msk.f32.gmra.mxu1 %vm372_vm1, %v14338_v28  ;;  %4017 = vmatprep.mubr.f32.mxu0 %v17087_v50 }
 0x36f   : > { %12509 = vmatprep.mubr.msk.f32.mxu1 %vm372_vm1, %v4317_v54  ;;  %v14414_v54 = vld [vmem:[#allocation3 + $0x68] sm:$0xff] }
 0x371   : > { %11443 = vmatmul.mubr.msk.f32.gmra.mxu0 %vm372_vm1, %v14189_v21  ;;  %v14364_v21 = vpop.f32.mrf.mxu1 }
 0x372   : > { %12510 = vmatmul.mubr.msk.f32.vlgmr.msra.gmra.mxu1 %vm372_vm1, %v4318_v24  ;;  %4023 = vmatprep.mubr.f32.mxu0 %v17087_v50 }
 0x373   : > { %12512 = vmatprep.mubr.msk.f32.mxu1 %vm372_vm1, %v4319_v25  ;;  %12554 = vmatpush3.msra.mxu1 %v11497_v7  ;;  %v14370_v14 = vpop.f32.mrf.mxu1 }
 0x374   : > { %12599 = vmatprep.subr.mxu1 %v14356_v58 }
 0x375   : > { %11444 = vmatmul.mubr.msk.f32.gmra.mxu0 %vm372_vm1, %v14203_v0  ;;  %v3872_v0 = vld [vmem:[#allocation4 + $0x94] sm:$0xff]  ;;  %v2863_v27 = vpop.f32.mrf.mxu1 }
 0x376   : > { %12513 = vmatmul.mubr.msk.f32.gmra.mxu1 %vm372_vm1, %v4320_v10  ;;  %4029 = vmatprep.mubr.f32.mxu0 %v17087_v50  ;;  %v4910_v10 = vld [vmem:[#allocation3 + $0x2a] sm:$0xff] }
 0x377   : > { %12515 = vmatprep.mubr.msk.f32.mxu1 %vm372_vm1, %v4321_v34 }
 0x379   : > { %11445 = vmatmul.mubr.msk.f32.gmra.mxu0 %vm372_vm1, %v3871_v4  ;;  %v3876_v4 = vld [vmem:[#allocation4 + $0xb4] sm:$0xff] }
 0x37a   : > { %12516 = vmatmul.mubr.msk.f32.gmra.mxu1 %vm372_vm1, %v4322_v51  ;;  %4035 = vmatprep.mubr.f32.mxu0 %v17087_v50 }
 0x37b   : > { %12518 = vmatprep.mubr.msk.f32.mxu1 %vm372_vm1, %v4323_v9 }
 0x37d   : > { %11446 = vmatmul.mubr.msk.f32.gmra.mxu0 %vm372_vm1, %v3872_v0 }
 0x37e   : > { %12519 = vmatmul.mubr.msk.f32.gmra.mxu1 %vm372_vm1, %v14374_v33  ;;  %4041 = vmatprep.mubr.f32.mxu0 %v17087_v50 }
 0x37f   : > { %12521 = vmatprep.mubr.msk.f32.mxu1 %vm372_vm1, %v14379_v41 }
 0x381   : > { %v14388_v18 = vpop.f32.mrf.mxu0  ;;  %11447 = vmatmul.mubr.msk.f32.gmra.mxu0 %vm372_vm1, %v3873_v55 }
 0x382   : > { %v2867_v19 = vpop.f32.mrf.mxu1  ;;  %12522 = vmatmul.mubr.msk.f32.gmra.mxu1 %vm372_vm1, %v14386_v8  ;;  %4047 = vmatprep.mubr.f32.mxu0 %v17087_v50 }
 0x383   : > { %12524 = vmatprep.mubr.msk.f32.mxu1 %vm372_vm1, %v14393_v46  ;;  %v14398_v48 = vpop.f32.mrf.mxu0 }
 0x384   : > { %v2869_v31 = vpop.f32.mrf.mxu1 }
 0x385   : > { %v14402_v2 = vpop.f32.mrf.mxu0  ;;  %11448 = vmatmul.mubr.msk.f32.gmra.mxu0 %vm372_vm1, %v3874_v45 }
 0x386   : > { %v2873_v7 = vpop.f32.mrf.mxu1  ;;  %12525 = vmatmul.mubr.msk.f32.gmra.mxu1 %vm372_vm1, %v14400_v39  ;;  %4053 = vmatprep.mubr.f32.mxu0 %v17087_v50 }
 0x387   : > { %12527 = vmatprep.mubr.msk.f32.mxu1 %vm372_vm1, %v14407_v3  ;;  %v2672_v57 = vpop.f32.mrf.mxu0 }
 0x388   : > { %v2875_v63 = vpop.f32.mrf.mxu1  ;;  %v14412_v40 = vadd.f32 %v2863_v27, %v2672_v57  ;;  %v4911_v27 = vld [vmem:[#allocation3 + $0x32] sm:$0xff] }
 0x389   : > { %v2676_v24 = vpop.f32.mrf.mxu0  ;;  %11449 = vmatmul.mubr.msk.f32.gmra.mxu0 %vm372_vm1, %v3875_v60  ;;  %v4912_v60 = vld [vmem:[#allocation3 + $0x3a] sm:$0xff] }
 0x38a   : > { %v2879_v25 = vpop.f32.mrf.mxu1  ;;  %12528 = vmatmul.mubr.msk.f32.gmra.mxu1 %vm372_vm1, %v14414_v54  ;;  %v14419_v34 = vadd.f32 %v2867_v19, %v2676_v24  ;;  %4059 = vmatprep.mubr.f32.mxu0 %v17087_v50  ;;  %v3877_v19 = vld [vmem:[#allocation4 + $0xbc] sm:$0xff] }
 0x38b   : > { %12555 = vmatprep.mubr.msk.f32.mxu1 %vm372_vm1, %v4910_v10  ;;  %v2678_v51 = vpop.f32.mrf.mxu0 }
 0x38c   : > { %v2881_v9 = vpop.f32.mrf.mxu1  ;;  %v14423_v0 = vadd.f32 %v2869_v31, %v2678_v51  ;;  %v4913_v51 = vld [vmem:[#allocation3 + $0x42] sm:$0xff] }
 0x38d   : > { %v2682_v55 = vpop.f32.mrf.mxu0  ;;  %11450 = vmatmul.mubr.msk.f32.gmra.mxu0 %vm372_vm1, %v3876_v4 }
 0x38e   : > { %v2885_v45 = vpop.f32.mrf.mxu1  ;;  %12556 = vmatmul.mubr.msk.f32.vlgmr.msra.gmra.mxu1 %vm372_vm1, %v4911_v27  ;;  %v14427_v57 = vadd.f32 %v2873_v7, %v2682_v55  ;;  %4065 = vmatprep.mubr.f32.mxu0 %v17087_v50  ;;  %v4914_v7 = vld [vmem:[#allocation3 + $0x4a] sm:$0xff] }
 0x38f   : > { %12558 = vmatprep.mubr.msk.f32.mxu1 %vm372_vm1, %v4912_v60  ;;  %v2684_v24 = vpop.f32.mrf.mxu0  ;;  %12600 = vmatpush3.msra.mxu1 %v14356_v58  ;;  %v4704_v58 = vld [vmem:[#allocation3 + $0x24] sm:$0xff] }
 0x390   : > { %v2887_v10 = vpop.f32.mrf.mxu1  ;;  %v14432_v31 = vadd.f32 %v2875_v63, %v2684_v24  ;;  %v4915_v63 = vld [vmem:[#allocation3 + $0x52] sm:$0xff]  ;;  %v14445_v24 = vld [vmem:[%s16989_s4 + $0x68] sm:$0xff] }
 0x391   : > { %v2688_v22 = vpop.f32.mrf.mxu0  ;;  %11451 = vmatmul.mubr.msk.f32.gmra.mxu0 %vm372_vm1, %v3877_v19 }
 0x392   : > { %v2891_v4 = vpop.f32.mrf.mxu1  ;;  %12559 = vmatmul.mubr.msk.f32.gmra.mxu1 %vm372_vm1, %v4913_v51  ;;  %v14436_v27 = vadd.f32 %v2879_v25, %v2688_v22  ;;  %12532 = vmatprep.mubr.msk.f32.mxu0 %vm372_vm1, %v4703_v62  ;;  %v4705_v22 = vld [vmem:[#allocation3 + $0x2c] sm:$0xff]  ;;  %v4916_v62 = vld [vmem:[#allocation3 + $0x5a] sm:$0xff] }
 0x393   : > { %12561 = vmatprep.mubr.msk.f32.mxu1 %vm372_vm1, %v4914_v7  ;;  %v2690_v55 = vpop.f32.mrf.mxu0 }
 0x394   : > { %v2893_v60 = vpop.f32.mrf.mxu1  ;;  %v14440_v50 = vadd.f32 %v2881_v9, %v2690_v55 }
 0x395   : > { %v2694_v19 = vpop.f32.mrf.mxu0  ;;  %12533 = vmatmul.mubr.msk.f32.vlgmr.msra.gmra.mxu0 %vm372_vm1, %v4704_v58  ;;  %v4917_v58 = vld [vmem:[#allocation3 + $0x62] sm:$0xff] }
 0x396   : > { %v2897_v51 = vpop.f32.mrf.mxu1  ;;  %12562 = vmatmul.mubr.msk.f32.gmra.mxu1 %vm372_vm1, %v4915_v63  ;;  %v14449_v25 = vadd.f32 %v2885_v45, %v2694_v19  ;;  %12577 = vmatpush3.msra.mxu0 %v14296_v47  ;;  %v4707_v47 = vld [vmem:[#allocation3 + $0x3c] sm:$0xff]  ;;  %v4918_v45 = vld [vmem:[#allocation3 + $0x6a] sm:$0xff] }
 0x397   : > { %12535 = vmatprep.mubr.msk.f32.mxu0 %vm372_vm1, %v4705_v22  ;;  %12564 = vmatprep.mubr.msk.f32.mxu1 %vm372_vm1, %v4916_v62  ;;  %v2696_v9 = vpop.f32.mrf.mxu0 }
 0x398   : > { %v2899_v7 = vpop.f32.mrf.mxu1  ;;  %12622 = vmatprep.subr.mxu0 %v14445_v24  ;;  %v14455_v55 = vadd.f32 %v2887_v10, %v2696_v9  ;;  %v4708_v9 = vld [vmem:[#allocation3 + $0x44] sm:$0xff] }
 0x399   : > { %v2700_v17 = vpop.f32.mrf.mxu0  ;;  %12536 = vmatmul.mubr.msk.f32.gmra.mxu0 %vm372_vm1, %v4706_v13  ;;  %v4709_v13 = vld [vmem:[#allocation3 + $0x4c] sm:$0xff] }
 0x39a   : > { %17095 = vst [vmem:[#allocation25_spill] sm:$0xff] %v14455_v55  ;;  %v2903_v63 = vpop.f32.mrf.mxu1  ;;  %12565 = vmatmul.mubr.msk.f32.gmra.mxu1 %vm372_vm1, %v4917_v58  ;;  %v14459_v19 = vadd.f32 %v2891_v4, %v2700_v17  ;;  %12538 = vmatprep.mubr.msk.f32.mxu0 %vm372_vm1, %v4707_v47  ;;  %v4920_v58 = vld [vmem:[#allocation3 + $0x7a] sm:$0xff] }
 0x39b   : > { %12567 = vmatprep.mubr.msk.f32.mxu1 %vm372_vm1, %v4918_v45  ;;  %v2702_v22 = vpop.f32.mrf.mxu0  ;;  %v14473_v45 = vld [vmem:[#allocation3 + $0x54] sm:$0xff] }
 0x39c   : > { %v2905_v62 = vpop.f32.mrf.mxu1  ;;  %v14463_v10 = vadd.f32 %v2893_v60, %v2702_v22  ;;  %v4921_v22 = vld [vmem:[#allocation3 + $0x82] sm:$0xff] }
 0x39d   : > { %v2706_v36 = vpop.f32.mrf.mxu0  ;;  %12539 = vmatmul.mubr.msk.f32.gmra.mxu0 %vm372_vm1, %v4708_v9 }
 0x39e   : > { %17096 = vst [vmem:[#allocation30_spill] sm:$0xff] %v14463_v10  ;;  %v2909_v32 = vpop.f32.mrf.mxu1  ;;  %12568 = vmatmul.mubr.msk.f32.gmra.mxu1 %vm372_vm1, %v4919_v37  ;;  %v14467_v17 = vadd.f32 %v2897_v51, %v2706_v36  ;;  %12541 = vmatprep.mubr.msk.f32.mxu0 %vm372_vm1, %v4709_v13  ;;  %v14478_v36 = vld [vmem:[#allocation3 + $0x5c] sm:$0xff]  ;;  %v4922_v37 = vld [vmem:[#allocation3 + $0x8a] sm:$0xff] }
 0x39f   : > { %12570 = vmatprep.mubr.msk.f32.mxu1 %vm372_vm1, %v4920_v58  ;;  %v2708_v4 = vpop.f32.mrf.mxu0  ;;  %v14487_v58 = vld [vmem:[#allocation3 + $0x64] sm:$0xff] }
 0x3a0   : > { %v2911_v47 = vpop.f32.mrf.mxu1  ;;  %v14471_v60 = vadd.f32 %v2899_v7, %v2708_v4  ;;  %v4923_v4 = vld [vmem:[#allocation3 + $0x92] sm:$0xff] }
 0x3a1   : > { %v2712_v11 = vpop.f32.mrf.mxu0  ;;  %12542 = vmatmul.mubr.msk.f32.gmra.mxu0 %vm372_vm1, %v14473_v45 }
 0x3a2   : > { %17097 = vst [vmem:[#allocation34_spill] sm:$0xff] %v14471_v60  ;;  %v2915_v23 = vpop.f32.mrf.mxu1  ;;  %12571 = vmatmul.mubr.msk.f32.gmra.mxu1 %vm372_vm1, %v4921_v22  ;;  %v14480_v51 = vadd.f32 %v2903_v63, %v2712_v11  ;;  %12544 = vmatprep.mubr.msk.f32.mxu0 %vm372_vm1, %v14478_v36  ;;  %v14492_v11 = vld [vmem:[#allocation3 + $0x6c] sm:$0xff] }
 0x3a3   : > { %12573 = vmatprep.mubr.msk.f32.mxu1 %vm372_vm1, %v4922_v37  ;;  %v2714_v7 = vpop.f32.mrf.mxu0 }
 0x3a4   : > { %v2917_v9 = vpop.f32.mrf.mxu1  ;;  %v14485_v13 = vadd.f32 %v2905_v62, %v2714_v7  ;;  %v14504_v7 = vld [vmem:[#allocation3 + $0x74] sm:$0xff] }
 0x3a5   : > { %v2718_v26 = vpop.f32.mrf.mxu0  ;;  %12545 = vmatmul.mubr.msk.f32.gmra.mxu0 %vm372_vm1, %v14487_v58 }
 0x3a6   : > { %17098 = vst [vmem:[#allocation26_spill] sm:$0xff] %v14485_v13  ;;  %v3281_v52 = vpop.f32.mrf.mxu1  ;;  %12574 = vmatmul.mubr.msk.f32.gmra.mxu1 %vm372_vm1, %v4923_v4  ;;  %v14494_v63 = vadd.f32 %v2909_v32, %v2718_v26  ;;  %12547 = vmatprep.mubr.msk.f32.mxu0 %vm372_vm1, %v14492_v11  ;;  %v14510_v26 = vld [vmem:[#allocation3 + $0x7c] sm:$0xff] }
 0x3a7   : > { %12601 = vmatprep.mubr.msk.f32.mxu1 %vm372_vm1, %v14305_v43  ;;  %v2720_v62 = vpop.f32.mrf.mxu0 }
 0x3a8   : > { %v14500_v22 = vpop.f32.mrf.mxu1  ;;  %v14502_v37 = vadd.f32 %v2911_v47, %v2720_v62  ;;  %v14522_v62 = vld [vmem:[#allocation3 + $0x84] sm:$0xff] }
 0x3a9   : > { %v2724_v38 = vpop.f32.mrf.mxu0  ;;  %12548 = vmatmul.mubr.msk.f32.gmra.mxu0 %vm372_vm1, %v14504_v7 }
 0x3aa   : > { %17099 = vst [vmem:[#allocation24_spill] sm:$0xff] %v14502_v37  ;;  %v3287_v56 = vpop.f32.mrf.mxu1  ;;  %12602 = vmatmul.mubr.msk.f32.vlgmr.msra.gmra.mxu1 %vm372_vm1, %v14311_v16  ;;  %v14512_v32 = vadd.f32 %v2915_v23, %v2724_v38  ;;  %12550 = vmatprep.mubr.msk.f32.mxu0 %vm372_vm1, %v14510_v26 }
 0x3ab   : > { %12604 = vmatprep.mubr.msk.f32.mxu1 %vm372_vm1, %v14316_v29  ;;  %v2726_v43 = vpop.f32.mrf.mxu0 }
 0x3ac   : > { %v14518_v47 = vpop.f32.mrf.mxu1  ;;  %v14520_v4 = vadd.f32 %v2917_v9, %v2726_v43 }
 0x3ad   : > { %v3045_v61 = vpop.f32.mrf.mxu0  ;;  %12551 = vmatmul.mubr.msk.f32.gmra.mxu0 %vm372_vm1, %v14522_v62 }
 0x3ae   : > { %17100 = vst [vmem:[#allocation32_spill] sm:$0xff] %v14520_v4  ;;  %v3293_v37 = vpop.f32.mrf.mxu1  ;;  %12605 = vmatmul.mubr.msk.f32.gmra.mxu1 %vm372_vm1, %v14322_v30  ;;  %v3128_v38 = vadd.f32 %v3045_v61, %v14124_v6  ;;  %12578 = vmatprep.mubr.msk.f32.mxu0 %vm372_vm1, %v14374_v33  ;;  %v5331_v30 = vld [vmem:[#allocation3 + $0x7e] sm:$0xff] }
 0x3af   : > { %12607 = vmatprep.mubr.msk.f32.mxu1 %vm372_vm1, %v14327_v15  ;;  %v14533_v23 = vpop.f32.mrf.mxu0 }
 0x3b0   : > { %v14535_v16 = vpop.f32.mrf.mxu1  ;;  %v14537_v29 = vadd.f32 %v3281_v52, %v3128_v38 }
 0x3b1   : > { %v3051_v9 = vpop.f32.mrf.mxu0  ;;  %12579 = vmatmul.mubr.msk.f32.vlgmr.msra.gmra.mxu0 %vm372_vm1, %v14379_v41 }
 0x3b2   : > { %v3299_v43 = vpop.f32.mrf.mxu1  ;;  %12608 = vmatmul.mubr.msk.f32.gmra.mxu1 %vm372_vm1, %v14333_v35  ;;  %v3130_v61 = vadd.f32 %v3051_v9, %v14134_v12  ;;  %12623 = vmatpush3.msra.mxu0 %v14445_v24  ;;  %v5332_v12 = vld [vmem:[#allocation3 + $0x86] sm:$0xff]  ;;  %v5333_v24 = vld [vmem:[#allocation3 + $0x8e] sm:$0xff] }
 0x3b3   : > { %12581 = vmatprep.mubr.msk.f32.mxu0 %vm372_vm1, %v14386_v8  ;;  %12610 = vmatprep.mubr.msk.f32.mxu1 %vm372_vm1, %v14338_v28  ;;  %v14549_v52 = vpop.f32.mrf.mxu0 }
 0x3b4   : > { %v14551_v6 = vpop.f32.mrf.mxu1  ;;  %v14553_v15 = vadd.f32 %v3287_v56, %v3130_v61  ;;  %v2856_v56 = vadd.f32 %v14351_v42, %v14388_v18  ;;  %v5335_v42 = vld [vmem:[#allocation3 + $0x9e] sm:$0xff] }
 0x3b5   : > { %v3057_v33 = vpop.f32.mrf.mxu0  ;;  %12582 = vmatmul.mubr.msk.f32.gmra.mxu0 %vm372_vm1, %v14393_v46 }
 0x3b6   : > { %v3305_v41 = vpop.f32.mrf.mxu1  ;;  %12611 = vmatmul.mubr.msk.f32.gmra.mxu1 %vm372_vm1, %v5331_v30  ;;  %v3132_v35 = vadd.f32 %v3057_v33, %v14142_v59  ;;  %12584 = vmatprep.mubr.msk.f32.mxu0 %vm372_vm1, %v14400_v39  ;;  %v5334_v59 = vld [vmem:[#allocation3 + $0x96] sm:$0xff]  ;;  %v2858_v39 = vadd.f32 %v14364_v21, %v14398_v48  ;;  %v5336_v30 = vld [vmem:[#allocation3 + $0xa6] sm:$0xff] }
 0x3b7   : > { %12613 = vmatprep.mubr.msk.f32.mxu1 %vm372_vm1, %v5332_v12  ;;  %v14562_v28 = vpop.f32.mrf.mxu0  ;;  %v5124_v12 = vld [vmem:[#allocation3 + $0x70] sm:$0xff] }
 0x3b8   : > { %v14564_v8 = vpop.f32.mrf.mxu1  ;;  %v14568_v38 = vadd.f32 %v3293_v37, %v3132_v35 }
 0x3b9   : > { %v3063_v46 = vpop.f32.mrf.mxu0  ;;  %12585 = vmatmul.mubr.msk.f32.gmra.mxu0 %vm372_vm1, %v14407_v3  ;;  %v2862_v3 = vadd.f32 %v14370_v14, %v14402_v2 }
 0x3ba   : > { %v3311_v9 = vpop.f32.mrf.mxu1  ;;  %12614 = vmatmul.mubr.msk.f32.gmra.mxu1 %vm372_vm1, %v5333_v24  ;;  %v3134_v61 = vadd.f32 %v3063_v46, %v2856_v56  ;;  %12587 = vmatprep.mubr.msk.f32.mxu0 %vm372_vm1, %v14414_v54  ;;  %v5125_v54 = vld [vmem:[#allocation3 + $0x78] sm:$0xff]  ;;  %v5337_v24 = vld [vmem:[#allocation3 + $0xae] sm:$0xff] }
 0x3bb   : > { %12616 = vmatprep.mubr.msk.f32.mxu1 %vm372_vm1, %v5334_v59  ;;  %v3065_v18 = vpop.f32.mrf.mxu0 }
 0x3bc   : > { %v14578_v37 = vpop.f32.mrf.mxu1  ;;  %v14582_v33 = vadd.f32 %v3065_v18, %v2858_v39  ;;  %v14584_v35 = vadd.f32 %v3299_v43, %v3134_v61  ;;  %v5126_v43 = vld [vmem:[#allocation3 + $0x80] sm:$0xff] }
 0x3bd   : > { %v3069_v21 = vpop.f32.mrf.mxu0  ;;  %12588 = vmatmul.mubr.msk.f32.gmra.mxu0 %vm372_vm1, %v5124_v12  ;;  %v5128_v12 = vld [vmem:[#allocation3 + $0x90] sm:$0xff] }
 0x3be   : > { %v3317_v48 = vpop.f32.mrf.mxu1  ;;  %12617 = vmatmul.mubr.msk.f32.gmra.mxu1 %vm372_vm1, %v5335_v42  ;;  %v3136_v56 = vadd.f32 %v3069_v21, %v2862_v3  ;;  %12590 = vmatprep.mubr.msk.f32.mxu0 %vm372_vm1, %v5125_v54  ;;  %v5127_v42 = vld [vmem:[#allocation3 + $0x88] sm:$0xff] }
 0x3bf   : > { %12619 = vmatprep.mubr.msk.f32.mxu1 %vm372_vm1, %v5336_v30  ;;  %v3071_v46 = vpop.f32.mrf.mxu0 }
 0x3c0   : > { %v14590_v14 = vpop.f32.mrf.mxu1  ;;  %v14593_v2 = vadd.f32 %v3071_v46, %v14412_v40  ;;  %v14595_v59 = vadd.f32 %v3305_v41, %v3136_v56  ;;  %v5129_v56 = vld [vmem:[#allocation3 + $0x98] sm:$0xff] }
 0x3c1   : > { %v3075_v39 = vpop.f32.mrf.mxu0  ;;  %12591 = vmatmul.mubr.msk.f32.gmra.mxu0 %vm372_vm1, %v5126_v43 }
 0x3c2   : > { %v3323_v61 = vpop.f32.mrf.mxu1  ;;  %12620 = vmatmul.mubr.msk.f32.gmra.mxu1 %vm372_vm1, %v5337_v24  ;;  %v3138_v18 = vadd.f32 %v3075_v39, %v14419_v34  ;;  %12593 = vmatprep.mubr.msk.f32.mxu0 %vm372_vm1, %v5127_v42  ;;  %v5130_v34 = vld [vmem:[#allocation3 + $0xa0] sm:$0xff] }
 0x3c3   : > { %v3077_v30 = vpop.f32.mrf.mxu0 }
 0x3c4   : > { %v14601_v3 = vpop.f32.mrf.mxu1  ;;  %v14604_v40 = vadd.f32 %v3077_v30, %v14423_v0  ;;  %v14606_v41 = vadd.f32 %v3311_v9, %v3138_v18 }
 0x3c5   : > { %17101 = vst [vmem:[#allocation27_spill] sm:$0xff] %v14601_v3  ;;  %v3081_v21 = vpop.f32.mrf.mxu0  ;;  %12594 = vmatmul.mubr.msk.f32.gmra.mxu0 %vm372_vm1, %v5128_v12 }
 0x3c6   : > { %v3329_v54 = vpop.f32.mrf.mxu1  ;;  %v3140_v24 = vadd.f32 %v3081_v21, %v14427_v57  ;;  %12596 = vmatprep.mubr.msk.f32.mxu0 %vm372_vm1, %v5129_v56 }
 0x3c7   : > { %v3083_v46 = vpop.f32.mrf.mxu0 }
 0x3c8   : > { %v14611_v43 = vpop.f32.mrf.mxu1  ;;  %v14614_v39 = vadd.f32 %v3083_v46, %v14432_v31  ;;  %v14616_v0 = vadd.f32 %v3317_v48, %v3140_v24 }
 0x3c9   : > { %17102 = vst [vmem:[#allocation33_spill] sm:$0xff] %v14611_v43  ;;  %v3087_v9 = vpop.f32.mrf.mxu0  ;;  %12597 = vmatmul.mubr.msk.f32.gmra.mxu0 %vm372_vm1, %v5130_v34 }
 0x3ca   : > { %v3335_v42 = vpop.f32.mrf.mxu1  ;;  %v3142_v18 = vadd.f32 %v3087_v9, %v14436_v27  ;;  %12624 = vmatprep.mubr.msk.f32.mxu0 %vm372_vm1, %v14473_v45 }
 0x3cb   : > { %v14622_v57 = vpop.f32.mrf.mxu0 }
 0x3cc   : > { %v14624_v30 = vpop.f32.mrf.mxu1  ;;  %v14626_v12 = vadd.f32 %v3323_v61, %v3142_v18 }
 0x3cd   : > { %17103 = vst [vmem:[#allocation28_spill] sm:$0xff] %v14624_v30  ;;  %v3093_v21 = vpop.f32.mrf.mxu0  ;;  %12625 = vmatmul.mubr.msk.f32.vlgmr.msra.gmra.mxu0 %vm372_vm1, %v14478_v36 }
 0x3ce   : > { %17104 = vst [vmem:[#allocation29_spill] sm:$0xff] %v14626_v12  ;;  %v3341_v31 = vpop.f32.mrf.mxu1  ;;  %v3144_v48 = vadd.f32 %v3093_v21, %v14449_v25  ;;  %12627 = vmatprep.mubr.msk.f32.mxu0 %vm372_vm1, %v14487_v58 }
 0x3cf   : > { %v14633_v27 = vpop.f32.mrf.mxu0 }
 0x3d0   : > { %17105 = vst [vmem:[#allocation31_spill] sm:$0xff] %v14633_v27  ;;  %v14635_v56 = vpop.f32.mrf.mxu1  ;;  %v14637_v45 = vadd.f32 %v3329_v54, %v3144_v48  ;;  %v5539_v48 = vld [vmem:[#allocation3 + $0x94] sm:$0xff] }
 0x3d1   : > { %17106 = vst [vmem:[#allocation35_spill] sm:$0xff] %v14635_v56  ;;  %v3099_v24 = vpop.f32.mrf.mxu0  ;;  %12628 = vmatmul.mubr.msk.f32.gmra.mxu0 %vm372_vm1, %v14492_v11 }
 0x3d2   : > { %17107 = vst [vmem:[#allocation36_spill] sm:$0xff] %v14637_v45  ;;  %v3347_v34 = vpop.f32.mrf.mxu1  ;;  %v3146_v61 = vadd.f32 %v3099_v24, %v14459_v19  ;;  %12630 = vmatprep.mubr.msk.f32.mxu0 %vm372_vm1, %v14504_v7  ;;  %v5538_v7 = vld [vmem:[#allocation3 + $0x8c] sm:$0xff] }
 0x3d3   : > { %v14644_v25 = vpop.f32.mrf.mxu0 }
 0x3d4   : > { %17108 = vst [vmem:[#allocation37_spill] sm:$0xff] %v14644_v25  ;;  %v14646_v36 = vpop.f32.mrf.mxu1  ;;  %v14648_v58 = vadd.f32 %v3335_v42, %v3146_v61  ;;  %v5541_v61 = vld [vmem:[#allocation3 + $0xa4] sm:$0xff] }
 0x3d5   : > { %17109 = vst [vmem:[#allocation38_spill] sm:$0xff] %v14646_v36  ;;  %v3105_v46 = vpop.f32.mrf.mxu0  ;;  %12631 = vmatmul.mubr.msk.f32.gmra.mxu0 %vm372_vm1, %v14510_v26 }
 0x3d6   : > { %17110 = vst [vmem:[#allocation39_spill] sm:$0xff] %v14648_v58  ;;  %v3353_v9 = vpop.f32.mrf.mxu1  ;;  %v3148_v54 = vadd.f32 %v3105_v46, %v14467_v17  ;;  %12633 = vmatprep.mubr.msk.f32.mxu0 %vm372_vm1, %v14522_v62  ;;  %v5540_v17 = vld [vmem:[#allocation3 + $0x9c] sm:$0xff] }
 0x3d7   : > { %v14655_v19 = vpop.f32.mrf.mxu0 }
 0x3d8   : > { %17111 = vst [vmem:[#allocation40_spill] sm:$0xff] %v14655_v19  ;;  %v14657_v11 = vpop.f32.mrf.mxu1  ;;  %v14659_v18 = vadd.f32 %v3341_v31, %v3148_v54 }
 0x3d9   : > { %17112 = vst [vmem:[#allocation41_spill] sm:$0xff] %v14657_v11  ;;  %v3111_v21 = vpop.f32.mrf.mxu0  ;;  %12634 = vmatmul.mubr.msk.f32.gmra.mxu0 %vm372_vm1, %v5538_v7 }
 0x3da   : > { %17113 = vst [vmem:[#allocation42_spill] sm:$0xff] %v14659_v18  ;;  %v3359_v42 = vpop.f32.mrf.mxu1  ;;  %v3150_v24 = vadd.f32 %v3111_v21, %v14480_v51  ;;  %12636 = vmatprep.mubr.msk.f32.mxu0 %vm372_vm1, %v5539_v48  ;;  %v5542_v51 = vld [vmem:[#allocation3 + $0xac] sm:$0xff]  ;;  %v5543_v48 = vld [vmem:[#allocation3 + $0xb4] sm:$0xff] }
 0x3db   : > { %v14664_v26 = vpop.f32.mrf.mxu0 }
 0x3dc   : > { %17114 = vst [vmem:[#allocation43_spill] sm:$0xff] %v14664_v26  ;;  %v14666_v62 = vpop.f32.mrf.mxu1  ;;  %v14668_v46 = vadd.f32 %v3347_v34, %v3150_v24 }
 0x3dd   : > { %17115 = vst [vmem:[#allocation44_spill] sm:$0xff] %v14666_v62  ;;  %v3117_v11 = vpop.f32.mrf.mxu0  ;;  %12637 = vmatmul.mubr.msk.f32.gmra.mxu0 %vm372_vm1, %v5540_v17 }
 0x3de   : > { %17116 = vst [vmem:[#allocation45_spill] sm:$0xff] %v14668_v46  ;;  %v14670_v31 = vpop.f32.mrf.mxu1  ;;  %v3152_v54 = vadd.f32 %v3117_v11, %v14494_v63  ;;  %12639 = vmatprep.mubr.msk.f32.mxu0 %vm372_vm1, %v5541_v61  ;;  %v5544_v63 = vld [vmem:[#allocation3 + $0xbc] sm:$0xff] }
 0x3df   : > { %v14675_v7 = vpop.f32.mrf.mxu0 }
 0x3e0   : > { %17117 = vst [vmem:[#allocation46_spill] sm:$0xff] %v14675_v7  ;;  %v14677_v21 = vpop.f32.mrf.mxu1  ;;  %v14679_v36 = vadd.f32 %v3353_v9, %v3152_v54 }
 0x3e1   : > { %v3123_v62 = vpop.f32.mrf.mxu0  ;;  %12640 = vmatmul.mubr.msk.f32.gmra.mxu0 %vm372_vm1, %v5542_v51 }
 0x3e2   : > { %17118 = vst [vmem:[#allocation47_spill] sm:$0xff] %v14679_v36  ;;  %v14681_v34 = vpop.f32.mrf.mxu1  ;;  %v3154_v24 = vadd.f32 %v3123_v62, %v14512_v32  ;;  %12642 = vmatprep.mubr.msk.f32.mxu0 %vm372_vm1, %v5543_v48 }
 0x3e3   : > { %v14686_v11 = vpop.f32.mrf.mxu0 }
 0x3e4   : > { %17119 = vst [vmem:[#allocation48_spill] sm:$0xff] %v14686_v11  ;;  %v14688_v17 = vpop.f32.mrf.mxu1  ;;  %v14690_v61 = vadd.f32 %v3359_v42, %v3154_v24 }
 0x3e5   : > { %v3517_v4 = vpop.f32.mrf.mxu0  ;;  %12643 = vmatmul.mubr.msk.f32.gmra.mxu0 %vm372_vm1, %v5544_v63 }
 0x3e6   : > { %17120 = vst [vmem:[#allocation49_spill] sm:$0xff] %v14690_v61  ;;  %v14692_v46 = vpop.f32.mrf.mxu1 }
 0x3e7   : > { %v3519_v9 = vpop.f32.mrf.mxu0 }
 0x3e8   : > { %v14695_v54 = vpop.f32.mrf.mxu1 }
 0x3e9   : > { %v14697_v51 = vpop.f32.mrf.mxu0 }
 0x3ea   : > { %v14699_v32 = vpop.f32.mrf.mxu1 }
 0x3eb   : > { %v14701_v62 = vpop.f32.mrf.mxu0 }
 0x3ec   : > { %v14703_v48 = vpop.f32.mrf.mxu1 }
 0x3ed   : > { %v14705_v36 = vpop.f32.mrf.mxu0 }
 0x3ee   : > { %v14707_v42 = vpop.f32.mrf.mxu1 }
 0x3ef   : > { %v14709_v24 = vpop.f32.mrf.mxu0 }
 0x3f0   : > { %v14711_v61 = vpop.f32.mrf.mxu1 }
 0x3f1   : > { %v14713_v63 = vpop.f32.mrf.mxu0 }
 0x3f2   : > { %v14715_v11 = vpop.f32.mrf.mxu1 }
 0x3f3   : > { %v14717_v7 = vpop.f32.mrf.mxu0 }
 0x3f4   : > { %v14719_v26 = vpop.f32.mrf.mxu1 }
 0x3f5   : > { %17121 = vst [vmem:[#allocation50_spill] sm:$0xff] %v14719_v26  ;;  %v14721_v13 = vpop.f32.mrf.mxu0 }
 0x3f6   : > { %v14723_v18 = vpop.f32.mrf.mxu1 }
 0x3f7   : > { %17122 = vst [vmem:[#allocation51_spill] sm:$0xff] %v14723_v18  ;;  %v14725_v56 = vpop.f32.mrf.mxu0 }
 0x3f8   : > { %v14727_v58 = vpop.f32.mrf.mxu1 }
 0x3f9   : > { %17123 = vst [vmem:[#allocation52_spill] sm:$0xff] %v14727_v58  ;;  %v14729_v30 = vpop.f32.mrf.mxu0 }
 0x3fa   : > { %v14731_v19 = vpop.f32.mrf.mxu1 }
 0x3fb   : > { %17124 = vst [vmem:[#allocation53_spill] sm:$0xff] %v14731_v19  ;;  %v14733_v60 = vpop.f32.mrf.mxu0 }
 0x3fc   : > { %v14735_v43 = vpop.f32.mrf.mxu1 }
 0x3fd   : > { %17125 = vst [vmem:[#allocation54_spill] sm:$0xff] %v14735_v43  ;;  %v14737_v45 = vpop.f32.mrf.mxu0  ;;  %v11560_v43 = vld [vmem:[%s16989_s4 + $0x78] sm:$0xff] }
 0x3fe   : > { %v14739_v25 = vpop.f32.mrf.mxu1  ;;  %12645 = vmatprep.subr.mxu1 %v11560_v43 }
 0x3ff   : > { %17126 = vst [vmem:[#allocation55_spill] sm:$0xff] %v14739_v25  ;;  %v14741_v10 = vpop.f32.mrf.mxu0  ;;  %12646 = vmatpush3.msra.mxu1 %v11560_v43 }
 0x400   : > { %17127 = vst [vmem:[#allocation56_spill] sm:$0xff] %v14741_v10  ;;  %v14743_v12 = vpop.f32.mrf.mxu1 }
 0x401   : > { %17128 = vst [vmem:[#allocation57_spill] sm:$0xff] %v14743_v12  ;;  %v14745_v18 = vpop.f32.mrf.mxu0 }
 0x402   : > { %17129 = vst [vmem:[#allocation58_spill] sm:$0xff] %v14745_v18  ;;  %v14747_v26 = vpop.f32.mrf.mxu1 }
 0x403   : > { %17130 = vst [vmem:[#allocation59_spill] sm:$0xff] %v14747_v26  ;;  %v14749_v58 = vpop.f32.mrf.mxu0 }
 0x404   : > { %17131 = vst [vmem:[#allocation60_spill] sm:$0xff] %v14749_v58  ;;  %v14751_v3 = vpop.f32.mrf.mxu1 }
 0x405   : > { %17132 = vst [vmem:[#allocation61_spill] sm:$0xff] %v14751_v3  ;;  %v14756_v19 = vpop.f32.mrf.mxu0 }
 0x406   : > { %17133 = vst [vmem:[#allocation62_spill] sm:$0xff] %v14756_v19  ;;  %v14758_v27 = vpop.f32.mrf.mxu1 }
 0x407   : > { %17134 = vst [vmem:[#allocation63_spill] sm:$0xff] %v14758_v27  ;;  %v14760_v25 = vpop.f32.mrf.mxu0 }
 0x408   : > { %17135 = vst [vmem:[#allocation64_spill] sm:$0xff] %v14760_v25  ;;  %v14762_v12 = vpop.f32.mrf.mxu1 }
 0x409   : > { %17136 = vst [vmem:[#allocation65_spill] sm:$0xff] %v14762_v12  ;;  %v14764_v18 = vpop.f32.mrf.mxu0  ;;  %v2840_v12 = vadd.f32 %v14118_v49, %v14126_v1  ;;  %v3600_v49 = vadd.f32 %v3517_v4, %v14537_v29  ;;  %v17151_v29 = vld [vmem:[#allocation8_spill] sm:$0xff] }
 0x40a   : > { %v14766_v26 = vpop.f32.mrf.mxu1 }
 0x40b   : > { %17137 = vst [vmem:[#allocation66_spill] sm:$0xff] %v14766_v26  ;;  %v14768_v58 = vpop.f32.mrf.mxu0 }
 0x40c   : > { %17138 = vst [vmem:[#allocation67_spill] sm:$0xff] %v14768_v58  ;;  %v14770_v3 = vpop.f32.mrf.mxu1 }
 0x40d   : > { %17139 = vst [vmem:[#allocation68_spill] sm:$0xff] %v14770_v3  ;;  %v14772_v10 = vpop.f32.mrf.mxu0  ;;  %v3129_v3 = vadd.f32 %v14533_v23, %v2840_v12  ;;  %v2852_v23 = vadd.f32 %v14344_v20, %v14384_v5  ;;  %v3836_v5 = vadd.f32 %v14670_v31, %v3600_v49 }
 0x40e   : > { %17140 = vst [vmem:[#allocation69_spill] sm:$0xff] %v14772_v10  ;;  %v14774_v55 = vpop.f32.mrf.mxu1 }
 0x40f   : > { %17141 = vst [vmem:[#allocation70_spill] sm:$0xff] %v14774_v55  ;;  %v14776_v19 = vpop.f32.mrf.mxu0  ;;  %v3365_v1 = vadd.f32 %v14500_v22, %v3129_v3  ;;  %v3602_v22 = vadd.f32 %v14697_v51, %v14553_v15 }
 0x410   : > { %17142 = vst [vmem:[#allocation71_spill] sm:$0xff] %v14776_v19  ;;  %v14778_v27 = vpop.f32.mrf.mxu1 }
 0x411   : > { %17143 = vst [vmem:[#allocation72_spill] sm:$0xff] %v14778_v27  ;;  %v14780_v43 = vpop.f32.mrf.mxu0  ;;  %v2846_v27 = vadd.f32 %v14132_v44, %v14136_v53  ;;  %v4100_v44 = vld [vmem:[%s16992_s7] sm:$0x3]  ;;  %v3133_v53 = vadd.f32 %v14562_v28, %v2852_v23  ;;  %v3838_v51 = vadd.f32 %v14681_v34, %v3602_v22 }
 0x412   : > { %17144 = vst [vmem:[#allocation73_spill] sm:$0xff] %v14780_v43  ;;  %v14782_v25 = vpop.f32.mrf.mxu1  ;;  %v14823_v3 = vrot.slane %v4100_v44, %v17151_v29 }
 0x413   : > { %17145 = vst [vmem:[#allocation74_spill] sm:$0xff] %v14782_v25  ;;  %v14786_v26 = vpop.f32.mrf.mxu0  ;;  %v3131_v25 = vadd.f32 %v14549_v52, %v2846_v27  ;;  %v3369_v23 = vadd.f32 %v14535_v16, %v3133_v53 }
 0x414   : > { %v14788_v58 = vpop.f32.mrf.mxu1 }
 0x415   : > { %17146 = vst [vmem:[#allocation75_spill] sm:$0xff] %v14788_v58  ;;  %v14791_v10 = vpop.f32.mrf.mxu0  ;;  %v3367_v20 = vadd.f32 %v14518_v47, %v3131_v25  ;;  %v3604_v25 = vadd.f32 %v14705_v36, %v14568_v38  ;;  %v3605_v49 = vadd.f32 %v14709_v24, %v3369_v23  ;;  %v3371_v36 = vadd.f32 %v14551_v6, %v14582_v33 }
 0x416   : > { %v14793_v55 = vpop.f32.mrf.mxu1 }
 0x417   : > { %17147 = vst [vmem:[#allocation76_spill] sm:$0xff] %v14793_v55  ;;  %v14797_v19 = vpop.f32.mrf.mxu0  ;;  %v3601_v55 = vadd.f32 %v3519_v9, %v3365_v1  ;;  %v3603_v9 = vadd.f32 %v14701_v62, %v3367_v20 }
 0x418   : > { %v14799_v43 = vpop.f32.mrf.mxu1 }
 0x419   : > { %17148 = vst [vmem:[#allocation77_spill] sm:$0xff] %v14799_v43  ;;  %v14806_v12 = vpop.f32.mrf.mxu0  ;;  %v3837_v1 = vadd.f32 %v14677_v21, %v3601_v55  ;;  %v3839_v21 = vadd.f32 %v14688_v17, %v3603_v9  ;;  %v11559_v17 = vld [vmem:[%s16989_s4 + $0x70] sm:$0xff]  ;;  %v3607_v9 = vadd.f32 %v14717_v7, %v3371_v36 }
 0x41a   : > { %v14808_v58 = vpop.f32.mrf.mxu1  ;;  %12668 = vmatprep.subr.mxu0 %v11559_v17 }
 0x41b   : > { %17149 = vst [vmem:[#allocation78_spill] sm:$0xff] %v14808_v58  ;;  %v14814_v43 = vpop.f32.mrf.mxu0  ;;  %v17152_v58 = vld [vmem:[#allocation9_spill] sm:$0xff]  ;;  %12669 = vmatpush3.msra.mxu0 %v11559_v17 }
 0x41c   : > { %v14816_v52 = vpop.f32.mrf.mxu1  ;;  %v14831_v15 = vrot.slane %v4100_v44, %v17152_v58  ;;  %v3606_v44 = vadd.f32 %v14713_v63, %v14584_v35  ;;  %v3841_v63 = vadd.f32 %v14695_v54, %v3605_v49 }
 0x41d   : > { %17150 = vst [vmem:[#allocation79_spill] sm:$0xff] %v14816_v52  ;;  %v3989_v4 = vpop.f32.mrf.mxu0 }
 0x41e   : > { %v14825_v27 = vpop.f32.mrf.mxu1  ;;  %v4072_v28 = vadd.f32 %v3989_v4, %v3836_v5  ;;  %v3842_v54 = vadd.f32 %v14699_v32, %v3606_v44  ;;  %v3843_v44 = vadd.f32 %v14703_v48, %v3607_v9  ;;  %v3143_v48 = vadd.f32 %v14622_v57, %v14440_v50 }
 0x41f   : > { %v3991_v52 = vpop.f32.mrf.mxu0 }
 0x420   : > { %v14833_v47 = vpop.f32.mrf.mxu1  ;;  %v4073_v31 = vadd.f32 %v3991_v52, %v3837_v1  ;;  %v4112_v62 = vadd.f32 %v14823_v3, %v4072_v28  ;;  %v3840_v52 = vadd.f32 %v14692_v46, %v3604_v25  ;;  %v3608_v46 = vadd.f32 %v14721_v13, %v14595_v59 }
 0x421   : > { %v3995_v20 = vpop.f32.mrf.mxu0  ;;  %v3373_v1 = vadd.f32 %v14564_v8, %v14593_v2  ;;  %v3375_v13 = vadd.f32 %v14578_v37, %v14604_v40 }
 0x422   : > { %v14840_v55 = vpop.f32.mrf.mxu1  ;;  %v4074_v16 = vadd.f32 %v3995_v20, %v3838_v51  ;;  %v4113_v53 = vadd.f32 %v14831_v15, %v4073_v31  ;;  %v4140_v22 = vmax.f32 %v4112_v62, 0.0  ;;  %v14871_v20 = vld [vmem:[%s16989_s4 + $0x80] sm:$0xff]  ;;  %v3844_v17 = vadd.f32 %v14707_v42, %v3608_v46 }
 0x423   : > { %v3997_v5 = vpop.f32.mrf.mxu0  ;;  %17153 = vst [vmem:[#allocation80_spill] sm:$0xff] %v14871_v20  ;;  %12691 = vmatprep.subr.mxu1 %v14871_v20  ;;  %v3609_v32 = vadd.f32 %v14725_v56, %v3373_v1  ;;  %v3612_v42 = vadd.f32 %v14737_v45, %v14616_v0 }
 0x424   : > { %v14846_v38 = vpop.f32.mrf.mxu1  ;;  %v4114_v34 = vadd.f32 %v14823_v3, %v4074_v16  ;;  %v4075_v24 = vadd.f32 %v3997_v5, %v3839_v21  ;;  %v4141_v23 = vmax.f32 %v4113_v53, 0.0  ;;  %v4172_v8 = vrot.slane %v4140_v22, 3 }
 0x425   : > { %v4001_v4 = vpop.f32.mrf.mxu0  ;;  %v3610_v53 = vadd.f32 %v14729_v30, %v14606_v41  ;;  %v3611_v41 = vadd.f32 %v14733_v60, %v3375_v13  ;;  %v3845_v60 = vadd.f32 %v14711_v61, %v3609_v32  ;;  %v17157_v61 = vld [vmem:[#allocation50_spill] sm:$0xff] }
 0x426   : > { %v14855_v35 = vpop.f32.mrf.mxu1  ;;  %v4142_v28 = vmax.f32 %v4114_v34, 0.0  ;;  %v4115_v6 = vadd.f32 %v14831_v15, %v4075_v24  ;;  %v4076_v33 = vadd.f32 %v4001_v4, %v3840_v52  ;;  %v4175_v5 = vrot.slane %v4141_v23, 3 }
 0x427   : > { %v4003_v25 = vpop.f32.mrf.mxu0  ;;  %v3846_v46 = vadd.f32 %v14715_v11, %v3610_v53  ;;  %v3847_v13 = vadd.f32 %v17157_v61, %v3611_v41 }
 0x428   : > { %v14864_v31 = vpop.f32.mrf.mxu1  ;;  %v4173_v51 = vrot.slane %v4142_v28, 3  ;;  %v4143_v49 = vmax.f32 %v4115_v6, 0.0  ;;  %v4116_v7 = vadd.f32 %v14823_v3, %v4076_v33  ;;  %v4077_v62 = vadd.f32 %v4003_v25, %v3841_v63  ;;  %v17154_v25 = vld [vmem:[#allocation25_spill] sm:$0xff] }
 0x429   : > { %v4007_v2 = vpop.f32.mrf.mxu0  ;;  %v3377_v63 = vadd.f32 %v14590_v14, %v14614_v39 }
 0x42a   : > { %v14875_v59 = vpop.f32.mrf.mxu1  ;;  %v4176_v16 = vrot.slane %v4143_v49, 3  ;;  %v4078_v21 = vadd.f32 %v4007_v2, %v3842_v54  ;;  %v4117_v36 = vadd.f32 %v14831_v15, %v4077_v62  ;;  %v4174_v37 = vsel %vm703_vm2, %v4172_v8, %v4173_v51  ;;  %v17155_v54 = vld [vmem:[#allocation31_spill] sm:$0xff]  ;;  %v17158_v8 = vld [vmem:[#allocation56_spill] sm:$0xff] }
 0x42b   : > { %v4009_v40 = vpop.f32.mrf.mxu0  ;;  %v4144_v24 = vmax.f32 %v4116_v7, 0.0  ;;  %4178 = vrot.lane.b32.xlu0 %v4174_v37, %s17036_s18  ;;  %v3145_v51 = vadd.f32 %v17155_v54, %v17154_v25  ;;  %v17156_v49 = vld [vmem:[#allocation27_spill] sm:$0xff]  ;;  %v3613_v2 = vadd.f32 %v17158_v8, %v3377_v63  ;;  %v17167_v54 = vld [vmem:[#allocation52_spill] sm:$0xff]  ;;  %v17168_v8 = vld [vmem:[#allocation33_spill] sm:$0xff] }
 0x42c   : > { %v14884_v34 = vpop.f32.mrf.mxu1  ;;  %v4118_v52 = vadd.f32 %v14823_v3, %v4078_v21  ;;  %v4079_v56 = vadd.f32 %v4009_v40, %v3843_v44  ;;  %v4177_v30 = vsel %vm703_vm2, %v4175_v5, %v4176_v16  ;;  %v4145_v50 = vmax.f32 %v4117_v36, 0.0  ;;  %v17159_v37 = vld [vmem:[#allocation51_spill] sm:$0xff] }
 0x42d   : > { %v4013_v22 = vpop.f32.mrf.mxu0  ;;  %4180 = vrot.lane.b32.xlu1 %v4177_v30, %s17036_s18  ;;  %v4192_v1 = vrot.slane %v4144_v24, 1  ;;  %v3379_v7 = vadd.f32 %v17156_v49, %v3143_v48  ;;  %v3848_v40 = vadd.f32 %v17159_v37, %v3612_v42  ;;  %v17160_v24 = vld [vmem:[#allocation29_spill] sm:$0xff]  ;;  %v17165_v42 = vld [vmem:[#allocation36_spill] sm:$0xff]  ;;  %v3849_v49 = vadd.f32 %v17167_v54, %v3613_v2 }
 0x42e   : > { %v14893_v4 = vpop.f32.mrf.mxu1  ;;  %v4146_v9 = vmax.f32 %v4118_v52, 0.0  ;;  %v4119_v28 = vadd.f32 %v14831_v15, %v4079_v56  ;;  %v4080_v6 = vadd.f32 %v4013_v22, %v3844_v17  ;;  %v4195_v21 = vrot.slane %v4145_v50, 1  ;;  %v17161_v52 = vld [vmem:[#allocation58_spill] sm:$0xff]  ;;  %v17162_v17 = vld [vmem:[#allocation60_spill] sm:$0xff] }
 0x42f   : > { %v4015_v57 = vpop.f32.mrf.mxu0  ;;  %v3614_v56 = vadd.f32 %v17161_v52, %v17160_v24  ;;  %v3615_v48 = vadd.f32 %v17162_v17, %v3379_v7  ;;  %v17171_v2 = vld [vmem:[#allocation40_spill] sm:$0xff]  ;;  %v17172_v17 = vld [vmem:[#allocation54_spill] sm:$0xff] }
 0x430   : > { %v14902_v33 = vpop.f32.mrf.mxu1  ;;  %v4193_v23 = vrot.slane %v4146_v9, 1  ;;  %v4147_v14 = vmax.f32 %v4119_v28, 0.0  ;;  %v4120_v39 = vadd.f32 %v14823_v3, %v4080_v6  ;;  %v4081_v62 = vadd.f32 %v4015_v57, %v3845_v60  ;;  %v17163_v57 = vld [vmem:[#allocation30_spill] sm:$0xff] }
 0x431   : > { %v4019_v0 = vpop.f32.mrf.mxu0  ;;  %v4209_v22 = vrot.slane %v4146_v9, 7 }
 0x432   : > { %v14909_v45 = vpop.f32.mrf.mxu1  ;;  %v4148_v32 = vmax.f32 %v4120_v39, 0.0  ;;  %v4082_v11 = vadd.f32 %v4019_v0, %v3846_v46  ;;  %v4194_v16 = vsel %vm719_vm4, %v4192_v1, %v4193_v23  ;;  %v4121_v44 = vadd.f32 %v14831_v15, %v4081_v62  ;;  %v17164_v46 = vld [vmem:[#allocation37_spill] sm:$0xff]  ;;  %v17166_v23 = vld [vmem:[#allocation62_spill] sm:$0xff] }
 0x433   : > { %4198 = vrot.lane.b32.xlu0 %v4194_v16, %s17036_s18  ;;  %v4021_v53 = vpop.f32.mrf.mxu0  ;;  %v4196_v36 = vrot.slane %v4147_v14, 1  ;;  %v3147_v1 = vadd.f32 %v17164_v46, %v17163_v57  ;;  %v3616_v39 = vadd.f32 %v17166_v23, %v17165_v42  ;;  %v17175_v46 = vld [vmem:[#allocation55_spill] sm:$0xff] }
 0x434   : > { %v14916_v5 = vpop.f32.mrf.mxu1  ;;  %v4210_v41 = vrot.slane %v4148_v32, 7  ;;  %v4083_v30 = vadd.f32 %v4021_v53, %v3847_v13  ;;  %v4149_v63 = vmax.f32 %v4121_v44, 0.0  ;;  %v4122_v28 = vadd.f32 %v14823_v3, %v4082_v11  ;;  %v17170_v53 = vld [vmem:[#allocation34_spill] sm:$0xff]  ;;  %v17177_v23 = vld [vmem:[#allocation39_spill] sm:$0xff] }
 0x435   : > { %v4197_v6 = vsel %vm719_vm4, %v4195_v21, %v4196_v36  ;;  %v4025_v50 = vpop.f32.mrf.mxu0  ;;  %v4212_v13 = vrot.slane %v4147_v14, 7  ;;  %v3381_v32 = vadd.f32 %v17168_v8, %v3145_v51  ;;  %v17169_v21 = vld [vmem:[#allocation53_spill] sm:$0xff]  ;;  %v3149_v36 = vadd.f32 %v17171_v2, %v17170_v53  ;;  %v17179_v8 = vld [vmem:[#allocation35_spill] sm:$0xff] }
 0x436   : > { %v14924_v60 = vpop.f32.mrf.mxu1  ;;  %4200 = vrot.lane.b32.xlu1 %v4197_v6, %s17036_s18  ;;  %v4084_v25 = vadd.f32 %v4025_v50, %v3848_v40  ;;  %v4213_v9 = vrot.slane %v4149_v63, 7  ;;  %v4123_v7 = vadd.f32 %v14831_v15, %v4083_v30  ;;  %v4211_v62 = vsel %vm732_vm5, %v4209_v22, %v4210_v41  ;;  %v17173_v41 = vld [vmem:[#allocation64_spill] sm:$0xff]  ;;  %v17182_v53 = vld [vmem:[#allocation69_spill] sm:$0xff] }
 0x437   : > { %v4027_v0 = vpop.f32.mrf.mxu0  ;;  %4215 = vrot.lane.b32.xlu0 %v4211_v62, %s17036_s18  ;;  %v3850_v44 = vadd.f32 %v17169_v21, %v3614_v56  ;;  %v4150_v37 = vmax.f32 %v4122_v28, 0.0  ;;  %v3851_v14 = vadd.f32 %v17172_v17, %v3615_v48  ;;  %v3617_v51 = vadd.f32 %v17173_v41, %v3381_v32  ;;  %v17174_v56 = vld [vmem:[#allocation28_spill] sm:$0xff]  ;;  %v14956_v48 = vld [vmem:[%s16989_s4 + $0x88] sm:$0xff]  ;;  %v17180_v21 = vld [vmem:[#allocation57_spill] sm:$0xff] }
 0x438   : > { %v14934_v61 = vpop.f32.mrf.mxu1  ;;  %v4124_v11 = vadd.f32 %v14823_v3, %v4084_v25  ;;  %v4085_v16 = vadd.f32 %v4027_v0, %v3849_v49  ;;  %v4214_v40 = vsel %vm732_vm5, %v4212_v13, %v4213_v9  ;;  %v3383_v6 = vadd.f32 %v17174_v56, %v3147_v1  ;;  %17176 = vst [vmem:[#allocation25_spill] sm:$0xff] %v14956_v48  ;;  %v17178_v1 = vld [vmem:[#allocation67_spill] sm:$0xff]  ;;  %v17183_v41 = vld [vmem:[#allocation26_spill] sm:$0xff] }
 0x439   : > { %v4031_v24 = vpop.f32.mrf.mxu0  ;;  %v4151_v50 = vmax.f32 %v4123_v7, 0.0  ;;  %v3852_v42 = vadd.f32 %v17175_v46, %v3616_v39  ;;  %v3618_v25 = vadd.f32 %v14764_v18, %v17177_v23  ;;  %12714 = vmatprep.subr.mxu0 %v14956_v48  ;;  %v4228_v62 = vrot.slane %v4150_v37, 5  ;;  %v17181_v18 = vld [vmem:[#allocation42_spill] sm:$0xff] }
 0x43a   : > { %v14943_v52 = vpop.f32.mrf.mxu1  ;;  %v4152_v30 = vmax.f32 %v4124_v11, 0.0  ;;  %v4125_v22 = vadd.f32 %v14831_v15, %v4085_v16  ;;  %4217 = vrot.lane.b32.xlu1 %v4214_v40, %s17036_s18  ;;  %v4086_v63 = vadd.f32 %v4031_v24, %v3850_v44  ;;  %v3619_v7 = vadd.f32 %v17178_v1, %v3383_v6  ;;  %v17186_v6 = vld [vmem:[#allocation24_spill] sm:$0xff]  ;;  %v17189_v1 = vld [vmem:[#allocation71_spill] sm:$0xff] }
 0x43b   : > { %v4033_v57 = vpop.f32.mrf.mxu0  ;;  %v3385_v32 = vadd.f32 %v17179_v8, %v3149_v36  ;;  %v3853_v44 = vadd.f32 %v17180_v21, %v3617_v51  ;;  %v3620_v2 = vadd.f32 %v17182_v53, %v17181_v18  ;;  %v4231_v40 = vrot.slane %v4151_v50, 5  ;;  %v17185_v51 = vld [vmem:[#allocation59_spill] sm:$0xff]  ;;  %v17191_v21 = vld [vmem:[#allocation73_spill] sm:$0xff] }
 0x43c   : > { %v14950_v28 = vpop.f32.mrf.mxu1  ;;  %v4229_v54 = vrot.slane %v4152_v30, 5  ;;  %v4153_v49 = vmax.f32 %v4125_v22, 0.0  ;;  %v4087_v9 = vadd.f32 %v4033_v57, %v3851_v14  ;;  %v4126_v0 = vadd.f32 %v14823_v3, %v4086_v63  ;;  %v17184_v30 = vld [vmem:[#allocation43_spill] sm:$0xff]  ;;  %v17187_v57 = vld [vmem:[#allocation46_spill] sm:$0xff] }
 0x43d   : > { %v4037_v13 = vpop.f32.mrf.mxu0  ;;  %v3151_v22 = vadd.f32 %v17184_v30, %v17183_v41  ;;  %v3854_v56 = vadd.f32 %v17185_v51, %v3618_v25  ;;  %v3153_v50 = vadd.f32 %v17187_v57, %v17186_v6  ;;  %v17190_v25 = vld [vmem:[#allocation45_spill] sm:$0xff]  ;;  %v17193_v41 = vld [vmem:[#allocation32_spill] sm:$0xff] }
 0x43e   : > { %v14963_v39 = vpop.f32.mrf.mxu1  ;;  %v4232_v11 = vrot.slane %v4153_v49, 5  ;;  %v4088_v16 = vadd.f32 %v4037_v13, %v3852_v42  ;;  %v4127_v24 = vadd.f32 %v14831_v15, %v4087_v9  ;;  %v4230_v17 = vsel %vm747_vm6, %v4228_v62, %v4229_v54  ;;  %v17188_v49 = vld [vmem:[#allocation61_spill] sm:$0xff]  ;;  %v17194_v30 = vld [vmem:[#allocation48_spill] sm:$0xff] }
 0x43f   : > { %v4039_v37 = vpop.f32.mrf.mxu0  ;;  %4234 = vrot.lane.b32.xlu0 %v4230_v17, %s17036_s18  ;;  %v4154_v46 = vmax.f32 %v4126_v0, 0.0  ;;  %v3855_v9 = vadd.f32 %v17188_v49, %v3619_v7  ;;  %v3621_v62 = vadd.f32 %v17189_v1, %v3385_v32  ;;  %v17197_v1 = vld [vmem:[#allocation65_spill] sm:$0xff] }
 0x440   : > { %v14971_v14 = vpop.f32.mrf.mxu1  ;;  %v4128_v36 = vadd.f32 %v14823_v3, %v4088_v16  ;;  %v4089_v63 = vadd.f32 %v4039_v37, %v3853_v44  ;;  %v4233_v42 = vsel %vm747_vm6, %v4231_v40, %v4232_v11  ;;  %v3622_v44 = vadd.f32 %v17191_v21, %v17190_v25  ;;  %v17192_v11 = vld [vmem:[#allocation63_spill] sm:$0xff] }
 0x441   : > { %v4043_v23 = vpop.f32.mrf.mxu0  ;;  %4236 = vrot.lane.b32.xlu1 %v4233_v42, %s17036_s18  ;;  %v4155_v18 = vmax.f32 %v4127_v24, 0.0  ;;  %v3856_v40 = vadd.f32 %v17192_v11, %v3620_v2  ;;  %v4247_v57 = vrot.slane %v4154_v46, 3 }
 0x442   : > { %v14981_v54 = vpop.f32.mrf.mxu1  ;;  %v4156_v13 = vmax.f32 %v4128_v36, 0.0  ;;  %v4129_v8 = vadd.f32 %v14831_v15, %v4089_v63  ;;  %v4090_v16 = vadd.f32 %v4043_v23, %v3854_v56  ;;  %v3155_v36 = vadd.f32 %v17194_v30, %v17193_v41  ;;  %v17195_v63 = vld [vmem:[#allocation38_spill] sm:$0xff]  ;;  %v17196_v56 = vld [vmem:[#allocation41_spill] sm:$0xff] }
 0x443   : > { %v4045_v0 = vpop.f32.mrf.mxu0  ;;  %v3387_v51 = vadd.f32 %v17195_v63, %v3151_v22  ;;  %v3389_v6 = vadd.f32 %v17196_v56, %v3153_v50  ;;  %v4250_v25 = vrot.slane %v4155_v18, 3  ;;  %v17200_v30 = vld [vmem:[#allocation49_spill] sm:$0xff] }
 0x444   : > { %v14989_v53 = vpop.f32.mrf.mxu1  ;;  %v4248_v17 = vrot.slane %v4156_v13, 3  ;;  %v4157_v37 = vmax.f32 %v4129_v8, 0.0  ;;  %v4130_v7 = vadd.f32 %v14823_v3, %v4090_v16  ;;  %v4091_v32 = vadd.f32 %v4045_v0, %v3855_v9  ;;  %v17198_v9 = vld [vmem:[#allocation47_spill] sm:$0xff] }
 0x445   : > { %v4049_v42 = vpop.f32.mrf.mxu0  ;;  %v3857_v13 = vadd.f32 %v17197_v1, %v3621_v62  ;;  %v3623_v8 = vadd.f32 %v14786_v26, %v3387_v51  ;;  %v3624_v16 = vadd.f32 %v14791_v10, %v17198_v9  ;;  %v3625_v62 = vadd.f32 %v14797_v19, %v3389_v6  ;;  %v17201_v51 = vld [vmem:[#allocation44_spill] sm:$0xff] }
 0x446   : > { %v14997_v24 = vpop.f32.mrf.mxu1  ;;  %v4251_v23 = vrot.slane %v4157_v37, 3  ;;  %v4131_v49 = vadd.f32 %v14831_v15, %v4091_v32  ;;  %v4092_v2 = vadd.f32 %v4049_v42, %v3856_v40  ;;  %v4249_v22 = vsel %vm703_vm2, %v4247_v57, %v4248_v17  ;;  %v17199_v40 = vld [vmem:[#allocation66_spill] sm:$0xff] }
 0x447   : > { %v4051_v21 = vpop.f32.mrf.mxu0  ;;  %v4158_v46 = vmax.f32 %v4130_v7, 0.0  ;;  %4253 = vrot.lane.b32.xlu0 %v4249_v22, %s17036_s18  ;;  %v3858_v37 = vadd.f32 %v17199_v40, %v3622_v44  ;;  %v3626_v63 = vadd.f32 %v14806_v12, %v17200_v30  ;;  %v3391_v56 = vadd.f32 %v17201_v51, %v3155_v36  ;;  %v17202_v44 = vld [vmem:[#allocation68_spill] sm:$0xff]  ;;  %v17203_v42 = vld [vmem:[#allocation70_spill] sm:$0xff] }
 0x448   : > { %v15005_v50 = vpop.f32.mrf.mxu1  ;;  %v4132_v0 = vadd.f32 %v14823_v3, %v4092_v2  ;;  %v4093_v11 = vadd.f32 %v4051_v21, %v3857_v13  ;;  %v4159_v26 = vmax.f32 %v4131_v49, 0.0  ;;  %v4252_v32 = vsel %vm703_vm2, %v4250_v25, %v4251_v23  ;;  %v17204_v36 = vld [vmem:[#allocation72_spill] sm:$0xff] }
 0x449   : > { %v4055_v10 = vpop.f32.mrf.mxu0  ;;  %4255 = vrot.lane.b32.xlu1 %v4252_v32, %s17036_s18  ;;  %v3859_v57 = vadd.f32 %v17202_v44, %v3623_v8  ;;  %v3860_v23 = vadd.f32 %v17203_v42, %v3624_v16  ;;  %v4266_v49 = vrot.slane %v4158_v46, 1  ;;  %v3627_v9 = vadd.f32 %v14814_v43, %v3391_v56  ;;  %v17205_v43 = vld [vmem:[#allocation74_spill] sm:$0xff]  ;;  %v17206_v42 = vld [vmem:[#allocation75_spill] sm:$0xff] }
 0x44a   : > { %v15012_v18 = vpop.f32.mrf.mxu1  ;;  %v4160_v17 = vmax.f32 %v4132_v0, 0.0  ;;  %v4133_v41 = vadd.f32 %v14831_v15, %v4093_v11  ;;  %v4094_v7 = vadd.f32 %v4055_v10, %v3858_v37  ;;  %v4269_v25 = vrot.slane %v4159_v26, 1 }
 0x44b   : > { %v4057_v19 = vpop.f32.mrf.mxu0  ;;  %v3861_v0 = vadd.f32 %v17204_v36, %v3625_v62  ;;  %v3862_v26 = vadd.f32 %v17205_v43, %v3626_v63 }
 0x44c   : > { %v15020_v6 = vpop.f32.mrf.mxu1  ;;  %v4267_v2 = vrot.slane %v4160_v17, 1  ;;  %v4161_v1 = vmax.f32 %v4133_v41, 0.0  ;;  %v4134_v13 = vadd.f32 %v14823_v3, %v4094_v7  ;;  %v4095_v22 = vadd.f32 %v4057_v19, %v3859_v57 }
 0x44d   : > { %v4061_v21 = vpop.f32.mrf.mxu0  ;;  %v4283_v16 = vrot.slane %v4160_v17, 7 }
 0x44e   : > { %v15025_v12 = vpop.f32.mrf.mxu1  ;;  %v4162_v8 = vmax.f32 %v4134_v13, 0.0  ;;  %v4096_v11 = vadd.f32 %v4061_v21, %v3860_v23  ;;  %v4268_v40 = vsel %vm719_vm4, %v4266_v49, %v4267_v2  ;;  %v4270_v37 = vrot.slane %v4161_v1, 1 }
 0x44f   : > { %v4135_v46 = vadd.f32 %v14831_v15, %v4095_v22  ;;  %4272 = vrot.lane.b32.xlu0 %v4268_v40, %s17036_s18  ;;  %v4063_v32 = vpop.f32.mrf.mxu0  ;;  %v3863_v23 = vadd.f32 %v17206_v42, %v3627_v9  ;;  %v4286_v13 = vrot.slane %v4161_v1, 7 }
 0x450   : > { %v15031_v10 = vpop.f32.mrf.mxu1  ;;  %v4284_v41 = vrot.slane %v4162_v8, 7  ;;  %v4136_v7 = vadd.f32 %v14823_v3, %v4096_v11  ;;  %v4097_v30 = vadd.f32 %v4063_v32, %v3861_v0  ;;  %v4271_v62 = vsel %vm719_vm4, %v4269_v25, %v4270_v37 }
 0x451   : > { %v4163_v51 = vmax.f32 %v4135_v46, 0.0  ;;  %4274 = vrot.lane.b32.xlu1 %v4271_v62, %s17036_s18  ;;  %v4067_v56 = vpop.f32.mrf.mxu0 }
 0x452   : > { %v15037_v17 = vpop.f32.mrf.mxu1  ;;  %v4137_v44 = vadd.f32 %v14831_v15, %v4097_v30  ;;  %v4098_v57 = vadd.f32 %v4067_v56, %v3862_v26  ;;  %v4285_v19 = vsel %vm732_vm5, %v4283_v16, %v4284_v41  ;;  %v4164_v25 = vmax.f32 %v4136_v7, 0.0 }
 0x453   : > { %v4287_v63 = vrot.slane %v4163_v51, 7  ;;  %4289 = vrot.lane.b32.xlu0 %v4285_v19, %s17036_s18  ;;  %v4069_v49 = vpop.f32.mrf.mxu0 }
 0x454   : > { %v15043_v2 = vpop.f32.mrf.mxu1  ;;  %v4138_v22 = vadd.f32 %v14823_v3, %v4098_v57  ;;  %v4099_v21 = vadd.f32 %v4069_v49, %v3863_v23  ;;  %v4165_v11 = vmax.f32 %v4137_v44, 0.0  ;;  %v4302_v46 = vrot.slane %v4164_v25, 5 }
 0x455   : > { %v4288_v36 = vsel %vm732_vm5, %v4286_v13, %v4287_v63  ;;  %v12534_v0 = vpop.f32.mrf.mxu0 }
 0x456   : > { %v15047_v8 = vpop.f32.mrf.mxu1  ;;  %v4166_v40 = vmax.f32 %v4138_v22, 0.0  ;;  %v4139_v9 = vadd.f32 %v14831_v15, %v4099_v21  ;;  %4291 = vrot.lane.b32.xlu1 %v4288_v36, %s17036_s18  ;;  %v4305_v26 = vrot.slane %v4165_v11, 5 }
 0x457   : > { %v4827_v37 = vpop.f32.mrf.mxu0 }
 0x458   : > { %v15051_v16 = vpop.f32.mrf.mxu1  ;;  %v4303_v1 = vrot.slane %v4166_v40, 5  ;;  %v4167_v32 = vmax.f32 %v4139_v9, 0.0 }
 0x459   : > { %v12537_v43 = vpop.f32.mrf.mxu0 }
 0x45a   : > { %v15053_v3 = vpop.f32.mrf.mxu1  ;;  %v4306_v41 = vrot.slane %v4167_v32, 5  ;;  %v4304_v7 = vsel %vm747_vm6, %v4302_v46, %v4303_v1 }
 0x45b   : > { %4308 = vrot.lane.b32.xlu0 %v4304_v7, %s17036_s18  ;;  %v4837_v30 = vpop.f32.mrf.mxu0 }
 0x45c   : > { %v15057_v62 = vpop.f32.mrf.mxu1  ;;  %v4307_v15 = vsel %vm747_vm6, %v4305_v26, %v4306_v41 }
 0x45d   : > { %17207 = vst [vmem:[#allocation31_spill] sm:$0xff] %v15057_v62  ;;  %4310 = vrot.lane.b32.xlu1 %v4307_v15, %s17036_s18  ;;  %v12540_v51 = vpop.f32.mrf.mxu0  ;;  %s17410_s18 = smov 64  }
 0x45e   : > { %v15061_v56 = vpop.f32.mrf.mxu1 }
 0x45f   : > { %17208 = vst [vmem:[#allocation27_spill] sm:$0xff] %v15061_v56  ;;  %v4847_v44 = vpop.f32.mrf.mxu0  ;;  %v17224_v56 = vld [vmem:[#allocation78_spill] sm:$0xff] }
 0x460   : > { %v15063_v57 = vpop.f32.mrf.mxu1 }
 0x461   : > { %17209 = vst [vmem:[#allocation50_spill] sm:$0xff] %v15063_v57  ;;  %v12543_v19 = vpop.f32.mrf.mxu0 }
 0x462   : > { %v15065_v42 = vpop.f32.mrf.mxu1 }
 0x463   : > { %17210 = vst [vmem:[#allocation56_spill] sm:$0xff] %v15065_v42  ;;  %v15067_v23 = vpop.f32.mrf.mxu0  ;;  %v17223_v42 = vld [vmem:[#allocation77_spill] sm:$0xff] }
 0x464   : > { %v15069_v63 = vpop.f32.mrf.mxu1 }
 0x465   : > { %17211 = vst [vmem:[#allocation51_spill] sm:$0xff] %v15069_v63  ;;  %v15071_v49 = vpop.f32.mrf.mxu0 }
 0x466   : > { %v15075_v25 = vpop.f32.mrf.mxu1 }
 0x467   : > { %v15073_v13 = vpop.f32.mrf.mxu0  ;;  %17213 = vst [vmem:[#allocation58_spill] sm:$0xff] %v15075_v25 }
 0x468   : > { %17212 = vst [vmem:[#allocation29_spill] sm:$0xff] %v15073_v13  ;;  %v15081_v36 = vpop.f32.mrf.mxu1  ;;  %v17226_v13 = vld [vmem:[#allocation79_spill] sm:$0xff] }
 0x469   : > { %v15077_v22 = vpop.f32.mrf.mxu0  ;;  %17216 = vst [vmem:[#allocation37_spill] sm:$0xff] %v15081_v36  ;;  %v17221_v36 = vld [vmem:[#allocation76_spill] sm:$0xff] }
 0x46a   : > { %17214 = vst [vmem:[#allocation60_spill] sm:$0xff] %v15077_v22  ;;  %v12603_v9 = vpop.f32.mrf.mxu1  ;;  %v4640_v25 = vadd.f32 %v14909_v45, %v17221_v36  ;;  %v4650_v22 = vadd.f32 %v14924_v60, %v17224_v56  ;;  %v4645_v45 = vadd.f32 %v14934_v61, %v17226_v13  ;;  %v4655_v56 = vadd.f32 %v14950_v28, %v14833_v47 }
 0x46b   : > { %v15079_v21 = vpop.f32.mrf.mxu0  ;;  %v4680_v28 = vadd.f32 %v14981_v54, %v14855_v35  ;;  %v4685_v35 = vadd.f32 %v15005_v50, %v14884_v34 }
 0x46c   : > { %17215 = vst [vmem:[#allocation30_spill] sm:$0xff] %v15079_v21  ;;  %v5448_v32 = vpop.f32.mrf.mxu1  ;;  %v4897_v57 = vadd.f32 %v12534_v0, %v4640_v25  ;;  %v4899_v36 = vadd.f32 %v12537_v43, %v4650_v22 }
 0x46d   : > { %v15083_v11 = vpop.f32.mrf.mxu0 }
 0x46e   : > { %17217 = vst [vmem:[#allocation36_spill] sm:$0xff] %v15083_v11  ;;  %v12606_v7 = vpop.f32.mrf.mxu1  ;;  %v4635_v11 = vadd.f32 %v14916_v5, %v17223_v42  ;;  %v4660_v5 = vadd.f32 %v14943_v52, %v14825_v27  ;;  %v4898_v42 = vadd.f32 %v4837_v30, %v4645_v45  ;;  %v4670_v27 = vadd.f32 %v14963_v39, %v14840_v55 }
 0x46f   : > { %v15085_v40 = vpop.f32.mrf.mxu0  ;;  %v4900_v52 = vadd.f32 %v4847_v44, %v4655_v56 }
 0x470   : > { %17218 = vst [vmem:[#allocation62_spill] sm:$0xff] %v15085_v40  ;;  %v15087_v29 = vpop.f32.mrf.mxu1  ;;  %v4896_v62 = vadd.f32 %v4827_v37, %v4635_v11  ;;  %v4901_v11 = vadd.f32 %v12540_v51, %v4660_v5  ;;  %v4903_v51 = vadd.f32 %v12543_v19, %v4670_v27  ;;  %v4700_v19 = vadd.f32 %v15012_v18, %v14893_v4  ;;  %v17227_v18 = vld [vmem:[#allocation29_spill] sm:$0xff] }
 0x471   : > { %v12580_v46 = vpop.f32.mrf.mxu0 }
 0x472   : > { %v15095_v63 = vpop.f32.mrf.mxu1  ;;  %v5103_v60 = vadd.f32 %v15031_v10, %v4896_v62  ;;  %v4665_v10 = vadd.f32 %v14971_v14, %v14846_v38  ;;  %v5105_v62 = vadd.f32 %v15043_v2, %v4898_v42  ;;  %v5108_v55 = vadd.f32 %v15047_v8, %v4901_v11  ;;  %v15141_v38 = vld [vmem:[%s16990_s5 + $0x1] ss:$0 sm:$0xff]  ;;  %v17233_v11 = vld [vmem:[#allocation27_spill] sm:$0xff] }
 0x473   : > { %v5241_v1 = vpop.f32.mrf.mxu0  ;;  %v4690_v14 = vadd.f32 %v14997_v24, %v14875_v59  ;;  %v4695_v24 = vadd.f32 %v15020_v6, %v14902_v33  ;;  %v5110_v50 = vadd.f32 %v15053_v3, %v4903_v51 }
 0x474   : > { %v5310_v61 = vadd.f32 %v5241_v1, %v5103_v60 }
 0x475   : > { %v12583_v26 = vpop.f32.mrf.mxu0 }
 0x476   : > { %v5517_v13 = vadd.f32 %v5448_v32, %v5310_v61 }
 0x477   : > { %v5251_v41 = vpop.f32.mrf.mxu0 }
 0x478   : > { %v5312_v2 = vadd.f32 %v5251_v41, %v5105_v62 }
 0x479   : > { %v12586_v15 = vpop.f32.mrf.mxu0 }
 0x47a   : > { %v5315_v54 = vadd.f32 %v12586_v15, %v5108_v55  ;;  %v5519_v4 = vadd.f32 %v15087_v29, %v5312_v2 }
 0x47b   : > { %v5261_v58 = vpop.f32.mrf.mxu0 }
 0x47c   : > { %v5522_v33 = vadd.f32 %v15095_v63, %v5315_v54  ;;  %v17234_v63 = vld [vmem:[#allocation10_spill] sm:$0xff] }
 0x47d   : > { %v15089_v48 = vpop.f32.mrf.mxu0 }
 0x47e   : > { %17219 = vst [vmem:[#allocation52_spill] sm:$0xff] %v15089_v48  ;;  %v15105_v48 = vpop.f32.mrf.mxu1 }
 0x47f   : > { %v15091_v20 = vpop.f32.mrf.mxu0 }
 0x480   : > { %17220 = vst [vmem:[#allocation33_spill] sm:$0xff] %v15091_v20  ;;  %v15117_v37 = vpop.f32.mrf.mxu1 }
 0x481   : > { %v15097_v40 = vpop.f32.mrf.mxu0 }
 0x482   : > { %17222 = vst [vmem:[#allocation53_spill] sm:$0xff] %v15097_v40  ;;  %v5104_v40 = vadd.f32 %v15025_v12, %v4897_v57  ;;  %v5106_v12 = vadd.f32 %v15037_v17, %v4899_v36  ;;  %v15131_v57 = vpop.f32.mrf.mxu1  ;;  %v4675_v17 = vadd.f32 %v14989_v53, %v14864_v31  ;;  %v4902_v31 = vadd.f32 %v15067_v23, %v4665_v10 }
 0x483   : > { %v15101_v21 = vpop.f32.mrf.mxu0  ;;  %v5107_v53 = vadd.f32 %v15051_v16, %v4900_v52 }
 0x484   : > { %v5311_v25 = vadd.f32 %v12580_v46, %v5104_v40  ;;  %v5313_v30 = vadd.f32 %v12583_v26, %v5106_v12  ;;  %v12615_v22 = vpop.f32.mrf.mxu1  ;;  %v4905_v46 = vadd.f32 %v15071_v49, %v4680_v28  ;;  %v4904_v26 = vadd.f32 %v17227_v18, %v4675_v17  ;;  %v17235_v28 = vld [vmem:[#allocation30_spill] sm:$0xff] }
 0x485   : > { %v15107_v20 = vpop.f32.mrf.mxu0  ;;  %v5314_v34 = vadd.f32 %v5261_v58, %v5107_v53  ;;  %v17228_v41 = vld [vmem:[#allocation52_spill] sm:$0xff]  ;;  %v17230_v58 = vld [vmem:[#allocation11_spill] sm:$0xff]  ;;  %v4906_v17 = vadd.f32 %v17235_v28, %v4685_v35 }
 0x486   : > { %17225 = vst [vmem:[#allocation34_spill] sm:$0xff] %v15107_v20  ;;  %v5518_v47 = vadd.f32 %v12603_v9, %v5311_v25  ;;  %v5520_v59 = vadd.f32 %v12606_v7, %v5313_v30  ;;  %v5317_v15 = vadd.f32 %v17228_v41, %v5110_v50  ;;  %v17229_v7 = vld [vmem:[#allocation31_spill] sm:$0xff]  ;;  %v5488_v6 = vpop.f32.mrf.mxu1  ;;  %v17231_v25 = vld [vmem:[#allocation60_spill] sm:$0xff]  ;;  %v5112_v61 = vadd.f32 %v17233_v11, %v4905_v46 }
 0x487   : > { %v15114_v0 = vpop.f32.mrf.mxu0  ;;  %v5109_v45 = vadd.f32 %v17229_v7, %v4902_v31  ;;  %v4907_v60 = vadd.f32 %v17231_v25, %v4690_v14  ;;  %v17232_v29 = vld [vmem:[#allocation33_spill] sm:$0xff]  ;;  %v5521_v27 = vadd.f32 %v15105_v48, %v5314_v34  ;;  %v17240_v35 = vld [vmem:[#allocation56_spill] sm:$0xff]  ;;  %v17244_v41 = vld [vmem:[#allocation51_spill] sm:$0xff] }
 0x488   : > { %v12618_v52 = vpop.f32.mrf.mxu1  ;;  %v17238_v48 = vld [vmem:[#allocation13_spill] sm:$0xff] }
 0x489   : > { %v15121_v20 = vpop.f32.mrf.mxu0  ;;  %v5316_v56 = vadd.f32 %v17232_v29, %v5109_v45  ;;  %v17236_v51 = vld [vmem:[#allocation53_spill] sm:$0xff]  ;;  %v17247_v29 = vld [vmem:[#allocation14_spill] sm:$0xff] }
 0x48a   : > { %v5319_v55 = vadd.f32 %v17236_v51, %v5112_v61  ;;  %v5498_v50 = vpop.f32.mrf.mxu1 }
 0x48b   : > { %v15126_v43 = vpop.f32.mrf.mxu0  ;;  %v5523_v34 = vadd.f32 %v15131_v57, %v5316_v56  ;;  %v17245_v57 = vld [vmem:[#allocation15_spill] sm:$0xff] }
 0x48c   : > { %v5526_v7 = vadd.f32 %v12615_v22, %v5319_v55 }
 0x48d   : > { %v12626_v39 = vpop.f32.mrf.mxu0 }
 0x48e   : > { %v5725_v44 = vadd.f32 %v12626_v39, %v5518_v47  ;;  %v17237_v39 = vld [vmem:[#allocation50_spill] sm:$0xff] }
 0x48f   : > { %v5655_v8 = vpop.f32.mrf.mxu0  ;;  %v5111_v14 = vadd.f32 %v17237_v39, %v4904_v26  ;;  %v17243_v26 = vld [vmem:[#allocation34_spill] sm:$0xff] }
 0x490   : > { %v5747_v40 = vadd.f32 %v15141_v38, %v5725_v44  ;;  %v5724_v9 = vadd.f32 %v5655_v8, %v5517_v13  ;;  %v5524_v44 = vadd.f32 %v15117_v37, %v5317_v15  ;;  %v17239_v8 = vld [vmem:[#allocation36_spill] sm:$0xff] }
 0x491   : > { %v12629_v23 = vpop.f32.mrf.mxu0  ;;  %v17241_v37 = vld [vmem:[#allocation12_spill] sm:$0xff] }
 0x492   : > { %v5761_v1 = vmax.f32 %v5747_v40, 0.0  ;;  %v5746_v16 = vadd.f32 %v15141_v38, %v5724_v9  ;;  %v5727_v32 = vadd.f32 %v12629_v23, %v5520_v59  ;;  %v4909_v40 = vadd.f32 %v17239_v8, %v4700_v19 }
 0x493   : > { %v5665_v36 = vpop.f32.mrf.mxu0  ;;  %v5318_v9 = vadd.f32 %v15101_v21, %v5111_v14  ;;  %v5114_v59 = vadd.f32 %v17240_v35, %v4907_v60  ;;  %v5113_v21 = vadd.f32 %v17244_v41, %v4906_v17  ;;  %v12621_v60 = vpop.f32.mrf.mxu1  ;;  %v17249_v17 = vld [vmem:[#allocation17_spill] sm:$0xff] }
 0x494   : > { %v5775_v49 = vmul.f32 %v5761_v1, %v17230_v58  ;;  %v5760_v3 = vmax.f32 %v5746_v16, 0.0  ;;  %v5749_v5 = vadd.f32 %v15141_v38, %v5727_v32  ;;  %v5726_v42 = vadd.f32 %v5665_v36, %v5519_v4  ;;  %v17242_v4 = vld [vmem:[#allocation62_spill] sm:$0xff] }
 0x495   : > { %v12632_v12 = vpop.f32.mrf.mxu0  ;;  %v4908_v18 = vadd.f32 %v17242_v4, %v4695_v24  ;;  %v5321_v19 = vadd.f32 %v17243_v26, %v5114_v59  ;;  %v5525_v25 = vadd.f32 %v5488_v6, %v5318_v9  ;;  %v5508_v8 = vpop.f32.mrf.mxu1  ;;  %v17253_v4 = vld [vmem:[#allocation19_spill] sm:$0xff] }
 0x496   : > { %5789 = vst.msk [vmem:[#allocation2 + $0x32] sm:$0xff] %vm372_vm1, %v5775_v49  ;;  %v5774_v10 = vmul.f32 %v5760_v3, %v17234_v63  ;;  %v5763_v30 = vmax.f32 %v5749_v5, 0.0  ;;  %v5748_v62 = vadd.f32 %v15141_v38, %v5726_v42  ;;  %v5729_v47 = vadd.f32 %v12632_v12, %v5522_v33  ;;  %v17246_v5 = vld [vmem:[#allocation58_spill] sm:$0xff] }
 0x497   : > { %v5675_v2 = vpop.f32.mrf.mxu0  ;;  %v5320_v3 = vadd.f32 %v15114_v0, %v5113_v21  ;;  %v5116_v42 = vadd.f32 %v17246_v5, %v4909_v40  ;;  %v17250_v40 = vld [vmem:[#allocation16_spill] sm:$0xff] }
 0x498   : > { %5788 = vst.msk [vmem:[#allocation2 + $0x2a] sm:$0xff] %vm372_vm1, %v5774_v10  ;;  %v5777_v13 = vmul.f32 %v5763_v30, %v17238_v48  ;;  %v5762_v31 = vmax.f32 %v5748_v62, 0.0  ;;  %v5751_v54 = vadd.f32 %v15141_v38, %v5729_v47  ;;  %v5728_v53 = vadd.f32 %v5675_v2, %v5521_v27  ;;  %v17248_v30 = vld [vmem:[#allocation37_spill] sm:$0xff] }
 0x499   : > { %v12635_v46 = vpop.f32.mrf.mxu0  ;;  %v5528_v27 = vadd.f32 %v12618_v52, %v5321_v19  ;;  %v5323_v10 = vadd.f32 %v15121_v20, %v5116_v42  ;;  %v5115_v62 = vadd.f32 %v17248_v30, %v4908_v18  ;;  %v15208_v52 = vld [vmem:[%s16989_s4 + $0x90] sm:$0xff] }
 0x49a   : > { %5791 = vst.msk [vmem:[#allocation2 + $0x42] sm:$0xff] %vm372_vm1, %v5777_v13  ;;  %v5776_v23 = vmul.f32 %v5762_v31, %v17241_v37  ;;  %v5765_v1 = vmax.f32 %v5751_v54, 0.0  ;;  %v5750_v16 = vadd.f32 %v15141_v38, %v5728_v53  ;;  %v5731_v32 = vadd.f32 %v12635_v46, %v5524_v44  ;;  %v15213_v44 = vld [vmem:[%s16989_s4 + $0x98] sm:$0xff] }
 0x49b   : > { %v5685_v15 = vpop.f32.mrf.mxu0  ;;  %v5527_v13 = vadd.f32 %v5498_v50, %v5320_v3  ;;  %v5322_v31 = vadd.f32 %v15126_v43, %v5115_v62  ;;  %v17252_v43 = vld [vmem:[#allocation25_spill] sm:$0xff]  ;;  %v5530_v50 = vadd.f32 %v12621_v60, %v5323_v10  ;;  %v17256_v62 = vld [vmem:[#allocation20_spill] sm:$0xff] }
 0x49c   : > { %5790 = vst.msk [vmem:[#allocation2 + $0x3a] sm:$0xff] %vm372_vm1, %v5776_v23  ;;  %v5779_v45 = vmul.f32 %v5765_v1, %v17245_v57  ;;  %v5764_v36 = vmax.f32 %v5750_v16, 0.0  ;;  %v5753_v33 = vadd.f32 %v15141_v38, %v5731_v32  ;;  %v5730_v49 = vadd.f32 %v5685_v15, %v5523_v34  ;;  %v17251_v34 = vld [vmem:[#allocation80_spill] sm:$0xff] }
 0x49d   : > { %v12638_v24 = vpop.f32.mrf.mxu0  ;;  %v4179_v12 = vpop.permute.xlu0 %4178  ;;  %v5529_v15 = vadd.f32 %v5508_v8, %v5322_v31 }
 0x49e   : > { %5793 = vst.msk [vmem:[#allocation2 + $0x52] sm:$0xff] %vm372_vm1, %v5779_v45  ;;  %v5778_v22 = vmul.f32 %v5764_v36, %v17247_v29  ;;  %v5767_v56 = vmax.f32 %v5753_v33, 0.0  ;;  %v5752_v11 = vadd.f32 %v15141_v38, %v5730_v49  ;;  %v5733_v61 = vadd.f32 %v12638_v24, %v5526_v7  ;;  %v17254_v36 = vld [vmem:[#allocation18_spill] sm:$0xff] }
 0x49f   : > { %4186 = vst.msk [vmem:[%s13458_s20 + $0x8] sm:$0xff] %vm4185_vm8, %v4179_v12  ;;  %v5695_v0 = vpop.f32.mrf.mxu0  ;;  %v5818_v47 = vld [vmem:[#allocation2 + $0x28] sm:$0xff]  ;;  %v5819_v28 = vld [vmem:[#allocation2 + $0x30] sm:$0xff]  ;;  %v4181_v14 = vpop.permute.xlu1 %4180 }
 0x4a0   : > { %v5802_v6 = vld [vmem:[#allocation2 + $0x27] sm:$0xff]  ;;  %5792 = vst.msk [vmem:[#allocation2 + $0x4a] sm:$0xff] %vm372_vm1, %v5778_v22  ;;  %v5781_v51 = vmul.f32 %v5767_v56, %v17249_v17  ;;  %v5766_v55 = vmax.f32 %v5752_v11, 0.0  ;;  %v5755_v39 = vadd.f32 %v15141_v38, %v5733_v61  ;;  %v5732_v2 = vadd.f32 %v5695_v0, %v5525_v25  ;;  %12647 = vmatprep.mubr.msk.f32.mxu1 %vm372_vm1, %v5818_v47  ;;  %v5803_v20 = vld [vmem:[#allocation2 + $0x2f] sm:$0xff] }
 0x4a1   : > { %12670 = vmatprep.mubr.msk.f32.mxu0 %vm372_vm1, %v5802_v6  ;;  %v4182_v54 = vsel %vm713_vm3, %v4179_v12, %v4181_v14  ;;  %v12641_v53 = vpop.f32.mrf.mxu0  ;;  %12648 = vmatmul.mubr.msk.f32.vlgmr.msra.gmra.mxu1 %vm372_vm1, %v5819_v28  ;;  %v17255_v22 = vld [vmem:[#allocation21_spill] sm:$0xff]  ;;  %v17257_v14 = vld [vmem:[#allocation23_spill] sm:$0xff] }
 0x4a2   : > { %12671 = vmatmul.mubr.msk.f32.vlgmr.msra.gmra.mxu0 %vm372_vm1, %v5803_v20  ;;  %5795 = vst.msk [vmem:[#allocation2 + $0x62] sm:$0xff] %vm372_vm1, %v5781_v51  ;;  %v5780_v9 = vmul.f32 %v5766_v55, %v17250_v40  ;;  %v5769_v35 = vmax.f32 %v5755_v39, 0.0  ;;  %4187 = vst [vmem:[%s13458_s20 + $0x10] sm:$0xff] %v4182_v54  ;;  %v5754_v59 = vadd.f32 %v15141_v38, %v5732_v2  ;;  %12692 = vmatpush3.msra.mxu1 %v17251_v34  ;;  %v17258_v54 = vld [vmem:[#allocation22_spill] sm:$0xff] }
 0x4a3   : > { %v5735_v46 = vadd.f32 %v12641_v53, %v5528_v27  ;;  %12715 = vmatpush3.msra.mxu0 %v17252_v43  ;;  %v5705_v23 = vpop.f32.mrf.mxu0  ;;  %v5820_v1 = vld [vmem:[#allocation2 + $0x38] sm:$0xff]  ;;  %v5821_v32 = vld [vmem:[#allocation2 + $0x40] sm:$0xff]  ;;  %12737 = vmatprep.subr.mxu1 %v15208_v52 }
 0x4a4   : > { %v5804_v16 = vld [vmem:[#allocation2 + $0x37] sm:$0xff]  ;;  %12760 = vmatprep.subr.mxu0 %v15213_v44  ;;  %5794 = vst.msk [vmem:[#allocation2 + $0x5a] sm:$0xff] %vm372_vm1, %v5780_v9  ;;  %v5783_v18 = vmul.f32 %v5769_v35, %v17253_v4  ;;  %v5768_v26 = vmax.f32 %v5754_v59, 0.0  ;;  %v5734_v41 = vadd.f32 %v5705_v23, %v5527_v13  ;;  %12650 = vmatprep.mubr.msk.f32.mxu1 %vm372_vm1, %v5820_v1  ;;  %v5805_v21 = vld [vmem:[#allocation2 + $0x3f] sm:$0xff] }
 0x4a5   : > { %v5757_v19 = vadd.f32 %v15141_v38, %v5735_v46  ;;  %12673 = vmatprep.mubr.msk.f32.mxu0 %vm372_vm1, %v5804_v16  ;;  %v12644_v7 = vpop.f32.mrf.mxu0  ;;  %12651 = vmatmul.mubr.msk.f32.gmra.mxu1 %vm372_vm1, %v5821_v32  ;;  %v4199_v45 = vpop.permute.xlu0 %4198 }
 0x4a6   : > { %12674 = vmatmul.mubr.msk.f32.gmra.mxu0 %vm372_vm1, %v5805_v21  ;;  %5797 = vst.msk [vmem:[#allocation2 + $0x72] sm:$0xff] %vm372_vm1, %v5783_v18  ;;  %v5782_v33 = vmul.f32 %v5768_v26, %v17254_v36  ;;  %v5756_v3 = vadd.f32 %v15141_v38, %v5734_v41  ;;  %v5737_v5 = vadd.f32 %v12644_v7, %v5530_v50  ;;  %v6188_v41 = vld [vmem:[#allocation2 + $0x29] sm:$0xff] }
 0x4a7   : > { %v5771_v49 = vmax.f32 %v5757_v19, 0.0  ;;  %4205 = vst.msk [vmem:[%s13458_s20 + $0x38] sm:$0xff] %vm4185_vm8, %v4199_v45  ;;  %v5715_v42 = vpop.f32.mrf.mxu0  ;;  %v5822_v24 = vld [vmem:[#allocation2 + $0x48] sm:$0xff]  ;;  %v5823_v60 = vld [vmem:[#allocation2 + $0x50] sm:$0xff] }
 0x4a8   : > { %v5806_v25 = vld [vmem:[#allocation2 + $0x47] sm:$0xff]  ;;  %5796 = vst.msk [vmem:[#allocation2 + $0x6a] sm:$0xff] %vm372_vm1, %v5782_v33  ;;  %v5770_v11 = vmax.f32 %v5756_v3, 0.0  ;;  %v5759_v61 = vadd.f32 %v15141_v38, %v5737_v5  ;;  %v4201_v12 = vpop.permute.xlu1 %4200  ;;  %v5736_v27 = vadd.f32 %v5715_v42, %v5529_v15  ;;  %12653 = vmatprep.mubr.msk.f32.mxu1 %vm372_vm1, %v5822_v24  ;;  %v5807_v10 = vld [vmem:[#allocation2 + $0x4f] sm:$0xff]  ;;  %v6190_v3 = vld [vmem:[#allocation2 + $0x39] sm:$0xff] }
 0x4a9   : > { %v5785_v56 = vmul.f32 %v5771_v49, %v17255_v22  ;;  %12676 = vmatprep.mubr.msk.f32.mxu0 %vm372_vm1, %v5806_v25  ;;  %v4202_v30 = vsel %vm713_vm3, %v4199_v45, %v4201_v12  ;;  %12654 = vmatmul.mubr.msk.f32.gmra.mxu1 %vm372_vm1, %v5823_v60  ;;  %v4216_v28 = vpop.permute.xlu0 %4215  ;;  %v6395_v21 = vld [vmem:[#allocation2 + $0x2a] sm:$0xff]  ;;  %v6396_v33 = vld [vmem:[#allocation2 + $0x32] sm:$0xff]  ;;  %v15290_v5 = vld [vmem:[%s16989_s4 + $0xa0] sm:$0xff] }
 0x4aa   : > { %12677 = vmatmul.mubr.msk.f32.gmra.mxu0 %vm372_vm1, %v5807_v10  ;;  %v5784_v0 = vmul.f32 %v5770_v11, %v17256_v62  ;;  %v5773_v47 = vmax.f32 %v5759_v61, 0.0  ;;  %4206 = vst [vmem:[%s13458_s20 + $0x40] sm:$0xff] %v4202_v30  ;;  %v5758_v6 = vadd.f32 %v15141_v38, %v5736_v27  ;;  %4222 = vst.msk [vmem:[%s13458_s20 + $0x68] sm:$0xff] %vm4185_vm8, %v4216_v28  ;;  %v6189_v45 = vld [vmem:[#allocation2 + $0x31] sm:$0xff]  ;;  %v6397_v42 = vld [vmem:[#allocation2 + $0x3a] sm:$0xff] }
 0x4ab   : > { %5799 = vst.msk [vmem:[#allocation2 + $0x82] sm:$0xff] %vm372_vm1, %v5785_v56  ;;  %v5824_v51 = vld [vmem:[#allocation2 + $0x58] sm:$0xff]  ;;  %v5825_v39 = vld [vmem:[#allocation2 + $0x60] sm:$0xff]  ;;  %v6192_v56 = vld [vmem:[#allocation2 + $0x49] sm:$0xff] }
 0x4ac   : > { %v5808_v55 = vld [vmem:[#allocation2 + $0x57] sm:$0xff]  ;;  %5798 = vst.msk [vmem:[#allocation2 + $0x7a] sm:$0xff] %vm372_vm1, %v5784_v0  ;;  %v5787_v2 = vmul.f32 %v5773_v47, %v17257_v14  ;;  %v5772_v20 = vmax.f32 %v5758_v6, 0.0  ;;  %v4218_v13 = vpop.permute.xlu1 %4217  ;;  %12656 = vmatprep.mubr.msk.f32.mxu1 %vm372_vm1, %v5824_v51  ;;  %v5809_v31 = vld [vmem:[#allocation2 + $0x5f] sm:$0xff] }
 0x4ad   : > { %12679 = vmatprep.mubr.msk.f32.mxu0 %vm372_vm1, %v5808_v55  ;;  %v4219_v38 = vsel %vm713_vm3, %v4216_v28, %v4218_v13  ;;  %12657 = vmatmul.mubr.msk.f32.gmra.mxu1 %vm372_vm1, %v5825_v39  ;;  %v6191_v24 = vld [vmem:[#allocation2 + $0x41] sm:$0xff]  ;;  %v6193_v61 = vld [vmem:[#allocation2 + $0x51] sm:$0xff]  ;;  %v6194_v10 = vld [vmem:[#allocation2 + $0x59] sm:$0xff] }
 0x4ae   : > { %12680 = vmatmul.mubr.msk.f32.gmra.mxu0 %vm372_vm1, %v5809_v31  ;;  %5801 = vst.msk [vmem:[#allocation2 + $0x92] sm:$0xff] %vm372_vm1, %v5787_v2  ;;  %v5786_v53 = vmul.f32 %v5772_v20, %v17258_v54  ;;  %4223 = vst [vmem:[%s13458_s20 + $0x70] sm:$0xff] %v4219_v38  ;;  %v6398_v25 = vld [vmem:[#allocation2 + $0x42] sm:$0xff]  ;;  %v6400_v12 = vld [vmem:[#allocation2 + $0x52] sm:$0xff] }
 0x4af   : > { %v5826_v8 = vld [vmem:[#allocation2 + $0x68] sm:$0xff]  ;;  %v5827_v35 = vld [vmem:[#allocation2 + $0x70] sm:$0xff]  ;;  %v6401_v30 = vld [vmem:[#allocation2 + $0x5a] sm:$0xff] }
 0x4b0   : > { %v5810_v9 = vld [vmem:[#allocation2 + $0x67] sm:$0xff]  ;;  %5800 = vst.msk [vmem:[#allocation2 + $0x8a] sm:$0xff] %vm372_vm1, %v5786_v53  ;;  %12659 = vmatprep.mubr.msk.f32.mxu1 %vm372_vm1, %v5826_v8  ;;  %v5811_v59 = vld [vmem:[#allocation2 + $0x6f] sm:$0xff] }
 0x4b1   : > { %12682 = vmatprep.mubr.msk.f32.mxu0 %vm372_vm1, %v5810_v9  ;;  %12660 = vmatmul.mubr.msk.f32.gmra.mxu1 %vm372_vm1, %v5827_v35  ;;  %v4235_v46 = vpop.permute.xlu0 %4234  ;;  %v6195_v47 = vld [vmem:[#allocation2 + $0x61] sm:$0xff]  ;;  %v6196_v51 = vld [vmem:[#allocation2 + $0x69] sm:$0xff]  ;;  %v6197_v39 = vld [vmem:[#allocation2 + $0x71] sm:$0xff] }
 0x4b2   : > { %12683 = vmatmul.mubr.msk.f32.gmra.mxu0 %vm372_vm1, %v5811_v59  ;;  %4241 = vst.msk [vmem:[%s13458_s20 + $0x98] sm:$0xff] %vm4185_vm8, %v4235_v46  ;;  %v6402_v6 = vld [vmem:[#allocation2 + $0x62] sm:$0xff]  ;;  %v6403_v55 = vld [vmem:[#allocation2 + $0x6a] sm:$0xff]  ;;  %v6404_v2 = vld [vmem:[#allocation2 + $0x72] sm:$0xff] }
 0x4b3   : > { %v5828_v34 = vld [vmem:[#allocation2 + $0x78] sm:$0xff]  ;;  %v5829_v50 = vld [vmem:[#allocation2 + $0x80] sm:$0xff]  ;;  %v4237_v23 = vpop.permute.xlu1 %4236 }
 0x4b4   : > { %v5812_v43 = vld [vmem:[#allocation2 + $0x77] sm:$0xff]  ;;  %12662 = vmatprep.mubr.msk.f32.mxu1 %vm372_vm1, %v5828_v34  ;;  %v5813_v1 = vld [vmem:[#allocation2 + $0x7f] sm:$0xff]  ;;  %v4238_v16 = vsel %vm713_vm3, %v4235_v46, %v4237_v23 }
 0x4b5   : > { %12685 = vmatprep.mubr.msk.f32.mxu0 %vm372_vm1, %v5812_v43  ;;  %12663 = vmatmul.mubr.msk.f32.gmra.mxu1 %vm372_vm1, %v5829_v50  ;;  %4242 = vst [vmem:[%s13458_s20 + $0xa0] sm:$0xff] %v4238_v16  ;;  %v6198_v13 = vld [vmem:[#allocation2 + $0x79] sm:$0xff]  ;;  %v6199_v8 = vld [vmem:[#allocation2 + $0x81] sm:$0xff]  ;;  %v6602_v43 = vld [vmem:[#allocation2 + $0x2b] sm:$0xff] }
 0x4b6   : > { %12686 = vmatmul.mubr.msk.f32.gmra.mxu0 %vm372_vm1, %v5813_v1  ;;  %v6405_v31 = vld [vmem:[#allocation2 + $0x7a] sm:$0xff]  ;;  %v6406_v9 = vld [vmem:[#allocation2 + $0x82] sm:$0xff]  ;;  %v6408_v34 = vld [vmem:[#allocation2 + $0x92] sm:$0xff] }
 0x4b7   : > { %v5830_v32 = vld [vmem:[#allocation2 + $0x88] sm:$0xff]  ;;  %v5831_v26 = vld [vmem:[#allocation2 + $0x90] sm:$0xff]  ;;  %v6604_v16 = vld [vmem:[#allocation2 + $0x3b] sm:$0xff] }
 0x4b8   : > { %v5814_v18 = vld [vmem:[#allocation2 + $0x87] sm:$0xff]  ;;  %12665 = vmatprep.mubr.msk.f32.mxu1 %vm372_vm1, %v5830_v32  ;;  %v5815_v19 = vld [vmem:[#allocation2 + $0x8f] sm:$0xff]  ;;  %v6811_v32 = vld [vmem:[#allocation2 + $0x3c] sm:$0xff] }
 0x4b9   : > { %12688 = vmatprep.mubr.msk.f32.mxu0 %vm372_vm1, %v5814_v18  ;;  %12666 = vmatmul.mubr.msk.f32.gmra.mxu1 %vm372_vm1, %v5831_v26  ;;  %v4254_v15 = vpop.permute.xlu0 %4253  ;;  %v6200_v35 = vld [vmem:[#allocation2 + $0x89] sm:$0xff]  ;;  %v6201_v46 = vld [vmem:[#allocation2 + $0x91] sm:$0xff] }
 0x4ba   : > { %12689 = vmatmul.mubr.msk.f32.gmra.mxu0 %vm372_vm1, %v5815_v19  ;;  %12693 = vmatprep.mubr.msk.f32.mxu1 %vm372_vm1, %v6188_v41  ;;  %4260 = vst.msk [vmem:[%s13458_s20 + $0xc8] sm:$0xff] %vm4185_vm8, %v4254_v15  ;;  %v6407_v59 = vld [vmem:[#allocation2 + $0x8a] sm:$0xff]  ;;  %v6603_v23 = vld [vmem:[#allocation2 + $0x33] sm:$0xff] }
 0x4bb   : > { %12716 = vmatprep.mubr.msk.f32.mxu0 %vm372_vm1, %v6395_v21  ;;  %v4256_v7 = vpop.permute.xlu1 %4255  ;;  %v6809_v50 = vld [vmem:[#allocation2 + $0x2c] sm:$0xff]  ;;  %v6810_v1 = vld [vmem:[#allocation2 + $0x34] sm:$0xff]  ;;  %v6605_v18 = vld [vmem:[#allocation2 + $0x43] sm:$0xff] }
 0x4bc   : > { %v4257_v49 = vsel %vm713_vm3, %v4254_v15, %v4256_v7  ;;  %v6812_v26 = vld [vmem:[#allocation2 + $0x44] sm:$0xff]  ;;  %v6813_v41 = vld [vmem:[#allocation2 + $0x4c] sm:$0xff]  ;;  %v6814_v15 = vld [vmem:[#allocation2 + $0x54] sm:$0xff] }
 0x4bd   : > { %12694 = vmatmul.mubr.msk.f32.vlgmr.msra.gmra.mxu1 %vm372_vm1, %v6189_v45  ;;  %4261 = vst [vmem:[%s13458_s20 + $0xd0] sm:$0xff] %v4257_v49  ;;  %v6606_v19 = vld [vmem:[#allocation2 + $0x4b] sm:$0xff]  ;;  %v6607_v21 = vld [vmem:[#allocation2 + $0x53] sm:$0xff]  ;;  %v6608_v7 = vld [vmem:[#allocation2 + $0x5b] sm:$0xff] }
 0x4be   : > { %12717 = vmatmul.mubr.msk.f32.vlgmr.msra.gmra.mxu0 %vm372_vm1, %v6396_v33  ;;  %12738 = vmatpush3.msra.mxu1 %v15208_v52  ;;  %v6399_v52 = vld [vmem:[#allocation2 + $0x4a] sm:$0xff]  ;;  %v6815_v45 = vld [vmem:[#allocation2 + $0x5c] sm:$0xff] }
 0x4bf   : > { %12696 = vmatprep.mubr.msk.f32.mxu1 %vm372_vm1, %v6190_v3  ;;  %12719 = vmatprep.mubr.msk.f32.mxu0 %vm372_vm1, %v6397_v42  ;;  %v6609_v33 = vld [vmem:[#allocation2 + $0x63] sm:$0xff]  ;;  %v6610_v3 = vld [vmem:[#allocation2 + $0x6b] sm:$0xff]  ;;  %v6611_v42 = vld [vmem:[#allocation2 + $0x73] sm:$0xff] }
 0x4c0   : > { %12761 = vmatpush3.msra.mxu0 %v15213_v44  ;;  %12783 = vmatprep.subr.mxu1 %v15290_v5  ;;  %v6816_v49 = vld [vmem:[#allocation2 + $0x64] sm:$0xff] }
 0x4c1   : > { %12697 = vmatmul.mubr.msk.f32.gmra.mxu1 %vm372_vm1, %v6191_v24  ;;  %v4273_v60 = vpop.permute.xlu0 %4272  ;;  %v6818_v24 = vld [vmem:[#allocation2 + $0x74] sm:$0xff] }
 0x4c2   : > { %12720 = vmatmul.mubr.msk.f32.gmra.mxu0 %vm372_vm1, %v6398_v25  ;;  %4279 = vst.msk [vmem:[%s13458_s20 + $0xf8] sm:$0xff] %vm4185_vm8, %v4273_v60  ;;  %12699 = vmatprep.mubr.msk.f32.mxu1 %vm372_vm1, %v6192_v56  ;;  %v6612_v25 = vld [vmem:[#allocation2 + $0x7b] sm:$0xff]  ;;  %v6613_v56 = vld [vmem:[#allocation2 + $0x83] sm:$0xff] }
 0x4c3   : > { %12722 = vmatprep.mubr.msk.f32.mxu0 %vm372_vm1, %v6399_v52  ;;  %v4275_v44 = vpop.permute.xlu1 %4274  ;;  %v6820_v52 = vld [vmem:[#allocation2 + $0x84] sm:$0xff] }
 0x4c4   : > { %v4276_v11 = vsel %vm713_vm3, %v4273_v60, %v4275_v44  ;;  %v6819_v60 = vld [vmem:[#allocation2 + $0x7c] sm:$0xff]  ;;  %v6614_v44 = vld [vmem:[#allocation2 + $0x8b] sm:$0xff] }
 0x4c5   : > { %4280 = vst [vmem:[%s13458_s20 + $0x100] sm:$0xff] %v4276_v11  ;;  %12700 = vmatmul.mubr.msk.f32.gmra.mxu1 %vm372_vm1, %v6193_v61  ;;  %v4290_v27 = vpop.permute.xlu0 %4289  ;;  %v6821_v11 = vld [vmem:[#allocation2 + $0x8c] sm:$0xff] }
 0x4c6   : > { %12723 = vmatmul.mubr.msk.f32.gmra.mxu0 %vm372_vm1, %v6400_v12  ;;  %4296 = vst.msk [vmem:[%s13458_s20 + $0x128] sm:$0xff] %vm4185_vm8, %v4290_v27  ;;  %12702 = vmatprep.mubr.msk.f32.mxu1 %vm372_vm1, %v6194_v10  ;;  %v6615_v61 = vld [vmem:[#allocation2 + $0x93] sm:$0xff] }
 0x4c7   : > { %12725 = vmatprep.mubr.msk.f32.mxu0 %vm372_vm1, %v6401_v30  ;;  %v6822_v12 = vld [vmem:[#allocation2 + $0x94] sm:$0xff]  ;;  %v7018_v30 = vld [vmem:[#allocation2 + $0x3d] sm:$0xff] }
 0x4c8   : > { %v4292_v0 = vpop.permute.xlu1 %4291  ;;  %v7017_v10 = vld [vmem:[#allocation2 + $0x35] sm:$0xff] }
 0x4c9   : > { %v4293_v28 = vsel %vm713_vm3, %v4290_v27, %v4292_v0  ;;  %12703 = vmatmul.mubr.msk.f32.gmra.mxu1 %vm372_vm1, %v6195_v47  ;;  %v7016_v27 = vld [vmem:[#allocation2 + $0x2d] sm:$0xff]  ;;  %v7019_v0 = vld [vmem:[#allocation2 + $0x45] sm:$0xff] }
 0x4ca   : > { %12726 = vmatmul.mubr.msk.f32.gmra.mxu0 %vm372_vm1, %v6402_v6  ;;  %4297 = vst [vmem:[%s13458_s20 + $0x130] sm:$0xff] %v4293_v28  ;;  %12705 = vmatprep.mubr.msk.f32.mxu1 %vm372_vm1, %v6196_v51  ;;  %v7020_v47 = vld [vmem:[#allocation2 + $0x4d] sm:$0xff]  ;;  %v7021_v6 = vld [vmem:[#allocation2 + $0x55] sm:$0xff]  ;;  %v7022_v28 = vld [vmem:[#allocation2 + $0x5d] sm:$0xff] }
 0x4cb   : > { %12728 = vmatprep.mubr.msk.f32.mxu0 %vm372_vm1, %v6403_v55  ;;  %v7023_v51 = vld [vmem:[#allocation2 + $0x65] sm:$0xff]  ;;  %v7024_v55 = vld [vmem:[#allocation2 + $0x6d] sm:$0xff] }
 0x4cd   : > { %12706 = vmatmul.mubr.msk.f32.gmra.mxu1 %vm372_vm1, %v6197_v39  ;;  %v4309_v20 = vpop.permute.xlu0 %4308  ;;  %v7025_v39 = vld [vmem:[#allocation2 + $0x75] sm:$0xff] }
 0x4ce   : > { %12729 = vmatmul.mubr.msk.f32.gmra.mxu0 %vm372_vm1, %v6404_v2  ;;  %4315 = vst.msk [vmem:[%s13458_s20 + $0x158] sm:$0xff] %vm4185_vm8, %v4309_v20  ;;  %12708 = vmatprep.mubr.msk.f32.mxu1 %vm372_vm1, %v6198_v13  ;;  %v7026_v2 = vld [vmem:[#allocation2 + $0x7d] sm:$0xff]  ;;  %v7028_v13 = vld [vmem:[#allocation2 + $0x8d] sm:$0xff] }
 0x4cf   : > { %12731 = vmatprep.mubr.msk.f32.mxu0 %vm372_vm1, %v6405_v31  ;;  %v4311_v38 = vpop.permute.xlu1 %4310  ;;  %v7029_v31 = vld [vmem:[#allocation2 + $0x95] sm:$0xff] }
 0x4d0   : > { %v4312_v53 = vsel %vm713_vm3, %v4309_v20, %v4311_v38  ;;  %v7027_v20 = vld [vmem:[#allocation2 + $0x85] sm:$0xff]  ;;  %v11667_v38 = vld [vmem:[%s16989_s4 + $0xb0] sm:$0xff] }
 0x4d1   : > { %4316 = vst [vmem:[%s13458_s20 + $0x160] sm:$0xff] %v4312_v53  ;;  %12709 = vmatmul.mubr.msk.f32.gmra.mxu1 %vm372_vm1, %v6199_v8  ;;  %12806 = vmatprep.subr.mxu0 %v11667_v38  ;;  %v11666_v53 = vld [vmem:[%s16989_s4 + $0xa8] sm:$0xff] }
 0x4d2   : > { %12732 = vmatmul.mubr.msk.f32.gmra.mxu0 %vm372_vm1, %v6406_v9  ;;  %12711 = vmatprep.mubr.msk.f32.mxu1 %vm372_vm1, %v6200_v35  ;;  %v7287_v8 = vld [vmem:[#allocation3] sm:$0xff]  ;;  %v7288_v9 = vld [vmem:[#allocation3 + $0x8] sm:$0xff] }
 0x4d3   : > { %12734 = vmatprep.mubr.msk.f32.mxu0 %vm372_vm1, %v6407_v59  ;;  %v7303_v35 = vld [vmem:[#allocation3 + $0xe] sm:$0xff]  ;;  %v7304_v59 = vld [vmem:[#allocation3 + $0x16] sm:$0xff] }
 0x4d5   : > { %12712 = vmatmul.mubr.msk.f32.gmra.mxu1 %vm372_vm1, %v6201_v46  ;;  %v7289_v46 = vld [vmem:[#allocation3 + $0x10] sm:$0xff] }
 0x4d6   : > { %12735 = vmatmul.mubr.msk.f32.gmra.mxu0 %vm372_vm1, %v6408_v34  ;;  %12739 = vmatprep.mubr.msk.f32.mxu1 %vm372_vm1, %v6602_v43  ;;  %v11696_v34 = vld [vmem:[%s16989_s4 + $0xb8] sm:$0xff]  ;;  %v7290_v43 = vld [vmem:[#allocation3 + $0x18] sm:$0xff] }
 0x4d7   : > { %12762 = vmatprep.mubr.msk.f32.mxu0 %vm372_vm1, %v6809_v50  ;;  %v7305_v50 = vld [vmem:[#allocation3 + $0x1e] sm:$0xff] }
 0x4d9   : > { %12740 = vmatmul.mubr.msk.f32.vlgmr.msra.gmra.mxu1 %vm372_vm1, %v6603_v23  ;;  %v7291_v23 = vld [vmem:[#allocation3 + $0x20] sm:$0xff] }
 0x4da   : > { %12763 = vmatmul.mubr.msk.f32.vlgmr.msra.gmra.mxu0 %vm372_vm1, %v6810_v1  ;;  %12784 = vmatpush3.msra.mxu1 %v15290_v5  ;;  %v6817_v5 = vld [vmem:[#allocation2 + $0x6c] sm:$0xff]  ;;  %v11711_v1 = vld [vmem:[%s16989_s4 + $0xc0] sm:$0xff] }
 0x4db   : > { %12742 = vmatprep.mubr.msk.f32.mxu1 %vm372_vm1, %v6604_v16  ;;  %12765 = vmatprep.mubr.msk.f32.mxu0 %vm372_vm1, %v6811_v32  ;;  %v15398_v16 = vld [vmem:[%s16989_s4 + $0xc8] sm:$0xff] }
 0x4dc   : > { %12807 = vmatpush3.msra.mxu0 %v11667_v38  ;;  %12829 = vmatprep.subr.mxu1 %v11666_v53  ;;  %17259 = vst [vmem:[#allocation40_spill] sm:$0xff] %v15398_v16 }
 0x4dd   : > { %12743 = vmatmul.mubr.msk.f32.gmra.mxu1 %vm372_vm1, %v6605_v18  ;;  %12852 = vmatprep.subr.mxu0 %v11696_v34 }
 0x4de   : > { %12766 = vmatmul.mubr.msk.f32.gmra.mxu0 %vm372_vm1, %v6812_v26  ;;  %12745 = vmatprep.mubr.msk.f32.mxu1 %vm372_vm1, %v6606_v19 }
 0x4df   : > { %12768 = vmatprep.mubr.msk.f32.mxu0 %vm372_vm1, %v6813_v41 }
 0x4e1   : > { %12746 = vmatmul.mubr.msk.f32.gmra.mxu1 %vm372_vm1, %v6607_v21 }
 0x4e2   : > { %12769 = vmatmul.mubr.msk.f32.gmra.mxu0 %vm372_vm1, %v6814_v15  ;;  %12748 = vmatprep.mubr.msk.f32.mxu1 %vm372_vm1, %v6608_v7 }
 0x4e3   : > { %12771 = vmatprep.mubr.msk.f32.mxu0 %vm372_vm1, %v6815_v45 }
 0x4e5   : > { %12749 = vmatmul.mubr.msk.f32.gmra.mxu1 %vm372_vm1, %v6609_v33 }
 0x4e6   : > { %12772 = vmatmul.mubr.msk.f32.gmra.mxu0 %vm372_vm1, %v6816_v49  ;;  %12751 = vmatprep.mubr.msk.f32.mxu1 %vm372_vm1, %v6610_v3 }
 0x4e7   : > { %12774 = vmatprep.mubr.msk.f32.mxu0 %vm372_vm1, %v6817_v5 }
 0x4e9   : > { %12752 = vmatmul.mubr.msk.f32.gmra.mxu1 %vm372_vm1, %v6611_v42 }
 0x4ea   : > { %12775 = vmatmul.mubr.msk.f32.gmra.mxu0 %vm372_vm1, %v6818_v24  ;;  %12754 = vmatprep.mubr.msk.f32.mxu1 %vm372_vm1, %v6612_v25 }
 0x4eb   : > { %12777 = vmatprep.mubr.msk.f32.mxu0 %vm372_vm1, %v6819_v60 }
 0x4ed   : > { %12755 = vmatmul.mubr.msk.f32.gmra.mxu1 %vm372_vm1, %v6613_v56 }
 0x4ee   : > { %12778 = vmatmul.mubr.msk.f32.gmra.mxu0 %vm372_vm1, %v6820_v52  ;;  %12757 = vmatprep.mubr.msk.f32.mxu1 %vm372_vm1, %v6614_v44 }
 0x4ef   : > { %12780 = vmatprep.mubr.msk.f32.mxu0 %vm372_vm1, %v6821_v11 }
 0x4f1   : > { %12758 = vmatmul.mubr.msk.f32.gmra.mxu1 %vm372_vm1, %v6615_v61 }
 0x4f2   : > { %12781 = vmatmul.mubr.msk.f32.gmra.mxu0 %vm372_vm1, %v6822_v12  ;;  %12785 = vmatprep.mubr.msk.f32.mxu1 %vm372_vm1, %v7016_v27  ;;  %v15448_v12 = vld [vmem:[%s16989_s4 + $0xd0] sm:$0xff] }
 0x4f3   : > { %12808 = vmatprep.mubr.msk.f32.mxu0 %vm372_vm1, %v7303_v35  ;;  %17260 = vst [vmem:[#allocation54_spill] sm:$0xff] %v15448_v12 }
 0x4f5   : > { %12786 = vmatmul.mubr.msk.f32.vlgmr.msra.gmra.mxu1 %vm372_vm1, %v7017_v10 }
 0x4f6   : > { %12788 = vmatprep.mubr.msk.f32.mxu1 %vm372_vm1, %v7018_v30  ;;  %12830 = vmatpush3.msra.mxu1 %v11666_v53 }
 0x4f7   : > { %12809 = vmatmul.mubr.msk.f32.vlgmr.msra.gmra.mxu0 %vm372_vm1, %v7304_v59  ;;  %12875 = vmatprep.subr.mxu1 %v11711_v1 }
 0x4f8   : > { %12853 = vmatpush3.msra.mxu0 %v11696_v34  ;;  %12811 = vmatprep.mubr.msk.f32.mxu0 %vm372_vm1, %v7305_v50 }
 0x4f9   : > { %12789 = vmatmul.mubr.msk.f32.gmra.mxu1 %vm372_vm1, %v7019_v0  ;;  %12898 = vmatprep.subr.mxu0 %v15398_v16 }
 0x4fa   : > { %12791 = vmatprep.mubr.msk.f32.mxu1 %vm372_vm1, %v7020_v47 }
 0x4fd   : > { %12792 = vmatmul.mubr.msk.f32.gmra.mxu1 %vm372_vm1, %v7021_v6 }
 0x4fe   : > { %12794 = vmatprep.mubr.msk.f32.mxu1 %vm372_vm1, %v7022_v28 }
 0x501   : > { %12795 = vmatmul.mubr.msk.f32.gmra.mxu1 %vm372_vm1, %v7023_v51 }
 0x502   : > { %12797 = vmatprep.mubr.msk.f32.mxu1 %vm372_vm1, %v7024_v55 }
 0x505   : > { %12798 = vmatmul.mubr.msk.f32.gmra.mxu1 %vm372_vm1, %v7025_v39 }
 0x506   : > { %12800 = vmatprep.mubr.msk.f32.mxu1 %vm372_vm1, %v7026_v2 }
 0x509   : > { %12801 = vmatmul.mubr.msk.f32.gmra.mxu1 %vm372_vm1, %v7027_v20 }
 0x50a   : > { %12803 = vmatprep.mubr.msk.f32.mxu1 %vm372_vm1, %v7028_v13 }
 0x50d   : > { %12804 = vmatmul.mubr.msk.f32.gmra.mxu1 %vm372_vm1, %v7029_v31 }
 0x50e   : > { %12831 = vmatprep.mubr.msk.f32.mxu1 %vm372_vm1, %v7287_v8 }
 0x511   : > { %12832 = vmatmul.mubr.msk.f32.vlgmr.msra.gmra.mxu1 %vm372_vm1, %v7288_v9 }
 0x512   : > { %12834 = vmatprep.mubr.msk.f32.mxu1 %vm372_vm1, %v7289_v46  ;;  %12876 = vmatpush3.msra.mxu1 %v11711_v1 }
 0x513   : > { %12921 = vmatprep.subr.mxu1 %v15448_v12 }
 0x515   : > { %12835 = vmatmul.mubr.msk.f32.gmra.mxu1 %vm372_vm1, %v7290_v43 }
 0x516   : > { %12837 = vmatprep.mubr.msk.f32.mxu1 %vm372_vm1, %v7291_v23 }
 0x561   : > { %v15401_v32 = vpop.f32.mrf.mxu1 }
 0x562   : > { %v15403_v18 = vpop.f32.mrf.mxu0 }
 0x563   : > { %v15405_v26 = vpop.f32.mrf.mxu1 }
 0x564   : > { %v15407_v19 = vpop.f32.mrf.mxu0 }
 0x565   : > { %v15409_v41 = vpop.f32.mrf.mxu1 }
 0x566   : > { %v15411_v21 = vpop.f32.mrf.mxu0 }
 0x567   : > { %v15413_v15 = vpop.f32.mrf.mxu1 }
 0x568   : > { %v15415_v7 = vpop.f32.mrf.mxu0 }
 0x569   : > { %v15417_v45 = vpop.f32.mrf.mxu1 }
 0x56a   : > { %v15419_v33 = vpop.f32.mrf.mxu0 }
 0x56b   : > { %v15421_v49 = vpop.f32.mrf.mxu1 }
 0x56c   : > { %v15423_v3 = vpop.f32.mrf.mxu0 }
 0x56d   : > { %v15425_v5 = vpop.f32.mrf.mxu1 }
 0x56e   : > { %v15427_v42 = vpop.f32.mrf.mxu0 }
 0x56f   : > { %v15429_v24 = vpop.f32.mrf.mxu1 }
 0x570   : > { %v15431_v25 = vpop.f32.mrf.mxu0 }
 0x571   : > { %v15433_v60 = vpop.f32.mrf.mxu1 }
 0x572   : > { %v15435_v56 = vpop.f32.mrf.mxu0 }
 0x573   : > { %v15437_v52 = vpop.f32.mrf.mxu1 }
 0x574   : > { %v15439_v44 = vpop.f32.mrf.mxu0 }
 0x575   : > { %v15441_v11 = vpop.f32.mrf.mxu1 }
 0x576   : > { %v15443_v61 = vpop.f32.mrf.mxu0 }
 0x577   : > { %v15451_v27 = vpop.f32.mrf.mxu1 }
 0x578   : > { %v15453_v10 = vpop.f32.mrf.mxu0 }
 0x579   : > { %v15455_v30 = vpop.f32.mrf.mxu1 }
 0x57a   : > { %v15457_v0 = vpop.f32.mrf.mxu0 }
 0x57b   : > { %v15459_v47 = vpop.f32.mrf.mxu1 }
 0x57c   : > { %v15461_v6 = vpop.f32.mrf.mxu0 }
 0x57d   : > { %v12695_v28 = vpop.f32.mrf.mxu1 }
 0x57e   : > { %v12718_v51 = vpop.f32.mrf.mxu0 }
 0x57f   : > { %v6312_v55 = vpop.f32.mrf.mxu1 }
 0x580   : > { %v6519_v39 = vpop.f32.mrf.mxu0 }
 0x581   : > { %v12698_v2 = vpop.f32.mrf.mxu1 }
 0x582   : > { %v12721_v20 = vpop.f32.mrf.mxu0 }
 0x583   : > { %v6322_v13 = vpop.f32.mrf.mxu1 }
 0x584   : > { %v6529_v31 = vpop.f32.mrf.mxu0 }
 0x585   : > { %v12701_v38 = vpop.f32.mrf.mxu1 }
 0x586   : > { %v15463_v53 = vpop.f32.mrf.mxu0 }
 0x587   : > { %v6332_v8 = vpop.f32.mrf.mxu1 }
 0x588   : > { %v15465_v9 = vpop.f32.mrf.mxu0 }
 0x589   : > { %v15467_v35 = vpop.f32.mrf.mxu1 }
 0x58a   : > { %v15469_v59 = vpop.f32.mrf.mxu0 }
 0x58b   : > { %v15471_v46 = vpop.f32.mrf.mxu1 }
 0x58c   : > { %v15473_v34 = vpop.f32.mrf.mxu0 }
 0x58d   : > { %17261 = vst [vmem:[#allocation64_spill] sm:$0xff] %v15473_v34  ;;  %v15475_v43 = vpop.f32.mrf.mxu1 }
 0x58e   : > { %17262 = vst [vmem:[#allocation28_spill] sm:$0xff] %v15475_v43  ;;  %v15477_v50 = vpop.f32.mrf.mxu0 }
 0x58f   : > { %17263 = vst [vmem:[#allocation55_spill] sm:$0xff] %v15477_v50  ;;  %v15479_v23 = vpop.f32.mrf.mxu1 }
 0x590   : > { %17264 = vst [vmem:[#allocation39_spill] sm:$0xff] %v15479_v23  ;;  %v15481_v1 = vpop.f32.mrf.mxu0  ;;  %v6135_v23 = vadd.f32 %v15411_v21, %v15409_v41 }
 0x591   : > { %17265 = vst [vmem:[#allocation67_spill] sm:$0xff] %v15481_v1  ;;  %v15483_v16 = vpop.f32.mrf.mxu1 }
 0x592   : > { %17266 = vst [vmem:[#allocation35_spill] sm:$0xff] %v15483_v16  ;;  %v15485_v12 = vpop.f32.mrf.mxu0 }
 0x593   : > { %17267 = vst [vmem:[#allocation57_spill] sm:$0xff] %v15485_v12  ;;  %v15487_v54 = vpop.f32.mrf.mxu1 }
 0x594   : > { %17268 = vst [vmem:[#allocation42_spill] sm:$0xff] %v15487_v54  ;;  %v15489_v14 = vpop.f32.mrf.mxu0 }
 0x595   : > { %17269 = vst [vmem:[#allocation69_spill] sm:$0xff] %v15489_v14  ;;  %v15491_v62 = vpop.f32.mrf.mxu1 }
 0x596   : > { %17270 = vst [vmem:[#allocation26_spill] sm:$0xff] %v15491_v62  ;;  %v15493_v22 = vpop.f32.mrf.mxu0 }
 0x597   : > { %17271 = vst [vmem:[#allocation43_spill] sm:$0xff] %v15493_v22  ;;  %v15495_v36 = vpop.f32.mrf.mxu1  ;;  %v6125_v22 = vadd.f32 %v15403_v18, %v15401_v32  ;;  %v6130_v32 = vadd.f32 %v15415_v7, %v15413_v15  ;;  %v6155_v7 = vadd.f32 %v15427_v42, %v15425_v5  ;;  %v15546_v5 = vld [vmem:[%s16990_s5 + $0x2] ss:$0 sm:$0xff] }
 0x598   : > { %17272 = vst [vmem:[#allocation59_spill] sm:$0xff] %v15495_v36  ;;  %v15497_v4 = vpop.f32.mrf.mxu0 }
 0x599   : > { %17273 = vst [vmem:[#allocation24_spill] sm:$0xff] %v15497_v4  ;;  %v12741_v40 = vpop.f32.mrf.mxu1  ;;  %v6120_v4 = vadd.f32 %v15407_v19, %v15405_v26  ;;  %v6382_v50 = vadd.f32 %v12695_v28, %v6125_v22  ;;  %v6383_v19 = vadd.f32 %v6322_v13, %v6130_v32 }
 0x59a   : > { %v12764_v17 = vpop.f32.mrf.mxu0 }
 0x59b   : > { %v6726_v29 = vpop.f32.mrf.mxu1  ;;  %v6381_v34 = vadd.f32 %v6312_v55, %v6120_v4  ;;  %v6589_v18 = vadd.f32 %v12718_v51, %v6382_v50  ;;  %v6140_v4 = vadd.f32 %v15423_v3, %v15421_v49  ;;  %v6388_v49 = vadd.f32 %v15467_v35, %v6155_v7 }
 0x59c   : > { %v6933_v57 = vpop.f32.mrf.mxu0 }
 0x59d   : > { %v12744_v37 = vpop.f32.mrf.mxu1  ;;  %v6588_v22 = vadd.f32 %v6519_v39, %v6381_v34  ;;  %v6796_v28 = vadd.f32 %v12741_v40, %v6589_v18  ;;  %v6385_v51 = vadd.f32 %v6332_v8, %v6140_v4  ;;  %v6590_v40 = vadd.f32 %v6529_v31, %v6383_v19  ;;  %v17280_v34 = vld [vmem:[#allocation39_spill] sm:$0xff] }
 0x59e   : > { %v12767_v1 = vpop.f32.mrf.mxu0  ;;  %v17284_v4 = vld [vmem:[#allocation35_spill] sm:$0xff] }
 0x59f   : > { %v6736_v48 = vpop.f32.mrf.mxu1  ;;  %v6795_v15 = vadd.f32 %v6726_v29, %v6588_v22  ;;  %v7003_v39 = vadd.f32 %v12764_v17, %v6796_v28  ;;  %v6160_v29 = vadd.f32 %v15439_v44, %v15437_v52 }
 0x5a0   : > { %v6943_v54 = vpop.f32.mrf.mxu0  ;;  %v6797_v42 = vadd.f32 %v6736_v48, %v6590_v40  ;;  %v6180_v48 = vadd.f32 %v15461_v6, %v15459_v47  ;;  %v17282_v6 = vld [vmem:[#allocation11_spill] sm:$0xff] }
 0x5a1   : > { %v12747_v12 = vpop.f32.mrf.mxu1  ;;  %v7002_v17 = vadd.f32 %v6933_v57, %v6795_v15  ;;  %v6595_v57 = vadd.f32 %v15469_v59, %v6388_v49  ;;  %v6389_v50 = vadd.f32 %v17280_v34, %v6160_v29 }
 0x5a2   : > { %v12770_v36 = vpop.f32.mrf.mxu0 }
 0x5a3   : > { %v6746_v63 = vpop.f32.mrf.mxu1 }
 0x5a4   : > { %v15513_v43 = vpop.f32.mrf.mxu0 }
 0x5a5   : > { %v15499_v16 = vpop.f32.mrf.mxu1 }
 0x5a6   : > { %17274 = vst [vmem:[#allocation46_spill] sm:$0xff] %v15499_v16 }
 0x5a7   : > { %v15501_v14 = vpop.f32.mrf.mxu1 }
 0x5a8   : > { %17275 = vst [vmem:[#allocation61_spill] sm:$0xff] %v15501_v14  ;;  %v6384_v14 = vadd.f32 %v12698_v2, %v6135_v23 }
 0x5a9   : > { %v15505_v62 = vpop.f32.mrf.mxu1 }
 0x5aa   : > { %17276 = vst [vmem:[#allocation71_spill] sm:$0xff] %v15505_v62  ;;  %v6145_v62 = vadd.f32 %v15419_v33, %v15417_v45  ;;  %v6591_v55 = vadd.f32 %v12721_v20, %v6384_v14  ;;  %v6150_v33 = vadd.f32 %v15431_v25, %v15429_v24  ;;  %v6170_v25 = vadd.f32 %v15453_v10, %v15451_v27 }
 0x5ab   : > { %v15509_v58 = vpop.f32.mrf.mxu1  ;;  %v6185_v20 = vadd.f32 %v15457_v0, %v15455_v30  ;;  %v17279_v30 = vld [vmem:[#allocation64_spill] sm:$0xff] }
 0x5ac   : > { %17277 = vst [vmem:[#allocation45_spill] sm:$0xff] %v15509_v58  ;;  %v15523_v58 = vpop.f32.mrf.mxu0  ;;  %v6386_v41 = vadd.f32 %v12701_v38, %v6145_v62  ;;  %v6798_v2 = vadd.f32 %v12744_v37, %v6591_v55  ;;  %v6165_v62 = vadd.f32 %v15435_v56, %v15433_v60  ;;  %v6175_v37 = vadd.f32 %v15443_v61, %v15441_v11  ;;  %v17278_v61 = vld [vmem:[#allocation28_spill] sm:$0xff] }
 0x5ad   : > { %v15515_v16 = vpop.f32.mrf.mxu1  ;;  %v6592_v60 = vadd.f32 %v15465_v9, %v6385_v51  ;;  %v6387_v56 = vadd.f32 %v15471_v46, %v6150_v33  ;;  %v7004_v9 = vadd.f32 %v6943_v54, %v6797_v42  ;;  %v17283_v54 = vld [vmem:[#allocation55_spill] sm:$0xff] }
 0x5ae   : > { %v15535_v13 = vpop.f32.mrf.mxu0  ;;  %v6593_v14 = vadd.f32 %v15463_v53, %v6386_v41  ;;  %v7005_v31 = vadd.f32 %v12767_v1, %v6798_v2  ;;  %v6390_v27 = vadd.f32 %v17278_v61, %v6165_v62  ;;  %v17281_v1 = vld [vmem:[#allocation46_spill] sm:$0xff]  ;;  %v6392_v41 = vadd.f32 %v17284_v4, %v6175_v37  ;;  %v17287_v62 = vld [vmem:[#allocation67_spill] sm:$0xff] }
 0x5af   : > { %v15521_v26 = vpop.f32.mrf.mxu1  ;;  %v6799_v10 = vadd.f32 %v6746_v63, %v6592_v60  ;;  %v6594_v0 = vadd.f32 %v17279_v30, %v6387_v56  ;;  %v6802_v32 = vadd.f32 %v17281_v1, %v6595_v57  ;;  %v17285_v15 = vld [vmem:[#allocation61_spill] sm:$0xff]  ;;  %v6596_v29 = vadd.f32 %v17287_v62, %v6389_v50  ;;  %v17297_v1 = vld [vmem:[#allocation15_spill] sm:$0xff] }
 0x5b0   : > { %v6800_v52 = vadd.f32 %v12747_v12, %v6593_v14  ;;  %v12776_v38 = vpop.f32.mrf.mxu0  ;;  %v6597_v28 = vadd.f32 %v17283_v54, %v6390_v27  ;;  %v17288_v14 = vld [vmem:[#allocation42_spill] sm:$0xff] }
 0x5b1   : > { %v15527_v21 = vpop.f32.mrf.mxu1  ;;  %v7006_v55 = vadd.f32 %v15513_v43, %v6799_v10  ;;  %v6801_v7 = vadd.f32 %v17285_v15, %v6594_v0  ;;  %v6391_v49 = vadd.f32 %v17288_v14, %v6170_v25  ;;  %v17289_v37 = vld [vmem:[#allocation71_spill] sm:$0xff]  ;;  %v17294_v10 = vld [vmem:[#allocation12_spill] sm:$0xff] }
 0x5b2   : > { %v7007_v23 = vadd.f32 %v12770_v36, %v6800_v52  ;;  %v6973_v47 = vpop.f32.mrf.mxu0  ;;  %v17286_v36 = vld [vmem:[#allocation10_spill] sm:$0xff]  ;;  %v17296_v0 = vld [vmem:[#allocation59_spill] sm:$0xff]  ;;  %v17300_v15 = vld [vmem:[#allocation24_spill] sm:$0xff] }
 0x5b3   : > { %v15531_v45 = vpop.f32.mrf.mxu1  ;;  %v7008_v25 = vadd.f32 %v15535_v13, %v6801_v7  ;;  %v17293_v61 = vld [vmem:[#allocation45_spill] sm:$0xff]  ;;  %v6393_v34 = vadd.f32 %v17296_v0, %v6180_v48 }
 0x5b4   : > { %v12779_v42 = vpop.f32.mrf.mxu0 }
 0x5b5   : > { %v12787_v3 = vpop.f32.mrf.mxu1  ;;  %v6600_v7 = vadd.f32 %v17300_v15, %v6393_v34 }
 0x5b6   : > { %v7210_v24 = vadd.f32 %v12787_v3, %v7003_v39  ;;  %v7009_v3 = vadd.f32 %v15523_v58, %v6802_v32  ;;  %v6803_v58 = vadd.f32 %v17293_v61, %v6596_v29  ;;  %v6983_v13 = vpop.f32.mrf.mxu0  ;;  %v17303_v61 = vld [vmem:[#allocation19_spill] sm:$0xff] }
 0x5b7   : > { %v7140_v44 = vpop.f32.mrf.mxu1 }
 0x5b8   : > { %v7232_v53 = vadd.f32 %v15546_v5, %v7210_v24  ;;  %v7209_v11 = vadd.f32 %v7140_v44, %v7002_v17  ;;  %v6804_v17 = vadd.f32 %v17289_v37, %v6597_v28  ;;  %v17290_v24 = vld [vmem:[#allocation13_spill] sm:$0xff]  ;;  %v7010_v54 = vadd.f32 %v6973_v47, %v6803_v58  ;;  %v12782_v62 = vpop.f32.mrf.mxu0 }
 0x5b9   : > { %v12790_v8 = vpop.f32.mrf.mxu1 }
 0x5ba   : > { %v7246_v12 = vmax.f32 %v7232_v53, 0.0  ;;  %v7231_v35 = vadd.f32 %v15546_v5, %v7209_v11  ;;  %v7212_v46 = vadd.f32 %v12790_v8, %v7005_v31  ;;  %v17291_v31 = vld [vmem:[#allocation57_spill] sm:$0xff]  ;;  %v17292_v11 = vld [vmem:[#allocation26_spill] sm:$0xff]  ;;  %v7011_v50 = vadd.f32 %v12776_v38, %v6804_v17 }
 0x5bb   : > { %v7150_v18 = vpop.f32.mrf.mxu1  ;;  %v6599_v53 = vadd.f32 %v17291_v31, %v6392_v41  ;;  %v6394_v57 = vadd.f32 %v17292_v11, %v6185_v20  ;;  %v17299_v38 = vld [vmem:[#allocation14_spill] sm:$0xff] }
 0x5bc   : > { %v7260_v59 = vmul.f32 %v7246_v12, %v17282_v6  ;;  %v7245_v22 = vmax.f32 %v7231_v35, 0.0  ;;  %v7234_v63 = vadd.f32 %v15546_v5, %v7212_v46  ;;  %v7211_v19 = vadd.f32 %v7150_v18, %v7004_v9  ;;  %v17295_v46 = vld [vmem:[#allocation69_spill] sm:$0xff] }
 0x5bd   : > { %v12793_v51 = vpop.f32.mrf.mxu1  ;;  %v6598_v30 = vadd.f32 %v17295_v46, %v6391_v49  ;;  %v6806_v20 = vadd.f32 %v15515_v16, %v6599_v53 }
 0x5be   : > { %7274 = vst.msk [vmem:[#allocation3 + $0x32] sm:$0xff] %vm372_vm1, %v7260_v59  ;;  %v7259_v33 = vmul.f32 %v7245_v22, %v17286_v36  ;;  %v7248_v40 = vmax.f32 %v7234_v63, 0.0  ;;  %v7233_v39 = vadd.f32 %v15546_v5, %v7211_v19  ;;  %v7214_v2 = vadd.f32 %v12793_v51, %v7007_v23  ;;  %v17298_v63 = vld [vmem:[#allocation43_spill] sm:$0xff] }
 0x5bf   : > { %v7160_v43 = vpop.f32.mrf.mxu1  ;;  %v6601_v19 = vadd.f32 %v17298_v63, %v6394_v57  ;;  %v6805_v28 = vadd.f32 %v15521_v26, %v6598_v30  ;;  %v7013_v51 = vadd.f32 %v12779_v42, %v6806_v20  ;;  %v17301_v26 = vld [vmem:[#allocation17_spill] sm:$0xff]  ;;  %v17302_v42 = vld [vmem:[#allocation16_spill] sm:$0xff]  ;;  %v17304_v30 = vld [vmem:[#allocation18_spill] sm:$0xff] }
 0x5c0   : > { %7273 = vst.msk [vmem:[#allocation3 + $0x2a] sm:$0xff] %vm372_vm1, %v7259_v33  ;;  %v7262_v60 = vmul.f32 %v7248_v40, %v17290_v24  ;;  %v7247_v56 = vmax.f32 %v7233_v39, 0.0  ;;  %v7236_v52 = vadd.f32 %v15546_v5, %v7214_v2  ;;  %v7213_v44 = vadd.f32 %v7160_v43, %v7006_v55 }
 0x5c1   : > { %v12796_v27 = vpop.f32.mrf.mxu1  ;;  %v6808_v33 = vadd.f32 %v15527_v21, %v6601_v19  ;;  %v7012_v17 = vadd.f32 %v6983_v13, %v6805_v28  ;;  %v6807_v21 = vadd.f32 %v15531_v45, %v6600_v7  ;;  %v6993_v45 = vpop.f32.mrf.mxu0 }
 0x5c2   : > { %7276 = vst.msk [vmem:[#allocation3 + $0x42] sm:$0xff] %vm372_vm1, %v7262_v60  ;;  %v7261_v8 = vmul.f32 %v7247_v56, %v17294_v10  ;;  %v7250_v9 = vmax.f32 %v7236_v52, 0.0  ;;  %v7235_v12 = vadd.f32 %v15546_v5, %v7213_v44  ;;  %v7216_v35 = vadd.f32 %v12796_v27, %v7009_v3 }
 0x5c3   : > { %v7170_v23 = vpop.f32.mrf.mxu1  ;;  %v7015_v31 = vadd.f32 %v12782_v62, %v6808_v33 }
 0x5c4   : > { %7275 = vst.msk [vmem:[#allocation3 + $0x3a] sm:$0xff] %vm372_vm1, %v7261_v8  ;;  %v7264_v32 = vmul.f32 %v7250_v9, %v17297_v1  ;;  %v7249_v18 = vmax.f32 %v7235_v12, 0.0  ;;  %v7238_v59 = vadd.f32 %v15546_v5, %v7216_v35  ;;  %v7215_v22 = vadd.f32 %v7170_v23, %v7008_v25 }
 0x5c5   : > { %v12799_v4 = vpop.f32.mrf.mxu1  ;;  %v7014_v35 = vadd.f32 %v6993_v45, %v6807_v21  ;;  %v17309_v21 = vld [vmem:[#allocation54_spill] sm:$0xff] }
 0x5c6   : > { %7278 = vst.msk [vmem:[#allocation3 + $0x52] sm:$0xff] %vm372_vm1, %v7264_v32  ;;  %v7263_v16 = vmul.f32 %v7249_v18, %v17299_v38  ;;  %v7252_v48 = vmax.f32 %v7238_v59, 0.0  ;;  %v7237_v41 = vadd.f32 %v15546_v5, %v7215_v22  ;;  %v7218_v55 = vadd.f32 %v12799_v4, %v7011_v50  ;;  %v17305_v59 = vld [vmem:[#allocation21_spill] sm:$0xff]  ;;  %v17306_v4 = vld [vmem:[#allocation20_spill] sm:$0xff] }
 0x5c7   : > { %v7180_v40 = vpop.f32.mrf.mxu1  ;;  %v7306_v39 = vld [vmem:[#allocation3 + $0x26] sm:$0xff]  ;;  %v7307_v47 = vld [vmem:[#allocation3 + $0x2e] sm:$0xff] }
 0x5c8   : > { %v7292_v2 = vld [vmem:[#allocation3 + $0x28] sm:$0xff]  ;;  %7277 = vst.msk [vmem:[#allocation3 + $0x4a] sm:$0xff] %vm372_vm1, %v7263_v16  ;;  %v7266_v29 = vmul.f32 %v7252_v48, %v17301_v26  ;;  %v7251_v14 = vmax.f32 %v7237_v41, 0.0  ;;  %v7240_v49 = vadd.f32 %v15546_v5, %v7218_v55  ;;  %v7217_v3 = vadd.f32 %v7180_v40, %v7010_v54  ;;  %12812 = vmatmul.mubr.msk.f32.gmra.mxu0 %vm372_vm1, %v7306_v39  ;;  %v7293_v37 = vld [vmem:[#allocation3 + $0x30] sm:$0xff] }
 0x5c9   : > { %12838 = vmatmul.mubr.msk.f32.gmra.mxu1 %vm372_vm1, %v7292_v2  ;;  %v12802_v43 = vpop.f32.mrf.mxu1  ;;  %12814 = vmatprep.mubr.msk.f32.mxu0 %vm372_vm1, %v7307_v47 }
 0x5ca   : > { %12840 = vmatprep.mubr.msk.f32.mxu1 %vm372_vm1, %v7293_v37  ;;  %7280 = vst.msk [vmem:[#allocation3 + $0x62] sm:$0xff] %vm372_vm1, %v7266_v29  ;;  %v7265_v60 = vmul.f32 %v7251_v14, %v17302_v42  ;;  %v7254_v56 = vmax.f32 %v7240_v49, 0.0  ;;  %v7239_v52 = vadd.f32 %v15546_v5, %v7217_v3  ;;  %v7220_v44 = vadd.f32 %v12802_v43, %v7013_v51  ;;  %v17307_v51 = vld [vmem:[#allocation23_spill] sm:$0xff]  ;;  %v7673_v49 = vld [vmem:[#allocation3 + $0x1c] sm:$0xff]  ;;  %v7881_v37 = vld [vmem:[#allocation3 + $0x32] sm:$0xff] }
 0x5cb   : > { %v7190_v53 = vpop.f32.mrf.mxu1  ;;  %v7308_v11 = vld [vmem:[#allocation3 + $0x36] sm:$0xff]  ;;  %v7309_v25 = vld [vmem:[#allocation3 + $0x3e] sm:$0xff]  ;;  %v7880_v14 = vld [vmem:[#allocation3 + $0x2a] sm:$0xff] }
 0x5cc   : > { %v15612_v57 = vld [vmem:[#allocation3 + $0x38] sm:$0xff]  ;;  %7279 = vst.msk [vmem:[#allocation3 + $0x5a] sm:$0xff] %vm372_vm1, %v7265_v60  ;;  %v7268_v58 = vmul.f32 %v7254_v56, %v17303_v61  ;;  %v7253_v27 = vmax.f32 %v7239_v52, 0.0  ;;  %v7242_v8 = vadd.f32 %v15546_v5, %v7220_v44  ;;  %v7219_v9 = vadd.f32 %v7190_v53, %v7012_v17  ;;  %12815 = vmatmul.mubr.msk.f32.gmra.mxu0 %vm372_vm1, %v7308_v11  ;;  %v15620_v12 = vld [vmem:[#allocation3 + $0x40] sm:$0xff]  ;;  %v11756_v56 = vld [vmem:[%s16989_s4 + $0xd8] sm:$0xff] }
 0x5cd   : > { %12841 = vmatmul.mubr.msk.f32.gmra.mxu1 %vm372_vm1, %v15612_v57  ;;  %v12805_v46 = vpop.f32.mrf.mxu1  ;;  %12817 = vmatprep.mubr.msk.f32.mxu0 %vm372_vm1, %v7309_v25  ;;  %v7882_v17 = vld [vmem:[#allocation3 + $0x3a] sm:$0xff]  ;;  %v7674_v43 = vld [vmem:[#allocation3 + $0x24] sm:$0xff]  ;;  %v7675_v52 = vld [vmem:[#allocation3 + $0x2c] sm:$0xff] }
 0x5ce   : > { %12843 = vmatprep.mubr.msk.f32.mxu1 %vm372_vm1, %v15620_v12  ;;  %7282 = vst.msk [vmem:[#allocation3 + $0x72] sm:$0xff] %vm372_vm1, %v7268_v58  ;;  %v7267_v0 = vmul.f32 %v7253_v27, %v17304_v30  ;;  %v7256_v34 = vmax.f32 %v7242_v8, 0.0  ;;  %v7241_v50 = vadd.f32 %v15546_v5, %v7219_v9  ;;  %v7222_v20 = vadd.f32 %v12805_v46, %v7015_v31  ;;  %v7883_v60 = vld [vmem:[#allocation3 + $0x42] sm:$0xff]  ;;  %v17310_v44 = vld [vmem:[#allocation40_spill] sm:$0xff] }
 0x5cf   : > { %v7200_v23 = vpop.f32.mrf.mxu1  ;;  %v15628_v13 = vld [vmem:[#allocation3 + $0x46] sm:$0xff]  ;;  %v15632_v18 = vld [vmem:[#allocation3 + $0x4e] sm:$0xff]  ;;  %v7677_v25 = vld [vmem:[#allocation3 + $0x3c] sm:$0xff] }
 0x5d0   : > { %v15630_v32 = vld [vmem:[#allocation3 + $0x48] sm:$0xff]  ;;  %7281 = vst.msk [vmem:[#allocation3 + $0x6a] sm:$0xff] %vm372_vm1, %v7267_v0  ;;  %v7270_v22 = vmul.f32 %v7256_v34, %v17305_v59  ;;  %v7255_v63 = vmax.f32 %v7241_v50, 0.0  ;;  %v7244_v19 = vadd.f32 %v15546_v5, %v7222_v20  ;;  %v7221_v54 = vadd.f32 %v7200_v23, %v7014_v35  ;;  %12818 = vmatmul.mubr.msk.f32.gmra.mxu0 %vm372_vm1, %v15628_v13  ;;  %v15641_v28 = vld [vmem:[#allocation3 + $0x50] sm:$0xff] }
 0x5d1   : > { %12844 = vmatmul.mubr.msk.f32.gmra.mxu1 %vm372_vm1, %v15630_v32  ;;  %12820 = vmatprep.mubr.msk.f32.mxu0 %vm372_vm1, %v15632_v18  ;;  %v7884_v31 = vld [vmem:[#allocation3 + $0x4a] sm:$0xff]  ;;  %v7676_v53 = vld [vmem:[#allocation3 + $0x34] sm:$0xff]  ;;  %v7887_v27 = vld [vmem:[#allocation3 + $0x62] sm:$0xff] }
 0x5d2   : > { %12846 = vmatprep.mubr.msk.f32.mxu1 %vm372_vm1, %v15641_v28  ;;  %7284 = vst.msk [vmem:[#allocation3 + $0x82] sm:$0xff] %vm372_vm1, %v7270_v22  ;;  %v7269_v16 = vmul.f32 %v7255_v63, %v17306_v4  ;;  %v7258_v48 = vmax.f32 %v7244_v19, 0.0  ;;  %v7243_v41 = vadd.f32 %v15546_v5, %v7221_v54  ;;  %v17308_v5 = vld [vmem:[#allocation22_spill] sm:$0xff]  ;;  %v7885_v11 = vld [vmem:[#allocation3 + $0x52] sm:$0xff] }
 0x5d3   : > { %v15650_v55 = vld [vmem:[#allocation3 + $0x56] sm:$0xff]  ;;  %v15654_v7 = vld [vmem:[#allocation3 + $0x5e] sm:$0xff]  ;;  %v7679_v8 = vld [vmem:[#allocation3 + $0x4c] sm:$0xff] }
 0x5d4   : > { %v15652_v15 = vld [vmem:[#allocation3 + $0x58] sm:$0xff]  ;;  %7283 = vst.msk [vmem:[#allocation3 + $0x7a] sm:$0xff] %vm372_vm1, %v7269_v16  ;;  %v7272_v33 = vmul.f32 %v7258_v48, %v17307_v51  ;;  %v7257_v40 = vmax.f32 %v7243_v41, 0.0  ;;  %12821 = vmatmul.mubr.msk.f32.gmra.mxu0 %vm372_vm1, %v15650_v55  ;;  %v15662_v39 = vld [vmem:[#allocation3 + $0x60] sm:$0xff] }
 0x5d5   : > { %12847 = vmatmul.mubr.msk.f32.gmra.mxu1 %vm372_vm1, %v15652_v15  ;;  %12823 = vmatprep.mubr.msk.f32.mxu0 %vm372_vm1, %v15654_v7  ;;  %v7886_v45 = vld [vmem:[#allocation3 + $0x5a] sm:$0xff]  ;;  %v7678_v58 = vld [vmem:[#allocation3 + $0x44] sm:$0xff]  ;;  %v7889_v46 = vld [vmem:[#allocation3 + $0x72] sm:$0xff] }
 0x5d6   : > { %12849 = vmatprep.mubr.msk.f32.mxu1 %vm372_vm1, %v15662_v39  ;;  %7286 = vst.msk [vmem:[#allocation3 + $0x92] sm:$0xff] %vm372_vm1, %v7272_v33  ;;  %v7271_v2 = vmul.f32 %v7257_v40, %v17308_v5  ;;  %v15708_v35 = vld [vmem:[#allocation3 + $0x54] sm:$0xff]  ;;  %v15713_v0 = vld [vmem:[#allocation3 + $0x5c] sm:$0xff]  ;;  %v8306_v41 = vld [vmem:[#allocation3 + $0xa6] sm:$0xff] }
 0x5d7   : > { %v15670_v47 = vld [vmem:[#allocation3 + $0x66] sm:$0xff]  ;;  %v15674_v29 = vld [vmem:[#allocation3 + $0x6e] sm:$0xff]  ;;  %v8305_v48 = vld [vmem:[#allocation3 + $0x9e] sm:$0xff] }
 0x5d8   : > { %v15672_v62 = vld [vmem:[#allocation3 + $0x68] sm:$0xff]  ;;  %7285 = vst.msk [vmem:[#allocation3 + $0x8a] sm:$0xff] %vm372_vm1, %v7271_v2  ;;  %12824 = vmatmul.mubr.msk.f32.gmra.mxu0 %vm372_vm1, %v15670_v47  ;;  %v17311_v2 = vmov 0.0  }
 0x5d9   : > { %12850 = vmatmul.mubr.msk.f32.gmra.mxu1 %vm372_vm1, %v15672_v62  ;;  %12826 = vmatprep.mubr.msk.f32.mxu0 %vm372_vm1, %v15674_v29  ;;  %v7888_v9 = vld [vmem:[#allocation3 + $0x6a] sm:$0xff]  ;;  %v7891_v20 = vld [vmem:[#allocation3 + $0x82] sm:$0xff] }
 0x5da   : > { %12877 = vmatprep.mubr.msk.f32.mxu1 %vm372_vm1, %v7880_v14  ;;  %v7682_v50 = vld [vmem:[#allocation3 + $0x64] sm:$0xff]  ;;  %v7683_v23 = vld [vmem:[#allocation3 + $0x6c] sm:$0xff] }
 0x5db   : > { %v15684_v3 = vld [vmem:[#allocation3 + $0x76] sm:$0xff]  ;;  %v8511_v14 = vld [vmem:[#allocation3 + $0xa4] sm:$0xff] }
 0x5dc   : > { %12827 = vmatmul.mubr.msk.f32.gmra.mxu0 %vm372_vm1, %v15684_v3  ;;  %v7890_v34 = vld [vmem:[#allocation3 + $0x7a] sm:$0xff] }
 0x5dd   : > { %12878 = vmatmul.mubr.msk.f32.vlgmr.msra.gmra.mxu1 %vm372_vm1, %v7881_v37  ;;  %12854 = vmatprep.mubr.msk.f32.mxu0 %vm372_vm1, %v7673_v49  ;;  %v7684_v63 = vld [vmem:[#allocation3 + $0x74] sm:$0xff]  ;;  %v7685_v54 = vld [vmem:[#allocation3 + $0x7c] sm:$0xff]  ;;  %v8512_v49 = vld [vmem:[#allocation3 + $0xac] sm:$0xff] }
 0x5de   : > { %12880 = vmatprep.mubr.msk.f32.mxu1 %vm372_vm1, %v7882_v17  ;;  %12922 = vmatpush3.msra.mxu1 %v17309_v21  ;;  %v7893_v19 = vld [vmem:[#allocation3 + $0x92] sm:$0xff]  ;;  %v8514_v37 = vld [vmem:[#allocation3 + $0xbc] sm:$0xff]  ;;  %v11773_v21 = vld [vmem:[%s16991_s6 + $0x70] sm:$0xff] }
 0x5df   : > { %v7892_v22 = vld [vmem:[#allocation3 + $0x8a] sm:$0xff]  ;;  %v8099_v40 = vld [vmem:[#allocation3 + $0x98] sm:$0xff] }
 0x5e0   : > { %12855 = vmatmul.mubr.msk.f32.vlgmr.msra.gmra.mxu0 %vm372_vm1, %v7674_v43  ;;  %v7686_v16 = vld [vmem:[#allocation3 + $0x84] sm:$0xff]  ;;  %v8098_v33 = vld [vmem:[#allocation3 + $0x90] sm:$0xff] }
 0x5e1   : > { %12881 = vmatmul.mubr.msk.f32.gmra.mxu1 %vm372_vm1, %v7883_v60  ;;  %12899 = vmatpush3.msra.mxu0 %v17310_v44  ;;  %v11774_v17 = vld [vmem:[%s16991_s6 + $0x78] sm:$0xff]  ;;  %v11776_v43 = vld [vmem:[%s16991_s6 + $0x88] sm:$0xff]  ;;  %v11775_v60 = vld [vmem:[%s16991_s6 + $0x80] sm:$0xff] }
 0x5e2   : > { %12857 = vmatprep.mubr.msk.f32.mxu0 %vm372_vm1, %v7675_v52  ;;  %12883 = vmatprep.mubr.msk.f32.mxu1 %vm372_vm1, %v7884_v31  ;;  %v15801_v52 = vpop.f32.mrf.mxu1 }
 0x5e3   : > { %12944 = vmatprep.subr.mxu0 %v11756_v56  ;;  %8878 = vmatprep.subr.mxu1 %v11776_v43 }
 0x5e4   : > { %12858 = vmatmul.mubr.msk.f32.gmra.mxu0 %vm372_vm1, %v7676_v53  ;;  %v15803_v44 = vpop.f32.mrf.mxu1  ;;  %v15807_v53 = vpop.f32.mrf.mxu0 }
 0x5e5   : > { %12884 = vmatmul.mubr.msk.f32.gmra.mxu1 %vm372_vm1, %v7885_v11  ;;  %12860 = vmatprep.mubr.msk.f32.mxu0 %vm372_vm1, %v7677_v25 }
 0x5e6   : > { %12886 = vmatprep.mubr.msk.f32.mxu1 %vm372_vm1, %v7886_v45  ;;  %v15805_v31 = vpop.f32.mrf.mxu1  ;;  %v15811_v25 = vpop.f32.mrf.mxu0 }
 0x5e8   : > { %12861 = vmatmul.mubr.msk.f32.gmra.mxu0 %vm372_vm1, %v7678_v58  ;;  %v15809_v11 = vpop.f32.mrf.mxu1 }
 0x5e9   : > { %12887 = vmatmul.mubr.msk.f32.gmra.mxu1 %vm372_vm1, %v7887_v27  ;;  %12863 = vmatprep.mubr.msk.f32.mxu0 %vm372_vm1, %v7679_v8 }
 0x5ea   : > { %12889 = vmatprep.mubr.msk.f32.mxu1 %vm372_vm1, %v7888_v9 }
 0x5ec   : > { %12864 = vmatmul.mubr.msk.f32.gmra.mxu0 %vm372_vm1, %v15708_v35 }
 0x5ed   : > { %12890 = vmatmul.mubr.msk.f32.gmra.mxu1 %vm372_vm1, %v7889_v46  ;;  %12866 = vmatprep.mubr.msk.f32.mxu0 %vm372_vm1, %v15713_v0 }
 0x5ee   : > { %12892 = vmatprep.mubr.msk.f32.mxu1 %vm372_vm1, %v7890_v34 }
 0x5f0   : > { %12867 = vmatmul.mubr.msk.f32.gmra.mxu0 %vm372_vm1, %v7682_v50 }
 0x5f1   : > { %12893 = vmatmul.mubr.msk.f32.gmra.mxu1 %vm372_vm1, %v7891_v20  ;;  %12869 = vmatprep.mubr.msk.f32.mxu0 %vm372_vm1, %v7683_v23 }
 0x5f2   : > { %12895 = vmatprep.mubr.msk.f32.mxu1 %vm372_vm1, %v7892_v22 }
 0x5f4   : > { %12870 = vmatmul.mubr.msk.f32.gmra.mxu0 %vm372_vm1, %v7684_v63 }
 0x5f5   : > { %12896 = vmatmul.mubr.msk.f32.gmra.mxu1 %vm372_vm1, %v7893_v19  ;;  %12872 = vmatprep.mubr.msk.f32.mxu0 %vm372_vm1, %v7685_v54 }
 0x5f6   : > { %12923 = vmatprep.mubr.msk.f32.mxu1 %vm372_vm1, %v15628_v13  ;;  %v8094_v13 = vld [vmem:[#allocation3 + $0x70] sm:$0xff] }
 0x5f8   : > { %12873 = vmatmul.mubr.msk.f32.gmra.mxu0 %vm372_vm1, %v7686_v16 }
 0x5f9   : > { %12924 = vmatmul.mubr.msk.f32.vlgmr.msra.gmra.mxu1 %vm372_vm1, %v15632_v18  ;;  %12900 = vmatprep.mubr.msk.f32.mxu0 %vm372_vm1, %v15612_v57  ;;  %v8301_v57 = vld [vmem:[#allocation3 + $0x7e] sm:$0xff] }
 0x5fa   : > { %12926 = vmatprep.mubr.msk.f32.mxu1 %vm372_vm1, %v15650_v55  ;;  %v8095_v18 = vld [vmem:[#allocation3 + $0x78] sm:$0xff]  ;;  %v8096_v55 = vld [vmem:[#allocation3 + $0x80] sm:$0xff]  ;;  %8879 = vmatpush1.msra.mxu1 %v11775_v60 }
 0x5fc   : > { %12901 = vmatmul.mubr.msk.f32.vlgmr.msra.gmra.mxu0 %vm372_vm1, %v15620_v12  ;;  %v8302_v12 = vld [vmem:[#allocation3 + $0x86] sm:$0xff] }
 0x5fd   : > { %12927 = vmatmul.mubr.msk.f32.gmra.mxu1 %vm372_vm1, %v15654_v7  ;;  %12945 = vmatpush3.msra.mxu0 %v11756_v56  ;;  %v8307_v7 = vld [vmem:[#allocation3 + $0xae] sm:$0xff]  ;;  %v11822_v56 = vld [vmem:[%s16991_s6 + $0xa8] sm:$0xff] }
 0x5fe   : > { %12903 = vmatprep.mubr.msk.f32.mxu0 %vm372_vm1, %v15630_v32  ;;  %12929 = vmatprep.mubr.msk.f32.mxu1 %vm372_vm1, %v15670_v47  ;;  %v8303_v32 = vld [vmem:[#allocation3 + $0x8e] sm:$0xff] }
 0x5ff   : > { %v8508_v47 = vld [vmem:[#allocation3 + $0x8c] sm:$0xff]  ;;  %9069 = vmatprep.subr.mxu0 %v11774_v17 }
 0x600   : > { %12904 = vmatmul.mubr.msk.f32.gmra.mxu0 %vm372_vm1, %v15641_v28  ;;  %v8304_v28 = vld [vmem:[#allocation3 + $0x96] sm:$0xff] }
 0x601   : > { %12930 = vmatmul.mubr.msk.f32.gmra.mxu1 %vm372_vm1, %v15674_v29  ;;  %12906 = vmatprep.mubr.msk.f32.mxu0 %vm372_vm1, %v15652_v15  ;;  %v8097_v15 = vld [vmem:[#allocation3 + $0x88] sm:$0xff]  ;;  %v8510_v29 = vld [vmem:[#allocation3 + $0x9c] sm:$0xff] }
 0x602   : > { %12932 = vmatprep.mubr.msk.f32.mxu1 %vm372_vm1, %v15684_v3  ;;  %v8513_v3 = vld [vmem:[#allocation3 + $0xb4] sm:$0xff] }
 0x604   : > { %12907 = vmatmul.mubr.msk.f32.gmra.mxu0 %vm372_vm1, %v15662_v39  ;;  %v8100_v39 = vld [vmem:[#allocation3 + $0xa0] sm:$0xff] }
 0x605   : > { %12933 = vmatmul.mubr.msk.f32.gmra.mxu1 %vm372_vm1, %v8301_v57  ;;  %12909 = vmatprep.mubr.msk.f32.mxu0 %vm372_vm1, %v15672_v62  ;;  %v8509_v62 = vld [vmem:[#allocation3 + $0x94] sm:$0xff] }
 0x606   : > { %12935 = vmatprep.mubr.msk.f32.mxu1 %vm372_vm1, %v8302_v12 }
 0x608   : > { %12910 = vmatmul.mubr.msk.f32.gmra.mxu0 %vm372_vm1, %v8094_v13 }
 0x609   : > { %12936 = vmatmul.mubr.msk.f32.gmra.mxu1 %vm372_vm1, %v8303_v32  ;;  %12912 = vmatprep.mubr.msk.f32.mxu0 %vm372_vm1, %v8095_v18 }
 0x60a   : > { %12938 = vmatprep.mubr.msk.f32.mxu1 %vm372_vm1, %v8304_v28 }
 0x60c   : > { %12913 = vmatmul.mubr.msk.f32.gmra.mxu0 %vm372_vm1, %v8096_v55 }
 0x60d   : > { %12939 = vmatmul.mubr.msk.f32.gmra.mxu1 %vm372_vm1, %v8305_v48  ;;  %12915 = vmatprep.mubr.msk.f32.mxu0 %vm372_vm1, %v8097_v15 }
 0x60e   : > { %12941 = vmatprep.mubr.msk.f32.mxu1 %vm372_vm1, %v8306_v41  ;;  %v11806_v41 = vld [vmem:[%s16991_s6 + $0x98] sm:$0xff] }
 0x60f   : > { %9277 = vmatprep.subr.mxu1 %v11806_v41 }
 0x610   : > { %12916 = vmatmul.mubr.msk.f32.gmra.mxu0 %vm372_vm1, %v8098_v33 }
 0x611   : > { %12942 = vmatmul.mubr.msk.f32.gmra.mxu1 %vm372_vm1, %v8307_v7  ;;  %12918 = vmatprep.mubr.msk.f32.mxu0 %vm372_vm1, %v8099_v40 }
 0x612   : > { %8912 = vmatprep.mubr.f32.mxu1 %v17311_v2 }
 0x614   : > { %12919 = vmatmul.mubr.msk.f32.gmra.mxu0 %vm372_vm1, %v8100_v39 }
 0x615   : > { %12946 = vmatprep.mubr.msk.f32.mxu0 %vm372_vm1, %v15708_v35 }
 0x618   : > { %12947 = vmatmul.mubr.msk.f32.vlgmr.msra.gmra.mxu0 %vm372_vm1, %v15713_v0 }
 0x619   : > { %12949 = vmatprep.mubr.msk.f32.mxu0 %vm372_vm1, %v7682_v50  ;;  %9070 = vmatpush1.msra.mxu0 %v11773_v21 }
 0x61a   : > { %9513 = vmatprep.subr.mxu0 %v11822_v56 }
 0x61c   : > { %12950 = vmatmul.mubr.msk.f32.gmra.mxu0 %vm372_vm1, %v7683_v23 }
 0x61d   : > { %12952 = vmatprep.mubr.msk.f32.mxu0 %vm372_vm1, %v7684_v63 }
 0x620   : > { %12953 = vmatmul.mubr.msk.f32.gmra.mxu0 %vm372_vm1, %v7685_v54 }
 0x621   : > { %12955 = vmatprep.mubr.msk.f32.mxu0 %vm372_vm1, %v7686_v16 }
 0x624   : > { %12956 = vmatmul.mubr.msk.f32.gmra.mxu0 %vm372_vm1, %v8508_v47 }
 0x625   : > { %12958 = vmatprep.mubr.msk.f32.mxu0 %vm372_vm1, %v8509_v62 }
 0x628   : > { %12959 = vmatmul.mubr.msk.f32.gmra.mxu0 %vm372_vm1, %v8510_v29 }
 0x629   : > { %12961 = vmatprep.mubr.msk.f32.mxu0 %vm372_vm1, %v8511_v14 }
 0x62c   : > { %12962 = vmatmul.mubr.msk.f32.gmra.mxu0 %vm372_vm1, %v8512_v49 }
 0x62d   : > { %12964 = vmatprep.mubr.msk.f32.mxu0 %vm372_vm1, %v8513_v3 }
 0x630   : > { %12965 = vmatmul.mubr.msk.f32.gmra.mxu0 %vm372_vm1, %v8514_v37 }
 0x631   : > { %9103 = vmatprep.mubr.f32.mxu0 %v17311_v2 }
 0x688   : > { %v15813_v45 = vpop.f32.mrf.mxu0 }
 0x689   : > { %v15815_v58 = vpop.f32.mrf.mxu1 }
 0x68a   : > { %v15817_v27 = vpop.f32.mrf.mxu0 }
 0x68b   : > { %v15819_v8 = vpop.f32.mrf.mxu1 }
 0x68c   : > { %v15821_v9 = vpop.f32.mrf.mxu0 }
 0x68d   : > { %v15823_v35 = vpop.f32.mrf.mxu1 }
 0x68e   : > { %v15825_v46 = vpop.f32.mrf.mxu0 }
 0x68f   : > { %v15827_v0 = vpop.f32.mrf.mxu1 }
 0x690   : > { %v15829_v34 = vpop.f32.mrf.mxu0 }
 0x691   : > { %v15831_v50 = vpop.f32.mrf.mxu1 }
 0x692   : > { %v15833_v20 = vpop.f32.mrf.mxu0 }
 0x693   : > { %v15835_v23 = vpop.f32.mrf.mxu1 }
 0x694   : > { %v15837_v22 = vpop.f32.mrf.mxu0 }
 0x695   : > { %v15839_v63 = vpop.f32.mrf.mxu1 }
 0x696   : > { %v15841_v19 = vpop.f32.mrf.mxu0 }
 0x697   : > { %v15843_v54 = vpop.f32.mrf.mxu1 }
 0x698   : > { %v15845_v16 = vpop.f32.mrf.mxu0 }
 0x699   : > { %v15847_v57 = vpop.f32.mrf.mxu1 }
 0x69a   : > { %v15849_v12 = vpop.f32.mrf.mxu0 }
 0x69b   : > { %v15851_v13 = vpop.f32.mrf.mxu1 }
 0x69c   : > { %v15853_v32 = vpop.f32.mrf.mxu0 }
 0x69d   : > { %v12879_v18 = vpop.f32.mrf.mxu1 }
 0x69e   : > { %v15855_v28 = vpop.f32.mrf.mxu0 }
 0x69f   : > { %v8004_v48 = vpop.f32.mrf.mxu1 }
 0x6a0   : > { %v12856_v55 = vpop.f32.mrf.mxu0 }
 0x6a1   : > { %v12882_v15 = vpop.f32.mrf.mxu1 }
 0x6a2   : > { %v7797_v7 = vpop.f32.mrf.mxu0 }
 0x6a3   : > { %v15860_v33 = vpop.f32.mrf.mxu1 }
 0x6a4   : > { %v12859_v40 = vpop.f32.mrf.mxu0 }
 0x6a5   : > { %v15862_v39 = vpop.f32.mrf.mxu1 }
 0x6a6   : > { %v7807_v47 = vpop.f32.mrf.mxu0 }
 0x6a7   : > { %v15864_v62 = vpop.f32.mrf.mxu1 }
 0x6a8   : > { %v12862_v29 = vpop.f32.mrf.mxu0 }
 0x6a9   : > { %v15866_v14 = vpop.f32.mrf.mxu1 }
 0x6aa   : > { %v7817_v49 = vpop.f32.mrf.mxu0 }
 0x6ab   : > { %v15868_v3 = vpop.f32.mrf.mxu1 }
 0x6ac   : > { %17312 = vst [vmem:[#allocation73_spill] sm:$0xff] %v15868_v3  ;;  %v12865_v37 = vpop.f32.mrf.mxu0  ;;  %v7620_v3 = vadd.f32 %v15805_v31, %v15813_v45  ;;  %v7625_v31 = vadd.f32 %v15819_v8, %v15825_v46 }
 0x6ad   : > { %v15870_v17 = vpop.f32.mrf.mxu1 }
 0x6ae   : > { %17313 = vst [vmem:[#allocation63_spill] sm:$0xff] %v15870_v17  ;;  %v15872_v21 = vpop.f32.mrf.mxu0  ;;  %v7605_v17 = vadd.f32 %v15803_v44, %v15811_v25 }
 0x6af   : > { %v15874_v43 = vpop.f32.mrf.mxu1 }
 0x6b0   : > { %17314 = vst [vmem:[#allocation32_spill] sm:$0xff] %v15874_v43  ;;  %v15876_v60 = vpop.f32.mrf.mxu0 }
 0x6b1   : > { %v15878_v56 = vpop.f32.mrf.mxu1 }
 0x6b2   : > { %17315 = vst [vmem:[#allocation48_spill] sm:$0xff] %v15878_v56  ;;  %v15880_v41 = vpop.f32.mrf.mxu0 }
 0x6b3   : > { %17316 = vst [vmem:[#allocation38_spill] sm:$0xff] %v15880_v41  ;;  %v15882_v5 = vpop.f32.mrf.mxu1  ;;  %v7866_v41 = vadd.f32 %v7797_v7, %v7605_v17 }
 0x6b4   : > { %17317 = vst [vmem:[#allocation41_spill] sm:$0xff] %v15882_v5  ;;  %v15884_v51 = vpop.f32.mrf.mxu0 }
 0x6b5   : > { %17318 = vst [vmem:[#allocation65_spill] sm:$0xff] %v15884_v51  ;;  %v15886_v4 = vpop.f32.mrf.mxu1 }
 0x6b6   : > { %17319 = vst [vmem:[#allocation47_spill] sm:$0xff] %v15886_v4  ;;  %v15888_v59 = vpop.f32.mrf.mxu0 }
 0x6b7   : > { %17320 = vst [vmem:[#allocation66_spill] sm:$0xff] %v15888_v59  ;;  %v15890_v30 = vpop.f32.mrf.mxu1 }
 0x6b8   : > { %17321 = vst [vmem:[#allocation49_spill] sm:$0xff] %v15890_v30  ;;  %v15892_v61 = vpop.f32.mrf.mxu0  ;;  %v7610_v30 = vadd.f32 %v15801_v52, %v15807_v53  ;;  %v7615_v52 = vadd.f32 %v15809_v11, %v15817_v27  ;;  %v7869_v53 = vadd.f32 %v12859_v40, %v7620_v3  ;;  %v7870_v27 = vadd.f32 %v7817_v49, %v7625_v31 }
 0x6b9   : > { %17322 = vst [vmem:[#allocation44_spill] sm:$0xff] %v15892_v61  ;;  %v12925_v2 = vpop.f32.mrf.mxu1 }
 0x6ba   : > { %v15894_v42 = vpop.f32.mrf.mxu0  ;;  %v7867_v51 = vadd.f32 %v12856_v55, %v7610_v30  ;;  %v7868_v30 = vadd.f32 %v7807_v47, %v7615_v52  ;;  %v8073_v55 = vadd.f32 %v8004_v48, %v7866_v41  ;;  %v8076_v11 = vadd.f32 %v12882_v15, %v7869_v53 }
 0x6bb   : > { %17323 = vst [vmem:[#allocation68_spill] sm:$0xff] %v15894_v42  ;;  %v8418_v1 = vpop.f32.mrf.mxu1 }
 0x6bc   : > { %v12902_v26 = vpop.f32.mrf.mxu0 }
 0x6bd   : > { %v12928_v24 = vpop.f32.mrf.mxu1 }
 0x6be   : > { %v8211_v38 = vpop.f32.mrf.mxu0 }
 0x6bf   : > { %v15896_v36 = vpop.f32.mrf.mxu1  ;;  %v8280_v17 = vadd.f32 %v8211_v38, %v8073_v55  ;;  %v7645_v38 = vadd.f32 %v15835_v23, %v15841_v19  ;;  %v8077_v19 = vadd.f32 %v15864_v62, %v7870_v27 }
 0x6c0   : > { %v12905_v10 = vpop.f32.mrf.mxu0 }
 0x6c1   : > { %v15904_v61 = vpop.f32.mrf.mxu1  ;;  %v8487_v48 = vadd.f32 %v8418_v1, %v8280_v17  ;;  %v7665_v1 = vadd.f32 %v15851_v13, %v15855_v28 }
 0x6c2   : > { %v8221_v56 = vpop.f32.mrf.mxu0  ;;  %17326 = vst [vmem:[#allocation74_spill] sm:$0xff] %v15904_v61  ;;  %v8074_v61 = vadd.f32 %v12879_v18, %v7867_v51  ;;  %v7640_v51 = vadd.f32 %v15823_v35, %v15829_v34 }
 0x6c4   : > { %v12908_v5 = vpop.f32.mrf.mxu0  ;;  %v8281_v25 = vadd.f32 %v12902_v26, %v8074_v61  ;;  %v7635_v26 = vadd.f32 %v15827_v0, %v15833_v20  ;;  %v8283_v61 = vadd.f32 %v12905_v10, %v8076_v11  ;;  %v7873_v46 = vadd.f32 %v12865_v37, %v7640_v51  ;;  %v15947_v0 = vld [vmem:[%s16990_s5 + $0x3] ss:$0 sm:$0xff] }
 0x6c5   : > { %v7660_v10 = vadd.f32 %v15839_v63, %v15845_v16 }
 0x6c6   : > { %v8231_v43 = vpop.f32.mrf.mxu0  ;;  %v8488_v8 = vadd.f32 %v12925_v2, %v8281_v25  ;;  %v7872_v23 = vadd.f32 %v15872_v21, %v7635_v26  ;;  %v8490_v63 = vadd.f32 %v12928_v24, %v8283_v61  ;;  %v17331_v24 = vld [vmem:[#allocation73_spill] sm:$0xff]  ;;  %v17337_v26 = vld [vmem:[#allocation10_spill] sm:$0xff] }
 0x6c7   : > { %v17334_v25 = vld [vmem:[#allocation65_spill] sm:$0xff] }
 0x6c8   : > { %v15898_v4 = vpop.f32.mrf.mxu0  ;;  %v7877_v55 = vadd.f32 %v17334_v25, %v7660_v10  ;;  %v17340_v10 = vld [vmem:[#allocation32_spill] sm:$0xff] }
 0x6c9   : > { %17324 = vst [vmem:[#allocation70_spill] sm:$0xff] %v15898_v4  ;;  %v15914_v4 = vpop.f32.mrf.mxu1  ;;  %v17332_v13 = vld [vmem:[#allocation74_spill] sm:$0xff] }
 0x6ca   : > { %v15900_v59 = vpop.f32.mrf.mxu0 }
 0x6cb   : > { %17325 = vst [vmem:[#allocation72_spill] sm:$0xff] %v15900_v59 }
 0x6cc   : > { %v15906_v42 = vpop.f32.mrf.mxu0 }
 0x6cd   : > { %17327 = vst [vmem:[#allocation75_spill] sm:$0xff] %v15906_v42  ;;  %v7630_v42 = vadd.f32 %v15815_v58, %v15821_v9  ;;  %v8075_v9 = vadd.f32 %v15860_v33, %v7868_v30  ;;  %v7670_v33 = vadd.f32 %v15847_v57, %v15853_v32  ;;  %v17329_v32 = vld [vmem:[#allocation38_spill] sm:$0xff] }
 0x6ce   : > { %v15910_v6 = vpop.f32.mrf.mxu0  ;;  %v7874_v3 = vadd.f32 %v17329_v32, %v7645_v38  ;;  %v17338_v38 = vld [vmem:[#allocation66_spill] sm:$0xff] }
 0x6cf   : > { %17328 = vst [vmem:[#allocation76_spill] sm:$0xff] %v15910_v6  ;;  %v15924_v6 = vpop.f32.mrf.mxu1  ;;  %v7871_v45 = vadd.f32 %v12862_v29, %v7630_v42  ;;  %v7650_v42 = vadd.f32 %v15831_v50, %v15837_v22  ;;  %v8282_v20 = vadd.f32 %v8221_v56, %v8075_v9  ;;  %v7655_v50 = vadd.f32 %v15843_v54, %v15849_v12 }
 0x6d0   : > { %v15916_v59 = vpop.f32.mrf.mxu0  ;;  %v8284_v54 = vadd.f32 %v8231_v43, %v8077_v19  ;;  %v8080_v12 = vadd.f32 %v15866_v14, %v7873_v46  ;;  %v17330_v37 = vld [vmem:[#allocation70_spill] sm:$0xff]  ;;  %v8079_v56 = vadd.f32 %v17331_v24, %v7872_v23  ;;  %v17333_v43 = vld [vmem:[#allocation11_spill] sm:$0xff] }
 0x6d1   : > { %v15937_v18 = vpop.f32.mrf.mxu1  ;;  %v8078_v35 = vadd.f32 %v15862_v39, %v7871_v45  ;;  %v7875_v16 = vadd.f32 %v15876_v60, %v7650_v42  ;;  %v8489_v57 = vadd.f32 %v15896_v36, %v8282_v20  ;;  %v17336_v45 = vld [vmem:[#allocation63_spill] sm:$0xff]  ;;  %v7876_v46 = vadd.f32 %v17338_v38, %v7655_v50  ;;  %v17344_v50 = vld [vmem:[#allocation48_spill] sm:$0xff] }
 0x6d2   : > { %v15922_v44 = vpop.f32.mrf.mxu0  ;;  %v8287_v21 = vadd.f32 %v17330_v37, %v8080_v12  ;;  %v17335_v31 = vld [vmem:[#allocation72_spill] sm:$0xff]  ;;  %v8491_v51 = vadd.f32 %v15914_v4, %v8284_v54  ;;  %v8081_v20 = vadd.f32 %v17340_v10, %v7874_v3  ;;  %v17341_v4 = vld [vmem:[#allocation13_spill] sm:$0xff]  ;;  %v8084_v54 = vadd.f32 %v17344_v50, %v7877_v55  ;;  %v17355_v50 = vld [vmem:[#allocation19_spill] sm:$0xff] }
 0x6d3   : > { %v8285_v22 = vadd.f32 %v12908_v5, %v8078_v35  ;;  %v12937_v40 = vpop.f32.mrf.mxu1  ;;  %v8286_v36 = vadd.f32 %v17335_v31, %v8079_v56  ;;  %v8082_v17 = vadd.f32 %v17336_v45, %v7875_v16  ;;  %v17346_v3 = vld [vmem:[#allocation68_spill] sm:$0xff] }
 0x6d4   : > { %v15928_v7 = vpop.f32.mrf.mxu0  ;;  %v17339_v35 = vld [vmem:[#allocation75_spill] sm:$0xff]  ;;  %v7878_v37 = vadd.f32 %v17346_v3, %v7665_v1 }
 0x6d5   : > { %v8492_v28 = vadd.f32 %v17332_v13, %v8285_v22  ;;  %v8458_v60 = vpop.f32.mrf.mxu1 }
 0x6d6   : > { %v15932_v58 = vpop.f32.mrf.mxu0 }
 0x6d7   : > { %v12940_v27 = vpop.f32.mrf.mxu1 }
 0x6d8   : > { %v12948_v34 = vpop.f32.mrf.mxu0 }
 0x6d9   : > { %v8695_v2 = vadd.f32 %v12948_v34, %v8488_v8  ;;  %v8289_v34 = vadd.f32 %v17339_v35, %v8082_v17  ;;  %v11821_v17 = vld [vmem:[%s16991_s6 + $0xa0] sm:$0xff] }
 0x6da   : > { %v8625_v15 = vpop.f32.mrf.mxu0 }
 0x6db   : > { %v8717_v39 = vadd.f32 %v15947_v0, %v8695_v2  ;;  %v8694_v47 = vadd.f32 %v8625_v15, %v8487_v48  ;;  %v8494_v48 = vadd.f32 %v15924_v6, %v8287_v21  ;;  %v17345_v6 = vld [vmem:[#allocation12_spill] sm:$0xff]  ;;  %v17347_v21 = vld [vmem:[#allocation41_spill] sm:$0xff] }
 0x6dc   : > { %v12951_v5 = vpop.f32.mrf.mxu0  ;;  %v8083_v24 = vadd.f32 %v17347_v21, %v7876_v46 }
 0x6dd   : > { %v8731_v29 = vmax.f32 %v8717_v39, 0.0  ;;  %v8716_v62 = vadd.f32 %v15947_v0, %v8694_v47  ;;  %v8697_v49 = vadd.f32 %v12951_v5, %v8490_v63  ;;  %v17342_v39 = vld [vmem:[#allocation44_spill] sm:$0xff]  ;;  %v8493_v5 = vadd.f32 %v15937_v18, %v8286_v36  ;;  %v17348_v18 = vld [vmem:[#allocation15_spill] sm:$0xff] }
 0x6de   : > { %v8635_v41 = vpop.f32.mrf.mxu0  ;;  %v7879_v47 = vadd.f32 %v17342_v39, %v7670_v33  ;;  %v17343_v63 = vld [vmem:[#allocation76_spill] sm:$0xff]  ;;  %v8291_v33 = vadd.f32 %v15916_v59, %v8084_v54  ;;  %v17350_v59 = vld [vmem:[#allocation14_spill] sm:$0xff] }
 0x6df   : > { %v8745_v52 = vmul.f32 %v8731_v29, %v17333_v43  ;;  %v8730_v14 = vmax.f32 %v8716_v62, 0.0  ;;  %v8719_v53 = vadd.f32 %v15947_v0, %v8697_v49  ;;  %v8696_v30 = vadd.f32 %v8635_v41, %v8489_v57  ;;  %v8468_v29 = vpop.f32.mrf.mxu1 }
 0x6e0   : > { %v12954_v11 = vpop.f32.mrf.mxu0  ;;  %v8288_v16 = vadd.f32 %v17343_v63, %v8081_v20  ;;  %v8496_v41 = vadd.f32 %v12937_v40, %v8289_v34 }
 0x6e1   : > { %8759 = vst.msk [vmem:[#allocation2 + $0x32] sm:$0xff] %vm372_vm1, %v8745_v52  ;;  %v8744_v61 = vmul.f32 %v8730_v14, %v17337_v26  ;;  %v8733_v9 = vmax.f32 %v8719_v53, 0.0  ;;  %v8718_v8 = vadd.f32 %v15947_v0, %v8696_v30  ;;  %v8699_v42 = vadd.f32 %v12954_v11, %v8492_v28  ;;  %v17349_v53 = vld [vmem:[#allocation47_spill] sm:$0xff]  ;;  %v12943_v55 = vpop.f32.mrf.mxu1 }
 0x6e2   : > { %v8645_v2 = vpop.f32.mrf.mxu0  ;;  %v8290_v14 = vadd.f32 %v15922_v44, %v8083_v24  ;;  %v8086_v30 = vadd.f32 %v17349_v53, %v7879_v47  ;;  %v8495_v1 = vadd.f32 %v8458_v60, %v8288_v16  ;;  %v8498_v11 = vadd.f32 %v12940_v27, %v8291_v33  ;;  %v11838_v27 = vld [vmem:[%s16991_s6 + $0xb8] sm:$0xff] }
 0x6e3   : > { %8758 = vst.msk [vmem:[#allocation2 + $0x2a] sm:$0xff] %vm372_vm1, %v8744_v61  ;;  %v8747_v23 = vmul.f32 %v8733_v9, %v17341_v4  ;;  %v8732_v22 = vmax.f32 %v8718_v8, 0.0  ;;  %v8721_v19 = vadd.f32 %v15947_v0, %v8699_v42  ;;  %v8698_v15 = vadd.f32 %v8645_v2, %v8491_v51  ;;  %v17351_v51 = vld [vmem:[#allocation49_spill] sm:$0xff]  ;;  %v11805_v8 = vld [vmem:[%s16991_s6 + $0x90] sm:$0xff]  ;;  %v8478_v4 = vpop.f32.mrf.mxu1 }
 0x6e4   : > { %v12957_v12 = vpop.f32.mrf.mxu0  ;;  %v8293_v44 = vadd.f32 %v15928_v7, %v8086_v30  ;;  %v8085_v26 = vadd.f32 %v17351_v51, %v7878_v37  ;;  %v17352_v42 = vld [vmem:[#allocation17_spill] sm:$0xff]  ;;  %v11854_v7 = vld [vmem:[%s16991_s6 + $0xc8] sm:$0xff]  ;;  %v8497_v10 = vadd.f32 %v8468_v29, %v8290_v14 }
 0x6e5   : > { %8761 = vst.msk [vmem:[#allocation2 + $0x42] sm:$0xff] %vm372_vm1, %v8747_v23  ;;  %v8746_v62 = vmul.f32 %v8732_v22, %v17345_v6  ;;  %v8735_v49 = vmax.f32 %v8721_v19, 0.0  ;;  %v8720_v57 = vadd.f32 %v15947_v0, %v8698_v15  ;;  %v8701_v32 = vadd.f32 %v12957_v12, %v8494_v48  ;;  %v17354_v23 = vld [vmem:[#allocation16_spill] sm:$0xff] }
 0x6e6   : > { %v8655_v56 = vpop.f32.mrf.mxu0  ;;  %v8292_v20 = vadd.f32 %v15932_v58, %v8085_v26  ;;  %v17353_v48 = vmov 0.0   ;;  %v8500_v47 = vadd.f32 %v12943_v55, %v8293_v44 }
 0x6e7   : > { %8760 = vst.msk [vmem:[#allocation2 + $0x3a] sm:$0xff] %vm372_vm1, %v8746_v62  ;;  %v8749_v13 = vmul.f32 %v8735_v49, %v17348_v18  ;;  %v8734_v28 = vmax.f32 %v8720_v57, 0.0  ;;  %v8723_v43 = vadd.f32 %v15947_v0, %v8701_v32  ;;  %v8700_v52 = vadd.f32 %v8655_v56, %v8493_v5  ;;  %v17356_v49 = vld [vmem:[#allocation18_spill] sm:$0xff]  ;;  %v17357_v56 = vld [vmem:[#allocation21_spill] sm:$0xff] }
 0x6e8   : > { %v12960_v25 = vpop.f32.mrf.mxu0  ;;  %v8499_v6 = vadd.f32 %v8478_v4, %v8292_v20  ;;  %v11853_v20 = vld [vmem:[%s16991_s6 + $0xc0] sm:$0xff] }
 0x6e9   : > { %8763 = vst.msk [vmem:[#allocation2 + $0x52] sm:$0xff] %vm372_vm1, %v8749_v13  ;;  %v8748_v31 = vmul.f32 %v8734_v28, %v17350_v59  ;;  %v8737_v40 = vmax.f32 %v8723_v43, 0.0  ;;  %v8722_v36 = vadd.f32 %v15947_v0, %v8700_v52  ;;  %v8703_v45 = vadd.f32 %v12960_v25, %v8496_v41  ;;  %v17358_v43 = vld [vmem:[#allocation20_spill] sm:$0xff] }
 0x6ea   : > { %v8665_v61 = vpop.f32.mrf.mxu0  ;;  %v8789_v60 = vld [vmem:[#allocation2 + $0x28] sm:$0xff]  ;;  %v8790_v16 = vld [vmem:[#allocation2 + $0x30] sm:$0xff] }
 0x6eb   : > { %v8772_v9 = vld [vmem:[#allocation2 + $0x27] sm:$0xff]  ;;  %8762 = vst.msk [vmem:[#allocation2 + $0x4a] sm:$0xff] %vm372_vm1, %v8748_v31  ;;  %v8751_v38 = vmul.f32 %v8737_v40, %v17352_v42  ;;  %v8736_v46 = vmax.f32 %v8722_v36, 0.0  ;;  %v8725_v35 = vadd.f32 %v15947_v0, %v8703_v45  ;;  %v8702_v34 = vadd.f32 %v8665_v61, %v8495_v1  ;;  %11777 = vmatmul.mubr.msk.f32.vlgmr.msra.gmra.mxu1 %vm372_vm1, %v8789_v60  ;;  %v8773_v58 = vld [vmem:[#allocation2 + $0x2f] sm:$0xff] }
 0x6ec   : > { %11791 = vmatmul.mubr.msk.f32.vlgmr.msra.gmra.mxu0 %vm372_vm1, %v8772_v9  ;;  %v12963_v2 = vpop.f32.mrf.mxu0  ;;  %8918 = vmatprep.mubr.f32.mxu1 %v17353_v48  ;;  %v17359_v1 = vld [vmem:[#allocation23_spill] sm:$0xff]  ;;  %v17360_v31 = vld [vmem:[#allocation22_spill] sm:$0xff] }
 0x6ed   : > { %9514 = vmatpush1.msra.mxu0 %v11821_v17  ;;  %8765 = vst.msk [vmem:[#allocation2 + $0x62] sm:$0xff] %vm372_vm1, %v8751_v38  ;;  %v8750_v22 = vmul.f32 %v8736_v46, %v17354_v23  ;;  %v8739_v19 = vmax.f32 %v8725_v35, 0.0  ;;  %v8724_v15 = vadd.f32 %v15947_v0, %v8702_v34  ;;  %v8705_v39 = vadd.f32 %v12963_v2, %v8498_v11  ;;  %v9188_v2 = vld [vmem:[#allocation2 + $0x29] sm:$0xff] }
 0x6ee   : > { %9109 = vmatprep.mubr.f32.mxu0 %v17353_v48  ;;  %9278 = vmatpush1.msra.mxu1 %v11805_v8  ;;  %v8675_v63 = vpop.f32.mrf.mxu0  ;;  %v8791_v21 = vld [vmem:[#allocation2 + $0x38] sm:$0xff]  ;;  %v8792_v30 = vld [vmem:[#allocation2 + $0x40] sm:$0xff]  ;;  %v9424_v4 = vld [vmem:[#allocation2 + $0x2a] sm:$0xff] }
 0x6ef   : > { %9985 = vmatprep.subr.mxu0 %v11854_v7  ;;  %9749 = vmatprep.subr.mxu1 %v11838_v27  ;;  %8764 = vst.msk [vmem:[#allocation2 + $0x5a] sm:$0xff] %vm372_vm1, %v8750_v22  ;;  %v8753_v54 = vmul.f32 %v8739_v19, %v17355_v50  ;;  %v8738_v12 = vmax.f32 %v8724_v15, 0.0  ;;  %v8727_v5 = vadd.f32 %v15947_v0, %v8705_v39  ;;  %v8774_v24 = vld [vmem:[#allocation2 + $0x37] sm:$0xff]  ;;  %v8775_v25 = vld [vmem:[#allocation2 + $0x3f] sm:$0xff] }
 0x6f0   : > { %v8704_v29 = vadd.f32 %v8675_v63, %v8497_v10  ;;  %11778 = vmatmul.mubr.msk.f32.gmra.mxu1 %vm372_vm1, %v8790_v16  ;;  %11792 = vmatmul.mubr.msk.f32.gmra.mxu0 %vm372_vm1, %v8773_v58  ;;  %v12966_v62 = vpop.f32.mrf.mxu0  ;;  %v11837_v23 = vld [vmem:[%s16991_s6 + $0xb0] sm:$0xff]  ;;  %v10762_v22 = vld [vmem:[%s16993_s8 + $0x18] sm:$0xff]  ;;  %v9191_v16 = vld [vmem:[#allocation2 + $0x41] sm:$0xff] }
 0x6f1   : > { %8924 = vmatprep.mubr.f32.mxu1 %v17353_v48  ;;  %9115 = vmatprep.mubr.f32.mxu0 %v17353_v48  ;;  %8767 = vst.msk [vmem:[#allocation2 + $0x72] sm:$0xff] %vm372_vm1, %v8753_v54  ;;  %v8752_v57 = vmul.f32 %v8738_v12, %v17356_v49  ;;  %v8741_v32 = vmax.f32 %v8727_v5, 0.0  ;;  %v8707_v37 = vadd.f32 %v12966_v62, %v8500_v47  ;;  %v11870_v19 = vld [vmem:[%s16991_s6 + $0xd8] sm:$0xff]  ;;  %v9427_v58 = vld [vmem:[#allocation2 + $0x42] sm:$0xff] }
 0x6f2   : > { %v8726_v3 = vadd.f32 %v15947_v0, %v8704_v29  ;;  %v8685_v33 = vpop.f32.mrf.mxu0  ;;  %v8776_v36 = vld [vmem:[#allocation2 + $0x47] sm:$0xff]  ;;  %v8794_v45 = vld [vmem:[#allocation2 + $0x50] sm:$0xff]  ;;  %v9190_v47 = vld [vmem:[#allocation2 + $0x39] sm:$0xff] }
 0x6f3   : > { %8766 = vst.msk [vmem:[#allocation2 + $0x6a] sm:$0xff] %vm372_vm1, %v8752_v57  ;;  %v8755_v41 = vmul.f32 %v8741_v32, %v17357_v56  ;;  %v8729_v13 = vadd.f32 %v15947_v0, %v8707_v37  ;;  %v8706_v28 = vadd.f32 %v8685_v33, %v8499_v6  ;;  %v8777_v17 = vld [vmem:[#allocation2 + $0x4f] sm:$0xff]  ;;  %v9426_v63 = vld [vmem:[#allocation2 + $0x3a] sm:$0xff] }
 0x6f4   : > { %v8740_v18 = vmax.f32 %v8726_v3, 0.0  ;;  %11779 = vmatmul.mubr.msk.f32.gmra.mxu1 %vm372_vm1, %v8791_v21  ;;  %11793 = vmatmul.mubr.msk.f32.gmra.mxu0 %vm372_vm1, %v8774_v24  ;;  %v9189_v15 = vld [vmem:[#allocation2 + $0x31] sm:$0xff]  ;;  %v9192_v50 = vld [vmem:[#allocation2 + $0x49] sm:$0xff] }
 0x6f5   : > { %8930 = vmatprep.mubr.f32.mxu1 %v17353_v48  ;;  %9121 = vmatprep.mubr.f32.mxu0 %v17353_v48  ;;  %8769 = vst.msk [vmem:[#allocation2 + $0x82] sm:$0xff] %vm372_vm1, %v8755_v41  ;;  %v8743_v14 = vmax.f32 %v8729_v13, 0.0  ;;  %v8728_v53 = vadd.f32 %v15947_v0, %v8706_v28  ;;  %v8793_v0 = vld [vmem:[#allocation2 + $0x48] sm:$0xff]  ;;  %v9425_v39 = vld [vmem:[#allocation2 + $0x32] sm:$0xff] }
 0x6f6   : > { %v8754_v52 = vmul.f32 %v8740_v18, %v17358_v43  ;;  %v8795_v11 = vld [vmem:[#allocation2 + $0x58] sm:$0xff]  ;;  %v8796_v51 = vld [vmem:[#allocation2 + $0x60] sm:$0xff]  ;;  %v9428_v54 = vld [vmem:[#allocation2 + $0x4a] sm:$0xff] }
 0x6f7   : > { %v8757_v55 = vmul.f32 %v8743_v14, %v17359_v1  ;;  %v8742_v59 = vmax.f32 %v8728_v53, 0.0  ;;  %v8778_v44 = vld [vmem:[#allocation2 + $0x57] sm:$0xff]  ;;  %v8779_v26 = vld [vmem:[#allocation2 + $0x5f] sm:$0xff]  ;;  %v9896_v14 = vld [vmem:[#allocation2 + $0x2c] sm:$0xff] }
 0x6f8   : > { %8768 = vst.msk [vmem:[#allocation2 + $0x7a] sm:$0xff] %vm372_vm1, %v8754_v52  ;;  %11780 = vmatmul.mubr.msk.f32.gmra.mxu1 %vm372_vm1, %v8792_v30  ;;  %11794 = vmatmul.mubr.msk.f32.gmra.mxu0 %vm372_vm1, %v8775_v25  ;;  %v9193_v12 = vld [vmem:[#allocation2 + $0x51] sm:$0xff]  ;;  %v9194_v29 = vld [vmem:[#allocation2 + $0x59] sm:$0xff]  ;;  %v9195_v62 = vld [vmem:[#allocation2 + $0x61] sm:$0xff] }
 0x6f9   : > { %8936 = vmatprep.mubr.f32.mxu1 %v17353_v48  ;;  %9127 = vmatprep.mubr.f32.mxu0 %v17353_v48  ;;  %8771 = vst.msk [vmem:[#allocation2 + $0x92] sm:$0xff] %vm372_vm1, %v8757_v55  ;;  %v8756_v40 = vmul.f32 %v8742_v59, %v17360_v31  ;;  %v9429_v5 = vld [vmem:[#allocation2 + $0x52] sm:$0xff]  ;;  %v9430_v6 = vld [vmem:[#allocation2 + $0x5a] sm:$0xff]  ;;  %v9431_v49 = vld [vmem:[#allocation2 + $0x62] sm:$0xff] }
 0x6fa   : > { %v8797_v61 = vld [vmem:[#allocation2 + $0x68] sm:$0xff]  ;;  %v8798_v9 = vld [vmem:[#allocation2 + $0x70] sm:$0xff]  ;;  %v10759_v30 = vld [vmem:[%s16993_s8] sm:$0xff] }
 0x6fb   : > { %8770 = vst.msk [vmem:[#allocation2 + $0x8a] sm:$0xff] %vm372_vm1, %v8756_v40  ;;  %v8780_v60 = vld [vmem:[#allocation2 + $0x67] sm:$0xff]  ;;  %v8781_v8 = vld [vmem:[#allocation2 + $0x6f] sm:$0xff]  ;;  %v9662_v59 = vld [vmem:[#allocation2 + $0x3b] sm:$0xff] }
 0x6fc   : > { %11781 = vmatmul.mubr.msk.f32.gmra.mxu1 %vm372_vm1, %v8793_v0  ;;  %11795 = vmatmul.mubr.msk.f32.gmra.mxu0 %vm372_vm1, %v8776_v36  ;;  %v9196_v57 = vld [vmem:[#allocation2 + $0x69] sm:$0xff]  ;;  %v9197_v3 = vld [vmem:[#allocation2 + $0x71] sm:$0xff]  ;;  %v9898_v31 = vld [vmem:[#allocation2 + $0x3c] sm:$0xff] }
 0x6fd   : > { %8942 = vmatprep.mubr.f32.mxu1 %v17353_v48  ;;  %9133 = vmatprep.mubr.f32.mxu0 %v17353_v48  ;;  %v9432_v32 = vld [vmem:[#allocation2 + $0x6a] sm:$0xff]  ;;  %v9433_v37 = vld [vmem:[#allocation2 + $0x72] sm:$0xff]  ;;  %v9435_v56 = vld [vmem:[#allocation2 + $0x82] sm:$0xff] }
 0x6fe   : > { %v10761_v43 = vld [vmem:[%s16993_s8 + $0x10] sm:$0xff]  ;;  %v10760_v53 = vld [vmem:[%s16993_s8 + $0x8] sm:$0xff] }
 0x6ff   : > { %v8799_v42 = vld [vmem:[#allocation2 + $0x78] sm:$0xff]  ;;  %v8800_v46 = vld [vmem:[#allocation2 + $0x80] sm:$0xff]  ;;  %v9660_v52 = vld [vmem:[#allocation2 + $0x2b] sm:$0xff] }
 0x700   : > { %11782 = vmatmul.mubr.msk.f32.gmra.mxu1 %vm372_vm1, %v8794_v45  ;;  %11796 = vmatmul.mubr.msk.f32.gmra.mxu0 %vm372_vm1, %v8777_v17  ;;  %v8782_v38 = vld [vmem:[#allocation2 + $0x77] sm:$0xff]  ;;  %v8783_v35 = vld [vmem:[#allocation2 + $0x7f] sm:$0xff]  ;;  %v9664_v36 = vld [vmem:[#allocation2 + $0x4b] sm:$0xff] }
 0x701   : > { %8948 = vmatprep.mubr.f32.mxu1 %v17353_v48  ;;  %9139 = vmatprep.mubr.f32.mxu0 %v17353_v48  ;;  %v9198_v33 = vld [vmem:[#allocation2 + $0x79] sm:$0xff]  ;;  %v9199_v24 = vld [vmem:[#allocation2 + $0x81] sm:$0xff]  ;;  %v11869_v25 = vld [vmem:[%s16991_s6 + $0xd0] sm:$0xff] }
 0x702   : > { %v8801_v34 = vld [vmem:[#allocation2 + $0x88] sm:$0xff]  ;;  %v8802_v27 = vld [vmem:[#allocation2 + $0x90] sm:$0xff]  ;;  %v9434_v21 = vld [vmem:[#allocation2 + $0x7a] sm:$0xff] }
 0x703   : > { %v8784_v7 = vld [vmem:[#allocation2 + $0x87] sm:$0xff]  ;;  %v8785_v10 = vld [vmem:[#allocation2 + $0x8f] sm:$0xff] }
 0x704   : > { %11783 = vmatmul.mubr.msk.f32.gmra.mxu1 %vm372_vm1, %v8795_v11  ;;  %11797 = vmatmul.mubr.msk.f32.gmra.mxu0 %vm372_vm1, %v8778_v44  ;;  %v9200_v41 = vld [vmem:[#allocation2 + $0x89] sm:$0xff]  ;;  %v9201_v13 = vld [vmem:[#allocation2 + $0x91] sm:$0xff]  ;;  %v10545_v44 = vld [vmem:[%s13216_s12 + $0x1b] sm:$0xff] }
 0x705   : > { %8954 = vmatprep.mubr.f32.mxu1 %v17353_v48  ;;  %9145 = vmatprep.mubr.f32.mxu0 %v17353_v48  ;;  %v9436_v18 = vld [vmem:[#allocation2 + $0x8a] sm:$0xff]  ;;  %v9437_v28 = vld [vmem:[#allocation2 + $0x92] sm:$0xff] }
 0x706   : > { %v9661_v1 = vld [vmem:[#allocation2 + $0x33] sm:$0xff]  ;;  %v9663_v40 = vld [vmem:[#allocation2 + $0x43] sm:$0xff] }
 0x707   : > { %v9897_v55 = vld [vmem:[#allocation2 + $0x34] sm:$0xff]  ;;  %v9899_v0 = vld [vmem:[#allocation2 + $0x44] sm:$0xff]  ;;  %v9900_v45 = vld [vmem:[#allocation2 + $0x4c] sm:$0xff] }
 0x708   : > { %11784 = vmatmul.mubr.msk.f32.gmra.mxu1 %vm372_vm1, %v8796_v51  ;;  %11798 = vmatmul.mubr.msk.f32.gmra.mxu0 %vm372_vm1, %v8779_v26  ;;  %v9665_v17 = vld [vmem:[#allocation2 + $0x53] sm:$0xff]  ;;  %v10559_v51 = vld [vmem:[%s13216_s12 + $0x1c] sm:$0xff] }
 0x709   : > { %8960 = vmatprep.mubr.f32.mxu1 %v17353_v48  ;;  %9151 = vmatprep.mubr.f32.mxu0 %v17353_v48  ;;  %v9901_v11 = vld [vmem:[#allocation2 + $0x54] sm:$0xff] }
 0x70a   : > { %v9666_v26 = vld [vmem:[#allocation2 + $0x5b] sm:$0xff] }
 0x70c   : > { %11785 = vmatmul.mubr.msk.f32.gmra.mxu1 %vm372_vm1, %v8797_v61  ;;  %11799 = vmatmul.mubr.msk.f32.gmra.mxu0 %vm372_vm1, %v8780_v60  ;;  %v9902_v61 = vld [vmem:[#allocation2 + $0x5c] sm:$0xff]  ;;  %v10573_v60 = vadd.f32 %v10559_v51, %v10545_v44  ;;  %v10592_v51 = vld [vmem:[%s13216_s12 + $0x45] sm:$0xff] }
 0x70d   : > { %8966 = vmatprep.mubr.f32.mxu1 %v17353_v48  ;;  %9157 = vmatprep.mubr.f32.mxu0 %v17353_v48  ;;  %v10688_v44 = vld [vmem:[%s13216_s12 + $0x3f] sm:$0xff] }
 0x710   : > { %11786 = vmatmul.mubr.msk.f32.gmra.mxu1 %vm372_vm1, %v8798_v9  ;;  %11800 = vmatmul.mubr.msk.f32.gmra.mxu0 %vm372_vm1, %v8781_v8  ;;  %v10587_v9 = vld [vmem:[%s13216_s12 + $0x1d] sm:$0xff] }
 0x711   : > { %8972 = vmatprep.mubr.f32.mxu1 %v17353_v48  ;;  %9163 = vmatprep.mubr.f32.mxu0 %v17353_v48  ;;  %v10546_v8 = vld [vmem:[%s13216_s12 + $0x23] sm:$0xff] }
 0x714   : > { %11787 = vmatmul.mubr.msk.f32.gmra.mxu1 %vm372_vm1, %v8799_v42  ;;  %11801 = vmatmul.mubr.msk.f32.gmra.mxu0 %vm372_vm1, %v8782_v38  ;;  %v10560_v42 = vld [vmem:[%s13216_s12 + $0x24] sm:$0xff] }
 0x715   : > { %8978 = vmatprep.mubr.f32.mxu1 %v17353_v48  ;;  %9169 = vmatprep.mubr.f32.mxu0 %v17353_v48  ;;  %v9667_v38 = vld [vmem:[#allocation2 + $0x63] sm:$0xff] }
 0x718   : > { %11788 = vmatmul.mubr.msk.f32.gmra.mxu1 %vm372_vm1, %v8800_v46  ;;  %11802 = vmatmul.mubr.msk.f32.gmra.mxu0 %vm372_vm1, %v8783_v35  ;;  %v9903_v46 = vld [vmem:[#allocation2 + $0x64] sm:$0xff]  ;;  %v10601_v35 = vadd.f32 %v10587_v9, %v10573_v60  ;;  %v9908_v60 = vld [vmem:[#allocation2 + $0x8c] sm:$0xff] }
 0x719   : > { %8984 = vmatprep.mubr.f32.mxu1 %v17353_v48  ;;  %9175 = vmatprep.mubr.f32.mxu0 %v17353_v48 }
 0x71c   : > { %11789 = vmatmul.mubr.msk.f32.gmra.mxu1 %vm372_vm1, %v8801_v34  ;;  %11803 = vmatmul.mubr.msk.f32.gmra.mxu0 %vm372_vm1, %v8784_v7  ;;  %v10615_v34 = vld [vmem:[%s13216_s12 + $0x29] sm:$0xff]  ;;  %v10574_v7 = vadd.f32 %v10560_v42, %v10546_v8 }
 0x71d   : > { %8990 = vmatprep.mubr.f32.mxu1 %v17353_v48  ;;  %9181 = vmatprep.mubr.f32.mxu0 %v17353_v48 }
 0x720   : > { %11790 = vmatmul.mubr.msk.f32.gmra.mxu1 %vm372_vm1, %v8802_v27  ;;  %11804 = vmatmul.mubr.msk.f32.gmra.mxu0 %vm372_vm1, %v8785_v10  ;;  %v10547_v27 = vld [vmem:[%s13216_s12 + $0x2b] sm:$0xff] }
 0x721   : > { %9311 = vmatprep.mubr.f32.mxu1 %v17353_v48  ;;  %9547 = vmatprep.mubr.f32.mxu0 %v17353_v48  ;;  %v10588_v10 = vld [vmem:[%s13216_s12 + $0x25] sm:$0xff] }
 0x724   : > { %11807 = vmatmul.mubr.msk.f32.vlgmr.msra.gmra.mxu1 %vm372_vm1, %v9188_v2  ;;  %11823 = vmatmul.mubr.msk.f32.vlgmr.msra.gmra.mxu0 %vm372_vm1, %v9424_v4  ;;  %v9668_v2 = vld [vmem:[#allocation2 + $0x6b] sm:$0xff] }
 0x725   : > { %9986 = vmatpush1.msra.mxu0 %v11853_v20  ;;  %9317 = vmatprep.mubr.f32.mxu1 %v17353_v48  ;;  %v10561_v20 = vld [vmem:[%s13216_s12 + $0x2c] sm:$0xff] }
 0x726   : > { %9553 = vmatprep.mubr.f32.mxu0 %v17353_v48  ;;  %9750 = vmatpush1.msra.mxu1 %v11837_v23  ;;  %v9904_v4 = vld [vmem:[#allocation2 + $0x6c] sm:$0xff]  ;;  %v10629_v23 = vadd.f32 %v10615_v34, %v10601_v35 }
 0x727   : > { %10845 = vmatprep.subr.mxu0 %v10762_v22  ;;  %10221 = vmatprep.subr.mxu1 %v11870_v19  ;;  %v10643_v22 = vld [vmem:[%s13216_s12 + $0x2a] sm:$0xff]  ;;  %v10548_v19 = vld [vmem:[%s13216_s12 + $0x33] sm:$0xff] }
 0x728   : > { %11808 = vmatmul.mubr.msk.f32.gmra.mxu1 %vm372_vm1, %v9189_v15  ;;  %11824 = vmatmul.mubr.msk.f32.gmra.mxu0 %vm372_vm1, %v9425_v39  ;;  %v10562_v15 = vld [vmem:[%s13216_s12 + $0x34] sm:$0xff]  ;;  %v10602_v39 = vadd.f32 %v10588_v10, %v10574_v7  ;;  %v10647_v35 = vld [vmem:[%s13216_s12 + $0x4a] sm:$0xff] }
 0x729   : > { %9323 = vmatprep.mubr.f32.mxu1 %v17353_v48  ;;  %9559 = vmatprep.mubr.f32.mxu0 %v17353_v48  ;;  %v10566_v10 = vld [vmem:[%s13216_s12 + $0x54] sm:$0xff] }
 0x72c   : > { %11809 = vmatmul.mubr.msk.f32.gmra.mxu1 %vm372_vm1, %v9190_v47  ;;  %11825 = vmatmul.mubr.msk.f32.gmra.mxu0 %vm372_vm1, %v9426_v63  ;;  %v10575_v47 = vadd.f32 %v10561_v20, %v10547_v27  ;;  %v10616_v63 = vld [vmem:[%s13216_s12 + $0x31] sm:$0xff]  ;;  %v10716_v20 = vld [vmem:[%s13216_s12 + $0x40] sm:$0xff] }
 0x72d   : > { %9329 = vmatprep.mubr.f32.mxu1 %v17353_v48  ;;  %9565 = vmatprep.mubr.f32.mxu0 %v17353_v48 }
 0x730   : > { %11810 = vmatmul.mubr.msk.f32.gmra.mxu1 %vm372_vm1, %v9191_v16  ;;  %11826 = vmatmul.mubr.msk.f32.gmra.mxu0 %vm372_vm1, %v9427_v58  ;;  %v10589_v16 = vld [vmem:[%s13216_s12 + $0x2d] sm:$0xff] }
 0x731   : > { %9335 = vmatprep.mubr.f32.mxu1 %v17353_v48  ;;  %9571 = vmatprep.mubr.f32.mxu0 %v17353_v48  ;;  %v9669_v58 = vld [vmem:[#allocation2 + $0x73] sm:$0xff] }
 0x734   : > { %11811 = vmatmul.mubr.msk.f32.gmra.mxu1 %vm372_vm1, %v9192_v50  ;;  %11827 = vmatmul.mubr.msk.f32.gmra.mxu0 %vm372_vm1, %v9428_v54  ;;  %v9905_v50 = vld [vmem:[#allocation2 + $0x74] sm:$0xff]  ;;  %v10657_v54 = vadd.f32 %v10643_v22, %v10629_v23 }
 0x735   : > { %9341 = vmatprep.mubr.f32.mxu1 %v17353_v48  ;;  %9577 = vmatprep.mubr.f32.mxu0 %v17353_v48  ;;  %v9673_v23 = vld [vmem:[#allocation2 + $0x93] sm:$0xff] }
 0x738   : > { %11812 = vmatmul.mubr.msk.f32.gmra.mxu1 %vm372_vm1, %v9193_v12  ;;  %11828 = vmatmul.mubr.msk.f32.gmra.mxu0 %vm372_vm1, %v9429_v5  ;;  %v10576_v12 = vadd.f32 %v10562_v15, %v10548_v19  ;;  %v10590_v5 = vld [vmem:[%s13216_s12 + $0x35] sm:$0xff] }
 0x739   : > { %9347 = vmatprep.mubr.f32.mxu1 %v17353_v48  ;;  %9583 = vmatprep.mubr.f32.mxu0 %v17353_v48 }
 0x73c   : > { %11813 = vmatmul.mubr.msk.f32.gmra.mxu1 %vm372_vm1, %v9194_v29  ;;  %11829 = vmatmul.mubr.msk.f32.gmra.mxu0 %vm372_vm1, %v9430_v6  ;;  %v10630_v29 = vadd.f32 %v10616_v63, %v10602_v39  ;;  %v10549_v6 = vld [vmem:[%s13216_s12 + $0x3b] sm:$0xff]  ;;  %v10690_v63 = vld [vmem:[%s13216_s12 + $0x4f] sm:$0xff] }
 0x73d   : > { %9353 = vmatprep.mubr.f32.mxu1 %v17353_v48  ;;  %9589 = vmatprep.mubr.f32.mxu0 %v17353_v48 }
 0x740   : > { %11814 = vmatmul.mubr.msk.f32.gmra.mxu1 %vm372_vm1, %v9195_v62  ;;  %11830 = vmatmul.mubr.msk.f32.gmra.mxu0 %vm372_vm1, %v9431_v49  ;;  %v10563_v62 = vld [vmem:[%s13216_s12 + $0x3c] sm:$0xff]  ;;  %v10603_v49 = vadd.f32 %v10589_v16, %v10575_v47 }
 0x741   : > { %9359 = vmatprep.mubr.f32.mxu1 %v17353_v48  ;;  %9595 = vmatprep.mubr.f32.mxu0 %v17353_v48  ;;  %v16277_v16 = vld [vmem:[%s13216_s12 + $0x59] sm:$0xff] }
 0x744   : > { %11815 = vmatmul.mubr.msk.f32.gmra.mxu1 %vm372_vm1, %v9196_v57  ;;  %11831 = vmatmul.mubr.msk.f32.gmra.mxu0 %vm372_vm1, %v9432_v32  ;;  %v10617_v57 = vld [vmem:[%s13216_s12 + $0x39] sm:$0xff] }
 0x745   : > { %9365 = vmatprep.mubr.f32.mxu1 %v17353_v48  ;;  %9601 = vmatprep.mubr.f32.mxu0 %v17353_v48  ;;  %v10644_v32 = vld [vmem:[%s13216_s12 + $0x32] sm:$0xff] }
 0x748   : > { %11816 = vmatmul.mubr.msk.f32.gmra.mxu1 %vm372_vm1, %v9197_v3  ;;  %11832 = vmatmul.mubr.msk.f32.gmra.mxu0 %vm372_vm1, %v9433_v37  ;;  %v9670_v3 = vld [vmem:[#allocation2 + $0x7b] sm:$0xff] }
 0x749   : > { %9371 = vmatprep.mubr.f32.mxu1 %v17353_v48  ;;  %9607 = vmatprep.mubr.f32.mxu0 %v17353_v48  ;;  %v9906_v37 = vld [vmem:[#allocation2 + $0x7c] sm:$0xff] }
 0x74c   : > { %11817 = vmatmul.mubr.msk.f32.gmra.mxu1 %vm372_vm1, %v9198_v33  ;;  %11833 = vmatmul.mubr.msk.f32.gmra.mxu0 %vm372_vm1, %v9434_v21  ;;  %v10673_v33 = vadd.f32 %v10657_v54, %v10547_v27  ;;  %v10604_v21 = vadd.f32 %v10590_v5, %v10576_v12  ;;  %v10552_v27 = vld [vmem:[%s13216_s12 + $0x53] sm:$0xff] }
 0x74d   : > { %9377 = vmatprep.mubr.f32.mxu1 %v17353_v48  ;;  %9613 = vmatprep.mubr.f32.mxu0 %v17353_v48  ;;  %v10594_v5 = vld [vmem:[%s13216_s12 + $0x55] sm:$0xff] }
 0x750   : > { %11818 = vmatmul.mubr.msk.f32.gmra.mxu1 %vm372_vm1, %v9199_v24  ;;  %11834 = vmatmul.mubr.msk.f32.gmra.mxu0 %vm372_vm1, %v9435_v56  ;;  %v10577_v24 = vadd.f32 %v10563_v62, %v10549_v6  ;;  %v10687_v56 = vld [vmem:[%s13216_s12 + $0x37] sm:$0xff]  ;;  %v10717_v62 = vld [vmem:[%s13216_s12 + $0x48] sm:$0xff] }
 0x751   : > { %9383 = vmatprep.mubr.f32.mxu1 %v17353_v48  ;;  %9619 = vmatprep.mubr.f32.mxu0 %v17353_v48 }
 0x754   : > { %11819 = vmatmul.mubr.msk.f32.gmra.mxu1 %vm372_vm1, %v9200_v41  ;;  %11835 = vmatmul.mubr.msk.f32.gmra.mxu0 %vm372_vm1, %v9436_v18  ;;  %v16239_v41 = vld [vmem:[%s13216_s12 + $0x41] sm:$0xff]  ;;  %v10658_v18 = vadd.f32 %v10644_v32, %v10630_v29 }
 0x755   : > { %9389 = vmatprep.mubr.f32.mxu1 %v17353_v48  ;;  %9625 = vmatprep.mubr.f32.mxu0 %v17353_v48  ;;  %v10553_v29 = vld [vmem:[%s13216_s12 + $0x5b] sm:$0xff] }
 0x758   : > { %11820 = vmatmul.mubr.msk.f32.gmra.mxu1 %vm372_vm1, %v9201_v13  ;;  %11836 = vmatmul.mubr.msk.f32.gmra.mxu0 %vm372_vm1, %v9437_v28  ;;  %v10591_v13 = vld [vmem:[%s13216_s12 + $0x3d] sm:$0xff]  ;;  %v10631_v28 = vadd.f32 %v10617_v57, %v10603_v49  ;;  %v10648_v49 = vld [vmem:[%s13216_s12 + $0x52] sm:$0xff] }
 0x759   : > { %9783 = vmatprep.mubr.f32.mxu1 %v17353_v48  ;;  %10019 = vmatprep.mubr.f32.mxu0 %v17353_v48 }
 0x75c   : > { %11839 = vmatmul.mubr.msk.f32.vlgmr.msra.gmra.mxu1 %vm372_vm1, %v9660_v52  ;;  %11855 = vmatmul.mubr.msk.f32.vlgmr.msra.gmra.mxu0 %vm372_vm1, %v9896_v14  ;;  %v10550_v52 = vld [vmem:[%s13216_s12 + $0x43] sm:$0xff] }
 0x75d   : > { %10846 = vmatpush1.msra.mxu0 %v10761_v43  ;;  %9789 = vmatprep.mubr.f32.mxu1 %v17353_v48  ;;  %v10645_v43 = vld [vmem:[%s13216_s12 + $0x3a] sm:$0xff]  ;;  %v10564_v14 = vld [vmem:[%s13216_s12 + $0x44] sm:$0xff] }
 0x75e   : > { %10025 = vmatprep.mubr.f32.mxu0 %v17353_v48  ;;  %10847 = vmatprep.subr.mxu0 %v10760_v53  ;;  %v9671_v53 = vld [vmem:[#allocation2 + $0x83] sm:$0xff] }
 0x75f   : > { %10848 = vmatpush1.msra.mxu0 %v10759_v30  ;;  %10222 = vmatpush1.msra.mxu1 %v11869_v25  ;;  %v9907_v30 = vld [vmem:[#allocation2 + $0x84] sm:$0xff]  ;;  %v10701_v25 = vadd.f32 %v10687_v56, %v10673_v33  ;;  %v10649_v33 = vld [vmem:[%s13216_s12 + $0x5a] sm:$0xff] }
 0x760   : > { %11840 = vmatmul.mubr.msk.f32.gmra.mxu1 %vm372_vm1, %v9661_v1  ;;  %11856 = vmatmul.mubr.msk.f32.gmra.mxu0 %vm372_vm1, %v9897_v55  ;;  %v10632_v1 = vadd.f32 %v16239_v41, %v10604_v21  ;;  %v10605_v55 = vadd.f32 %v10591_v13, %v10577_v24  ;;  %v16293_v56 = vld [vmem:[%s13216_s12 + $0x61] sm:$0xff] }
 0x761   : > { %9795 = vmatprep.mubr.f32.mxu1 %v17353_v48  ;;  %10031 = vmatprep.mubr.f32.mxu0 %v17353_v48 }
 0x764   : > { %11841 = vmatmul.mubr.msk.f32.gmra.mxu1 %vm372_vm1, %v9662_v59  ;;  %11857 = vmatmul.mubr.msk.f32.gmra.mxu0 %vm372_vm1, %v9898_v31  ;;  %v10551_v59 = vld [vmem:[%s13216_s12 + $0x4b] sm:$0xff] }
 0x765   : > { %9801 = vmatprep.mubr.f32.mxu1 %v17353_v48  ;;  %10037 = vmatprep.mubr.f32.mxu0 %v17353_v48  ;;  %v10565_v31 = vld [vmem:[%s13216_s12 + $0x4c] sm:$0xff] }
 0x768   : > { %11842 = vmatmul.mubr.msk.f32.gmra.mxu1 %vm372_vm1, %v9663_v40  ;;  %11858 = vmatmul.mubr.msk.f32.gmra.mxu0 %vm372_vm1, %v9899_v0  ;;  %v10715_v40 = vld [vmem:[%s13216_s12 + $0x38] sm:$0xff]  ;;  %v10646_v0 = vld [vmem:[%s13216_s12 + $0x42] sm:$0xff] }
 0x769   : > { %9807 = vmatprep.mubr.f32.mxu1 %v17353_v48  ;;  %10043 = vmatprep.mubr.f32.mxu0 %v17353_v48  ;;  %v10729_v9 = vadd.f32 %v10715_v40, %v10701_v25  ;;  %v10660_v8 = vadd.f32 %v10646_v0, %v10632_v1  ;;  %v10133_v1 = vld [vmem:[#allocation2 + $0x35] sm:$0xff]  ;;  %v16307_v40 = vld [vmem:[%s13216_s12 + $0x69] sm:$0xff] }
 0x76b   : > { %v10745_v15 = vadd.f32 %v10729_v9, %v10617_v57  ;;  %v10676_v47 = vadd.f32 %v10660_v8, %v10550_v52  ;;  %v10132_v57 = vld [vmem:[#allocation2 + $0x2d] sm:$0xff]  ;;  %v10134_v8 = vld [vmem:[#allocation2 + $0x3d] sm:$0xff] }
 0x76c   : > { %11843 = vmatmul.mubr.msk.f32.gmra.mxu1 %vm372_vm1, %v9664_v36  ;;  %11859 = vmatmul.mubr.msk.f32.gmra.mxu0 %vm372_vm1, %v9900_v45  ;;  %v10674_v36 = vadd.f32 %v10658_v18, %v10548_v19  ;;  %v16255_v45 = vld [vmem:[%s13216_s12 + $0x49] sm:$0xff]  ;;  %v9909_v19 = vld [vmem:[#allocation2 + $0x94] sm:$0xff] }
 0x76d   : > { %9813 = vmatprep.mubr.f32.mxu1 %v17353_v48  ;;  %10049 = vmatprep.mubr.f32.mxu0 %v17353_v48  ;;  %v10633_v42 = vadd.f32 %v16255_v45, %v10605_v55 }
 0x76f   : > { %v10661_v39 = vadd.f32 %v10647_v35, %v10633_v42 }
 0x770   : > { %11844 = vmatmul.mubr.msk.f32.gmra.mxu1 %vm372_vm1, %v9665_v17  ;;  %11860 = vmatmul.mubr.msk.f32.gmra.mxu0 %vm372_vm1, %v9901_v11  ;;  %v10659_v17 = vadd.f32 %v10645_v43, %v10631_v28  ;;  %v10578_v11 = vadd.f32 %v10564_v14, %v10550_v52  ;;  %v10595_v52 = vld [vmem:[%s13216_s12 + $0x5d] sm:$0xff] }
 0x771   : > { %9819 = vmatprep.mubr.f32.mxu1 %v17353_v48  ;;  %10055 = vmatprep.mubr.f32.mxu0 %v17353_v48  ;;  %v10677_v21 = vadd.f32 %v10661_v39, %v10551_v59  ;;  %v10554_v14 = vld [vmem:[%s13216_s12 + $0x63] sm:$0xff] }
 0x772   : > { %v10675_v34 = vadd.f32 %v10659_v17, %v10549_v6  ;;  %v10606_v7 = vadd.f32 %v10592_v51, %v10578_v11  ;;  %v10567_v6 = vld [vmem:[%s13216_s12 + $0x5c] sm:$0xff]  ;;  %v10555_v51 = vld [vmem:[%s13216_s12 + $0x6b] sm:$0xff] }
 0x773   : > { %v10581_v18 = vadd.f32 %v10567_v6, %v10553_v29  ;;  %v10135_v39 = vld [vmem:[#allocation2 + $0x45] sm:$0xff]  ;;  %v16342_v6 = vld [vmem:[%s13216_s12 + $0x79] sm:$0xff] }
 0x774   : > { %11845 = vmatmul.mubr.msk.f32.gmra.mxu1 %vm372_vm1, %v9666_v26  ;;  %11861 = vmatmul.mubr.msk.f32.gmra.mxu0 %vm372_vm1, %v9902_v61  ;;  %v10579_v26 = vadd.f32 %v10565_v31, %v10551_v59  ;;  %v9672_v61 = vld [vmem:[#allocation2 + $0x8b] sm:$0xff] }
 0x775   : > { %9825 = vmatprep.mubr.f32.mxu1 %v17353_v48  ;;  %10061 = vmatprep.mubr.f32.mxu0 %v17353_v48  ;;  %v10609_v31 = vadd.f32 %v10595_v52, %v10581_v18 }
 0x778   : > { %11846 = vmatmul.mubr.msk.f32.gmra.mxu1 %vm372_vm1, %v9667_v38  ;;  %11862 = vmatmul.mubr.msk.f32.gmra.mxu0 %vm372_vm1, %v9903_v46  ;;  %v10593_v38 = vld [vmem:[%s13216_s12 + $0x4d] sm:$0xff]  ;;  %v10702_v46 = vadd.f32 %v10688_v44, %v10674_v36  ;;  %v10596_v44 = vld [vmem:[%s13216_s12 + $0x65] sm:$0xff] }
 0x779   : > { %9831 = vmatprep.mubr.f32.mxu1 %v17353_v48  ;;  %10067 = vmatprep.mubr.f32.mxu0 %v17353_v48  ;;  %v10607_v22 = vadd.f32 %v10593_v38, %v10579_v26  ;;  %v10569_v26 = vld [vmem:[%s13216_s12 + $0x6c] sm:$0xff] }
 0x77a   : > { %v10693_v38 = vld [vmem:[%s13216_s12 + $0x67] sm:$0xff]  ;;  %v10583_v35 = vadd.f32 %v10569_v26, %v10555_v51 }
 0x77b   : > { %v10635_v32 = vadd.f32 %v16277_v16, %v10607_v22  ;;  %v10556_v22 = vld [vmem:[%s13216_s12 + $0x73] sm:$0xff]  ;;  %v16374_v26 = vld [vmem:[%s13216_s12 + $0x89] sm:$0xff] }
 0x77c   : > { %11847 = vmatmul.mubr.msk.f32.gmra.mxu1 %vm372_vm1, %v9668_v2  ;;  %11863 = vmatmul.mubr.msk.f32.gmra.mxu0 %vm372_vm1, %v9904_v4  ;;  %v10689_v2 = vld [vmem:[%s13216_s12 + $0x47] sm:$0xff]  ;;  %v16273_v4 = vld [vmem:[%s13216_s12 + $0x51] sm:$0xff] }
 0x77d   : > { %9837 = vmatprep.mubr.f32.mxu1 %v17353_v48  ;;  %10073 = vmatprep.mubr.f32.mxu0 %v17353_v48  ;;  %v10703_v54 = vadd.f32 %v10689_v2, %v10675_v34  ;;  %v10634_v12 = vadd.f32 %v16273_v4, %v10606_v7  ;;  %v10663_v25 = vadd.f32 %v10649_v33, %v10635_v32  ;;  %v10597_v2 = vld [vmem:[%s13216_s12 + $0x6d] sm:$0xff]  ;;  %v10571_v32 = vld [vmem:[%s13216_s12 + $0x7c] sm:$0xff] }
 0x77f   : > { %v10731_v28 = vadd.f32 %v10717_v62, %v10703_v54  ;;  %v10662_v43 = vadd.f32 %v10648_v49, %v10634_v12  ;;  %v10679_v9 = vadd.f32 %v10663_v25, %v10553_v29  ;;  %v10694_v29 = vld [vmem:[%s13216_s12 + $0x6f] sm:$0xff]  ;;  %v10558_v25 = vld [vmem:[%s13216_s12 + $0x83] sm:$0xff] }
 0x780   : > { %11848 = vmatmul.mubr.msk.f32.gmra.mxu1 %vm372_vm1, %v9669_v58  ;;  %11864 = vmatmul.mubr.msk.f32.gmra.mxu0 %vm372_vm1, %v9905_v50  ;;  %v10580_v58 = vadd.f32 %v10566_v10, %v10552_v27  ;;  %v10730_v50 = vadd.f32 %v10716_v20, %v10702_v46  ;;  %v10651_v10 = vld [vmem:[%s13216_s12 + $0x6a] sm:$0xff]  ;;  %v10598_v49 = vld [vmem:[%s13216_s12 + $0x75] sm:$0xff] }
 0x781   : > { %9843 = vmatprep.mubr.f32.mxu1 %v17353_v48  ;;  %10079 = vmatprep.mubr.f32.mxu0 %v17353_v48  ;;  %v10747_v36 = vadd.f32 %v10731_v28, %v16255_v45  ;;  %v10678_v11 = vadd.f32 %v10662_v43, %v10552_v27  ;;  %v10637_v45 = vadd.f32 %v16307_v40, %v10609_v31  ;;  %v16326_v20 = vld [vmem:[%s13216_s12 + $0x71] sm:$0xff]  ;;  %v10653_v28 = vld [vmem:[%s13216_s12 + $0x7a] sm:$0xff] }
 0x782   : > { %v10608_v24 = vadd.f32 %v10594_v5, %v10580_v58  ;;  %v10746_v13 = vadd.f32 %v10730_v50, %v16239_v41  ;;  %v10650_v41 = vld [vmem:[%s13216_s12 + $0x62] sm:$0xff]  ;;  %v10611_v50 = vadd.f32 %v10597_v2, %v10583_v35  ;;  %v10652_v5 = vld [vmem:[%s13216_s12 + $0x72] sm:$0xff] }
 0x783   : > { %v10695_v43 = vld [vmem:[%s13216_s12 + $0x77] sm:$0xff] }
 0x784   : > { %11849 = vmatmul.mubr.msk.f32.gmra.mxu1 %vm372_vm1, %v9670_v3  ;;  %11865 = vmatmul.mubr.msk.f32.gmra.mxu0 %vm372_vm1, %v9906_v37  ;;  %v10704_v3 = vadd.f32 %v10690_v63, %v10676_v47  ;;  %v10718_v37 = vld [vmem:[%s13216_s12 + $0x50] sm:$0xff]  ;;  %v10636_v59 = vadd.f32 %v16293_v56, %v10608_v24  ;;  %v10721_v47 = vld [vmem:[%s13216_s12 + $0x68] sm:$0xff]  ;;  %v10639_v24 = vadd.f32 %v16342_v6, %v10611_v50 }
 0x785   : > { %9849 = vmatprep.mubr.f32.mxu1 %v17353_v48  ;;  %10085 = vmatprep.mubr.f32.mxu0 %v17353_v48 }
 0x786   : > { %v10732_v55 = vadd.f32 %v10718_v37, %v10704_v3  ;;  %v10664_v42 = vadd.f32 %v10650_v41, %v10636_v59  ;;  %v10136_v37 = vld [vmem:[#allocation2 + $0x4d] sm:$0xff]  ;;  %v10667_v41 = vadd.f32 %v10653_v28, %v10639_v24 }
 0x788   : > { %11850 = vmatmul.mubr.msk.f32.gmra.mxu1 %vm372_vm1, %v9671_v53  ;;  %11866 = vmatmul.mubr.msk.f32.gmra.mxu0 %vm372_vm1, %v9907_v30  ;;  %v10568_v53 = vld [vmem:[%s13216_s12 + $0x64] sm:$0xff]  ;;  %v10691_v30 = vld [vmem:[%s13216_s12 + $0x57] sm:$0xff]  ;;  %v10748_v34 = vadd.f32 %v10732_v55, %v16273_v4  ;;  %v10665_v4 = vadd.f32 %v10651_v10, %v10637_v45  ;;  %v10680_v58 = vadd.f32 %v10664_v42, %v10554_v14 }
 0x789   : > { %9855 = vmatprep.mubr.f32.mxu1 %v17353_v48  ;;  %10091 = vmatprep.mubr.f32.mxu0 %v17353_v48  ;;  %v10582_v0 = vadd.f32 %v10568_v53, %v10554_v14  ;;  %v10705_v17 = vadd.f32 %v10691_v30, %v10677_v21  ;;  %v10722_v21 = vld [vmem:[%s13216_s12 + $0x70] sm:$0xff]  ;;  %v16357_v14 = vld [vmem:[%s13216_s12 + $0x81] sm:$0xff] }
 0x78a   : > { %v10708_v33 = vadd.f32 %v10694_v29, %v10680_v58  ;;  %v10681_v18 = vadd.f32 %v10665_v4, %v10555_v51  ;;  %v10599_v30 = vld [vmem:[%s13216_s12 + $0x7d] sm:$0xff] }
 0x78b   : > { %v10610_v46 = vadd.f32 %v10596_v44, %v10582_v0 }
 0x78c   : > { %11851 = vmatmul.mubr.msk.f32.gmra.mxu1 %vm372_vm1, %v9672_v61  ;;  %11867 = vmatmul.mubr.msk.f32.gmra.mxu0 %vm372_vm1, %v9908_v60  ;;  %v10719_v61 = vld [vmem:[%s13216_s12 + $0x58] sm:$0xff]  ;;  %v10736_v59 = vadd.f32 %v10722_v21, %v10708_v33  ;;  %v10709_v31 = vadd.f32 %v10695_v43, %v10681_v18 }
 0x78d   : > { %9861 = vmatprep.mubr.f32.mxu1 %v17353_v48  ;;  %10097 = vmatprep.mubr.f32.mxu0 %v17353_v48  ;;  %v10692_v60 = vld [vmem:[%s13216_s12 + $0x5f] sm:$0xff]  ;;  %v10733_v7 = vadd.f32 %v10719_v61, %v10705_v17  ;;  %v10638_v63 = vadd.f32 %v16326_v20, %v10610_v46 }
 0x78e   : > { %v10706_v27 = vadd.f32 %v10692_v60, %v10678_v11  ;;  %v10696_v11 = vld [vmem:[%s13216_s12 + $0x7f] sm:$0xff] }
 0x78f   : > { %v10749_v54 = vadd.f32 %v10733_v7, %v16277_v16  ;;  %v10666_v16 = vadd.f32 %v10652_v5, %v10638_v63  ;;  %v10600_v61 = vld [vmem:[%s13216_s12 + $0x85] sm:$0xff]  ;;  %v10138_v60 = vld [vmem:[#allocation2 + $0x5d] sm:$0xff] }
 0x790   : > { %11852 = vmatmul.mubr.msk.f32.gmra.mxu1 %vm372_vm1, %v9673_v23  ;;  %11868 = vmatmul.mubr.msk.f32.gmra.mxu0 %vm372_vm1, %v9909_v19  ;;  %v10720_v23 = vld [vmem:[%s13216_s12 + $0x60] sm:$0xff]  ;;  %v10570_v19 = vld [vmem:[%s13216_s12 + $0x74] sm:$0xff] }
 0x791   : > { %10255 = vmatprep.mubr.f32.mxu1 %v17353_v48  ;;  %10881 = vmatprep.mubr.f32.mxu0 %v17353_v48  ;;  %v10734_v12 = vadd.f32 %v10720_v23, %v10706_v27  ;;  %v10584_v62 = vadd.f32 %v10570_v19, %v10556_v22  ;;  %v10682_v0 = vadd.f32 %v10666_v16, %v10556_v22  ;;  %v10697_v27 = vld [vmem:[%s13216_s12 + $0x87] sm:$0xff]  ;;  %v16389_v23 = vld [vmem:[%s13216_s12 + $0x91] sm:$0xff] }
 0x792   : > { %v10140_v16 = vld [vmem:[#allocation2 + $0x6d] sm:$0xff] }
 0x793   : > { %v10612_v52 = vadd.f32 %v10598_v49, %v10584_v62  ;;  %v10710_v42 = vadd.f32 %v10696_v11, %v10682_v0  ;;  %v10698_v49 = vld [vmem:[%s13216_s12 + $0x8f] sm:$0xff] }
 0x794   : > { %11871 = vmatmul.mubr.msk.f32.vlgmr.msra.gmra.mxu1 %vm372_vm1, %v10132_v57  ;;  %11886 = vmatmul.mubr.msk.f32.vlgmr.msra.gmra.mxu0 %vm479_vm0, %v10745_v15  ;;  %v10707_v15 = vadd.f32 %v10693_v38, %v10679_v9  ;;  %v10557_v57 = vld [vmem:[%s13216_s12 + $0x7b] sm:$0xff]  ;;  %v10752_v9 = vadd.f32 %v10736_v59, %v16326_v20  ;;  %v10655_v20 = vld [vmem:[%s13216_s12 + $0x8a] sm:$0xff] }
 0x795   : > { %10261 = vmatprep.mubr.f32.mxu1 %v17353_v48  ;;  %10887 = vmatprep.mubr.f32.mxu0 %v17353_v48  ;;  %v10585_v53 = vadd.f32 %v10571_v32, %v10557_v57  ;;  %v10640_v17 = vadd.f32 %v16357_v14, %v10612_v52  ;;  %v10683_v45 = vadd.f32 %v10667_v41, %v10557_v57  ;;  %v10671_v57 = vld [vmem:[%s13216_s12 + $0x8b] sm:$0xff] }
 0x796   : > { %v10735_v3 = vadd.f32 %v10721_v47, %v10707_v15 }
 0x797   : > { %v10613_v44 = vadd.f32 %v10599_v30, %v10585_v53  ;;  %v10711_v63 = vadd.f32 %v10697_v27, %v10683_v45  ;;  %v10726_v53 = vld [vmem:[%s13216_s12 + $0x90] sm:$0xff] }
 0x798   : > { %11872 = vmatmul.mubr.msk.f32.gmra.mxu1 %vm372_vm1, %v10133_v1  ;;  %11887 = vmatmul.mubr.msk.f32.gmra.mxu0 %vm479_vm0, %v10746_v13  ;;  %v10750_v13 = vadd.f32 %v10734_v12, %v16293_v56  ;;  %v10572_v1 = vld [vmem:[%s13216_s12 + $0x84] sm:$0xff]  ;;  %v10751_v55 = vadd.f32 %v10735_v3, %v16307_v40  ;;  %v10137_v56 = vld [vmem:[#allocation2 + $0x55] sm:$0xff] }
 0x799   : > { %10267 = vmatprep.mubr.f32.mxu1 %v17353_v48  ;;  %10893 = vmatprep.mubr.f32.mxu0 %v17353_v48  ;;  %v10586_v51 = vadd.f32 %v10572_v1, %v10558_v25  ;;  %v10654_v40 = vld [vmem:[%s13216_s12 + $0x82] sm:$0xff]  ;;  %v10641_v7 = vadd.f32 %v16374_v26, %v10613_v44  ;;  %v10699_v30 = vld [vmem:[%s13216_s12 + $0x97] sm:$0xff] }
 0x79a   : > { %v10668_v35 = vadd.f32 %v10654_v40, %v10640_v17  ;;  %v10725_v12 = vld [vmem:[%s13216_s12 + $0x88] sm:$0xff]  ;;  %v10727_v44 = vld [vmem:[%s13216_s12 + $0x98] sm:$0xff] }
 0x79b   : > { %v10614_v10 = vadd.f32 %v10600_v61, %v10586_v51  ;;  %v10739_v21 = vadd.f32 %v10725_v12, %v10711_v63  ;;  %v10700_v51 = vld [vmem:[%s13216_s12 + $0x9f] sm:$0xff] }
 0x79c   : > { %11873 = vmatmul.mubr.msk.f32.gmra.mxu1 %vm372_vm1, %v10134_v8  ;;  %11888 = vmatmul.mubr.msk.f32.gmra.mxu0 %vm479_vm0, %v10747_v36  ;;  %v10723_v36 = vld [vmem:[%s13216_s12 + $0x78] sm:$0xff]  ;;  %v10684_v29 = vadd.f32 %v10668_v35, %v10558_v25 }
 0x79d   : > { %10273 = vmatprep.mubr.f32.mxu1 %v17353_v48  ;;  %10899 = vmatprep.mubr.f32.mxu0 %v17353_v48  ;;  %v10737_v8 = vadd.f32 %v10723_v36, %v10709_v31  ;;  %v10642_v5 = vadd.f32 %v16389_v23, %v10614_v10  ;;  %v10672_v25 = vld [vmem:[%s13216_s12 + $0x93] sm:$0xff]  ;;  %v10755_v59 = vadd.f32 %v10739_v21, %v16374_v26 }
 0x79e   : > { %v10712_v28 = vadd.f32 %v10698_v49, %v10684_v29  ;;  %v10743_v35 = vld [vmem:[%s13216_s12 + $0x99] sm:$0xff] }
 0x79f   : > { %v10753_v4 = vadd.f32 %v10737_v8, %v16342_v6  ;;  %v10656_v6 = vld [vmem:[%s13216_s12 + $0x92] sm:$0xff] }
 0x7a0   : > { %11874 = vmatmul.mubr.msk.f32.gmra.mxu1 %vm372_vm1, %v10135_v39  ;;  %11889 = vmatmul.mubr.msk.f32.gmra.mxu0 %vm479_vm0, %v10748_v34  ;;  %v10724_v34 = vld [vmem:[%s13216_s12 + $0x80] sm:$0xff]  ;;  %v10740_v0 = vadd.f32 %v10726_v53, %v10712_v28 }
 0x7a1   : > { %10279 = vmatprep.mubr.f32.mxu1 %v17353_v48  ;;  %10905 = vmatprep.mubr.f32.mxu0 %v17353_v48  ;;  %v10139_v39 = vld [vmem:[#allocation2 + $0x65] sm:$0xff]  ;;  %v10738_v47 = vadd.f32 %v10724_v34, %v10710_v42 }
 0x7a2   : > { %v10756_v42 = vadd.f32 %v10740_v0, %v16389_v23  ;;  %v10728_v34 = vld [vmem:[%s13216_s12 + $0xa0] sm:$0xff] }
 0x7a3   : > { %v10754_v33 = vadd.f32 %v10738_v47, %v16357_v14  ;;  %v10744_v47 = vld [vmem:[%s13216_s12 + $0xa1] sm:$0xff]  ;;  %s13017_s12 = scalar_lea.vmem %s16939_s28, 6144 }
 0x7a4   : > { %11875 = vmatmul.mubr.msk.f32.gmra.mxu1 %vm372_vm1, %v10136_v37  ;;  %11890 = vmatmul.mubr.msk.f32.gmra.mxu0 %vm479_vm0, %v10749_v54  ;;  %v10669_v54 = vadd.f32 %v10655_v20, %v10641_v7  ;;  %v10143_v20 = vld [vmem:[#allocation2 + $0x85] sm:$0xff]  ;;  %p13018_p11 = scmp.ne.s32.totalorder %s16939_s28, %s13017_s12  ;;  %p13025_p1 = scmp.lt.s32.totalorder %s13023_s0, %s13017_s12 }
 0x7a5   : > { %10285 = vmatprep.mubr.f32.mxu1 %v17353_v48  ;;  %10911 = vmatprep.mubr.f32.mxu0 %v17353_v48 }
 0x7a6   : > { %v10685_v43 = vadd.f32 %v10671_v57, %v10669_v54  ;;  %v10144_v54 = vld [vmem:[#allocation2 + $0x8d] sm:$0xff]  ;;  %p13019_p12 = pnand %p13018_p11, %p13179_p5  ;;  %p13026_p2 = por %p13025_p1, %p13024_p0 }
 0x7a8   : > { %11876 = vmatmul.mubr.msk.f32.gmra.mxu1 %vm372_vm1, %v10137_v56  ;;  %11891 = vmatmul.mubr.msk.f32.gmra.mxu0 %vm479_vm0, %v10750_v13  ;;  %v10670_v13 = vadd.f32 %v10656_v6, %v10642_v5  ;;  %v10141_v56 = vld [vmem:[#allocation2 + $0x75] sm:$0xff]  ;;  %v10713_v36 = vadd.f32 %v10699_v30, %v10685_v43  ;;  %p13020_p13 = pneg %p13019_p12 }
 0x7a9   : > { %10291 = vmatprep.mubr.f32.mxu1 %v17353_v48  ;;  %10917 = vmatprep.mubr.f32.mxu0 %v17353_v48 }
 0x7aa   : > { %v10686_v17 = vadd.f32 %v10672_v25, %v10670_v13  ;;  %v10741_v45 = vadd.f32 %v10727_v44, %v10713_v36  ;;  %p13027_p3 = pnand %p13026_p2, %p13020_p13 }
 0x7ab   : > { %v8914_v38 = vpop.f32.mrf.mxu1 }
 0x7ac   : > { %v9105_v46 = vpop.f32.mrf.mxu0  ;;  %11877 = vmatmul.mubr.msk.f32.gmra.mxu1 %vm372_vm1, %v10138_v60  ;;  %11892 = vmatmul.mubr.msk.f32.gmra.mxu0 %vm479_vm0, %v10751_v55  ;;  %v10142_v60 = vld [vmem:[#allocation2 + $0x7d] sm:$0xff]  ;;  %v10757_v23 = vadd.f32 %v10743_v35, %v10741_v45 }
 0x7ad   : > { %v16383_v2 = vadd.f32 %v9105_v46, %v8914_v38  ;;  %10297 = vmatprep.mubr.f32.mxu1 %v17353_v48  ;;  %10923 = vmatprep.mubr.f32.mxu0 %v17353_v48  ;;  %v8916_v22 = vpop.f32.mrf.mxu1  ;;  %v10714_v38 = vadd.f32 %v10700_v51, %v10686_v17 }
 0x7ae   : > { %v9107_v19 = vpop.f32.mrf.mxu0 }
 0x7af   : > { %v16391_v15 = vadd.f32 %v9107_v19, %v8916_v22 }
 0x7b0   : > { %v8920_v58 = vpop.f32.mrf.mxu1  ;;  %v9111_v50 = vpop.f32.mrf.mxu0  ;;  %11878 = vmatmul.mubr.msk.f32.gmra.mxu1 %vm372_vm1, %v10139_v39  ;;  %11893 = vmatmul.mubr.msk.f32.gmra.mxu0 %vm479_vm0, %v10752_v9  ;;  %v10742_v39 = vadd.f32 %v10728_v34, %v10714_v38 }
 0x7b1   : > { %v16398_v62 = vadd.f32 %v9111_v50, %v8920_v58  ;;  %10303 = vmatprep.mubr.f32.mxu1 %v17353_v48  ;;  %10929 = vmatprep.mubr.f32.mxu0 %v17353_v48 }
 0x7b2   : > { %v8922_v32 = vpop.f32.mrf.mxu1  ;;  %v9113_v3 = vpop.f32.mrf.mxu0  ;;  %v10758_v29 = vadd.f32 %v10744_v47, %v10742_v39 }
 0x7b3   : > { %v16405_v37 = vadd.f32 %v9113_v3, %v8922_v32  ;;  %v10145_v3 = vld [vmem:[#allocation2 + $0x95] sm:$0xff] }
 0x7b4   : > { %v8926_v24 = vpop.f32.mrf.mxu1  ;;  %v9117_v18 = vpop.f32.mrf.mxu0  ;;  %11879 = vmatmul.mubr.msk.f32.gmra.mxu1 %vm372_vm1, %v10140_v16  ;;  %11894 = vmatmul.mubr.msk.f32.gmra.mxu0 %vm479_vm0, %v10753_v4 }
 0x7b5   : > { %v16410_v52 = vadd.f32 %v9117_v18, %v8926_v24  ;;  %10309 = vmatprep.mubr.f32.mxu1 %v17353_v48  ;;  %10935 = vmatprep.mubr.f32.mxu0 %v17353_v48 }
 0x7b6   : > { %v8928_v14 = vpop.f32.mrf.mxu1  ;;  %v9119_v1 = vpop.f32.mrf.mxu0 }
 0x7b7   : > { %v16417_v55 = vadd.f32 %v9119_v1, %v8928_v14 }
 0x7b8   : > { %v8932_v41 = vpop.f32.mrf.mxu1  ;;  %v9123_v31 = vpop.f32.mrf.mxu0  ;;  %11880 = vmatmul.mubr.msk.f32.gmra.mxu1 %vm372_vm1, %v10141_v56  ;;  %11895 = vmatmul.mubr.msk.f32.gmra.mxu0 %vm479_vm0, %v10754_v33 }
 0x7b9   : > { %v16422_v11 = vadd.f32 %v9123_v31, %v8932_v41  ;;  %10315 = vmatprep.mubr.f32.mxu1 %v17353_v48  ;;  %10941 = vmatprep.mubr.f32.mxu0 %v17353_v48 }
 0x7ba   : > { %v8934_v40 = vpop.f32.mrf.mxu1  ;;  %v9125_v26 = vpop.f32.mrf.mxu0 }
 0x7bb   : > { %v16428_v61 = vadd.f32 %v9125_v26, %v8934_v40 }
 0x7bc   : > { %v8938_v9 = vpop.f32.mrf.mxu1  ;;  %v9129_v8 = vpop.f32.mrf.mxu0  ;;  %11881 = vmatmul.mubr.msk.f32.gmra.mxu1 %vm372_vm1, %v10142_v60  ;;  %11896 = vmatmul.mubr.msk.f32.gmra.mxu0 %vm479_vm0, %v10755_v59 }
 0x7bd   : > { %v16433_v46 = vadd.f32 %v9129_v8, %v8938_v9  ;;  %10321 = vmatprep.mubr.f32.mxu1 %v17353_v48  ;;  %10947 = vmatprep.mubr.f32.mxu0 %v17353_v48 }
 0x7be   : > { %v8940_v7 = vpop.f32.mrf.mxu1  ;;  %v9131_v27 = vpop.f32.mrf.mxu0 }
 0x7bf   : > { %v16439_v10 = vadd.f32 %v9131_v27, %v8940_v7 }
 0x7c0   : > { %v8944_v22 = vpop.f32.mrf.mxu1  ;;  %v9135_v19 = vpop.f32.mrf.mxu0  ;;  %11882 = vmatmul.mubr.msk.f32.gmra.mxu1 %vm372_vm1, %v10143_v20  ;;  %11897 = vmatmul.mubr.msk.f32.gmra.mxu0 %vm479_vm0, %v10756_v42 }
 0x7c1   : > { %v16443_v4 = vadd.f32 %v9135_v19, %v8944_v22  ;;  %10327 = vmatprep.mubr.f32.mxu1 %v17353_v48  ;;  %10953 = vmatprep.mubr.f32.mxu0 %v17353_v48 }
 0x7c2   : > { %v8946_v63 = vpop.f32.mrf.mxu1  ;;  %v9137_v58 = vpop.f32.mrf.mxu0 }
 0x7c3   : > { %v16448_v50 = vadd.f32 %v9137_v58, %v8946_v63 }
 0x7c4   : > { %v8950_v12 = vpop.f32.mrf.mxu1  ;;  %v9141_v5 = vpop.f32.mrf.mxu0  ;;  %11883 = vmatmul.mubr.msk.f32.gmra.mxu1 %vm372_vm1, %v10144_v54  ;;  %11898 = vmatmul.mubr.msk.f32.gmra.mxu0 %vm479_vm0, %v10757_v23 }
 0x7c5   : > { %v16452_v6 = vadd.f32 %v9141_v5, %v8950_v12  ;;  %10333 = vmatprep.mubr.f32.mxu1 %v17353_v48  ;;  %10959 = vmatprep.mubr.f32.mxu0 %v17353_v48 }
 0x7c6   : > { %v8952_v49 = vpop.f32.mrf.mxu1  ;;  %v9143_v57 = vpop.f32.mrf.mxu0 }
 0x7c7   : > { %v16456_v32 = vadd.f32 %v9143_v57, %v8952_v49 }
 0x7c8   : > { %v8956_v16 = vpop.f32.mrf.mxu1  ;;  %v9147_v33 = vpop.f32.mrf.mxu0  ;;  %11884 = vmatmul.mubr.msk.f32.gmra.mxu1 %vm372_vm1, %v10145_v3  ;;  %11899 = vmatmul.mubr.msk.f32.gmra.mxu0 %vm479_vm0, %v10758_v29 }
 0x7c9   : > { %v16460_v21 = vadd.f32 %v9147_v33, %v8956_v16 }
 0x7ca   : > { %v8958_v24 = vpop.f32.mrf.mxu1  ;;  %v9149_v18 = vpop.f32.mrf.mxu0 }
 0x7cb   : > { %v16462_v13 = vadd.f32 %v9149_v18, %v8958_v24 }
 0x7cc   : > { %v8962_v28 = vpop.f32.mrf.mxu1  ;;  %v9153_v43 = vpop.f32.mrf.mxu0 }
 0x7cd   : > { %v16464_v48 = vadd.f32 %v9153_v43, %v8962_v28 }
 0x7ce   : > { %v8964_v53 = vpop.f32.mrf.mxu1  ;;  %v9155_v30 = vpop.f32.mrf.mxu0 }
 0x7cf   : > { %v16466_v25 = vadd.f32 %v9155_v30, %v8964_v53 }
 0x7d0   : > { %v8968_v14 = vpop.f32.mrf.mxu1  ;;  %v9159_v1 = vpop.f32.mrf.mxu0 }
 0x7d1   : > { %v16468_v56 = vadd.f32 %v9159_v1, %v8968_v14 }
 0x7d2   : > { %v8970_v59 = vpop.f32.mrf.mxu1  ;;  %v9161_v41 = vpop.f32.mrf.mxu0 }
 0x7d3   : > { %v16470_v31 = vadd.f32 %v9161_v41, %v8970_v59 }
 0x7d4   : > { %v8974_v0 = vpop.f32.mrf.mxu1  ;;  %v9165_v36 = vpop.f32.mrf.mxu0 }
 0x7d5   : > { %v16472_v17 = vadd.f32 %v9165_v36, %v8974_v0 }
 0x7d6   : > { %v8976_v44 = vpop.f32.mrf.mxu1  ;;  %v9167_v51 = vpop.f32.mrf.mxu0 }
 0x7d7   : > { %v16474_v40 = vadd.f32 %v9167_v51, %v8976_v44 }
 0x7d8   : > { %v8980_v26 = vpop.f32.mrf.mxu1  ;;  %v9171_v60 = vpop.f32.mrf.mxu0 }
 0x7d9   : > { %v16476_v9 = vadd.f32 %v9171_v60, %v8980_v26 }
 0x7da   : > { %v8982_v8 = vpop.f32.mrf.mxu1  ;;  %v9173_v42 = vpop.f32.mrf.mxu0 }
 0x7db   : > { %v16478_v45 = vadd.f32 %v9173_v42, %v8982_v8 }
 0x7dc   : > { %v8986_v38 = vpop.f32.mrf.mxu1  ;;  %v9177_v35 = vpop.f32.mrf.mxu0 }
 0x7dd   : > { %v16480_v34 = vadd.f32 %v9177_v35, %v8986_v38 }
 0x7de   : > { %v8988_v7 = vpop.f32.mrf.mxu1  ;;  %v9179_v27 = vpop.f32.mrf.mxu0 }
 0x7df   : > { %v16482_v20 = vadd.f32 %v9179_v27, %v8988_v7 }
 0x7e0   : > { %v8992_v22 = vpop.f32.mrf.mxu1  ;;  %v9183_v19 = vpop.f32.mrf.mxu0 }
 0x7e1   : > { %v16484_v23 = vadd.f32 %v9183_v19, %v8992_v22 }
 0x7e2   : > { %v8994_v39 = vpop.f32.mrf.mxu1  ;;  %v9185_v47 = vpop.f32.mrf.mxu0 }
 0x7e3   : > { %v16486_v63 = vadd.f32 %v9185_v47, %v8994_v39 }
 0x7e4   : > { %v9313_v58 = vpop.f32.mrf.mxu1  ;;  %v9549_v54 = vpop.f32.mrf.mxu0 }
 0x7e5   : > { %v9396_v12 = vadd.f32 %v9313_v58, %v16383_v2 }
 0x7e6   : > { %v9315_v5 = vpop.f32.mrf.mxu1  ;;  %v9551_v29 = vpop.f32.mrf.mxu0 }
 0x7e7   : > { %v16489_v49 = vadd.f32 %v9549_v54, %v9396_v12  ;;  %v9397_v57 = vadd.f32 %v9315_v5, %v16391_v15 }
 0x7e8   : > { %v9319_v3 = vpop.f32.mrf.mxu1  ;;  %v9555_v16 = vpop.f32.mrf.mxu0 }
 0x7e9   : > { %v16492_v33 = vadd.f32 %v9551_v29, %v9397_v57  ;;  %v9398_v24 = vadd.f32 %v9319_v3, %v16398_v62 }
 0x7ea   : > { %v9321_v18 = vpop.f32.mrf.mxu1  ;;  %v9557_v28 = vpop.f32.mrf.mxu0 }
 0x7eb   : > { %v16495_v43 = vadd.f32 %v9555_v16, %v9398_v24  ;;  %v9399_v53 = vadd.f32 %v9321_v18, %v16405_v37 }
 0x7ec   : > { %v9325_v30 = vpop.f32.mrf.mxu1  ;;  %v9561_v2 = vpop.f32.mrf.mxu0 }
 0x7ed   : > { %v16498_v14 = vadd.f32 %v9557_v28, %v9399_v53  ;;  %v9400_v1 = vadd.f32 %v9325_v30, %v16410_v52 }
 0x7ee   : > { %v9327_v59 = vpop.f32.mrf.mxu1  ;;  %v9563_v15 = vpop.f32.mrf.mxu0 }
 0x7ef   : > { %v16501_v41 = vadd.f32 %v9561_v2, %v9400_v1  ;;  %v9401_v0 = vadd.f32 %v9327_v59, %v16417_v55 }
 0x7f0   : > { %v9331_v36 = vpop.f32.mrf.mxu1  ;;  %v9567_v62 = vpop.f32.mrf.mxu0 }
 0x7f1   : > { %v16504_v44 = vadd.f32 %v9563_v15, %v9401_v0  ;;  %v9402_v51 = vadd.f32 %v9331_v36, %v16422_v11 }
 0x7f2   : > { %v9333_v26 = vpop.f32.mrf.mxu1  ;;  %v9569_v37 = vpop.f32.mrf.mxu0 }
 0x7f3   : > { %v16507_v60 = vadd.f32 %v9567_v62, %v9402_v51  ;;  %v9403_v8 = vadd.f32 %v9333_v26, %v16428_v61 }
 0x7f4   : > { %v9337_v42 = vpop.f32.mrf.mxu1  ;;  %v9573_v52 = vpop.f32.mrf.mxu0 }
 0x7f5   : > { %v16510_v38 = vadd.f32 %v9569_v37, %v9403_v8  ;;  %v9404_v35 = vadd.f32 %v9337_v42, %v16433_v46 }
 0x7f6   : > { %v9339_v7 = vpop.f32.mrf.mxu1  ;;  %v9575_v55 = vpop.f32.mrf.mxu0 }
 0x7f7   : > { %v16513_v27 = vadd.f32 %v9573_v52, %v9404_v35  ;;  %v9405_v22 = vadd.f32 %v9339_v7, %v16439_v10 }
 0x7f8   : > { %v9343_v19 = vpop.f32.mrf.mxu1  ;;  %v9579_v11 = vpop.f32.mrf.mxu0 }
 0x7f9   : > { %v16516_v39 = vadd.f32 %v9575_v55, %v9405_v22  ;;  %v9406_v47 = vadd.f32 %v9343_v19, %v16443_v4 }
 0x7fa   : > { %v9345_v58 = vpop.f32.mrf.mxu1  ;;  %v9581_v61 = vpop.f32.mrf.mxu0 }
 0x7fb   : > { %v16519_v54 = vadd.f32 %v9579_v11, %v9406_v47  ;;  %v9407_v12 = vadd.f32 %v9345_v58, %v16448_v50 }
 0x7fc   : > { %v9349_v5 = vpop.f32.mrf.mxu1  ;;  %v9585_v46 = vpop.f32.mrf.mxu0 }
 0x7fd   : > { %v16522_v29 = vadd.f32 %v9581_v61, %v9407_v12  ;;  %v9408_v57 = vadd.f32 %v9349_v5, %v16452_v6 }
 0x7fe   : > { %v9351_v3 = vpop.f32.mrf.mxu1  ;;  %v9587_v10 = vpop.f32.mrf.mxu0 }
 0x7ff   : > { %v16525_v16 = vadd.f32 %v9585_v46, %v9408_v57  ;;  %v9409_v24 = vadd.f32 %v9351_v3, %v16456_v32 }
 0x800   : > { %v9355_v18 = vpop.f32.mrf.mxu1  ;;  %v9591_v4 = vpop.f32.mrf.mxu0 }
 0x801   : > { %v16528_v28 = vadd.f32 %v9587_v10, %v9409_v24  ;;  %v9410_v53 = vadd.f32 %v9355_v18, %v16460_v21 }
 0x802   : > { %v9357_v30 = vpop.f32.mrf.mxu1  ;;  %v9593_v50 = vpop.f32.mrf.mxu0 }
 0x803   : > { %v16531_v2 = vadd.f32 %v9591_v4, %v9410_v53  ;;  %v9411_v1 = vadd.f32 %v9357_v30, %v16462_v13 }
 0x804   : > { %v9361_v59 = vpop.f32.mrf.mxu1  ;;  %v9597_v6 = vpop.f32.mrf.mxu0 }
 0x805   : > { %v16534_v15 = vadd.f32 %v9593_v50, %v9411_v1  ;;  %v9412_v0 = vadd.f32 %v9361_v59, %v16464_v48 }
 0x806   : > { %v9363_v36 = vpop.f32.mrf.mxu1  ;;  %v9599_v32 = vpop.f32.mrf.mxu0 }
 0x807   : > { %v16537_v62 = vadd.f32 %v9597_v6, %v9412_v0  ;;  %v9413_v51 = vadd.f32 %v9363_v36, %v16466_v25 }
 0x808   : > { %v9367_v26 = vpop.f32.mrf.mxu1  ;;  %v9603_v21 = vpop.f32.mrf.mxu0 }
 0x809   : > { %v16540_v37 = vadd.f32 %v9599_v32, %v9413_v51  ;;  %v9414_v8 = vadd.f32 %v9367_v26, %v16468_v56 }
 0x80a   : > { %v9369_v42 = vpop.f32.mrf.mxu1  ;;  %v9605_v13 = vpop.f32.mrf.mxu0 }
 0x80b   : > { %17361 = vst [vmem:[#allocation77_spill] sm:$0xff] %v16540_v37  ;;  %v16543_v52 = vadd.f32 %v9603_v21, %v9414_v8  ;;  %v9415_v35 = vadd.f32 %v9369_v42, %v16470_v31 }
 0x80c   : > { %v9373_v7 = vpop.f32.mrf.mxu1  ;;  %v9609_v48 = vpop.f32.mrf.mxu0 }
 0x80d   : > { %17362 = vst [vmem:[#allocation78_spill] sm:$0xff] %v16543_v52  ;;  %v16546_v55 = vadd.f32 %v9605_v13, %v9415_v35  ;;  %v9416_v22 = vadd.f32 %v9373_v7, %v16472_v17 }
 0x80e   : > { %v9375_v19 = vpop.f32.mrf.mxu1  ;;  %v9611_v25 = vpop.f32.mrf.mxu0 }
 0x80f   : > { %17363 = vst [vmem:[#allocation79_spill] sm:$0xff] %v16546_v55  ;;  %v16549_v11 = vadd.f32 %v9609_v48, %v9416_v22  ;;  %v9417_v47 = vadd.f32 %v9375_v19, %v16474_v40 }
 0x810   : > { %v9379_v58 = vpop.f32.mrf.mxu1  ;;  %v9615_v56 = vpop.f32.mrf.mxu0 }
 0x811   : > { %17364 = vst [vmem:[#allocation29_spill] sm:$0xff] %v16549_v11  ;;  %v16552_v61 = vadd.f32 %v9611_v25, %v9417_v47  ;;  %v9418_v12 = vadd.f32 %v9379_v58, %v16476_v9 }
 0x812   : > { %v9381_v5 = vpop.f32.mrf.mxu1  ;;  %v9617_v31 = vpop.f32.mrf.mxu0 }
 0x813   : > { %17365 = vst [vmem:[#allocation52_spill] sm:$0xff] %v16552_v61  ;;  %v16555_v46 = vadd.f32 %v9615_v56, %v9418_v12  ;;  %v9419_v57 = vadd.f32 %v9381_v5, %v16478_v45 }
 0x814   : > { %v9385_v3 = vpop.f32.mrf.mxu1  ;;  %v9621_v17 = vpop.f32.mrf.mxu0 }
 0x815   : > { %17366 = vst [vmem:[#allocation31_spill] sm:$0xff] %v16555_v46  ;;  %v16558_v10 = vadd.f32 %v9617_v31, %v9419_v57  ;;  %v9420_v24 = vadd.f32 %v9385_v3, %v16480_v34 }
 0x816   : > { %v9387_v18 = vpop.f32.mrf.mxu1  ;;  %v9623_v40 = vpop.f32.mrf.mxu0 }
 0x817   : > { %17367 = vst [vmem:[#allocation60_spill] sm:$0xff] %v16558_v10  ;;  %v16561_v4 = vadd.f32 %v9621_v17, %v9420_v24  ;;  %v9421_v53 = vadd.f32 %v9387_v18, %v16482_v20 }
 0x818   : > { %v9391_v30 = vpop.f32.mrf.mxu1  ;;  %v9627_v9 = vpop.f32.mrf.mxu0 }
 0x819   : > { %17368 = vst [vmem:[#allocation33_spill] sm:$0xff] %v16561_v4  ;;  %v16564_v50 = vadd.f32 %v9623_v40, %v9421_v53  ;;  %v9422_v1 = vadd.f32 %v9391_v30, %v16484_v23 }
 0x81a   : > { %v9393_v59 = vpop.f32.mrf.mxu1  ;;  %v9629_v45 = vpop.f32.mrf.mxu0 }
 0x81b   : > { %17369 = vst [vmem:[#allocation27_spill] sm:$0xff] %v16564_v50  ;;  %v16567_v6 = vadd.f32 %v9627_v9, %v9422_v1  ;;  %v9423_v0 = vadd.f32 %v9393_v59, %v16486_v63 }
 0x81c   : > { %v9785_v36 = vpop.f32.mrf.mxu1  ;;  %v16570_v34 = vpop.f32.mrf.mxu0 }
 0x81d   : > { %17370 = vst [vmem:[#allocation30_spill] sm:$0xff] %v16567_v6  ;;  %v16572_v32 = vadd.f32 %v9629_v45, %v9423_v0 }
 0x81e   : > { %v9787_v51 = vpop.f32.mrf.mxu1  ;;  %v16574_v26 = vpop.f32.mrf.mxu0 }
 0x81f   : > { %17371 = vst [vmem:[#allocation53_spill] sm:$0xff] %v16572_v32 }
 0x820   : > { %v9791_v20 = vpop.f32.mrf.mxu1  ;;  %v16576_v21 = vpop.f32.mrf.mxu0 }
 0x822   : > { %v9793_v8 = vpop.f32.mrf.mxu1  ;;  %v16578_v42 = vpop.f32.mrf.mxu0 }
 0x823   : > { %v9871_v37 = vadd.f32 %v9793_v8, %v16498_v14 }
 0x824   : > { %v9797_v23 = vpop.f32.mrf.mxu1  ;;  %v16580_v13 = vpop.f32.mrf.mxu0 }
 0x826   : > { %v9799_v35 = vpop.f32.mrf.mxu1  ;;  %v16582_v7 = vpop.f32.mrf.mxu0 }
 0x828   : > { %v9803_v63 = vpop.f32.mrf.mxu1  ;;  %v16584_v48 = vpop.f32.mrf.mxu0 }
 0x82a   : > { %v9805_v22 = vpop.f32.mrf.mxu1  ;;  %v16586_v19 = vpop.f32.mrf.mxu0 }
 0x82c   : > { %v9809_v25 = vpop.f32.mrf.mxu1  ;;  %v16588_v47 = vpop.f32.mrf.mxu0 }
 0x82e   : > { %v9811_v58 = vpop.f32.mrf.mxu1  ;;  %v16590_v56 = vpop.f32.mrf.mxu0 }
 0x830   : > { %v9815_v12 = vpop.f32.mrf.mxu1  ;;  %v16592_v5 = vpop.f32.mrf.mxu0 }
 0x831   : > { %v9878_v8 = vadd.f32 %v9815_v12, %v16519_v54 }
 0x832   : > { %v9817_v31 = vpop.f32.mrf.mxu1  ;;  %v16594_v57 = vpop.f32.mrf.mxu0 }
 0x833   : > { %17372 = vst [vmem:[#allocation50_spill] sm:$0xff] %v16594_v57  ;;  %v17386_v57 = vld [vmem:[#allocation9_spill] sm:$0xff] }
 0x834   : > { %v9821_v3 = vpop.f32.mrf.mxu1  ;;  %v16596_v17 = vpop.f32.mrf.mxu0 }
 0x835   : > { %17373 = vst [vmem:[#allocation36_spill] sm:$0xff] %v16596_v17 }
 0x836   : > { %v9823_v24 = vpop.f32.mrf.mxu1  ;;  %v16598_v18 = vpop.f32.mrf.mxu0 }
 0x837   : > { %17374 = vst [vmem:[#allocation56_spill] sm:$0xff] %v16598_v18 }
 0x838   : > { %v9827_v40 = vpop.f32.mrf.mxu1  ;;  %v16600_v53 = vpop.f32.mrf.mxu0 }
 0x839   : > { %17375 = vst [vmem:[#allocation62_spill] sm:$0xff] %v16600_v53 }
 0x83a   : > { %v9829_v30 = vpop.f32.mrf.mxu1  ;;  %v16602_v9 = vpop.f32.mrf.mxu0 }
 0x83b   : > { %17376 = vst [vmem:[#allocation34_spill] sm:$0xff] %v16602_v9  ;;  %v9883_v54 = vadd.f32 %v9829_v30, %v16534_v15  ;;  %v17387_v15 = vld [vmem:[#allocation77_spill] sm:$0xff] }
 0x83c   : > { %v9833_v1 = vpop.f32.mrf.mxu1  ;;  %v16604_v59 = vpop.f32.mrf.mxu0 }
 0x83d   : > { %17377 = vst [vmem:[#allocation51_spill] sm:$0xff] %v16604_v59  ;;  %v11885_v59 = vld [vmem:[%s16992_s7 + $0x2] sm:$0x3] }
 0x83e   : > { %v9835_v45 = vpop.f32.mrf.mxu1  ;;  %v16606_v0 = vpop.f32.mrf.mxu0  ;;  %v16636_v52 = vrot.slane %v11885_v59, %v17386_v57 }
 0x83f   : > { %17378 = vst [vmem:[#allocation58_spill] sm:$0xff] %v16606_v0  ;;  %v9868_v0 = vadd.f32 %v9785_v36, %v16489_v49  ;;  %v9872_v49 = vadd.f32 %v9797_v23, %v16501_v41 }
 0x840   : > { %v9839_v32 = vpop.f32.mrf.mxu1  ;;  %v16608_v6 = vpop.f32.mrf.mxu0  ;;  %v17392_v12 = vld [vmem:[#allocation62_spill] sm:$0xff] }
 0x841   : > { %17379 = vst [vmem:[#allocation37_spill] sm:$0xff] %v16608_v6  ;;  %v10763_v6 = vld [vmem:[%s16994_s9] sm:$0x3]  ;;  %v10104_v14 = vadd.f32 %v16570_v34, %v9868_v0  ;;  %v16660_v34 = vadd.f32 %v16580_v13, %v9872_v49  ;;  %v17388_v13 = vld [vmem:[#allocation78_spill] sm:$0xff]  ;;  %v17398_v49 = vld [vmem:[#allocation60_spill] sm:$0xff] }
 0x842   : > { %v9841_v50 = vpop.f32.mrf.mxu1  ;;  %v16610_v4 = vpop.f32.mrf.mxu0 }
 0x843   : > { %17380 = vst [vmem:[#allocation80_spill] sm:$0xff] %v16610_v4  ;;  %v9869_v4 = vadd.f32 %v9787_v51, %v16492_v33  ;;  %v9873_v33 = vadd.f32 %v9799_v35, %v16504_v44  ;;  %v16644_v51 = vrot.slane %v10763_v6, %v17386_v57 }
 0x844   : > { %v9845_v10 = vpop.f32.mrf.mxu1  ;;  %v16612_v46 = vpop.f32.mrf.mxu0 }
 0x845   : > { %17381 = vst [vmem:[#allocation25_spill] sm:$0xff] %v16612_v46  ;;  %v9870_v46 = vadd.f32 %v9791_v20, %v16495_v43  ;;  %v9874_v20 = vadd.f32 %v9803_v63, %v16507_v60  ;;  %v10105_v41 = vadd.f32 %v16574_v26, %v9869_v4  ;;  %v9880_v60 = vadd.f32 %v9821_v3, %v16525_v16  ;;  %v17395_v3 = vld [vmem:[#allocation29_spill] sm:$0xff] }
 0x846   : > { %v9847_v61 = vpop.f32.mrf.mxu1  ;;  %v16614_v11 = vpop.f32.mrf.mxu0  ;;  %v16663_v4 = vadd.f32 %v16582_v7, %v9873_v33  ;;  %v9886_v7 = vadd.f32 %v9839_v32, %v17388_v13  ;;  %v17394_v32 = vld [vmem:[#allocation79_spill] sm:$0xff]  ;;  %v17404_v13 = vld [vmem:[#allocation30_spill] sm:$0xff] }
 0x847   : > { %17382 = vst [vmem:[#allocation28_spill] sm:$0xff] %v16614_v11  ;;  %v17385_v11 = vld [vmem:[#allocation8_spill] sm:$0xff]  ;;  %v10106_v44 = vadd.f32 %v16576_v21, %v9870_v46  ;;  %v9884_v21 = vadd.f32 %v9833_v1, %v16537_v62  ;;  %v17393_v62 = vld [vmem:[#allocation34_spill] sm:$0xff]  ;;  %v9887_v57 = vadd.f32 %v9841_v50, %v17394_v32 }
 0x848   : > { %v9851_v55 = vpop.f32.mrf.mxu1  ;;  %v16616_v9 = vpop.f32.mrf.mxu0  ;;  %v16630_v17 = vrot.slane %v11885_v59, %v17385_v11  ;;  %v9877_v59 = vadd.f32 %v9811_v58, %v16516_v39  ;;  %v10107_v39 = vadd.f32 %v16578_v42, %v9871_v37  ;;  %v16679_v37 = vadd.f32 %v16592_v5, %v9878_v8  ;;  %v17391_v58 = vld [vmem:[#allocation56_spill] sm:$0xff]  ;;  %v17401_v50 = vld [vmem:[#allocation37_spill] sm:$0xff] }
 0x849   : > { %17383 = vst [vmem:[#allocation64_spill] sm:$0xff] %v16616_v9  ;;  %v16633_v9 = vrot.slane %v10763_v6, %v17385_v11  ;;  %v9875_v11 = vadd.f32 %v9805_v22, %v16510_v38  ;;  %v9879_v6 = vadd.f32 %v9817_v31, %v16522_v29  ;;  %v9881_v38 = vadd.f32 %v9823_v24, %v16528_v28  ;;  %v17389_v22 = vld [vmem:[#allocation50_spill] sm:$0xff] }
 0x84a   : > { %v9853_v53 = vpop.f32.mrf.mxu1  ;;  %v16627_v18 = vpop.f32.mrf.mxu0  ;;  %v16667_v29 = vadd.f32 %v16584_v48, %v9874_v20  ;;  %v9885_v42 = vadd.f32 %v9835_v45, %v17387_v15  ;;  %v16701_v31 = vadd.f32 %v17393_v62, %v9883_v54  ;;  %v9888_v24 = vadd.f32 %v9845_v10, %v17395_v3  ;;  %v17397_v45 = vld [vmem:[#allocation31_spill] sm:$0xff]  ;;  %v17402_v10 = vld [vmem:[#allocation33_spill] sm:$0xff] }
 0x84b   : > { %17384 = vst [vmem:[#allocation39_spill] sm:$0xff] %v16627_v18  ;;  %v9876_v18 = vadd.f32 %v9809_v25, %v16513_v27  ;;  %v9882_v27 = vadd.f32 %v9827_v40, %v16531_v2  ;;  %v16670_v16 = vadd.f32 %v16586_v19, %v9875_v11  ;;  %v16676_v2 = vadd.f32 %v16590_v56, %v9877_v59  ;;  %v17390_v25 = vld [vmem:[#allocation36_spill] sm:$0xff]  ;;  %v17399_v59 = vld [vmem:[#allocation51_spill] sm:$0xff] }
 0x84c   : > { %v9857_v36 = vpop.f32.mrf.mxu1  ;;  %v16641_v43 = vpop.f32.mrf.mxu0  ;;  %v16689_v19 = vadd.f32 %v17389_v22, %v9879_v6  ;;  %v16695_v56 = vadd.f32 %v17391_v58, %v9881_v38  ;;  %v9890_v0 = vadd.f32 %v9851_v55, %v17397_v45  ;;  %v9891_v33 = vadd.f32 %v9853_v53, %v17398_v49  ;;  %v17400_v6 = vld [vmem:[#allocation58_spill] sm:$0xff]  ;;  %v17403_v15 = vld [vmem:[#allocation27_spill] sm:$0xff]  ;;  %v17406_v58 = vld [vmem:[#allocation25_spill] sm:$0xff] }
 0x84d   : > { %v16673_v28 = vadd.f32 %v16588_v47, %v9876_v18  ;;  %v16692_v47 = vadd.f32 %v17390_v25, %v9880_v60  ;;  %v16698_v5 = vadd.f32 %v17392_v12, %v9882_v27  ;;  %v17396_v18 = vld [vmem:[#allocation52_spill] sm:$0xff]  ;;  %v16710_v8 = vadd.f32 %v17399_v59, %v9884_v21 }
 0x84e   : > { %v9859_v23 = vpop.f32.mrf.mxu1  ;;  %v10095_v35 = vpop.f32.mrf.mxu0  ;;  %v9889_v40 = vadd.f32 %v9847_v61, %v17396_v18  ;;  %v16713_v60 = vadd.f32 %v17400_v6, %v9885_v42  ;;  %v16716_v38 = vadd.f32 %v17401_v50, %v9886_v7  ;;  %v9892_v61 = vadd.f32 %v9857_v36, %v17402_v10  ;;  %v17405_v25 = vld [vmem:[#allocation80_spill] sm:$0xff] }
 0x84f   : > { %v9893_v55 = vadd.f32 %v9859_v23, %v17403_v15  ;;  %v16723_v21 = vadd.f32 %v17405_v25, %v9887_v57  ;;  %v16726_v42 = vadd.f32 %v17406_v58, %v9888_v24  ;;  %v17407_v12 = vld [vmem:[#allocation28_spill] sm:$0xff] }
 0x850   : > { %v9863_v46 = vpop.f32.mrf.mxu1  ;;  %v10099_v26 = vpop.f32.mrf.mxu0  ;;  %v16729_v7 = vadd.f32 %v17407_v12, %v9889_v40  ;;  %v17408_v3 = vld [vmem:[#allocation64_spill] sm:$0xff] }
 0x851   : > { %v9894_v53 = vadd.f32 %v9863_v46, %v17404_v13  ;;  %v16732_v18 = vadd.f32 %v17408_v3, %v9890_v0 }
 0x852   : > { %v16684_v63 = vpop.f32.mrf.mxu1  ;;  %v16686_v48 = vpop.f32.mrf.mxu0  ;;  %v17409_v23 = vld [vmem:[#allocation39_spill] sm:$0xff] }
 0x853   : > { %v16735_v46 = vadd.f32 %v17409_v23, %v9891_v33  ;;  %v16745_v0 = vadd.f32 %v10099_v26, %v9894_v53 }
 0x854   : > { %v10257_v30 = vpop.f32.mrf.mxu1  ;;  %v10883_v1 = vpop.f32.mrf.mxu0 }
 0x855   : > { %v10340_v20 = vadd.f32 %v10257_v30, %v10104_v14  ;;  %v10884_v11 = vadd.f32 %v10883_v1, %v16633_v9  ;;  %v16740_v30 = vadd.f32 %v16641_v43, %v9892_v61 }
 0x856   : > { %v10259_v27 = vpop.f32.mrf.mxu1  ;;  %v10885_v54 = vpop.f32.mrf.mxu0 }
 0x857   : > { %v10381_v14 = vadd.f32 %v16630_v17, %v10340_v20  ;;  %v10341_v22 = vadd.f32 %v10259_v27, %v10105_v41  ;;  %v10966_v62 = vmax.f32 %v10884_v11, 0.0  ;;  %v10886_v57 = vadd.f32 %v10885_v54, %v16644_v51 }
 0x858   : > { %v10263_v36 = vpop.f32.mrf.mxu1  ;;  %v10889_v32 = vpop.f32.mrf.mxu0  ;;  %v16743_v20 = vadd.f32 %v10095_v35, %v9893_v55 }
 0x859   : > { %v10382_v41 = vadd.f32 %v16636_v52, %v10341_v22  ;;  %v10409_v24 = vmax.f32 %v10381_v14, 0.0  ;;  %v10342_v1 = vadd.f32 %v10263_v36, %v10106_v44  ;;  %v10890_v40 = vadd.f32 %v10889_v32, %v16633_v9 }
 0x85a   : > { %v10265_v45 = vpop.f32.mrf.mxu1  ;;  %v10891_v49 = vpop.f32.mrf.mxu0  ;;  %v10998_v59 = vrot.slane %v10966_v62, 3  ;;  %v10967_v27 = vmax.f32 %v10886_v57, 0.0 }
 0x85b   : > { %v10410_v11 = vmax.f32 %v10382_v41, 0.0  ;;  %v10343_v33 = vadd.f32 %v10265_v45, %v10107_v39  ;;  %v10383_v6 = vadd.f32 %v16630_v17, %v10342_v1  ;;  %v10968_v50 = vmax.f32 %v10890_v40, 0.0 }
 0x85c   : > { %v10892_v10 = vadd.f32 %v10891_v49, %v16644_v51  ;;  %v10269_v43 = vpop.f32.mrf.mxu1  ;;  %v10895_v61 = vpop.f32.mrf.mxu0  ;;  %v10441_v15 = vrot.slane %v10409_v24, 3 }
 0x85d   : > { %v10384_v44 = vadd.f32 %v16636_v52, %v10343_v33  ;;  %v10344_v54 = vadd.f32 %v10269_v43, %v16660_v34  ;;  %v10896_v35 = vadd.f32 %v10895_v61, %v16633_v9  ;;  %v10411_v26 = vmax.f32 %v10383_v6, 0.0 }
 0x85e   : > { %v10999_v55 = vrot.slane %v10968_v50, 3  ;;  %v10969_v13 = vmax.f32 %v10892_v10, 0.0  ;;  %v10271_v39 = vpop.f32.mrf.mxu1  ;;  %v10897_v53 = vpop.f32.mrf.mxu0  ;;  %v10444_v14 = vrot.slane %v10410_v11, 3  ;;  %v11001_v33 = vrot.slane %v10967_v27, 3 }
 0x85f   : > { %v10412_v22 = vmax.f32 %v10384_v44, 0.0  ;;  %v10385_v25 = vadd.f32 %v16630_v17, %v10344_v54  ;;  %v10345_v58 = vadd.f32 %v10271_v39, %v16663_v4  ;;  %v10442_v12 = vrot.slane %v10411_v26, 3 }
 0x860   : > { %v10970_v62 = vmax.f32 %v10896_v35, 0.0  ;;  %v10898_v36 = vadd.f32 %v10897_v53, %v16644_v51  ;;  %v10275_v34 = vpop.f32.mrf.mxu1  ;;  %v10901_v32 = vpop.f32.mrf.mxu0  ;;  %v11000_v3 = vsel %vm703_vm2, %v10998_v59, %v10999_v55  ;;  %v11002_v41 = vrot.slane %v10969_v13, 3 }
 0x861   : > { %v10445_v23 = vrot.slane %v10412_v22, 3  ;;  %v10413_v57 = vmax.f32 %v10385_v25, 0.0  ;;  %v10386_v24 = vadd.f32 %v16636_v52, %v10345_v58  ;;  %11004 = vrot.lane.b32.xlu0 %v11000_v3, %s17410_s18  ;;  %v10443_v1 = vsel %vm703_vm2, %v10441_v15, %v10442_v12 }
 0x862   : > { %v10971_v4 = vmax.f32 %v10898_v36, 0.0  ;;  %v10346_v40 = vadd.f32 %v10275_v34, %v16667_v29  ;;  %v10902_v45 = vadd.f32 %v10901_v32, %v16633_v9  ;;  %v10277_v49 = vpop.f32.mrf.mxu1  ;;  %v10903_v11 = vpop.f32.mrf.mxu0  ;;  %10449 = vst [vmem:[%s13458_s20 + $0x18] sm:$0xff] %v10443_v1  ;;  %v11017_v10 = vrot.slane %v10970_v62, 1 }
 0x863   : > { %v10446_v59 = vsel %vm703_vm2, %v10444_v14, %v10445_v23  ;;  %v10414_v6 = vmax.f32 %v10386_v24, 0.0  ;;  %v10347_v50 = vadd.f32 %v10277_v49, %v16670_v16  ;;  %v16768_v44 = vadd.f32 %v10903_v11, %v16644_v51 }
 0x864   : > { %10450 = vst.msk [vmem:[%s13458_s20 + $0x20] sm:$0xff] %vm713_vm3, %v10446_v59  ;;  %v10387_v43 = vadd.f32 %v16630_v17, %v10346_v40  ;;  %v10972_v61 = vmax.f32 %v10902_v45, 0.0  ;;  %v10281_v29 = vpop.f32.mrf.mxu1  ;;  %v10907_v54 = vpop.f32.mrf.mxu0  ;;  %v10455_v35 = vrot.slane %v10413_v57, 1  ;;  %v11003_v15 = vsel %vm703_vm2, %v11001_v33, %v11002_v41 }
 0x865   : > { %v10388_v27 = vadd.f32 %v16636_v52, %v10347_v50  ;;  %v10348_v26 = vadd.f32 %v10281_v29, %v16673_v28  ;;  %v10458_v55 = vrot.slane %v10414_v6, 1  ;;  %v11020_v16 = vrot.slane %v10971_v4, 1  ;;  %11006 = vrot.lane.b32.xlu1 %v11003_v15, %s17410_s18 }
 0x866   : > { %v10415_v13 = vmax.f32 %v10387_v43, 0.0  ;;  %v10973_v39 = vmax.f32 %v16768_v44, 0.0  ;;  %v10283_v53 = vpop.f32.mrf.mxu1  ;;  %v10909_v14 = vpop.f32.mrf.mxu0  ;;  %v10908_v58 = vadd.f32 %v10907_v54, %v16633_v9  ;;  %v11018_v28 = vrot.slane %v10972_v61, 1 }
 0x867   : > { %v10416_v22 = vmax.f32 %v10388_v27, 0.0  ;;  %v10389_v25 = vadd.f32 %v16630_v17, %v10348_v26  ;;  %v10349_v12 = vadd.f32 %v10283_v53, %v16676_v2  ;;  %v11034_v34 = vrot.slane %v10972_v61, 7 }
 0x868   : > { %v10456_v62 = vrot.slane %v10415_v13, 1  ;;  %v10467_v36 = vrot.slane %v10415_v13, 7  ;;  %v10287_v32 = vpop.f32.mrf.mxu1  ;;  %v10913_v3 = vpop.f32.mrf.mxu0  ;;  %v11021_v41 = vrot.slane %v10973_v39, 1  ;;  %v10974_v24 = vmax.f32 %v10908_v58, 0.0 }
 0x869   : > { %v10459_v23 = vrot.slane %v10416_v22, 1  ;;  %v10417_v57 = vmax.f32 %v10389_v25, 0.0  ;;  %v10390_v4 = vadd.f32 %v16636_v52, %v10349_v12  ;;  %v10910_v40 = vadd.f32 %v10909_v14, %v16644_v51  ;;  %v17411_v25 = vld [vmem:[#allocation53_spill] sm:$0xff] }
 0x86a   : > { %v10457_v1 = vsel %vm719_vm4, %v10455_v35, %v10456_v62  ;;  %v10350_v2 = vadd.f32 %v10287_v32, %v16679_v37  ;;  %v10289_v45 = vpop.f32.mrf.mxu1  ;;  %v10915_v49 = vpop.f32.mrf.mxu0  ;;  %v11035_v59 = vrot.slane %v10974_v24, 7  ;;  %v10914_v6 = vadd.f32 %v10913_v3, %v16633_v9 }
 0x86b   : > { %10463 = vst [vmem:[%s13458_s20 + $0x48] sm:$0xff] %v10457_v1  ;;  %v10460_v11 = vsel %vm719_vm4, %v10458_v55, %v10459_v23  ;;  %v10468_v33 = vrot.slane %v10417_v57, 7  ;;  %v10418_v50 = vmax.f32 %v10390_v4, 0.0  ;;  %v10975_v43 = vmax.f32 %v10910_v40, 0.0 }
 0x86c   : > { %10464 = vst.msk [vmem:[%s13458_s20 + $0x50] sm:$0xff] %vm713_vm3, %v10460_v11  ;;  %v10391_v61 = vadd.f32 %v16630_v17, %v10350_v2  ;;  %v11019_v44 = vsel %vm719_vm4, %v11017_v10, %v11018_v28  ;;  %v10293_v29 = vpop.f32.mrf.mxu1  ;;  %v10919_v37 = vpop.f32.mrf.mxu0  ;;  %v10976_v35 = vmax.f32 %v10914_v6, 0.0  ;;  %v10351_v27 = vadd.f32 %v10289_v45, %v16689_v19 }
 0x86d   : > { %v10469_v54 = vsel %vm732_vm5, %v10467_v36, %v10468_v33  ;;  %11023 = vrot.lane.b32.xlu0 %v11019_v44, %s17410_s18  ;;  %v10916_v15 = vadd.f32 %v10915_v49, %v16644_v51  ;;  %v10470_v26 = vrot.slane %v10416_v22, 7  ;;  %v10471_v55 = vrot.slane %v10418_v50, 7 }
 0x86e   : > { %10475 = vst [vmem:[%s13458_s20 + $0x78] sm:$0xff] %v10469_v54  ;;  %v11038_v13 = vrot.slane %v10975_v43, 7  ;;  %v11022_v53 = vsel %vm719_vm4, %v11020_v16, %v11021_v41  ;;  %v10295_v14 = vpop.f32.mrf.mxu1  ;;  %v10921_v10 = vpop.f32.mrf.mxu0  ;;  %v16797_v58 = vadd.f32 %v16684_v63, %v17411_v25  ;;  %v10419_v12 = vmax.f32 %v10391_v61, 0.0 }
 0x86f   : > { %v10392_v62 = vadd.f32 %v16636_v52, %v10351_v27  ;;  %11025 = vrot.lane.b32.xlu1 %v11022_v53, %s17410_s18  ;;  %v10352_v19 = vadd.f32 %v10293_v29, %v16692_v47  ;;  %v11037_v22 = vrot.slane %v10973_v39, 7  ;;  %v10472_v36 = vsel %vm732_vm5, %v10470_v26, %v10471_v55 }
 0x870   : > { %v10920_v28 = vadd.f32 %v10919_v37, %v16633_v9  ;;  %v11036_v16 = vsel %vm732_vm5, %v11034_v34, %v11035_v59  ;;  %v10299_v32 = vpop.f32.mrf.mxu1  ;;  %v10925_v3 = vpop.f32.mrf.mxu0  ;;  %10476 = vst.msk [vmem:[%s13458_s20 + $0x80] sm:$0xff] %vm713_vm3, %v10472_v36  ;;  %v11053_v63 = vrot.slane %v10976_v35, 5  ;;  %v10977_v23 = vmax.f32 %v10916_v15, 0.0 }
 0x871   : > { %v10393_v41 = vadd.f32 %v16630_v17, %v10352_v19  ;;  %11040 = vrot.lane.b32.xlu0 %v11036_v16, %s17410_s18  ;;  %v10353_v57 = vadd.f32 %v10295_v14, %v16695_v56  ;;  %v10922_v39 = vadd.f32 %v10921_v10, %v16644_v51  ;;  %v11039_v24 = vsel %vm732_vm5, %v11037_v22, %v11038_v13 }
 0x872   : > { %v10978_v47 = vmax.f32 %v10920_v28, 0.0  ;;  %v10354_v1 = vadd.f32 %v10299_v32, %v16698_v5  ;;  %v10301_v34 = vpop.f32.mrf.mxu1  ;;  %v10927_v4 = vpop.f32.mrf.mxu0  ;;  %v10481_v40 = vrot.slane %v10419_v12, 5  ;;  %v10420_v2 = vmax.f32 %v10392_v62, 0.0 }
 0x873   : > { %v10421_v45 = vmax.f32 %v10393_v41, 0.0  ;;  %v10394_v49 = vadd.f32 %v16636_v52, %v10353_v57  ;;  %11042 = vrot.lane.b32.xlu1 %v11039_v24, %s17410_s18  ;;  %v10979_v11 = vmax.f32 %v10922_v39, 0.0  ;;  %v10926_v56 = vadd.f32 %v10925_v3, %v16633_v9 }
 0x874   : > { %v10395_v33 = vadd.f32 %v16630_v17, %v10354_v1  ;;  %v10355_v59 = vadd.f32 %v10301_v34, %v16701_v31  ;;  %v10305_v6 = vpop.f32.mrf.mxu1  ;;  %v10931_v50 = vpop.f32.mrf.mxu0  ;;  %v11054_v43 = vrot.slane %v10978_v47, 5  ;;  %v10928_v44 = vadd.f32 %v10927_v4, %v16644_v51 }
 0x875   : > { %v10482_v5 = vrot.slane %v10421_v45, 5  ;;  %v10422_v61 = vmax.f32 %v10394_v49, 0.0  ;;  %v11056_v29 = vrot.slane %v10977_v23, 5  ;;  %v10356_v35 = vadd.f32 %v10305_v6, %v16710_v8 }
 0x876   : > { %v10423_v37 = vmax.f32 %v10395_v33, 0.0  ;;  %v10396_v54 = vadd.f32 %v16636_v52, %v10355_v59  ;;  %v10307_v27 = vpop.f32.mrf.mxu1  ;;  %v10933_v15 = vpop.f32.mrf.mxu0  ;;  %v10484_v26 = vrot.slane %v10420_v2, 5  ;;  %v11057_v13 = vrot.slane %v10979_v11, 5 }
 0x877   : > { %v10483_v31 = vsel %vm747_vm6, %v10481_v40, %v10482_v5  ;;  %v10485_v55 = vrot.slane %v10422_v61, 5  ;;  %v10980_v53 = vmax.f32 %v10926_v56, 0.0  ;;  %v10981_v14 = vmax.f32 %v10928_v44, 0.0 }
 0x878   : > { %10489 = vst [vmem:[%s13458_s20 + $0xa8] sm:$0xff] %v10483_v31  ;;  %v10397_v10 = vadd.f32 %v16630_v17, %v10356_v35  ;;  %v10932_v25 = vadd.f32 %v10931_v50, %v16633_v9  ;;  %v10311_v12 = vpop.f32.mrf.mxu1  ;;  %v10937_v62 = vpop.f32.mrf.mxu0  ;;  %v10495_v8 = vrot.slane %v10423_v37, 3  ;;  %v11055_v22 = vsel %vm747_vm6, %v11053_v63, %v11054_v43 }
 0x879   : > { %v10486_v19 = vsel %vm747_vm6, %v10484_v26, %v10485_v55  ;;  %v10357_v36 = vadd.f32 %v10307_v27, %v16713_v60  ;;  %v10424_v28 = vmax.f32 %v10396_v54, 0.0  ;;  %11059 = vrot.lane.b32.xlu0 %v11055_v22, %s17410_s18  ;;  %v10934_v3 = vadd.f32 %v10933_v15, %v16644_v51 }
 0x87a   : > { %10490 = vst.msk [vmem:[%s13458_s20 + $0xb0] sm:$0xff] %vm713_vm3, %v10486_v19  ;;  %v10425_v16 = vmax.f32 %v10397_v10, 0.0  ;;  %v10982_v32 = vmax.f32 %v10932_v25, 0.0  ;;  %v10313_v23 = vpop.f32.mrf.mxu1  ;;  %v10939_v41 = vpop.f32.mrf.mxu0  ;;  %v11058_v47 = vsel %vm747_vm6, %v11056_v29, %v11057_v13  ;;  %v10358_v39 = vadd.f32 %v10311_v12, %v16716_v38 }
 0x87b   : > { %v10398_v57 = vadd.f32 %v16636_v52, %v10357_v36  ;;  %v10938_v63 = vadd.f32 %v10937_v62, %v16633_v9  ;;  %v10983_v1 = vmax.f32 %v10934_v3, 0.0  ;;  %11061 = vrot.lane.b32.xlu1 %v11058_v47, %s17410_s18  ;;  %v10359_v34 = vadd.f32 %v10313_v23, %v16723_v21 }
 0x87c   : > { %v10496_v60 = vrot.slane %v10425_v16, 3  ;;  %v11073_v24 = vrot.slane %v10982_v32, 3  ;;  %v10317_v4 = vpop.f32.mrf.mxu1  ;;  %v10943_v40 = vpop.f32.mrf.mxu0  ;;  %v10399_v45 = vadd.f32 %v16630_v17, %v10358_v39  ;;  %v10940_v11 = vadd.f32 %v10939_v41, %v16644_v51 }
 0x87d   : > { %v10426_v2 = vmax.f32 %v10398_v57, 0.0  ;;  %v10984_v49 = vmax.f32 %v10938_v63, 0.0  ;;  %v11072_v33 = vrot.slane %v10980_v53, 3  ;;  %v10400_v56 = vadd.f32 %v16636_v52, %v10359_v34 }
 0x87e   : > { %v10497_v38 = vsel %vm703_vm2, %v10495_v8, %v10496_v60  ;;  %v10360_v59 = vadd.f32 %v10317_v4, %v16726_v42  ;;  %v10319_v6 = vpop.f32.mrf.mxu1  ;;  %v10945_v50 = vpop.f32.mrf.mxu0  ;;  %v10498_v5 = vrot.slane %v10424_v28, 3  ;;  %v11076_v43 = vrot.slane %v10983_v1, 3 }
 0x87f   : > { %10503 = vst [vmem:[%s13458_s20 + $0xd8] sm:$0xff] %v10497_v38  ;;  %v10499_v21 = vrot.slane %v10426_v2, 3  ;;  %v10427_v61 = vmax.f32 %v10399_v45, 0.0  ;;  %v10985_v44 = vmax.f32 %v10940_v11, 0.0  ;;  %v10944_v37 = vadd.f32 %v10943_v40, %v16633_v9 }
 0x880   : > { %v10401_v29 = vadd.f32 %v16630_v17, %v10360_v59  ;;  %v11074_v54 = vsel %vm703_vm2, %v11072_v33, %v11073_v24  ;;  %v10323_v35 = vpop.f32.mrf.mxu1  ;;  %v10949_v27 = vpop.f32.mrf.mxu0  ;;  %v11075_v15 = vrot.slane %v10981_v14, 3  ;;  %v11091_v26 = vrot.slane %v10984_v49, 1 }
 0x881   : > { %v10500_v42 = vsel %vm703_vm2, %v10498_v5, %v10499_v21  ;;  %11078 = vrot.lane.b32.xlu0 %v11074_v54, %s17410_s18  ;;  %v10361_v31 = vadd.f32 %v10319_v6, %v16729_v7  ;;  %v10428_v55 = vmax.f32 %v10400_v56, 0.0  ;;  %v10986_v53 = vmax.f32 %v10944_v37, 0.0 }
 0x882   : > { %10504 = vst.msk [vmem:[%s13458_s20 + $0xe0] sm:$0xff] %vm713_vm3, %v10500_v42  ;;  %v10429_v13 = vmax.f32 %v10401_v29, 0.0  ;;  %v10946_v10 = vadd.f32 %v10945_v50, %v16644_v51  ;;  %v10325_v25 = vpop.f32.mrf.mxu1  ;;  %v10951_v12 = vpop.f32.mrf.mxu0  ;;  %v11077_v14 = vsel %vm703_vm2, %v11075_v15, %v11076_v43  ;;  %v10362_v19 = vadd.f32 %v10323_v35, %v16732_v18 }
 0x883   : > { %v10402_v62 = vadd.f32 %v16636_v52, %v10361_v31  ;;  %v10950_v8 = vadd.f32 %v10949_v27, %v16633_v9  ;;  %v10509_v22 = vrot.slane %v10427_v61, 1  ;;  %v11094_v36 = vrot.slane %v10985_v44, 1  ;;  %11080 = vrot.lane.b32.xlu1 %v11077_v14, %s17410_s18 }
 0x884   : > { %v10510_v7 = vrot.slane %v10429_v13, 1  ;;  %v11092_v28 = vrot.slane %v10986_v53, 1  ;;  %v10329_v16 = vpop.f32.mrf.mxu1  ;;  %v10955_v32 = vpop.f32.mrf.mxu0  ;;  %v10987_v23 = vmax.f32 %v10946_v10, 0.0  ;;  %v10403_v41 = vadd.f32 %v16630_v17, %v10362_v19 }
 0x885   : > { %v10430_v3 = vmax.f32 %v10402_v62, 0.0  ;;  %v10988_v57 = vmax.f32 %v10950_v8, 0.0  ;;  %v10363_v18 = vadd.f32 %v10325_v25, %v16735_v46  ;;  %v10952_v39 = vadd.f32 %v10951_v12, %v16644_v51 }
 0x886   : > { %v10511_v47 = vsel %vm719_vm4, %v10509_v22, %v10510_v7  ;;  %v10364_v63 = vadd.f32 %v10329_v16, %v16740_v30  ;;  %v10331_v60 = vpop.f32.mrf.mxu1  ;;  %v10957_v24 = vpop.f32.mrf.mxu0  ;;  %v10512_v1 = vrot.slane %v10428_v55, 1  ;;  %v10521_v34 = vrot.slane %v10429_v13, 7 }
 0x887   : > { %10517 = vst [vmem:[%s13458_s20 + $0x108] sm:$0xff] %v10511_v47  ;;  %v10513_v4 = vrot.slane %v10430_v3, 1  ;;  %v11095_v40 = vrot.slane %v10987_v23, 1  ;;  %v11108_v2 = vrot.slane %v10986_v53, 7  ;;  %v10431_v45 = vmax.f32 %v10403_v41, 0.0 }
 0x888   : > { %v10404_v49 = vadd.f32 %v16636_v52, %v10363_v18  ;;  %v10989_v11 = vmax.f32 %v10952_v39, 0.0  ;;  %v10335_v33 = vpop.f32.mrf.mxu1  ;;  %v10961_v38 = vpop.f32.mrf.mxu0  ;;  %v11109_v56 = vrot.slane %v10988_v57, 7  ;;  %v10956_v30 = vadd.f32 %v10955_v32, %v16633_v9 }
 0x889   : > { %v10514_v46 = vsel %vm719_vm4, %v10512_v1, %v10513_v4  ;;  %v11093_v59 = vsel %vm719_vm4, %v11091_v26, %v11092_v28  ;;  %v10522_v6 = vrot.slane %v10431_v45, 7  ;;  %v10405_v5 = vadd.f32 %v16630_v17, %v10364_v63 }
 0x88a   : > { %10518 = vst.msk [vmem:[%s13458_s20 + $0x110] sm:$0xff] %vm713_vm3, %v10514_v46  ;;  %v10432_v50 = vmax.f32 %v10404_v49, 0.0  ;;  %11097 = vrot.lane.b32.xlu0 %v11093_v59, %s17410_s18  ;;  %v10365_v21 = vadd.f32 %v10331_v60, %v16743_v20  ;;  %v10524_v43 = vrot.slane %v10430_v3, 7  ;;  %v11112_v61 = vrot.slane %v10989_v11, 7  ;;  %v10337_v15 = vpop.f32.mrf.mxu1  ;;  %v10963_v42 = vpop.f32.mrf.mxu0 }
 0x88b   : > { %v10958_v44 = vadd.f32 %v10957_v24, %v16644_v51  ;;  %v11096_v29 = vsel %vm719_vm4, %v11094_v36, %v11095_v40  ;;  %v10523_v37 = vsel %vm732_vm5, %v10521_v34, %v10522_v6  ;;  %v10990_v35 = vmax.f32 %v10956_v30, 0.0 }
 0x88c   : > { %v10525_v54 = vrot.slane %v10432_v50, 7  ;;  %11099 = vrot.lane.b32.xlu1 %v11096_v29, %s17410_s18  ;;  %v10366_v27 = vadd.f32 %v10335_v33, %v16745_v0  ;;  %v10131_v20 = vadd.f32 %v16686_v48, %v16797_v58  ;;  %v11111_v26 = vrot.slane %v10987_v23, 7  ;;  %10529 = vst [vmem:[%s13458_s20 + $0x138] sm:$0xff] %v10523_v37 }
 0x88d   : > { %v10406_v31 = vadd.f32 %v16636_v52, %v10365_v21  ;;  %v10962_v55 = vadd.f32 %v10961_v38, %v16633_v9  ;;  %v10433_v53 = vmax.f32 %v10405_v5, 0.0  ;;  %v11110_v25 = vsel %vm732_vm5, %v11108_v2, %v11109_v56 }
 0x88e   : > { %v10526_v13 = vsel %vm732_vm5, %v10524_v43, %v10525_v54  ;;  %v10407_v10 = vadd.f32 %v16630_v17, %v10366_v27  ;;  %v10991_v0 = vmax.f32 %v10958_v44, 0.0  ;;  %11114 = vrot.lane.b32.xlu0 %v11110_v25, %s17410_s18  ;;  %v10367_v48 = vadd.f32 %v10337_v15, %v10131_v20 }
 0x88f   : > { %10530 = vst.msk [vmem:[%s13458_s20 + $0x140] sm:$0xff] %vm713_vm3, %v10526_v13  ;;  %v10992_v12 = vmax.f32 %v10962_v55, 0.0  ;;  %v10964_v58 = vadd.f32 %v10963_v42, %v16644_v51  ;;  %v11127_v62 = vrot.slane %v10990_v35, 5  ;;  %v11113_v9 = vsel %vm732_vm5, %v11111_v26, %v11112_v61 }
 0x890   : > { %v10435_v14 = vmax.f32 %v10407_v10, 0.0  ;;  %v10434_v19 = vmax.f32 %v10406_v31, 0.0  ;;  %v10408_v17 = vadd.f32 %v16636_v52, %v10367_v48  ;;  %11116 = vrot.lane.b32.xlu1 %v11113_v9, %s17410_s18  ;;  %v10535_v36 = vrot.slane %v10433_v53, 5 }
 0x891   : > { %v11128_v8 = vrot.slane %v10992_v12, 5  ;;  %v10993_v22 = vmax.f32 %v10964_v58, 0.0  ;;  %v11130_v28 = vrot.slane %v10991_v0, 5 }
 0x892   : > { %v10536_v7 = vrot.slane %v10435_v14, 5  ;;  %v10436_v16 = vmax.f32 %v10408_v17, 0.0  ;;  %v10538_v23 = vrot.slane %v10434_v19, 5 }
 0x893   : > { %v11131_v51 = vrot.slane %v10993_v22, 5  ;;  %v11129_v32 = vsel %vm747_vm6, %v11127_v62, %v11128_v8 }
 0x894   : > { %v10537_v3 = vsel %vm747_vm6, %v10535_v36, %v10536_v7  ;;  %11133 = vrot.lane.b32.xlu0 %v11129_v32, %s17410_s18  ;;  %v10539_v52 = vrot.slane %v10436_v16, 5 }
 0x895   : > { %10543 = vst [vmem:[%s13458_s20 + $0x168] sm:$0xff] %v10537_v3  ;;  %v11132_v41 = vsel %vm747_vm6, %v11130_v28, %v11131_v51 }
 0x896   : > { %11135 = vrot.lane.b32.xlu1 %v11132_v41, %s17410_s18  ;;  %v10540_v57 = vsel %vm747_vm6, %v10538_v23, %v10539_v52 }
 0x897   : > { %10544 = vst.msk [vmem:[%s13458_s20 + $0x170] sm:$0xff] %vm713_vm3, %v10540_v57 }
 0x8d3   : > { %v11005_v47 = vpop.permute.xlu0 %11004 }
 0x8d4   : > { %11011 = vst.msk [vmem:[%s13458_s20 + $0x20] sm:$0xff] %vm4185_vm8, %v11005_v47 }
 0x8d7   : > { %v11007_v18 = vpop.permute.xlu1 %11006 }
 0x8d8   : > { %v11008_v39 = vsel %vm713_vm3, %v11005_v47, %v11007_v18 }
 0x8d9   : > { %11012 = vst [vmem:[%s13458_s20 + $0x28] sm:$0xff] %v11008_v39 }
 0x8df   : > { %v11024_v63 = vpop.permute.xlu0 %11023 }
 0x8e0   : > { %11030 = vst.msk [vmem:[%s13458_s20 + $0x50] sm:$0xff] %vm4185_vm8, %v11024_v63 }
 0x8e1   : > { %v11026_v60 = vpop.permute.xlu1 %11025 }
 0x8e2   : > { %v11027_v24 = vsel %vm713_vm3, %v11024_v63, %v11026_v60 }
 0x8e3   : > { %11031 = vst [vmem:[%s13458_s20 + $0x58] sm:$0xff] %v11027_v24  ;;  %v11041_v1 = vpop.permute.xlu0 %11040 }
 0x8e4   : > { %11047 = vst.msk [vmem:[%s13458_s20 + $0x80] sm:$0xff] %vm4185_vm8, %v11041_v1 }
 0x8e5   : > { %v11043_v34 = vpop.permute.xlu1 %11042 }
 0x8e6   : > { %v11044_v4 = vsel %vm713_vm3, %v11041_v1, %v11043_v34 }
 0x8e7   : > { %11048 = vst [vmem:[%s13458_s20 + $0x88] sm:$0xff] %v11044_v4 }
 0x8eb   : > { %v11060_v40 = vpop.permute.xlu0 %11059 }
 0x8ec   : > { %11066 = vst.msk [vmem:[%s13458_s20 + $0xb0] sm:$0xff] %vm4185_vm8, %v11060_v40 }
 0x8ed   : > { %v11062_v2 = vpop.permute.xlu1 %11061 }
 0x8ee   : > { %v11063_v45 = vsel %vm713_vm3, %v11060_v40, %v11062_v2 }
 0x8ef   : > { %11067 = vst [vmem:[%s13458_s20 + $0xb8] sm:$0xff] %v11063_v45 }
 0x8f3   : > { %v11079_v49 = vpop.permute.xlu0 %11078 }
 0x8f4   : > { %11085 = vst.msk [vmem:[%s13458_s20 + $0xe0] sm:$0xff] %vm4185_vm8, %v11079_v49 }
 0x8f5   : > { %v11081_v11 = vpop.permute.xlu1 %11080 }
 0x8f6   : > { %v11082_v33 = vsel %vm713_vm3, %v11079_v49, %v11081_v11 }
 0x8f7   : > { %11086 = vst [vmem:[%s13458_s20 + $0xe8] sm:$0xff] %v11082_v33 }
 0x8fc   : > { %v11098_v38 = vpop.permute.xlu0 %11097 }
 0x8fd   : > { %11104 = vst.msk [vmem:[%s13458_s20 + $0x110] sm:$0xff] %vm4185_vm8, %v11098_v38 }
 0x8fe   : > { %v11100_v46 = vpop.permute.xlu1 %11099 }
 0x8ff   : > { %v11101_v56 = vsel %vm713_vm3, %v11098_v38, %v11100_v46 }
 0x900   : > { %11105 = vst [vmem:[%s13458_s20 + $0x118] sm:$0xff] %v11101_v56  ;;  %v11115_v30 = vpop.permute.xlu0 %11114 }
 0x901   : > { %11121 = vst.msk [vmem:[%s13458_s20 + $0x140] sm:$0xff] %vm4185_vm8, %v11115_v30 }
 0x902   : > { %v11117_v59 = vpop.permute.xlu1 %11116 }
 0x903   : > { %v11118_v6 = vsel %vm713_vm3, %v11115_v30, %v11117_v59 }
 0x904   : > { %11122 = vst [vmem:[%s13458_s20 + $0x148] sm:$0xff] %v11118_v6 }
 0x906   : > { %v11134_v50 = vpop.permute.xlu0 %11133 }
 0x907   : > { %11140 = vst.msk [vmem:[%s13458_s20 + $0x170] sm:$0xff] %vm4185_vm8, %v11134_v50 }
 0x908   : > { %v11136_v5 = vpop.permute.xlu1 %11135 }
 0x909   : > { %v11137_v21 = vsel %vm713_vm3, %v11134_v50, %v11136_v5 }
 0x90a   : > { %11141 = vst [vmem:[%s13458_s20 + $0x178] sm:$0xff] %v11137_v21 }
 0x90b   : > { %13030 = shalt.err (!%p13027_p3)
}
 0x90c   : > { %s13031_s20 = scalar_lea.hbm %s16937_s30, 6144  ;;  %s13035_s26 = scalar_lea.hbm %s16995_s10, 12288 }
 0x90d   : > { %p13032_p4 = scmp.ne.s32.totalorder %s16937_s30, %s13031_s20  ;;  %p13036_p9 = scmp.lt.s32.totalorder %s16937_s30, %s16995_s10 }
 0x90e   : > { %p13037_p10 = scmp.lt.s32.totalorder %s13035_s26, %s13031_s20 }
 0x90f   : > { %p13033_p7 = pnand %p13032_p4, %p13179_p5 }
 0x910   : > { %p13038_p11 = por %p13037_p10, %p13036_p9 }
 0x911   : > { %p13034_p8 = pneg %p13033_p7 }
 0x913   : > { %p13039_p12 = pnand %p13038_p11, %p13034_p8 }
 0x915   : > { %13042 = shalt.err (!%p13039_p12)
}
 0x916   : > { %s13084_s12 = smov 768   ;;  %s13085_s21 = smov 48  }
 0x917   : > { %12970 = dma.vmem_to_hbm [thread:$0]  (%p13179_p5), %s16939_s28, 6144, %s16937_s30, %s16945_s11, %s13084_s12, %s13084_s12, %s13085_s21  }
 0x918 PF: > { %p12976_p13 = scmp.ge.s32.totalorder %s13077_s16, 2  ;;  %s11171_s25 = sand.u32 1, %s13065_s13  }
 0x919   : > { %s11172_s0 = scalar_lea.sflag [#allocation6], %s11171_s25 }
 0x91a   : > { %p12973_p0 = pnand %p12976_p13, %p13183_p6 }
 0x91c   : > { %p12974_p1 = pneg %p12973_p0 }
 0x91e   : > { %13060 = dma.done.wait (%p12974_p1), %s11172_s0, 6144  }
 0x91f   : > { %13062 = vsyncadd (%p12974_p1), %s11172_s0, 4294961152  ;;  %p20_p2 = scmp.ge.s32.totalorder %s13166_s19, 4   ;;  %s17413_s13 = smov %s13069_s14 }
 0x920   : > { %s17414_s14 = smov %s13073_s15  ;;  %s17415_s15 = smov %s13177_s22 }
 0x921   : > { %s17416_s16 = smov %s13166_s19  ;;  %22 = sbr.rel (!%p20_p2) target bundleno = 5 (0x5), region = 139 }
 0x926   :  { %11177 = vsyncpa [#allocation6], 1 }
 0x927   :  { %11179 = vsyncpa [#allocation6 + $0x1], 1 }

</bundles_post_ra>
